<compile_context>
chip_gen: v7x
topology: tpu7x:2x2x1
jax: 0.10.0
libtpu: 0.0.40
codegen_flags: <defaults>
</compile_context>

<pallas_src>
import functools

import jax
import jax.numpy as jnp
from jax import lax
from jax.experimental import pallas as pl
from jax.experimental.pallas import tpu as pltpu

H = 256            # LSTM hidden size (nn.LSTM hidden_size=256)
IN = 512           # LSTM input size (2 x embedding_dim 256)
OUT = 2            # fc output features
OUT_PAD = 128      # fc output padded to one full lane width inside the kernel


def _sigmoid(x):
    # tanh-form sigmoid: transcendental goes to the EUP slot, no VPU divide.
    return 0.5 * (jnp.tanh(0.5 * x) + 1.0)


def lstm_fc_kernel(xi_ref, xc_ref, wii_ref, wic_ref, whh_ref, b_ref,
                   wfc_ref, bfc_ref, out_ref, xw_ref, hseq_ref, *, T):
    """Single-batch-column LSTM recurrence + fc + sigmoid.

    xi_ref:  (T, 256)   bf16  image-embedding rows (last batch column only)
    xc_ref:  (T, 256)   bf16  cell-embedding rows
    wii_ref: (256, 4H)  bf16  W_ih^T rows 0:256  (multiplies image emb), gate-prescaled
    wic_ref: (256, 4H)  bf16  W_ih^T rows 256:512 (multiplies cell emb), gate-prescaled
    whh_ref: (256, 4H)  bf16  W_hh^T, gate-prescaled
    b_ref:   (1, 4H)    f32   b_ih + b_hh, gate-prescaled
    wfc_ref: (256, 128) bf16  fc weight^T, zero-padded to 128 lanes
    bfc_ref: (1, 128)   f32   fc bias, zero-padded
    out_ref: (T, 128)   f32   sigmoid(fc(h_t)); lanes [0:2] valid
    scratch: xw_ref (T, 4H) f32, hseq_ref (T, H) f32

    Gate columns are packed [i | f | g | o]; the i/f/o columns of every weight
    and the bias are pre-scaled by 0.5, so one tanh over the whole gates row
    yields all four nonlinearities (sigmoid(x) = 0.5*tanh(0.5*x) + 0.5).
    """
    # Hoisted input projection + bias: two MXU calls entirely outside the
    # serial h->h dependency chain (also removes the per-step bias broadcast).
    xw_ref[...] = (jnp.dot(xi_ref[...], wii_ref[...],
                           preferred_element_type=jnp.float32)
                   + jnp.dot(xc_ref[...], wic_ref[...],
                             preferred_element_type=jnp.float32)
                   + b_ref[...])

    h_bf = jnp.zeros((1, H), jnp.bfloat16)
    c = jnp.zeros((1, H), jnp.float32)

    # T is a small static constant -> fully unroll at trace time: every slice
    # is static and lane-aligned, and the LLO scheduler sees across steps.
    for t in range(T):
        gates = xw_ref[t:t + 1, :] + jnp.dot(h_bf, whh_ref[...],
                                             preferred_element_type=jnp.float32)
        tg = jnp.tanh(gates)                           # one EUP pass, all 4 gates
        i_g = 0.5 * tg[:, 0 * H:1 * H] + 0.5           # sigmoid(i)
        f_g = 0.5 * tg[:, 1 * H:2 * H] + 0.5           # sigmoid(f)
        g_g = tg[:, 2 * H:3 * H]                       # tanh(g)
        o_g = 0.5 * tg[:, 3 * H:4 * H] + 0.5           # sigmoid(o)
        c = f_g * c + i_g * g_g
        h = o_g * jnp.tanh(c)
        h_bf = h.astype(jnp.bfloat16)                  # bf16 operand for next h@W_hh
        hseq_ref[t:t + 1, :] = h                       # this IS lstm_out[:, -1, :][t]

    logits = jnp.dot(hseq_ref[...].astype(jnp.bfloat16), wfc_ref[...],
                     preferred_element_type=jnp.float32) + bfc_ref[...]
    out_ref[...] = _sigmoid(logits)


def prepare_params(params):
    """One-time re-layout of PyTorch-style params into kernel-ready arrays:
    gate pre-scaling, W_ih split into image/cell halves (drops the concat),
    bf16 matmul operands, and lane-padded fc."""
    gate_scale = jnp.concatenate(
        [jnp.full((1, H), 0.5, jnp.float32),    # i
         jnp.full((1, H), 0.5, jnp.float32),    # f
         jnp.ones((1, H), jnp.float32),         # g (tanh -> scale 1)
         jnp.full((1, H), 0.5, jnp.float32)],   # o
        axis=1)
    wih = params["w_ih_t"] * gate_scale                              # (512, 4H)
    whh = params["w_hh_t"] * gate_scale                              # (256, 4H)
    b = params["b"] * gate_scale                                     # (1, 4H)
    wfc_pad = jnp.zeros((H, OUT_PAD), jnp.float32).at[:, :OUT].set(params["w_fc_t"])
    bfc_pad = jnp.zeros((1, OUT_PAD), jnp.float32).at[:, :OUT].set(params["b_fc"])
    return {
        "emb_ind":  params["emb_ind"],
        "emb_cell": params["emb_cell"],
        "wih_img":  wih[:H].astype(jnp.bfloat16),     # multiplies image embedding
        "wih_cell": wih[H:].astype(jnp.bfloat16),     # multiplies cell embedding
        "whh":      whh.astype(jnp.bfloat16),
        "b":        b,
        "wfc":      wfc_pad.astype(jnp.bfloat16),
        "bfc":      bfc_pad,
    }


@jax.jit
def temporal_model_forward(cells, imgs, kparams):
    # lstm_out[:, -1, :] (batch_first=False) selects the LAST BATCH column, and
    # LSTM batch rows are independent -> only compute that column.
    emb_i = jnp.take(kparams["emb_ind"], imgs[:, -1], axis=0)       # (T, 256)
    emb_c = jnp.take(kparams["emb_cell"], cells[:, -1], axis=0)     # (T, 256)
    T = emb_i.shape[0]

    # TODO(synk): nn.Dropout(p=0.5) is treated as identity (inference mode).
    out_pad = pl.pallas_call(
        functools.partial(lstm_fc_kernel, T=T),
        out_shape=jax.ShapeDtypeStruct((T, OUT_PAD), jnp.float32),
        in_specs=[pl.BlockSpec(memory_space=pltpu.MemorySpace.VMEM)] * 8,
        out_specs=pl.BlockSpec(memory_space=pltpu.MemorySpace.VMEM),
        scratch_shapes=[
            pltpu.VMEM((T, 4 * H), jnp.float32),     # hoisted x @ W_ih + b
            pltpu.VMEM((T, H), jnp.float32),         # hidden state per step
        ],
    )(emb_i.astype(jnp.bfloat16), emb_c.astype(jnp.bfloat16),
      kparams["wih_img"], kparams["wih_cell"], kparams["whh"], kparams["b"],
      kparams["wfc"], kparams["bfc"])
    return out_pad[:, :OUT]


def ref_forward(cells, imgs, params):
    """Pure-JAX f32 reference of the PyTorch forward (dropout = identity),
    run on the FULL batch to validate the last-batch-column shortcut."""
    emb_c = params["emb_cell"][cells]
    emb_i = params["emb_ind"][imgs]
    data = jnp.concatenate([emb_i, emb_c], axis=2)                  # (T, B, 512)
    T, B, _ = data.shape

    def step(carry, x_t):
        h, c = carry
        gates = x_t @ params["w_ih_t"] + h @ params["w_hh_t"] + params["b"]
        i_g = _sigmoid(gates[:, 0 * H:1 * H])
        f_g = _sigmoid(gates[:, 1 * H:2 * H])
        g_g = jnp.tanh(gates[:, 2 * H:3 * H])
        o_g = _sigmoid(gates[:, 3 * H:4 * H])
        c = f_g * c + i_g * g_g
        h = o_g * jnp.tanh(c)
        return (h, c), h

    init = (jnp.zeros((B, H), jnp.float32), jnp.zeros((B, H), jnp.float32))
    _, hs = lax.scan(step, init, data)                              # (T, B, 256)
    x = hs[:, -1, :]                                                # (T, 256)
    return _sigmoid(x @ params["w_fc_t"] + params["b_fc"])          # (T, 2)


def init_params(key):
    ks = jax.random.split(key, 8)
    s_lstm = 1.0 / jnp.sqrt(jnp.float32(H))
    return {
        "emb_ind":  jax.random.normal(ks[0], (900, H), jnp.float32) * 0.02,
        "emb_cell": jax.random.normal(ks[1], (5, H), jnp.float32) * 0.02,
        # LSTM weights stored pre-transposed for the kernel matmuls.
        "w_ih_t": jax.random.uniform(ks[2], (IN, 4 * H), jnp.float32,
                                     -s_lstm, s_lstm),
        "w_hh_t": jax.random.uniform(ks[3], (H, 4 * H), jnp.float32,
                                     -s_lstm, s_lstm),
        "b": (jax.random.uniform(ks[4], (1, 4 * H), jnp.float32, -s_lstm, s_lstm)
              + jax.random.uniform(ks[5], (1, 4 * H), jnp.float32, -s_lstm, s_lstm)),
        "w_fc_t": jax.random.uniform(ks[6], (H, OUT), jnp.float32,
                                     -1.0 / 16.0, 1.0 / 16.0),
        "b_fc":   jax.random.uniform(ks[7], (1, OUT), jnp.float32,
                                     -1.0 / 16.0, 1.0 / 16.0),
    }


if __name__ == "__main__":
    key = jax.random.PRNGKey(0)
    kp, kc, ki = jax.random.split(key, 3)
    params = init_params(kp)
    kparams = prepare_params(params)           # one-time kernel-ready re-layout

    T, B = 8, 8
    cells = jax.random.randint(kc, (T, B), 0, 5, dtype=jnp.int32)
    imgs = jax.random.randint(ki, (T, B), 0, 900, dtype=jnp.int32)

    out = jax.block_until_ready(temporal_model_forward(cells, imgs, kparams))
    ref = jax.block_until_ready(ref_forward(cells, imgs, params))

    assert out.shape == (T, OUT), out.shape
    # Tolerance loosened for bf16 matmul operands (f32 accumulation).
    assert jnp.allclose(out, ref, rtol=1e-2, atol=1e-2), (out, ref)
    print("KERNEL_OK")
</pallas_src>

<mosaic_0001>
module attributes {stable_mosaic.version = 11 : i64} {
  func.func @lstm_fc_kernel(%arg0: memref<8x256xbf16, #tpu.memory_space<vmem>>, %arg1: memref<8x256xbf16, #tpu.memory_space<vmem>>, %arg2: memref<256x1024xbf16, #tpu.memory_space<vmem>>, %arg3: memref<256x1024xbf16, #tpu.memory_space<vmem>>, %arg4: memref<256x1024xbf16, #tpu.memory_space<vmem>>, %arg5: memref<1x1024xf32, #tpu.memory_space<vmem>>, %arg6: memref<256x128xbf16, #tpu.memory_space<vmem>>, %arg7: memref<1x128xf32, #tpu.memory_space<vmem>>, %arg8: memref<8x128xf32, #tpu.memory_space<vmem>>, %arg9: memref<8x1024xf32, #tpu.memory_space<vmem>>, %arg10: memref<8x256xf32, #tpu.memory_space<vmem>>) attributes {dimension_semantics = [], scalar_prefetch = 0 : i64, scratch_operands = 2 : i64, tpu.core_type = #tpu.core_type<tc>} {
    %c0 = arith.constant 0 : index
    %c0_0 = arith.constant 0 : index
    %0 = vector.load %arg0[%c0, %c0_0] : memref<8x256xbf16, #tpu.memory_space<vmem>>, vector<8x256xbf16>
    %c0_1 = arith.constant 0 : index
    %c0_2 = arith.constant 0 : index
    %1 = vector.load %arg2[%c0_1, %c0_2] : memref<256x1024xbf16, #tpu.memory_space<vmem>>, vector<256x1024xbf16>
    %cst = arith.constant dense<0.000000e+00> : vector<8x1024xf32>
    %2 = tpu.matmul %0, %1, %cst {dimension_numbers = #tpu.dot_dimension_numbers<[1], [0], [0], [1], [0, 0, 1, 1], [], []>} : vector<8x256xbf16>, vector<256x1024xbf16>, vector<8x1024xf32> -> vector<8x1024xf32>
    %c0_3 = arith.constant 0 : index
    %c0_4 = arith.constant 0 : index
    %3 = vector.load %arg1[%c0_3, %c0_4] : memref<8x256xbf16, #tpu.memory_space<vmem>>, vector<8x256xbf16>
    %c0_5 = arith.constant 0 : index
    %c0_6 = arith.constant 0 : index
    %4 = vector.load %arg3[%c0_5, %c0_6] : memref<256x1024xbf16, #tpu.memory_space<vmem>>, vector<256x1024xbf16>
    %cst_7 = arith.constant dense<0.000000e+00> : vector<8x1024xf32>
    %5 = tpu.matmul %3, %4, %cst_7 {dimension_numbers = #tpu.dot_dimension_numbers<[1], [0], [0], [1], [0, 0, 1, 1], [], []>} : vector<8x256xbf16>, vector<256x1024xbf16>, vector<8x1024xf32> -> vector<8x1024xf32>
    %6 = arith.addf %2, %5 : vector<8x1024xf32>
    %c0_8 = arith.constant 0 : index
    %c0_9 = arith.constant 0 : index
    %7 = vector.load %arg5[%c0_8, %c0_9] : memref<1x1024xf32, #tpu.memory_space<vmem>>, vector<1x1024xf32>
    %8 = vector.broadcast %7 : vector<1x1024xf32> to vector<8x1024xf32>
    %9 = arith.addf %6, %8 : vector<8x1024xf32>
    %c0_10 = arith.constant 0 : index
    %c0_11 = arith.constant 0 : index
    %10 = vector.load %arg9[%c0_10, %c0_11] : memref<8x1024xf32, #tpu.memory_space<vmem>>, vector<8x1024xf32>
    tpu.vector_store %arg9[%c0_10, %c0_11], %9 {strides = array<i32>} : memref<8x1024xf32, #tpu.memory_space<vmem>>, vector<8x1024xf32>,
    %cst_12 = arith.constant 0.000000e+00 : bf16
    %11 = vector.broadcast %cst_12 : bf16 to vector<1x256xbf16>
    %cst_13 = arith.constant 0.000000e+00 : f32
    %12 = vector.broadcast %cst_13 : f32 to vector<1x256xf32>
    %c0_14 = arith.constant 0 : index
    %c0_15 = arith.constant 0 : index
    %13 = vector.load %arg9[%c0_14, %c0_15] : memref<8x1024xf32, #tpu.memory_space<vmem>>, vector<1x1024xf32>
    %c0_16 = arith.constant 0 : index
    %c0_17 = arith.constant 0 : index
    %14 = vector.load %arg4[%c0_16, %c0_17] : memref<256x1024xbf16, #tpu.memory_space<vmem>>, vector<256x1024xbf16>
    %cst_18 = arith.constant dense<0.000000e+00> : vector<1x1024xf32>
    %15 = tpu.matmul %11, %14, %cst_18 {dimension_numbers = #tpu.dot_dimension_numbers<[1], [0], [0], [1], [0, 0, 1, 1], [], []>} : vector<1x256xbf16>, vector<256x1024xbf16>, vector<1x1024xf32> -> vector<1x1024xf32>
    %16 = arith.addf %13, %15 : vector<1x1024xf32>
    %17 = math.tanh %16 : vector<1x1024xf32>
    %18 = vector.extract_strided_slice %17 {offsets = [0, 0], sizes = [1, 256], strides = [1, 1]} : vector<1x1024xf32> to vector<1x256xf32>
    %cst_19 = arith.constant 5.000000e-01 : f32
    %19 = vector.broadcast %cst_19 : f32 to vector<1x256xf32>
    %20 = arith.mulf %19, %18 : vector<1x256xf32>
    %cst_20 = arith.constant 5.000000e-01 : f32
    %21 = vector.broadcast %cst_20 : f32 to vector<1x256xf32>
    %22 = arith.addf %20, %21 : vector<1x256xf32>
    %23 = vector.extract_strided_slice %17 {offsets = [0, 256], sizes = [1, 256], strides = [1, 1]} : vector<1x1024xf32> to vector<1x256xf32>
    %cst_21 = arith.constant 5.000000e-01 : f32
    %24 = vector.broadcast %cst_21 : f32 to vector<1x256xf32>
    %25 = arith.mulf %24, %23 : vector<1x256xf32>
    %cst_22 = arith.constant 5.000000e-01 : f32
    %26 = vector.broadcast %cst_22 : f32 to vector<1x256xf32>
    %27 = arith.addf %25, %26 : vector<1x256xf32>
    %28 = vector.extract_strided_slice %17 {offsets = [0, 512], sizes = [1, 256], strides = [1, 1]} : vector<1x1024xf32> to vector<1x256xf32>
    %29 = vector.extract_strided_slice %17 {offsets = [0, 768], sizes = [1, 256], strides = [1, 1]} : vector<1x1024xf32> to vector<1x256xf32>
    %cst_23 = arith.constant 5.000000e-01 : f32
    %30 = vector.broadcast %cst_23 : f32 to vector<1x256xf32>
    %31 = arith.mulf %30, %29 : vector<1x256xf32>
    %cst_24 = arith.constant 5.000000e-01 : f32
    %32 = vector.broadcast %cst_24 : f32 to vector<1x256xf32>
    %33 = arith.addf %31, %32 : vector<1x256xf32>
    %34 = arith.mulf %27, %12 : vector<1x256xf32>
    %35 = arith.mulf %22, %28 : vector<1x256xf32>
    %36 = arith.addf %34, %35 : vector<1x256xf32>
    %37 = math.tanh %36 : vector<1x256xf32>
    %38 = arith.mulf %33, %37 : vector<1x256xf32>
    %39 = arith.truncf %38 : vector<1x256xf32> to vector<1x256xbf16>
    %c0_25 = arith.constant 0 : index
    %c0_26 = arith.constant 0 : index
    %40 = vector.load %arg10[%c0_25, %c0_26] : memref<8x256xf32, #tpu.memory_space<vmem>>, vector<1x256xf32>
    tpu.vector_store %arg10[%c0_25, %c0_26], %38 {strides = array<i32>} : memref<8x256xf32, #tpu.memory_space<vmem>>, vector<1x256xf32>,
    %c1 = arith.constant 1 : index
    %c0_27 = arith.constant 0 : index
    %41 = vector.load %arg9[%c1, %c0_27] : memref<8x1024xf32, #tpu.memory_space<vmem>>, vector<1x1024xf32>
    %c0_28 = arith.constant 0 : index
    %c0_29 = arith.constant 0 : index
    %42 = vector.load %arg4[%c0_28, %c0_29] : memref<256x1024xbf16, #tpu.memory_space<vmem>>, vector<256x1024xbf16>
    %cst_30 = arith.constant dense<0.000000e+00> : vector<1x1024xf32>
    %43 = tpu.matmul %39, %42, %cst_30 {dimension_numbers = #tpu.dot_dimension_numbers<[1], [0], [0], [1], [0, 0, 1, 1], [], []>} : vector<1x256xbf16>, vector<256x1024xbf16>, vector<1x1024xf32> -> vector<1x1024xf32>
    %44 = arith.addf %41, %43 : vector<1x1024xf32>
    %45 = math.tanh %44 : vector<1x1024xf32>
    %46 = vector.extract_strided_slice %45 {offsets = [0, 0], sizes = [1, 256], strides = [1, 1]} : vector<1x1024xf32> to vector<1x256xf32>
    %cst_31 = arith.constant 5.000000e-01 : f32
    %47 = vector.broadcast %cst_31 : f32 to vector<1x256xf32>
    %48 = arith.mulf %47, %46 : vector<1x256xf32>
    %cst_32 = arith.constant 5.000000e-01 : f32
    %49 = vector.broadcast %cst_32 : f32 to vector<1x256xf32>
    %50 = arith.addf %48, %49 : vector<1x256xf32>
    %51 = vector.extract_strided_slice %45 {offsets = [0, 256], sizes = [1, 256], strides = [1, 1]} : vector<1x1024xf32> to vector<1x256xf32>
    %cst_33 = arith.constant 5.000000e-01 : f32
    %52 = vector.broadcast %cst_33 : f32 to vector<1x256xf32>
    %53 = arith.mulf %52, %51 : vector<1x256xf32>
    %cst_34 = arith.constant 5.000000e-01 : f32
    %54 = vector.broadcast %cst_34 : f32 to vector<1x256xf32>
    %55 = arith.addf %53, %54 : vector<1x256xf32>
    %56 = vector.extract_strided_slice %45 {offsets = [0, 512], sizes = [1, 256], strides = [1, 1]} : vector<1x1024xf32> to vector<1x256xf32>
    %57 = vector.extract_strided_slice %45 {offsets = [0, 768], sizes = [1, 256], strides = [1, 1]} : vector<1x1024xf32> to vector<1x256xf32>
    %cst_35 = arith.constant 5.000000e-01 : f32
    %58 = vector.broadcast %cst_35 : f32 to vector<1x256xf32>
    %59 = arith.mulf %58, %57 : vector<1x256xf32>
    %cst_36 = arith.constant 5.000000e-01 : f32
    %60 = vector.broadcast %cst_36 : f32 to vector<1x256xf32>
    %61 = arith.addf %59, %60 : vector<1x256xf32>
    %62 = arith.mulf %55, %36 : vector<1x256xf32>
    %63 = arith.mulf %50, %56 : vector<1x256xf32>
    %64 = arith.addf %62, %63 : vector<1x256xf32>
    %65 = math.tanh %64 : vector<1x256xf32>
    %66 = arith.mulf %61, %65 : vector<1x256xf32>
    %67 = arith.truncf %66 : vector<1x256xf32> to vector<1x256xbf16>
    %c1_37 = arith.constant 1 : index
    %c0_38 = arith.constant 0 : index
    %68 = vector.load %arg10[%c1_37, %c0_38] : memref<8x256xf32, #tpu.memory_space<vmem>>, vector<1x256xf32>
    tpu.vector_store %arg10[%c1_37, %c0_38], %66 {strides = array<i32>} : memref<8x256xf32, #tpu.memory_space<vmem>>, vector<1x256xf32>,
    %c2 = arith.constant 2 : index
    %c0_39 = arith.constant 0 : index
    %69 = vector.load %arg9[%c2, %c0_39] : memref<8x1024xf32, #tpu.memory_space<vmem>>, vector<1x1024xf32>
    %c0_40 = arith.constant 0 : index
    %c0_41 = arith.constant 0 : index
    %70 = vector.load %arg4[%c0_40, %c0_41] : memref<256x1024xbf16, #tpu.memory_space<vmem>>, vector<256x1024xbf16>
    %cst_42 = arith.constant dense<0.000000e+00> : vector<1x1024xf32>
    %71 = tpu.matmul %67, %70, %cst_42 {dimension_numbers = #tpu.dot_dimension_numbers<[1], [0], [0], [1], [0, 0, 1, 1], [], []>} : vector<1x256xbf16>, vector<256x1024xbf16>, vector<1x1024xf32> -> vector<1x1024xf32>
    %72 = arith.addf %69, %71 : vector<1x1024xf32>
    %73 = math.tanh %72 : vector<1x1024xf32>
    %74 = vector.extract_strided_slice %73 {offsets = [0, 0], sizes = [1, 256], strides = [1, 1]} : vector<1x1024xf32> to vector<1x256xf32>
    %cst_43 = arith.constant 5.000000e-01 : f32
    %75 = vector.broadcast %cst_43 : f32 to vector<1x256xf32>
    %76 = arith.mulf %75, %74 : vector<1x256xf32>
    %cst_44 = arith.constant 5.000000e-01 : f32
    %77 = vector.broadcast %cst_44 : f32 to vector<1x256xf32>
    %78 = arith.addf %76, %77 : vector<1x256xf32>
    %79 = vector.extract_strided_slice %73 {offsets = [0, 256], sizes = [1, 256], strides = [1, 1]} : vector<1x1024xf32> to vector<1x256xf32>
    %cst_45 = arith.constant 5.000000e-01 : f32
    %80 = vector.broadcast %cst_45 : f32 to vector<1x256xf32>
    %81 = arith.mulf %80, %79 : vector<1x256xf32>
    %cst_46 = arith.constant 5.000000e-01 : f32
    %82 = vector.broadcast %cst_46 : f32 to vector<1x256xf32>
    %83 = arith.addf %81, %82 : vector<1x256xf32>
    %84 = vector.extract_strided_slice %73 {offsets = [0, 512], sizes = [1, 256], strides = [1, 1]} : vector<1x1024xf32> to vector<1x256xf32>
    %85 = vector.extract_strided_slice %73 {offsets = [0, 768], sizes = [1, 256], strides = [1, 1]} : vector<1x1024xf32> to vector<1x256xf32>
    %cst_47 = arith.constant 5.000000e-01 : f32
    %86 = vector.broadcast %cst_47 : f32 to vector<1x256xf32>
    %87 = arith.mulf %86, %85 : vector<1x256xf32>
    %cst_48 = arith.constant 5.000000e-01 : f32
    %88 = vector.broadcast %cst_48 : f32 to vector<1x256xf32>
    %89 = arith.addf %87, %88 : vector<1x256xf32>
    %90 = arith.mulf %83, %64 : vector<1x256xf32>
    %91 = arith.mulf %78, %84 : vector<1x256xf32>
    %92 = arith.addf %90, %91 : vector<1x256xf32>
    %93 = math.tanh %92 : vector<1x256xf32>
    %94 = arith.mulf %89, %93 : vector<1x256xf32>
    %95 = arith.truncf %94 : vector<1x256xf32> to vector<1x256xbf16>
    %c2_49 = arith.constant 2 : index
    %c0_50 = arith.constant 0 : index
    %96 = vector.load %arg10[%c2_49, %c0_50] : memref<8x256xf32, #tpu.memory_space<vmem>>, vector<1x256xf32>
    tpu.vector_store %arg10[%c2_49, %c0_50], %94 {strides = array<i32>} : memref<8x256xf32, #tpu.memory_space<vmem>>, vector<1x256xf32>,
    %c3 = arith.constant 3 : index
    %c0_51 = arith.constant 0 : index
    %97 = vector.load %arg9[%c3, %c0_51] : memref<8x1024xf32, #tpu.memory_space<vmem>>, vector<1x1024xf32>
    %c0_52 = arith.constant 0 : index
    %c0_53 = arith.constant 0 : index
    %98 = vector.load %arg4[%c0_52, %c0_53] : memref<256x1024xbf16, #tpu.memory_space<vmem>>, vector<256x1024xbf16>
    %cst_54 = arith.constant dense<0.000000e+00> : vector<1x1024xf32>
    %99 = tpu.matmul %95, %98, %cst_54 {dimension_numbers = #tpu.dot_dimension_numbers<[1], [0], [0], [1], [0, 0, 1, 1], [], []>} : vector<1x256xbf16>, vector<256x1024xbf16>, vector<1x1024xf32> -> vector<1x1024xf32>
    %100 = arith.addf %97, %99 : vector<1x1024xf32>
    %101 = math.tanh %100 : vector<1x1024xf32>
    %102 = vector.extract_strided_slice %101 {offsets = [0, 0], sizes = [1, 256], strides = [1, 1]} : vector<1x1024xf32> to vector<1x256xf32>
    %cst_55 = arith.constant 5.000000e-01 : f32
    %103 = vector.broadcast %cst_55 : f32 to vector<1x256xf32>
    %104 = arith.mulf %103, %102 : vector<1x256xf32>
    %cst_56 = arith.constant 5.000000e-01 : f32
    %105 = vector.broadcast %cst_56 : f32 to vector<1x256xf32>
    %106 = arith.addf %104, %105 : vector<1x256xf32>
    %107 = vector.extract_strided_slice %101 {offsets = [0, 256], sizes = [1, 256], strides = [1, 1]} : vector<1x1024xf32> to vector<1x256xf32>
    %cst_57 = arith.constant 5.000000e-01 : f32
    %108 = vector.broadcast %cst_57 : f32 to vector<1x256xf32>
    %109 = arith.mulf %108, %107 : vector<1x256xf32>
    %cst_58 = arith.constant 5.000000e-01 : f32
    %110 = vector.broadcast %cst_58 : f32 to vector<1x256xf32>
    %111 = arith.addf %109, %110 : vector<1x256xf32>
    %112 = vector.extract_strided_slice %101 {offsets = [0, 512], sizes = [1, 256], strides = [1, 1]} : vector<1x1024xf32> to vector<1x256xf32>
    %113 = vector.extract_strided_slice %101 {offsets = [0, 768], sizes = [1, 256], strides = [1, 1]} : vector<1x1024xf32> to vector<1x256xf32>
    %cst_59 = arith.constant 5.000000e-01 : f32
    %114 = vector.broadcast %cst_59 : f32 to vector<1x256xf32>
    %115 = arith.mulf %114, %113 : vector<1x256xf32>
    %cst_60 = arith.constant 5.000000e-01 : f32
    %116 = vector.broadcast %cst_60 : f32 to vector<1x256xf32>
    %117 = arith.addf %115, %116 : vector<1x256xf32>
    %118 = arith.mulf %111, %92 : vector<1x256xf32>
    %119 = arith.mulf %106, %112 : vector<1x256xf32>
    %120 = arith.addf %118, %119 : vector<1x256xf32>
    %121 = math.tanh %120 : vector<1x256xf32>
    %122 = arith.mulf %117, %121 : vector<1x256xf32>
    %123 = arith.truncf %122 : vector<1x256xf32> to vector<1x256xbf16>
    %c3_61 = arith.constant 3 : index
    %c0_62 = arith.constant 0 : index
    %124 = vector.load %arg10[%c3_61, %c0_62] : memref<8x256xf32, #tpu.memory_space<vmem>>, vector<1x256xf32>
    tpu.vector_store %arg10[%c3_61, %c0_62], %122 {strides = array<i32>} : memref<8x256xf32, #tpu.memory_space<vmem>>, vector<1x256xf32>,
    %c4 = arith.constant 4 : index
    %c0_63 = arith.constant 0 : index
    %125 = vector.load %arg9[%c4, %c0_63] : memref<8x1024xf32, #tpu.memory_space<vmem>>, vector<1x1024xf32>
    %c0_64 = arith.constant 0 : index
    %c0_65 = arith.constant 0 : index
    %126 = vector.load %arg4[%c0_64, %c0_65] : memref<256x1024xbf16, #tpu.memory_space<vmem>>, vector<256x1024xbf16>
    %cst_66 = arith.constant dense<0.000000e+00> : vector<1x1024xf32>
    %127 = tpu.matmul %123, %126, %cst_66 {dimension_numbers = #tpu.dot_dimension_numbers<[1], [0], [0], [1], [0, 0, 1, 1], [], []>} : vector<1x256xbf16>, vector<256x1024xbf16>, vector<1x1024xf32> -> vector<1x1024xf32>
    %128 = arith.addf %125, %127 : vector<1x1024xf32>
    %129 = math.tanh %128 : vector<1x1024xf32>
    %130 = vector.extract_strided_slice %129 {offsets = [0, 0], sizes = [1, 256], strides = [1, 1]} : vector<1x1024xf32> to vector<1x256xf32>
    %cst_67 = arith.constant 5.000000e-01 : f32
    %131 = vector.broadcast %cst_67 : f32 to vector<1x256xf32>
    %132 = arith.mulf %131, %130 : vector<1x256xf32>
    %cst_68 = arith.constant 5.000000e-01 : f32
    %133 = vector.broadcast %cst_68 : f32 to vector<1x256xf32>
    %134 = arith.addf %132, %133 : vector<1x256xf32>
    %135 = vector.extract_strided_slice %129 {offsets = [0, 256], sizes = [1, 256], strides = [1, 1]} : vector<1x1024xf32> to vector<1x256xf32>
    %cst_69 = arith.constant 5.000000e-01 : f32
    %136 = vector.broadcast %cst_69 : f32 to vector<1x256xf32>
    %137 = arith.mulf %136, %135 : vector<1x256xf32>
    %cst_70 = arith.constant 5.000000e-01 : f32
    %138 = vector.broadcast %cst_70 : f32 to vector<1x256xf32>
    %139 = arith.addf %137, %138 : vector<1x256xf32>
    %140 = vector.extract_strided_slice %129 {offsets = [0, 512], sizes = [1, 256], strides = [1, 1]} : vector<1x1024xf32> to vector<1x256xf32>
    %141 = vector.extract_strided_slice %129 {offsets = [0, 768], sizes = [1, 256], strides = [1, 1]} : vector<1x1024xf32> to vector<1x256xf32>
    %cst_71 = arith.constant 5.000000e-01 : f32
    %142 = vector.broadcast %cst_71 : f32 to vector<1x256xf32>
    %143 = arith.mulf %142, %141 : vector<1x256xf32>
    %cst_72 = arith.constant 5.000000e-01 : f32
    %144 = vector.broadcast %cst_72 : f32 to vector<1x256xf32>
    %145 = arith.addf %143, %144 : vector<1x256xf32>
    %146 = arith.mulf %139, %120 : vector<1x256xf32>
    %147 = arith.mulf %134, %140 : vector<1x256xf32>
    %148 = arith.addf %146, %147 : vector<1x256xf32>
    %149 = math.tanh %148 : vector<1x256xf32>
    %150 = arith.mulf %145, %149 : vector<1x256xf32>
    %151 = arith.truncf %150 : vector<1x256xf32> to vector<1x256xbf16>
    %c4_73 = arith.constant 4 : index
    %c0_74 = arith.constant 0 : index
    %152 = vector.load %arg10[%c4_73, %c0_74] : memref<8x256xf32, #tpu.memory_space<vmem>>, vector<1x256xf32>
    tpu.vector_store %arg10[%c4_73, %c0_74], %150 {strides = array<i32>} : memref<8x256xf32, #tpu.memory_space<vmem>>, vector<1x256xf32>,
    %c5 = arith.constant 5 : index
    %c0_75 = arith.constant 0 : index
    %153 = vector.load %arg9[%c5, %c0_75] : memref<8x1024xf32, #tpu.memory_space<vmem>>, vector<1x1024xf32>
    %c0_76 = arith.constant 0 : index
    %c0_77 = arith.constant 0 : index
    %154 = vector.load %arg4[%c0_76, %c0_77] : memref<256x1024xbf16, #tpu.memory_space<vmem>>, vector<256x1024xbf16>
    %cst_78 = arith.constant dense<0.000000e+00> : vector<1x1024xf32>
    %155 = tpu.matmul %151, %154, %cst_78 {dimension_numbers = #tpu.dot_dimension_numbers<[1], [0], [0], [1], [0, 0, 1, 1], [], []>} : vector<1x256xbf16>, vector<256x1024xbf16>, vector<1x1024xf32> -> vector<1x1024xf32>
    %156 = arith.addf %153, %155 : vector<1x1024xf32>
    %157 = math.tanh %156 : vector<1x1024xf32>
    %158 = vector.extract_strided_slice %157 {offsets = [0, 0], sizes = [1, 256], strides = [1, 1]} : vector<1x1024xf32> to vector<1x256xf32>
    %cst_79 = arith.constant 5.000000e-01 : f32
    %159 = vector.broadcast %cst_79 : f32 to vector<1x256xf32>
    %160 = arith.mulf %159, %158 : vector<1x256xf32>
    %cst_80 = arith.constant 5.000000e-01 : f32
    %161 = vector.broadcast %cst_80 : f32 to vector<1x256xf32>
    %162 = arith.addf %160, %161 : vector<1x256xf32>
    %163 = vector.extract_strided_slice %157 {offsets = [0, 256], sizes = [1, 256], strides = [1, 1]} : vector<1x1024xf32> to vector<1x256xf32>
    %cst_81 = arith.constant 5.000000e-01 : f32
    %164 = vector.broadcast %cst_81 : f32 to vector<1x256xf32>
    %165 = arith.mulf %164, %163 : vector<1x256xf32>
    %cst_82 = arith.constant 5.000000e-01 : f32
    %166 = vector.broadcast %cst_82 : f32 to vector<1x256xf32>
    %167 = arith.addf %165, %166 : vector<1x256xf32>
    %168 = vector.extract_strided_slice %157 {offsets = [0, 512], sizes = [1, 256], strides = [1, 1]} : vector<1x1024xf32> to vector<1x256xf32>
    %169 = vector.extract_strided_slice %157 {offsets = [0, 768], sizes = [1, 256], strides = [1, 1]} : vector<1x1024xf32> to vector<1x256xf32>
    %cst_83 = arith.constant 5.000000e-01 : f32
    %170 = vector.broadcast %cst_83 : f32 to vector<1x256xf32>
    %171 = arith.mulf %170, %169 : vector<1x256xf32>
    %cst_84 = arith.constant 5.000000e-01 : f32
    %172 = vector.broadcast %cst_84 : f32 to vector<1x256xf32>
    %173 = arith.addf %171, %172 : vector<1x256xf32>
    %174 = arith.mulf %167, %148 : vector<1x256xf32>
    %175 = arith.mulf %162, %168 : vector<1x256xf32>
    %176 = arith.addf %174, %175 : vector<1x256xf32>
    %177 = math.tanh %176 : vector<1x256xf32>
    %178 = arith.mulf %173, %177 : vector<1x256xf32>
    %179 = arith.truncf %178 : vector<1x256xf32> to vector<1x256xbf16>
    %c5_85 = arith.constant 5 : index
    %c0_86 = arith.constant 0 : index
    %180 = vector.load %arg10[%c5_85, %c0_86] : memref<8x256xf32, #tpu.memory_space<vmem>>, vector<1x256xf32>
    tpu.vector_store %arg10[%c5_85, %c0_86], %178 {strides = array<i32>} : memref<8x256xf32, #tpu.memory_space<vmem>>, vector<1x256xf32>,
    %c6 = arith.constant 6 : index
    %c0_87 = arith.constant 0 : index
    %181 = vector.load %arg9[%c6, %c0_87] : memref<8x1024xf32, #tpu.memory_space<vmem>>, vector<1x1024xf32>
    %c0_88 = arith.constant 0 : index
    %c0_89 = arith.constant 0 : index
    %182 = vector.load %arg4[%c0_88, %c0_89] : memref<256x1024xbf16, #tpu.memory_space<vmem>>, vector<256x1024xbf16>
    %cst_90 = arith.constant dense<0.000000e+00> : vector<1x1024xf32>
    %183 = tpu.matmul %179, %182, %cst_90 {dimension_numbers = #tpu.dot_dimension_numbers<[1], [0], [0], [1], [0, 0, 1, 1], [], []>} : vector<1x256xbf16>, vector<256x1024xbf16>, vector<1x1024xf32> -> vector<1x1024xf32>
    %184 = arith.addf %181, %183 : vector<1x1024xf32>
    %185 = math.tanh %184 : vector<1x1024xf32>
    %186 = vector.extract_strided_slice %185 {offsets = [0, 0], sizes = [1, 256], strides = [1, 1]} : vector<1x1024xf32> to vector<1x256xf32>
    %cst_91 = arith.constant 5.000000e-01 : f32
    %187 = vector.broadcast %cst_91 : f32 to vector<1x256xf32>
    %188 = arith.mulf %187, %186 : vector<1x256xf32>
    %cst_92 = arith.constant 5.000000e-01 : f32
    %189 = vector.broadcast %cst_92 : f32 to vector<1x256xf32>
    %190 = arith.addf %188, %189 : vector<1x256xf32>
    %191 = vector.extract_strided_slice %185 {offsets = [0, 256], sizes = [1, 256], strides = [1, 1]} : vector<1x1024xf32> to vector<1x256xf32>
    %cst_93 = arith.constant 5.000000e-01 : f32
    %192 = vector.broadcast %cst_93 : f32 to vector<1x256xf32>
    %193 = arith.mulf %192, %191 : vector<1x256xf32>
    %cst_94 = arith.constant 5.000000e-01 : f32
    %194 = vector.broadcast %cst_94 : f32 to vector<1x256xf32>
    %195 = arith.addf %193, %194 : vector<1x256xf32>
    %196 = vector.extract_strided_slice %185 {offsets = [0, 512], sizes = [1, 256], strides = [1, 1]} : vector<1x1024xf32> to vector<1x256xf32>
    %197 = vector.extract_strided_slice %185 {offsets = [0, 768], sizes = [1, 256], strides = [1, 1]} : vector<1x1024xf32> to vector<1x256xf32>
    %cst_95 = arith.constant 5.000000e-01 : f32
    %198 = vector.broadcast %cst_95 : f32 to vector<1x256xf32>
    %199 = arith.mulf %198, %197 : vector<1x256xf32>
    %cst_96 = arith.constant 5.000000e-01 : f32
    %200 = vector.broadcast %cst_96 : f32 to vector<1x256xf32>
    %201 = arith.addf %199, %200 : vector<1x256xf32>
    %202 = arith.mulf %195, %176 : vector<1x256xf32>
    %203 = arith.mulf %190, %196 : vector<1x256xf32>
    %204 = arith.addf %202, %203 : vector<1x256xf32>
    %205 = math.tanh %204 : vector<1x256xf32>
    %206 = arith.mulf %201, %205 : vector<1x256xf32>
    %207 = arith.truncf %206 : vector<1x256xf32> to vector<1x256xbf16>
    %c6_97 = arith.constant 6 : index
    %c0_98 = arith.constant 0 : index
    %208 = vector.load %arg10[%c6_97, %c0_98] : memref<8x256xf32, #tpu.memory_space<vmem>>, vector<1x256xf32>
    tpu.vector_store %arg10[%c6_97, %c0_98], %206 {strides = array<i32>} : memref<8x256xf32, #tpu.memory_space<vmem>>, vector<1x256xf32>,
    %c7 = arith.constant 7 : index
    %c0_99 = arith.constant 0 : index
    %209 = vector.load %arg9[%c7, %c0_99] : memref<8x1024xf32, #tpu.memory_space<vmem>>, vector<1x1024xf32>
    %c0_100 = arith.constant 0 : index
    %c0_101 = arith.constant 0 : index
    %210 = vector.load %arg4[%c0_100, %c0_101] : memref<256x1024xbf16, #tpu.memory_space<vmem>>, vector<256x1024xbf16>
    %cst_102 = arith.constant dense<0.000000e+00> : vector<1x1024xf32>
    %211 = tpu.matmul %207, %210, %cst_102 {dimension_numbers = #tpu.dot_dimension_numbers<[1], [0], [0], [1], [0, 0, 1, 1], [], []>} : vector<1x256xbf16>, vector<256x1024xbf16>, vector<1x1024xf32> -> vector<1x1024xf32>
    %212 = arith.addf %209, %211 : vector<1x1024xf32>
    %213 = math.tanh %212 : vector<1x1024xf32>
    %214 = vector.extract_strided_slice %213 {offsets = [0, 0], sizes = [1, 256], strides = [1, 1]} : vector<1x1024xf32> to vector<1x256xf32>
    %cst_103 = arith.constant 5.000000e-01 : f32
    %215 = vector.broadcast %cst_103 : f32 to vector<1x256xf32>
    %216 = arith.mulf %215, %214 : vector<1x256xf32>
    %cst_104 = arith.constant 5.000000e-01 : f32
    %217 = vector.broadcast %cst_104 : f32 to vector<1x256xf32>
    %218 = arith.addf %216, %217 : vector<1x256xf32>
    %219 = vector.extract_strided_slice %213 {offsets = [0, 256], sizes = [1, 256], strides = [1, 1]} : vector<1x1024xf32> to vector<1x256xf32>
    %cst_105 = arith.constant 5.000000e-01 : f32
    %220 = vector.broadcast %cst_105 : f32 to vector<1x256xf32>
    %221 = arith.mulf %220, %219 : vector<1x256xf32>
    %cst_106 = arith.constant 5.000000e-01 : f32
    %222 = vector.broadcast %cst_106 : f32 to vector<1x256xf32>
    %223 = arith.addf %221, %222 : vector<1x256xf32>
    %224 = vector.extract_strided_slice %213 {offsets = [0, 512], sizes = [1, 256], strides = [1, 1]} : vector<1x1024xf32> to vector<1x256xf32>
    %225 = vector.extract_strided_slice %213 {offsets = [0, 768], sizes = [1, 256], strides = [1, 1]} : vector<1x1024xf32> to vector<1x256xf32>
    %cst_107 = arith.constant 5.000000e-01 : f32
    %226 = vector.broadcast %cst_107 : f32 to vector<1x256xf32>
    %227 = arith.mulf %226, %225 : vector<1x256xf32>
    %cst_108 = arith.constant 5.000000e-01 : f32
    %228 = vector.broadcast %cst_108 : f32 to vector<1x256xf32>
    %229 = arith.addf %227, %228 : vector<1x256xf32>
    %230 = arith.mulf %223, %204 : vector<1x256xf32>
    %231 = arith.mulf %218, %224 : vector<1x256xf32>
    %232 = arith.addf %230, %231 : vector<1x256xf32>
    %233 = math.tanh %232 : vector<1x256xf32>
    %234 = arith.mulf %229, %233 : vector<1x256xf32>
    %c7_109 = arith.constant 7 : index
    %c0_110 = arith.constant 0 : index
    %235 = vector.load %arg10[%c7_109, %c0_110] : memref<8x256xf32, #tpu.memory_space<vmem>>, vector<1x256xf32>
    tpu.vector_store %arg10[%c7_109, %c0_110], %234 {strides = array<i32>} : memref<8x256xf32, #tpu.memory_space<vmem>>, vector<1x256xf32>,
    %c0_111 = arith.constant 0 : index
    %c0_112 = arith.constant 0 : index
    %236 = vector.load %arg10[%c0_111, %c0_112] : memref<8x256xf32, #tpu.memory_space<vmem>>, vector<8x256xf32>
    %237 = arith.truncf %236 : vector<8x256xf32> to vector<8x256xbf16>
    %c0_113 = arith.constant 0 : index
    %c0_114 = arith.constant 0 : index
    %238 = vector.load %arg6[%c0_113, %c0_114] : memref<256x128xbf16, #tpu.memory_space<vmem>>, vector<256x128xbf16>
    %cst_115 = arith.constant dense<0.000000e+00> : vector<8x128xf32>
    %239 = tpu.matmul %237, %238, %cst_115 {dimension_numbers = #tpu.dot_dimension_numbers<[1], [0], [0], [1], [0, 0, 1, 1], [], []>} : vector<8x256xbf16>, vector<256x128xbf16>, vector<8x128xf32> -> vector<8x128xf32>
    %c0_116 = arith.constant 0 : index
    %c0_117 = arith.constant 0 : index
    %240 = vector.load %arg7[%c0_116, %c0_117] : memref<1x128xf32, #tpu.memory_space<vmem>>, vector<1x128xf32>
    %241 = vector.broadcast %240 : vector<1x128xf32> to vector<8x128xf32>
    %242 = arith.addf %239, %241 : vector<8x128xf32>
    %cst_118 = arith.constant 5.000000e-01 : f32
    %243 = vector.broadcast %cst_118 : f32 to vector<8x128xf32>
    %244 = arith.mulf %243, %242 : vector<8x128xf32>
    %245 = math.tanh %244 : vector<8x128xf32>
    %cst_119 = arith.constant 1.000000e+00 : f32
    %246 = vector.broadcast %cst_119 : f32 to vector<8x128xf32>
    %247 = arith.addf %245, %246 : vector<8x128xf32>
    %cst_120 = arith.constant 5.000000e-01 : f32
    %248 = vector.broadcast %cst_120 : f32 to vector<8x128xf32>
    %249 = arith.mulf %248, %247 : vector<8x128xf32>
    %c0_121 = arith.constant 0 : index
    %c0_122 = arith.constant 0 : index
    %250 = vector.load %arg8[%c0_121, %c0_122] : memref<8x128xf32, #tpu.memory_space<vmem>>, vector<8x128xf32>
    tpu.vector_store %arg8[%c0_121, %c0_122], %249 {strides = array<i32>} : memref<8x128xf32, #tpu.memory_space<vmem>>, vector<8x128xf32>,
    return
  }
}

</mosaic_0001>

<bundles_post_ra>
// kernel: temporal_model_forward.1
= control target key start
LH: loop header
LB: loop body
LE: loop exit
PB: predicated region body
PF: predicated region fallthrough
CT: control target
= control target key end

     0   :  { %13 = vsyncpa [#allocation5], 0  ;;  %s14274_s0 = inlined_call_operand.vmem [shape: bf16[8,256], index: 0, kind: input, shape index: {}]   ;;  %s14275_s1 = inlined_call_operand.vmem [shape: bf16[8,256], index: 1, kind: input, shape index: {}]   ;;  %s14276_s2 = inlined_call_operand.hbm [shape: bf16[256,1024], index: 2, kind: input, shape index: {}]   ;;  %s14277_s3 = inlined_call_operand.hbm [shape: bf16[256,1024], index: 3, kind: input, shape index: {}]   ;;  %s14278_s4 = inlined_call_operand.hbm [shape: bf16[256,1024], index: 4, kind: input, shape index: {}]   ;;  %s14279_s5 = inlined_call_operand.vmem [shape: f32[1,1024], index: 5, kind: input, shape index: {}]   ;;  %s14280_s6 = inlined_call_operand.vmem [shape: bf16[256,128], index: 6, kind: input, shape index: {}]   ;;  %s14281_s7 = inlined_call_operand.vmem [shape: f32[1,128], index: 7, kind: input, shape index: {}]   ;;  %s14282_s8 = inlined_call_operand.vmem [shape: f32[8,128], index: 8, kind: output, shape index: {}]  }
   0x1   :  { %14 = vsyncpa [#allocation7], 0  ;;  %s11882_s27 = smov [#allocation6]   ;;  %s11883_s29 = smov [#allocation4]  }
   0x2   :  { %s36_s28 = sshll.u32 %s11882_s27, 4  ;;  %s24_s30 = sshll.u32 %s11883_s29, 4  ;;  %s37_s28 = int_to_ptr.vmem [resolvable:$true] %s36_s28  ;;  %s11934_s30 = int_to_ptr.vmem [resolvable:$true] %s24_s30 }
   0x3   :  { %s11812_s11 = scalar_lea.hbm %s14277_s3, 16384 }
   0x4   :  { %p11813_p0 = scmp.ne.s32.totalorder %s14277_s3, %s11812_s11  ;;  %p11816_p1 = scmp.lt.u32.totalorder %s11812_s11, %s14277_s3 }
   0x6   :  { %p11818_p2 = pnand %p11816_p1, %p11813_p0 }
   0x8   :  { %11821 = shalt.err (!%p11818_p2)
}
   0x9   :  { %s11822_s16 = scalar_lea.vmem %s37_s28, 16384  ;;  %p11827_p4 = scmp.lt.s32.totalorder %s37_s28, %s37_s28 }
   0xa   :  { %p11823_p3 = scmp.ne.s32.totalorder %s37_s28, %s11822_s16  ;;  %p11828_p5 = scmp.lt.s32.totalorder %s11822_s16, %s11822_s16 }
   0xc   :  { %p11829_p6 = por %p11828_p5, %p11827_p4 }
   0xe   :  { %p11830_p7 = pnand %p11829_p6, %p11823_p3 }
  0x10   :  { %11833 = shalt.err (!%p11830_p7)
}
  0x11   :  { %s11884_s17 = smov 512   ;;  %s11885_s18 = smov 32  }
  0x12   :  { %42 = dma.hbm_to_vmem [thread:$0]  %s14277_s3, 16384, %s37_s28, [#allocation7], %s11884_s17, %s11884_s17, %s11885_s18  }
  0x13   :  { %s11834_s23 = scalar_lea.hbm %s14276_s2, 16384 }
  0x14   :  { %p11835_p8 = scmp.ne.s32.totalorder %s14276_s2, %s11834_s23  ;;  %p11838_p9 = scmp.lt.u32.totalorder %s11834_s23, %s14276_s2 }
  0x16   :  { %p11840_p10 = pnand %p11838_p9, %p11835_p8 }
  0x18   :  { %11843 = shalt.err (!%p11840_p10)
}
  0x19   :  { %s11844_s29 = scalar_lea.vmem %s11934_s30, 16384  ;;  %p11849_p12 = scmp.lt.s32.totalorder %s11934_s30, %s11934_s30 }
  0x1a   :  { %p11845_p11 = scmp.ne.s32.totalorder %s11934_s30, %s11844_s29  ;;  %p11850_p13 = scmp.lt.s32.totalorder %s11844_s29, %s11844_s29 }
  0x1c   :  { %p11851_p0 = por %p11850_p13, %p11849_p12 }
  0x1e   :  { %p11852_p1 = pnand %p11851_p0, %p11845_p11 }
  0x20   :  { %11855 = shalt.err (!%p11852_p1)
}
  0x21   :  { %30 = dma.hbm_to_vmem [thread:$0]  %s14276_s2, 16384, %s11934_s30, [#allocation5], %s11884_s17, %s11884_s17, %s11885_s18  }
  0x22   :  { %s11886_s9 = smov [#allocation8]   ;;  %s11856_s13 = scalar_lea.hbm %s14278_s4, 16384 }
  0x23   :  { %s48_s10 = sshll.u32 %s11886_s9, 4  ;;  %p11857_p2 = scmp.ne.s32.totalorder %s14278_s4, %s11856_s13  ;;  %s49_s10 = int_to_ptr.vmem [resolvable:$true] %s48_s10 }
  0x24   :  { %p11860_p3 = scmp.lt.u32.totalorder %s11856_s13, %s14278_s4 }
  0x26   :  { %p11862_p4 = pnand %p11860_p3, %p11857_p2 }
  0x28   :  { %11865 = shalt.err (!%p11862_p4)
}
  0x29   :  { %s11866_s20 = scalar_lea.vmem %s49_s10, 16384  ;;  %p11871_p6 = scmp.lt.s32.totalorder %s49_s10, %s49_s10 }
  0x2a   :  { %p11867_p5 = scmp.ne.s32.totalorder %s49_s10, %s11866_s20  ;;  %p11872_p7 = scmp.lt.s32.totalorder %s11866_s20, %s11866_s20 }
  0x2c   :  { %p11873_p8 = por %p11872_p7, %p11871_p6 }
  0x2e   :  { %p11874_p9 = pnand %p11873_p8, %p11867_p5 }
  0x30   :  { %11877 = shalt.err (!%p11874_p9)
}
  0x31   :  { %54 = dma.hbm_to_vmem [thread:$0]  %s14278_s4, 16384, %s49_s10, [#allocation7], %s11884_s17, %s11884_s17, %s11885_s18  }
  0x32   :  { %11878 = dma.done.wait [#allocation5], 16384  }
  0x33   :  { %11879 = vsyncadd [#allocation5], 4294950912 }
  0x34   :  { %11880 = dma.done.wait [#allocation7], 32768  }
  0x35   :  { %11881 = vsyncadd [#allocation7], 4294934528  ;;  %v201_v0 = vld [vmem:[#allocation6] sm:$0xff]  ;;  %v202_v2 = vld [vmem:[#allocation6 + $0x8] sm:$0xff] }
  0x36   :  { %v205_v1 = vld [vmem:[#allocation6 + $0x20] sm:$0xff]  ;;  %v206_v4 = vld [vmem:[#allocation6 + $0x28] sm:$0xff]  ;;  %v11989_v53 = vld [vmem:[%s14275_s1] sm:$0xff] }
  0x37   :  { %v10431_v3 = vcombine.high %v201_v0, %v205_v1  ;;  %v10430_v5 = vcombine.low %v201_v0, %v205_v1  ;;  %v209_v6 = vld [vmem:[#allocation6 + $0x40] sm:$0xff]  ;;  %v10433_v8 = vcombine.high %v202_v2, %v206_v4  ;;  %v10432_v9 = vcombine.low %v202_v2, %v206_v4  ;;  %v210_v11 = vld [vmem:[#allocation6 + $0x48] sm:$0xff] }
  0x38   :  { %v213_v7 = vld [vmem:[#allocation6 + $0x60] sm:$0xff]  ;;  %v214_v12 = vld [vmem:[#allocation6 + $0x68] sm:$0xff]  ;;  %v11993_v57 = vcombine.high %v11989_v53, %v11989_v53 }
  0x39   :  { %v10439_v10 = vcombine.high %v209_v6, %v213_v7  ;;  %v217_v13 = vld [vmem:[#allocation6 + $0x80] sm:$0xff]  ;;  %976 = vmatprep.subr.bf16.mxu0 %v10431_v3  ;;  %v10441_v14 = vcombine.high %v210_v11, %v214_v12  ;;  %v218_v16 = vld [vmem:[#allocation6 + $0x88] sm:$0xff]  ;;  %1017 = vmatprep.subr.bf16.mxu1 %v10433_v8  ;;  %v10438_v18 = vcombine.low %v209_v6, %v213_v7 }
  0x3a   :  { %v221_v15 = vld [vmem:[#allocation6 + $0xa0] sm:$0xff]  ;;  %v222_v17 = vld [vmem:[#allocation6 + $0xa8] sm:$0xff]  ;;  %977 = vmatpush1.bf16.msra.mxu0 %v10430_v5  ;;  %1018 = vmatpush1.bf16.msra.mxu1 %v10432_v9  ;;  %v10440_v19 = vcombine.low %v210_v11, %v214_v12 }
  0x3b   :  { %978 = vmatprep.subr.bf16.mxu0 %v10439_v10  ;;  %v10447_v20 = vcombine.high %v217_v13, %v221_v15  ;;  %1019 = vmatprep.subr.bf16.mxu1 %v10441_v14  ;;  %v10449_v21 = vcombine.high %v218_v16, %v222_v17  ;;  %v225_v22 = vld [vmem:[#allocation6 + $0xc0] sm:$0xff]  ;;  %v226_v24 = vld [vmem:[#allocation6 + $0xc8] sm:$0xff]  ;;  %v10446_v26 = vcombine.low %v217_v13, %v221_v15 }
  0x3c   :  { %v229_v23 = vld [vmem:[#allocation6 + $0xe0] sm:$0xff]  ;;  %v230_v25 = vld [vmem:[#allocation6 + $0xe8] sm:$0xff]  ;;  %v10448_v27 = vcombine.low %v218_v16, %v222_v17  ;;  %1008 = vmatprep.mubr.bf16.mxu0 %v11993_v57  ;;  %1049 = vmatprep.mubr.bf16.mxu1 %v11993_v57 }
  0x3d   :  { %v10455_v28 = vcombine.high %v225_v22, %v229_v23  ;;  %v10457_v29 = vcombine.high %v226_v24, %v230_v25  ;;  %v233_v30 = vld [vmem:[#allocation6 + $0x100] sm:$0xff]  ;;  %v234_v32 = vld [vmem:[#allocation6 + $0x108] sm:$0xff]  ;;  %v10454_v34 = vcombine.low %v225_v22, %v229_v23  ;;  %v10456_v35 = vcombine.low %v226_v24, %v230_v25 }
  0x3e   :  { %979 = vmatpush1.bf16.msra.mxu0 %v10438_v18  ;;  %1020 = vmatpush1.bf16.msra.mxu1 %v10440_v19  ;;  %v237_v31 = vld [vmem:[#allocation6 + $0x120] sm:$0xff]  ;;  %v238_v33 = vld [vmem:[#allocation6 + $0x128] sm:$0xff] }
  0x3f   :  { %980 = vmatprep.subr.bf16.mxu0 %v10447_v20  ;;  %1021 = vmatprep.subr.bf16.mxu1 %v10449_v21  ;;  %v10463_v36 = vcombine.high %v233_v30, %v237_v31  ;;  %v10465_v37 = vcombine.high %v234_v32, %v238_v33  ;;  %v241_v38 = vld [vmem:[#allocation6 + $0x140] sm:$0xff]  ;;  %v242_v40 = vld [vmem:[#allocation6 + $0x148] sm:$0xff]  ;;  %v10462_v42 = vcombine.low %v233_v30, %v237_v31 }
  0x40   :  { %v245_v39 = vld [vmem:[#allocation6 + $0x160] sm:$0xff]  ;;  %v246_v41 = vld [vmem:[#allocation6 + $0x168] sm:$0xff]  ;;  %v10464_v43 = vcombine.low %v234_v32, %v238_v33 }
  0x41   :  { %v10471_v44 = vcombine.high %v241_v38, %v245_v39  ;;  %v10473_v45 = vcombine.high %v242_v40, %v246_v41  ;;  %v249_v46 = vld [vmem:[#allocation6 + $0x180] sm:$0xff]  ;;  %v250_v48 = vld [vmem:[#allocation6 + $0x188] sm:$0xff]  ;;  %v10470_v50 = vcombine.low %v241_v38, %v245_v39  ;;  %v10472_v51 = vcombine.low %v242_v40, %v246_v41 }
  0x42   :  { %981 = vmatpush1.bf16.msra.mxu0 %v10446_v26  ;;  %1022 = vmatpush1.bf16.msra.mxu1 %v10448_v27  ;;  %v253_v47 = vld [vmem:[#allocation6 + $0x1a0] sm:$0xff]  ;;  %v254_v49 = vld [vmem:[#allocation6 + $0x1a8] sm:$0xff] }
  0x43   :  { %982 = vmatprep.subr.bf16.mxu0 %v10455_v28  ;;  %1023 = vmatprep.subr.bf16.mxu1 %v10457_v29  ;;  %v10479_v52 = vcombine.high %v249_v46, %v253_v47  ;;  %v10481_v54 = vcombine.high %v250_v48, %v254_v49  ;;  %v257_v55 = vld [vmem:[#allocation6 + $0x1c0] sm:$0xff]  ;;  %v258_v58 = vld [vmem:[#allocation6 + $0x1c8] sm:$0xff]  ;;  %v10478_v60 = vcombine.low %v249_v46, %v253_v47 }
  0x44   :  { %v261_v56 = vld [vmem:[#allocation6 + $0x1e0] sm:$0xff]  ;;  %v262_v59 = vld [vmem:[#allocation6 + $0x1e8] sm:$0xff]  ;;  %v10480_v61 = vcombine.low %v250_v48, %v254_v49 }
  0x45   :  { %v10487_v62 = vcombine.high %v257_v55, %v261_v56  ;;  %v10489_v63 = vcombine.high %v258_v58, %v262_v59  ;;  %v265_v0 = vld [vmem:[#allocation6 + $0x200] sm:$0xff]  ;;  %v266_v2 = vld [vmem:[#allocation6 + $0x208] sm:$0xff]  ;;  %v10486_v4 = vcombine.low %v257_v55, %v261_v56  ;;  %v10488_v5 = vcombine.low %v258_v58, %v262_v59 }
  0x46   :  { %983 = vmatpush1.bf16.msra.mxu0 %v10454_v34  ;;  %1024 = vmatpush1.bf16.msra.mxu1 %v10456_v35  ;;  %v269_v1 = vld [vmem:[#allocation6 + $0x220] sm:$0xff]  ;;  %v270_v3 = vld [vmem:[#allocation6 + $0x228] sm:$0xff] }
  0x47   :  { %984 = vmatprep.subr.bf16.mxu0 %v10463_v36  ;;  %1025 = vmatprep.subr.bf16.mxu1 %v10465_v37  ;;  %v10495_v6 = vcombine.high %v265_v0, %v269_v1  ;;  %v10497_v7 = vcombine.high %v266_v2, %v270_v3  ;;  %v273_v8 = vld [vmem:[#allocation6 + $0x240] sm:$0xff]  ;;  %v274_v10 = vld [vmem:[#allocation6 + $0x248] sm:$0xff]  ;;  %v10494_v12 = vcombine.low %v265_v0, %v269_v1 }
  0x48   :  { %v277_v9 = vld [vmem:[#allocation6 + $0x260] sm:$0xff]  ;;  %v278_v11 = vld [vmem:[#allocation6 + $0x268] sm:$0xff]  ;;  %v10496_v13 = vcombine.low %v266_v2, %v270_v3  ;;  %v203_v2 = vld [vmem:[#allocation6 + $0x10] sm:$0xff] }
  0x49   :  { %v10503_v14 = vcombine.high %v273_v8, %v277_v9  ;;  %v10505_v15 = vcombine.high %v274_v10, %v278_v11  ;;  %v281_v16 = vld [vmem:[#allocation6 + $0x280] sm:$0xff]  ;;  %v282_v18 = vld [vmem:[#allocation6 + $0x288] sm:$0xff]  ;;  %v10502_v20 = vcombine.low %v273_v8, %v277_v9  ;;  %v10504_v21 = vcombine.low %v274_v10, %v278_v11  ;;  %v207_v3 = vld [vmem:[#allocation6 + $0x30] sm:$0xff] }
  0x4a   :  { %985 = vmatpush1.bf16.msra.mxu0 %v10462_v42  ;;  %1026 = vmatpush1.bf16.msra.mxu1 %v10464_v43  ;;  %v285_v17 = vld [vmem:[#allocation6 + $0x2a0] sm:$0xff]  ;;  %v286_v19 = vld [vmem:[#allocation6 + $0x2a8] sm:$0xff]  ;;  %v10435_v8 = vcombine.high %v203_v2, %v207_v3  ;;  %v211_v10 = vld [vmem:[#allocation6 + $0x50] sm:$0xff] }
  0x4b   :  { %986 = vmatprep.subr.bf16.mxu0 %v10471_v44  ;;  %1027 = vmatprep.subr.bf16.mxu1 %v10473_v45  ;;  %v10511_v22 = vcombine.high %v281_v16, %v285_v17  ;;  %v10513_v23 = vcombine.high %v282_v18, %v286_v19  ;;  %v289_v24 = vld [vmem:[#allocation6 + $0x2c0] sm:$0xff]  ;;  %v290_v26 = vld [vmem:[#allocation6 + $0x2c8] sm:$0xff]  ;;  %v10510_v28 = vcombine.low %v281_v16, %v285_v17  ;;  %v215_v11 = vld [vmem:[#allocation6 + $0x70] sm:$0xff] }
  0x4c   :  { %v293_v25 = vld [vmem:[#allocation6 + $0x2e0] sm:$0xff]  ;;  %v294_v27 = vld [vmem:[#allocation6 + $0x2e8] sm:$0xff]  ;;  %v10512_v29 = vcombine.low %v282_v18, %v286_v19  ;;  %v10443_v17 = vcombine.high %v211_v10, %v215_v11  ;;  %v219_v18 = vld [vmem:[#allocation6 + $0x90] sm:$0xff] }
  0x4d   :  { %v10519_v30 = vcombine.high %v289_v24, %v293_v25  ;;  %v10521_v31 = vcombine.high %v290_v26, %v294_v27  ;;  %v297_v32 = vld [vmem:[#allocation6 + $0x300] sm:$0xff]  ;;  %v298_v34 = vld [vmem:[#allocation6 + $0x308] sm:$0xff]  ;;  %v10518_v36 = vcombine.low %v289_v24, %v293_v25  ;;  %v10520_v37 = vcombine.low %v290_v26, %v294_v27  ;;  %v223_v19 = vld [vmem:[#allocation6 + $0xb0] sm:$0xff] }
  0x4e   :  { %987 = vmatpush1.bf16.msra.mxu0 %v10470_v50  ;;  %1028 = vmatpush1.bf16.msra.mxu1 %v10472_v51  ;;  %v301_v33 = vld [vmem:[#allocation6 + $0x320] sm:$0xff]  ;;  %v302_v35 = vld [vmem:[#allocation6 + $0x328] sm:$0xff]  ;;  %v10451_v24 = vcombine.high %v219_v18, %v223_v19  ;;  %v227_v25 = vld [vmem:[#allocation6 + $0xd0] sm:$0xff] }
  0x4f   :  { %988 = vmatprep.subr.bf16.mxu0 %v10479_v52  ;;  %1029 = vmatprep.subr.bf16.mxu1 %v10481_v54  ;;  %v10527_v38 = vcombine.high %v297_v32, %v301_v33  ;;  %v10529_v39 = vcombine.high %v298_v34, %v302_v35  ;;  %v305_v40 = vld [vmem:[#allocation6 + $0x340] sm:$0xff]  ;;  %v306_v42 = vld [vmem:[#allocation6 + $0x348] sm:$0xff]  ;;  %v10526_v44 = vcombine.low %v297_v32, %v301_v33  ;;  %v231_v26 = vld [vmem:[#allocation6 + $0xf0] sm:$0xff] }
  0x50   :  { %v309_v41 = vld [vmem:[#allocation6 + $0x360] sm:$0xff]  ;;  %v310_v43 = vld [vmem:[#allocation6 + $0x368] sm:$0xff]  ;;  %v10528_v45 = vcombine.low %v298_v34, %v302_v35  ;;  %v228_v27 = vld [vmem:[#allocation6 + $0xd8] sm:$0xff]  ;;  %v10459_v32 = vcombine.high %v227_v25, %v231_v26 }
  0x51   :  { %v10535_v46 = vcombine.high %v305_v40, %v309_v41  ;;  %v10537_v47 = vcombine.high %v306_v42, %v310_v43  ;;  %v313_v48 = vld [vmem:[#allocation6 + $0x380] sm:$0xff]  ;;  %v314_v50 = vld [vmem:[#allocation6 + $0x388] sm:$0xff]  ;;  %v10534_v52 = vcombine.low %v305_v40, %v309_v41  ;;  %v10536_v54 = vcombine.low %v306_v42, %v310_v43  ;;  %v235_v33 = vld [vmem:[#allocation6 + $0x110] sm:$0xff] }
  0x52   :  { %989 = vmatpush1.bf16.msra.mxu0 %v10478_v60  ;;  %1030 = vmatpush1.bf16.msra.mxu1 %v10480_v61  ;;  %v317_v49 = vld [vmem:[#allocation6 + $0x3a0] sm:$0xff]  ;;  %v318_v51 = vld [vmem:[#allocation6 + $0x3a8] sm:$0xff]  ;;  %v239_v34 = vld [vmem:[#allocation6 + $0x130] sm:$0xff] }
  0x53   :  { %990 = vmatprep.subr.bf16.mxu0 %v10487_v62  ;;  %1031 = vmatprep.subr.bf16.mxu1 %v10489_v63  ;;  %v10543_v55 = vcombine.high %v313_v48, %v317_v49  ;;  %v10545_v56 = vcombine.high %v314_v50, %v318_v51  ;;  %v321_v58 = vld [vmem:[#allocation6 + $0x3c0] sm:$0xff]  ;;  %v322_v60 = vld [vmem:[#allocation6 + $0x3c8] sm:$0xff]  ;;  %v10542_v62 = vcombine.low %v313_v48, %v317_v49  ;;  %v236_v35 = vld [vmem:[#allocation6 + $0x118] sm:$0xff] }
  0x54   :  { %v325_v59 = vld [vmem:[#allocation6 + $0x3e0] sm:$0xff]  ;;  %v326_v61 = vld [vmem:[#allocation6 + $0x3e8] sm:$0xff]  ;;  %v10544_v63 = vcombine.low %v314_v50, %v318_v51  ;;  %v10467_v40 = vcombine.high %v235_v33, %v239_v34  ;;  %v243_v41 = vld [vmem:[#allocation6 + $0x150] sm:$0xff] }
  0x55   :  { %v10551_v0 = vcombine.high %v321_v58, %v325_v59  ;;  %v10553_v1 = vcombine.high %v322_v60, %v326_v61  ;;  %v244_v42 = vld [vmem:[#allocation6 + $0x158] sm:$0xff]  ;;  %v251_v49 = vld [vmem:[#allocation6 + $0x190] sm:$0xff] }
  0x56   :  { %991 = vmatpush1.bf16.msra.mxu0 %v10486_v4  ;;  %1032 = vmatpush1.bf16.msra.mxu1 %v10488_v5  ;;  %v204_v4 = vld [vmem:[#allocation6 + $0x18] sm:$0xff]  ;;  %v255_v50 = vld [vmem:[#allocation6 + $0x1b0] sm:$0xff] }
  0x57   :  { %992 = vmatprep.subr.bf16.mxu0 %v10495_v6  ;;  %1033 = vmatprep.subr.bf16.mxu1 %v10497_v7  ;;  %v208_v5 = vld [vmem:[#allocation6 + $0x38] sm:$0xff]  ;;  %v10550_v6 = vcombine.low %v321_v58, %v325_v59  ;;  %v10552_v7 = vcombine.low %v322_v60, %v326_v61  ;;  %v259_v59 = vld [vmem:[#allocation6 + $0x1d0] sm:$0xff] }
  0x58   :  { %v10437_v9 = vcombine.high %v204_v4, %v208_v5  ;;  %v10436_v16 = vcombine.low %v204_v4, %v208_v5  ;;  %v252_v51 = vld [vmem:[#allocation6 + $0x198] sm:$0xff]  ;;  %v263_v60 = vld [vmem:[#allocation6 + $0x1f0] sm:$0xff] }
  0x59   :  { %v260_v61 = vld [vmem:[#allocation6 + $0x1d8] sm:$0xff]  ;;  %v271_v4 = vld [vmem:[#allocation6 + $0x230] sm:$0xff] }
  0x5a   :  { %993 = vmatpush1.bf16.msra.mxu0 %v10494_v12  ;;  %1034 = vmatpush1.bf16.msra.mxu1 %v10496_v13  ;;  %v11999_v12 = vcombine.low %v11989_v53, %v11989_v53  ;;  %v212_v13 = vld [vmem:[#allocation6 + $0x58] sm:$0xff]  ;;  %v10442_v53 = vcombine.low %v211_v10, %v215_v11  ;;  %v275_v11 = vld [vmem:[#allocation6 + $0x250] sm:$0xff] }
  0x5b   :  { %994 = vmatprep.subr.bf16.mxu0 %v10503_v14  ;;  %1035 = vmatprep.subr.bf16.mxu1 %v10505_v15  ;;  %v216_v14 = vld [vmem:[#allocation6 + $0x78] sm:$0xff]  ;;  %v10434_v15 = vcombine.low %v203_v2, %v207_v3  ;;  %v267_v3 = vld [vmem:[#allocation6 + $0x210] sm:$0xff] }
  0x5c   :  { %v268_v5 = vld [vmem:[#allocation6 + $0x218] sm:$0xff] }
  0x5e   :  { %995 = vmatpush1.bf16.msra.mxu0 %v10502_v20  ;;  %1036 = vmatpush1.bf16.msra.mxu1 %v10504_v21  ;;  %v220_v20 = vld [vmem:[#allocation6 + $0x98] sm:$0xff]  ;;  %v10445_v21 = vcombine.high %v212_v13, %v216_v14 }
  0x5f   :  { %996 = vmatprep.subr.bf16.mxu0 %v10511_v22  ;;  %1037 = vmatprep.subr.bf16.mxu1 %v10513_v23  ;;  %v224_v22 = vld [vmem:[#allocation6 + $0xb8] sm:$0xff]  ;;  %v10444_v23 = vcombine.low %v212_v13, %v216_v14  ;;  %v279_v13 = vld [vmem:[#allocation6 + $0x270] sm:$0xff] }
  0x60   :  { %v276_v14 = vld [vmem:[#allocation6 + $0x258] sm:$0xff] }
  0x62   :  { %997 = vmatpush1.bf16.msra.mxu0 %v10510_v28  ;;  %1038 = vmatpush1.bf16.msra.mxu1 %v10512_v29  ;;  %v10453_v28 = vcombine.high %v220_v20, %v224_v22  ;;  %v232_v29 = vld [vmem:[#allocation6 + $0xf8] sm:$0xff] }
  0x63   :  { %998 = vmatprep.subr.bf16.mxu0 %v10519_v30  ;;  %1039 = vmatprep.subr.bf16.mxu1 %v10521_v31  ;;  %v10450_v30 = vcombine.low %v219_v18, %v223_v19  ;;  %v10452_v31 = vcombine.low %v220_v20, %v224_v22  ;;  %v10507_v18 = vcombine.high %v275_v11, %v279_v13  ;;  %v283_v20 = vld [vmem:[#allocation6 + $0x290] sm:$0xff]  ;;  %v284_v22 = vld [vmem:[#allocation6 + $0x298] sm:$0xff] }
  0x66   :  { %999 = vmatpush1.bf16.msra.mxu0 %v10518_v36  ;;  %1040 = vmatpush1.bf16.msra.mxu1 %v10520_v37  ;;  %v10461_v36 = vcombine.high %v228_v27, %v232_v29  ;;  %v240_v37 = vld [vmem:[#allocation6 + $0x138] sm:$0xff] }
  0x67   :  { %1000 = vmatprep.subr.bf16.mxu0 %v10527_v38  ;;  %1041 = vmatprep.subr.bf16.mxu1 %v10529_v39  ;;  %v10458_v38 = vcombine.low %v227_v25, %v231_v26  ;;  %v10460_v39 = vcombine.low %v228_v27, %v232_v29  ;;  %v10469_v43 = vcombine.high %v236_v35, %v240_v37  ;;  %v291_v27 = vld [vmem:[#allocation6 + $0x2d0] sm:$0xff]  ;;  %v292_v29 = vld [vmem:[#allocation6 + $0x2d8] sm:$0xff] }
  0x6a   :  { %1001 = vmatpush1.bf16.msra.mxu0 %v10526_v44  ;;  %1042 = vmatpush1.bf16.msra.mxu1 %v10528_v45  ;;  %v248_v44 = vld [vmem:[#allocation6 + $0x178] sm:$0xff]  ;;  %v10466_v45 = vcombine.low %v235_v33, %v239_v34 }
  0x6b   :  { %1002 = vmatprep.subr.bf16.mxu0 %v10535_v46  ;;  %1043 = vmatprep.subr.bf16.mxu1 %v10537_v47  ;;  %v10468_v46 = vcombine.low %v236_v35, %v240_v37  ;;  %v10477_v48 = vcombine.high %v244_v42, %v248_v44  ;;  %v299_v35 = vld [vmem:[#allocation6 + $0x310] sm:$0xff]  ;;  %v300_v37 = vld [vmem:[#allocation6 + $0x318] sm:$0xff] }
  0x6e   :  { %1003 = vmatpush1.bf16.msra.mxu0 %v10534_v52  ;;  %1044 = vmatpush1.bf16.msra.mxu1 %v10536_v54  ;;  %v256_v52 = vld [vmem:[#allocation6 + $0x1b8] sm:$0xff] }
  0x6f   :  { %1004 = vmatprep.subr.bf16.mxu0 %v10543_v55  ;;  %1045 = vmatprep.subr.bf16.mxu1 %v10545_v56  ;;  %v10476_v55 = vcombine.low %v244_v42, %v248_v44  ;;  %v10483_v56 = vcombine.high %v251_v49, %v255_v50  ;;  %v10485_v58 = vcombine.high %v252_v51, %v256_v52  ;;  %v307_v42 = vld [vmem:[#allocation6 + $0x350] sm:$0xff]  ;;  %v308_v44 = vld [vmem:[#allocation6 + $0x358] sm:$0xff] }
  0x72   :  { %1005 = vmatpush1.bf16.msra.mxu0 %v10542_v62  ;;  %1046 = vmatpush1.bf16.msra.mxu1 %v10544_v63  ;;  %v264_v62 = vld [vmem:[#allocation6 + $0x1f8] sm:$0xff]  ;;  %v10482_v63 = vcombine.low %v251_v49, %v255_v50  ;;  %v315_v50 = vld [vmem:[#allocation6 + $0x390] sm:$0xff] }
  0x73   :  { %1006 = vmatprep.subr.bf16.mxu0 %v10551_v0  ;;  %1047 = vmatprep.subr.bf16.mxu1 %v10553_v1  ;;  %v10484_v0 = vcombine.low %v252_v51, %v256_v52  ;;  %v10491_v1 = vcombine.high %v259_v59, %v263_v60  ;;  %v10493_v2 = vcombine.high %v260_v61, %v264_v62  ;;  %v319_v51 = vld [vmem:[#allocation6 + $0x3b0] sm:$0xff]  ;;  %v316_v52 = vld [vmem:[#allocation6 + $0x398] sm:$0xff] }
  0x76   :  { %1007 = vmatpush1.bf16.msra.mxu0 %v10550_v6  ;;  %1048 = vmatpush1.bf16.msra.mxu1 %v10552_v7  ;;  %v272_v6 = vld [vmem:[#allocation6 + $0x238] sm:$0xff]  ;;  %v10490_v7 = vcombine.low %v259_v59, %v263_v60  ;;  %v323_v60 = vld [vmem:[#allocation6 + $0x3d0] sm:$0xff] }
  0x77   :  { %1058 = vmatprep.subr.bf16.mxu0 %v10435_v8  ;;  %1099 = vmatprep.subr.bf16.mxu1 %v10437_v9  ;;  %v10492_v8 = vcombine.low %v260_v61, %v264_v62  ;;  %v10499_v9 = vcombine.high %v267_v3, %v271_v4  ;;  %v10501_v10 = vcombine.high %v268_v5, %v272_v6  ;;  %v327_v61 = vld [vmem:[#allocation6 + $0x3f0] sm:$0xff]  ;;  %v324_v62 = vld [vmem:[#allocation6 + $0x3d8] sm:$0xff] }
  0x79   :  { %1009 = vmatmul.mubr.bf16.vlgmr.msra.gmra.mrb[0].mxu0 %v11999_v12  ;;  %1050 = vmatmul.mubr.bf16.vlgmr.msra.gmra.mrb[0].mxu1 %v11999_v12 }
  0x7a   :  { %1059 = vmatpush1.bf16.msra.mxu0 %v10434_v15  ;;  %1100 = vmatpush1.bf16.msra.mxu1 %v10436_v16  ;;  %v280_v15 = vld [vmem:[#allocation6 + $0x278] sm:$0xff]  ;;  %v10498_v16 = vcombine.low %v267_v3, %v271_v4  ;;  %v72_v4 = vld [vmem:[#allocation4] sm:$0xff] }
  0x7b   :  { %1060 = vmatprep.subr.bf16.mxu0 %v10443_v17  ;;  %1101 = vmatprep.subr.bf16.mxu1 %v10445_v21  ;;  %v10500_v17 = vcombine.low %v268_v5, %v272_v6  ;;  %v10509_v19 = vcombine.high %v276_v14, %v280_v15  ;;  %v287_v21 = vld [vmem:[#allocation6 + $0x2b0] sm:$0xff]  ;;  %v76_v5 = vld [vmem:[#allocation4 + $0x20] sm:$0xff]  ;;  %v73_v6 = vld [vmem:[#allocation4 + $0x8] sm:$0xff] }
  0x7c   :  { %1090 = vmatprep.mubr.bf16.mxu0 %v11993_v57  ;;  %1131 = vmatprep.mubr.bf16.mxu1 %v11993_v57  ;;  %v247_v57 = vld [vmem:[#allocation6 + $0x170] sm:$0xff]  ;;  %v10515_v25 = vcombine.high %v283_v20, %v287_v21 }
  0x7d   :  { %v10475_v47 = vcombine.high %v243_v41, %v247_v57  ;;  %v10474_v54 = vcombine.low %v243_v41, %v247_v57 }
  0x7e   :  { %1061 = vmatpush1.bf16.msra.mxu0 %v10442_v53  ;;  %1102 = vmatpush1.bf16.msra.mxu1 %v10444_v23  ;;  %v288_v53 = vld [vmem:[#allocation6 + $0x2b8] sm:$0xff]  ;;  %v10506_v23 = vcombine.low %v275_v11, %v279_v13  ;;  %v80_v13 = vld [vmem:[#allocation4 + $0x40] sm:$0xff] }
  0x7f   :  { %1062 = vmatprep.subr.bf16.mxu0 %v10451_v24  ;;  %1103 = vmatprep.subr.bf16.mxu1 %v10453_v28  ;;  %v10508_v24 = vcombine.low %v276_v14, %v280_v15  ;;  %v10517_v26 = vcombine.high %v284_v22, %v288_v53  ;;  %v295_v28 = vld [vmem:[#allocation6 + $0x2f0] sm:$0xff]  ;;  %v84_v14 = vld [vmem:[#allocation4 + $0x60] sm:$0xff]  ;;  %v81_v15 = vld [vmem:[#allocation4 + $0x48] sm:$0xff] }
  0x80   :  { %v10523_v33 = vcombine.high %v291_v27, %v295_v28 }
  0x82   :  { %1063 = vmatpush1.bf16.msra.mxu0 %v10450_v30  ;;  %1104 = vmatpush1.bf16.msra.mxu1 %v10452_v31  ;;  %v296_v30 = vld [vmem:[#allocation6 + $0x2f8] sm:$0xff]  ;;  %v10514_v31 = vcombine.low %v283_v20, %v287_v21  ;;  %v10569_v20 = vcombine.high %v80_v13, %v84_v14 }
  0x83   :  { %1064 = vmatprep.subr.bf16.mxu0 %v10459_v32  ;;  %1105 = vmatprep.subr.bf16.mxu1 %v10461_v36  ;;  %v10516_v32 = vcombine.low %v284_v22, %v288_v53  ;;  %v10525_v34 = vcombine.high %v292_v29, %v296_v30  ;;  %v303_v36 = vld [vmem:[#allocation6 + $0x330] sm:$0xff]  ;;  %v88_v22 = vld [vmem:[#allocation4 + $0x80] sm:$0xff] }
  0x84   :  { %v10531_v41 = vcombine.high %v299_v35, %v303_v36  ;;  %v92_v53 = vld [vmem:[#allocation4 + $0xa0] sm:$0xff] }
  0x86   :  { %1065 = vmatpush1.bf16.msra.mxu0 %v10458_v38  ;;  %1106 = vmatpush1.bf16.msra.mxu1 %v10460_v39  ;;  %v304_v38 = vld [vmem:[#allocation6 + $0x338] sm:$0xff]  ;;  %v10522_v39 = vcombine.low %v291_v27, %v295_v28  ;;  %v10577_v28 = vcombine.high %v88_v22, %v92_v53 }
  0x87   :  { %1066 = vmatprep.subr.bf16.mxu0 %v10467_v40  ;;  %1107 = vmatprep.subr.bf16.mxu1 %v10469_v43  ;;  %v10524_v40 = vcombine.low %v292_v29, %v296_v30  ;;  %v10533_v57 = vcombine.high %v300_v37, %v304_v38  ;;  %v311_v43 = vld [vmem:[#allocation6 + $0x370] sm:$0xff]  ;;  %v96_v30 = vld [vmem:[#allocation4 + $0xc0] sm:$0xff] }
  0x8a   :  { %1067 = vmatpush1.bf16.msra.mxu0 %v10466_v45  ;;  %1108 = vmatpush1.bf16.msra.mxu1 %v10468_v46  ;;  %v312_v45 = vld [vmem:[#allocation6 + $0x378] sm:$0xff]  ;;  %v10530_v46 = vcombine.low %v299_v35, %v303_v36 }
  0x8b   :  { %1068 = vmatprep.subr.bf16.mxu0 %v10475_v47  ;;  %1109 = vmatprep.subr.bf16.mxu1 %v10477_v48  ;;  %v10532_v47 = vcombine.low %v300_v37, %v304_v38  ;;  %v10539_v48 = vcombine.high %v307_v42, %v311_v43  ;;  %v10541_v49 = vcombine.high %v308_v44, %v312_v45  ;;  %v104_v37 = vld [vmem:[#allocation4 + $0x100] sm:$0xff] }
  0x8c   :  { %v108_v38 = vld [vmem:[#allocation4 + $0x120] sm:$0xff] }
  0x8e   :  { %1069 = vmatpush1.bf16.msra.mxu0 %v10474_v54  ;;  %1110 = vmatpush1.bf16.msra.mxu1 %v10476_v55  ;;  %v320_v54 = vld [vmem:[#allocation6 + $0x3b8] sm:$0xff]  ;;  %v10538_v55 = vcombine.low %v307_v42, %v311_v43  ;;  %v10593_v42 = vcombine.high %v104_v37, %v108_v38 }
  0x8f   :  { %1070 = vmatprep.subr.bf16.mxu0 %v10483_v56  ;;  %1111 = vmatprep.subr.bf16.mxu1 %v10485_v58  ;;  %v10540_v56 = vcombine.low %v308_v44, %v312_v45  ;;  %v10547_v58 = vcombine.high %v315_v50, %v319_v51  ;;  %v10549_v59 = vcombine.high %v316_v52, %v320_v54  ;;  %v112_v44 = vld [vmem:[#allocation4 + $0x140] sm:$0xff] }
  0x90   :  { %v116_v45 = vld [vmem:[#allocation4 + $0x160] sm:$0xff] }
  0x92   :  { %1071 = vmatpush1.bf16.msra.mxu0 %v10482_v63  ;;  %1112 = vmatpush1.bf16.msra.mxu1 %v10484_v0  ;;  %v328_v63 = vld [vmem:[#allocation6 + $0x3f8] sm:$0xff]  ;;  %v10546_v0 = vcombine.low %v315_v50, %v319_v51  ;;  %v10601_v50 = vcombine.high %v112_v44, %v116_v45 }
  0x93   :  { %1072 = vmatprep.subr.bf16.mxu0 %v10491_v1  ;;  %1113 = vmatprep.subr.bf16.mxu1 %v10493_v2  ;;  %v10548_v1 = vcombine.low %v316_v52, %v320_v54  ;;  %v10555_v2 = vcombine.high %v323_v60, %v327_v61  ;;  %v10557_v3 = vcombine.high %v324_v62, %v328_v63  ;;  %v120_v52 = vld [vmem:[#allocation4 + $0x180] sm:$0xff] }
  0x94   :  { %v124_v54 = vld [vmem:[#allocation4 + $0x1a0] sm:$0xff] }
  0x96   :  { %1073 = vmatpush1.bf16.msra.mxu0 %v10490_v7  ;;  %1114 = vmatpush1.bf16.msra.mxu1 %v10492_v8  ;;  %v77_v7 = vld [vmem:[#allocation4 + $0x28] sm:$0xff]  ;;  %v10554_v8 = vcombine.low %v323_v60, %v327_v61  ;;  %v10609_v60 = vcombine.high %v120_v52, %v124_v54 }
  0x97   :  { %1074 = vmatprep.subr.bf16.mxu0 %v10499_v9  ;;  %1115 = vmatprep.subr.bf16.mxu1 %v10501_v10  ;;  %v10556_v9 = vcombine.low %v324_v62, %v328_v63  ;;  %v10561_v10 = vcombine.high %v72_v4, %v76_v5  ;;  %v10563_v11 = vcombine.high %v73_v6, %v77_v7  ;;  %v128_v62 = vld [vmem:[#allocation4 + $0x1c0] sm:$0xff] }
  0x98   :  { %v132_v63 = vld [vmem:[#allocation4 + $0x1e0] sm:$0xff] }
  0x9a   :  { %1075 = vmatpush1.bf16.msra.mxu0 %v10498_v16  ;;  %1116 = vmatpush1.bf16.msra.mxu1 %v10500_v17  ;;  %v85_v16 = vld [vmem:[#allocation4 + $0x68] sm:$0xff]  ;;  %v12008_v17 = vld [vmem:[%s14274_s0] sm:$0xff] }
  0x9b   :  { %1076 = vmatprep.subr.bf16.mxu0 %v10507_v18  ;;  %1117 = vmatprep.subr.bf16.mxu1 %v10509_v19  ;;  %v10560_v18 = vcombine.low %v72_v4, %v76_v5  ;;  %v10562_v19 = vcombine.low %v73_v6, %v77_v7  ;;  %v10571_v21 = vcombine.high %v81_v15, %v85_v16  ;;  %v136_v6 = vld [vmem:[#allocation4 + $0x200] sm:$0xff] }
  0x9c   :  { %v10570_v27 = vcombine.low %v81_v15, %v85_v16  ;;  %v10617_v4 = vcombine.high %v128_v62, %v132_v63  ;;  %v140_v7 = vld [vmem:[#allocation4 + $0x220] sm:$0xff] }
  0x9d   :  { %v144_v15 = vld [vmem:[#allocation4 + $0x240] sm:$0xff] }
  0x9e   :  { %1077 = vmatpush1.bf16.msra.mxu0 %v10506_v23  ;;  %1118 = vmatpush1.bf16.msra.mxu1 %v10508_v24  ;;  %v12012_v23 = vcombine.high %v12008_v17, %v12008_v17  ;;  %v89_v24 = vld [vmem:[#allocation4 + $0x88] sm:$0xff]  ;;  %v148_v16 = vld [vmem:[#allocation4 + $0x260] sm:$0xff] }
  0x9f   :  { %1078 = vmatprep.subr.bf16.mxu0 %v10515_v25  ;;  %1119 = vmatprep.subr.bf16.mxu1 %v10517_v26  ;;  %v93_v25 = vld [vmem:[#allocation4 + $0xa8] sm:$0xff]  ;;  %v10568_v26 = vcombine.low %v80_v13, %v84_v14  ;;  %v10625_v13 = vcombine.high %v136_v6, %v140_v7 }
  0xa0   :  { %v10579_v29 = vcombine.high %v89_v24, %v93_v25 }
  0xa2   :  { %1079 = vmatpush1.bf16.msra.mxu0 %v10514_v31  ;;  %1120 = vmatpush1.bf16.msra.mxu1 %v10516_v32  ;;  %v100_v31 = vld [vmem:[#allocation4 + $0xe0] sm:$0xff]  ;;  %v97_v32 = vld [vmem:[#allocation4 + $0xc8] sm:$0xff] }
  0xa3   :  { %1080 = vmatprep.subr.bf16.mxu0 %v10523_v33  ;;  %1121 = vmatprep.subr.bf16.mxu1 %v10525_v34  ;;  %v101_v33 = vld [vmem:[#allocation4 + $0xe8] sm:$0xff]  ;;  %v10576_v34 = vcombine.low %v88_v22, %v92_v53  ;;  %v10585_v35 = vcombine.high %v96_v30, %v100_v31  ;;  %v10633_v22 = vcombine.high %v144_v15, %v148_v16 }
  0xa4   :  { %v10587_v36 = vcombine.high %v97_v32, %v101_v33 }
  0xa6   :  { %1081 = vmatpush1.bf16.msra.mxu0 %v10522_v39  ;;  %1122 = vmatpush1.bf16.msra.mxu1 %v10524_v40  ;;  %v105_v39 = vld [vmem:[#allocation4 + $0x108] sm:$0xff] }
  0xa7   :  { %1082 = vmatprep.subr.bf16.mxu0 %v10531_v41  ;;  %1123 = vmatprep.subr.bf16.mxu1 %v10533_v57  ;;  %v109_v40 = vld [vmem:[#allocation4 + $0x128] sm:$0xff]  ;;  %v10584_v41 = vcombine.low %v96_v30, %v100_v31  ;;  %v10586_v57 = vcombine.low %v97_v32, %v101_v33  ;;  %v160_v32 = vld [vmem:[#allocation4 + $0x2c0] sm:$0xff] }
  0xa8   :  { %v10595_v43 = vcombine.high %v105_v39, %v109_v40  ;;  %v164_v33 = vld [vmem:[#allocation4 + $0x2e0] sm:$0xff] }
  0xaa   :  { %1083 = vmatpush1.bf16.msra.mxu0 %v10530_v46  ;;  %1124 = vmatpush1.bf16.msra.mxu1 %v10532_v47  ;;  %v113_v46 = vld [vmem:[#allocation4 + $0x148] sm:$0xff] }
  0xab   :  { %1084 = vmatprep.subr.bf16.mxu0 %v10539_v48  ;;  %1125 = vmatprep.subr.bf16.mxu1 %v10541_v49  ;;  %v117_v47 = vld [vmem:[#allocation4 + $0x168] sm:$0xff]  ;;  %v10592_v48 = vcombine.low %v104_v37, %v108_v38  ;;  %v10594_v49 = vcombine.low %v105_v39, %v109_v40  ;;  %v10649_v37 = vcombine.high %v160_v32, %v164_v33  ;;  %v168_v39 = vld [vmem:[#allocation4 + $0x300] sm:$0xff] }
  0xac   :  { %v10603_v51 = vcombine.high %v113_v46, %v117_v47  ;;  %v172_v40 = vld [vmem:[#allocation4 + $0x320] sm:$0xff] }
  0xae   :  { %1085 = vmatpush1.bf16.msra.mxu0 %v10538_v55  ;;  %1126 = vmatpush1.bf16.msra.mxu1 %v10540_v56  ;;  %v121_v55 = vld [vmem:[#allocation4 + $0x188] sm:$0xff] }
  0xaf   :  { %1086 = vmatprep.subr.bf16.mxu0 %v10547_v58  ;;  %1127 = vmatprep.subr.bf16.mxu1 %v10549_v59  ;;  %v125_v56 = vld [vmem:[#allocation4 + $0x1a8] sm:$0xff]  ;;  %v10600_v58 = vcombine.low %v112_v44, %v116_v45  ;;  %v10602_v59 = vcombine.low %v113_v46, %v117_v47  ;;  %v10657_v44 = vcombine.high %v168_v39, %v172_v40  ;;  %v176_v46 = vld [vmem:[#allocation4 + $0x340] sm:$0xff] }
  0xb0   :  { %v10611_v61 = vcombine.high %v121_v55, %v125_v56  ;;  %v180_v47 = vld [vmem:[#allocation4 + $0x360] sm:$0xff] }
  0xb2   :  { %1087 = vmatpush1.bf16.msra.mxu0 %v10546_v0  ;;  %1128 = vmatpush1.bf16.msra.mxu1 %v10548_v1  ;;  %v129_v0 = vld [vmem:[#allocation4 + $0x1c8] sm:$0xff] }
  0xb3   :  { %1088 = vmatprep.subr.bf16.mxu0 %v10555_v2  ;;  %1129 = vmatprep.subr.bf16.mxu1 %v10557_v3  ;;  %v133_v1 = vld [vmem:[#allocation4 + $0x1e8] sm:$0xff]  ;;  %v10608_v2 = vcombine.low %v120_v52, %v124_v54  ;;  %v10610_v3 = vcombine.low %v121_v55, %v125_v56  ;;  %v10665_v52 = vcombine.high %v176_v46, %v180_v47  ;;  %v184_v55 = vld [vmem:[#allocation4 + $0x380] sm:$0xff] }
  0xb4   :  { %v10619_v5 = vcombine.high %v129_v0, %v133_v1  ;;  %v188_v56 = vld [vmem:[#allocation4 + $0x3a0] sm:$0xff] }
  0xb6   :  { %1089 = vmatpush1.bf16.msra.mxu0 %v10554_v8  ;;  %1130 = vmatpush1.bf16.msra.mxu1 %v10556_v9  ;;  %v137_v8 = vld [vmem:[#allocation4 + $0x208] sm:$0xff] }
  0xb7   :  { %1787 = vmatprep.subr.bf16.mxu0 %v10561_v10  ;;  %1828 = vmatprep.subr.bf16.mxu1 %v10563_v11  ;;  %v141_v9 = vld [vmem:[#allocation4 + $0x228] sm:$0xff]  ;;  %v10616_v10 = vcombine.low %v128_v62, %v132_v63  ;;  %v10618_v11 = vcombine.low %v129_v0, %v133_v1  ;;  %v10673_v62 = vcombine.high %v184_v55, %v188_v56  ;;  %v192_v0 = vld [vmem:[#allocation4 + $0x3c0] sm:$0xff] }
  0xb8   :  { %v10627_v14 = vcombine.high %v137_v8, %v141_v9  ;;  %v196_v1 = vld [vmem:[#allocation4 + $0x3e0] sm:$0xff] }
  0xb9   :  { %1091 = vmatmul.mubr.bf16.vlgmr.msra.gmra.mrb[4].mxu0 %v11999_v12  ;;  %1132 = vmatmul.mubr.bf16.vlgmr.msra.gmra.mrb[4].mxu1 %v11999_v12  ;;  %v10578_v12 = vcombine.low %v89_v24, %v93_v25  ;;  %v152_v24 = vld [vmem:[#allocation4 + $0x280] sm:$0xff] }
  0xba   :  { %1788 = vmatpush1.bf16.msra.mxu0 %v10560_v18  ;;  %1829 = vmatpush1.bf16.msra.mxu1 %v10562_v19  ;;  %v145_v18 = vld [vmem:[#allocation4 + $0x248] sm:$0xff]  ;;  %v156_v25 = vld [vmem:[#allocation4 + $0x2a0] sm:$0xff] }
  0xbb   :  { %1789 = vmatprep.subr.bf16.mxu0 %v10569_v20  ;;  %1830 = vmatprep.subr.bf16.mxu1 %v10571_v21  ;;  %v149_v19 = vld [vmem:[#allocation4 + $0x268] sm:$0xff]  ;;  %v10624_v20 = vcombine.low %v136_v6, %v140_v7  ;;  %v10626_v21 = vcombine.low %v137_v8, %v141_v9  ;;  %v10641_v30 = vcombine.high %v152_v24, %v156_v25  ;;  %v74_v8 = vld [vmem:[#allocation4 + $0x10] sm:$0xff] }
  0xbc   :  { %1819 = vmatprep.mubr.bf16.mxu0 %v12012_v23  ;;  %1860 = vmatprep.mubr.bf16.mxu1 %v12012_v23  ;;  %v10635_v53 = vcombine.high %v145_v18, %v149_v19  ;;  %v10681_v6 = vcombine.high %v192_v0, %v196_v1  ;;  %v78_v9 = vld [vmem:[#allocation4 + $0x30] sm:$0xff] }
  0xbe   :  { %1790 = vmatpush1.bf16.msra.mxu0 %v10568_v26  ;;  %1831 = vmatpush1.bf16.msra.mxu1 %v10570_v27  ;;  %v153_v26 = vld [vmem:[#allocation4 + $0x288] sm:$0xff] }
  0xbf   :  { %1791 = vmatprep.subr.bf16.mxu0 %v10577_v28  ;;  %1832 = vmatprep.subr.bf16.mxu1 %v10579_v29  ;;  %v157_v27 = vld [vmem:[#allocation4 + $0x2a8] sm:$0xff]  ;;  %v10632_v28 = vcombine.low %v144_v15, %v148_v16  ;;  %v10634_v29 = vcombine.low %v145_v18, %v149_v19  ;;  %v10565_v15 = vcombine.high %v74_v8, %v78_v9  ;;  %v82_v18 = vld [vmem:[#allocation4 + $0x50] sm:$0xff] }
  0xc0   :  { %v10643_v31 = vcombine.high %v153_v26, %v157_v27  ;;  %v86_v19 = vld [vmem:[#allocation4 + $0x70] sm:$0xff] }
  0xc2   :  { %1792 = vmatpush1.bf16.msra.mxu0 %v10576_v34  ;;  %1833 = vmatpush1.bf16.msra.mxu1 %v10578_v12  ;;  %v161_v34 = vld [vmem:[#allocation4 + $0x2c8] sm:$0xff] }
  0xc3   :  { %1793 = vmatprep.subr.bf16.mxu0 %v10585_v35  ;;  %1834 = vmatprep.subr.bf16.mxu1 %v10587_v36  ;;  %v165_v12 = vld [vmem:[#allocation4 + $0x2e8] sm:$0xff]  ;;  %v10640_v35 = vcombine.low %v152_v24, %v156_v25  ;;  %v10642_v36 = vcombine.low %v153_v26, %v157_v27  ;;  %v10573_v25 = vcombine.high %v82_v18, %v86_v19  ;;  %v90_v27 = vld [vmem:[#allocation4 + $0x90] sm:$0xff] }
  0xc4   :  { %v10651_v38 = vcombine.high %v161_v34, %v165_v12 }
  0xc6   :  { %1794 = vmatpush1.bf16.msra.mxu0 %v10584_v41  ;;  %1835 = vmatpush1.bf16.msra.mxu1 %v10586_v57  ;;  %v169_v41 = vld [vmem:[#allocation4 + $0x308] sm:$0xff] }
  0xc7   :  { %1795 = vmatprep.subr.bf16.mxu0 %v10593_v42  ;;  %1836 = vmatprep.subr.bf16.mxu1 %v10595_v43  ;;  %v173_v57 = vld [vmem:[#allocation4 + $0x328] sm:$0xff]  ;;  %v10648_v42 = vcombine.low %v160_v32, %v164_v33  ;;  %v10650_v43 = vcombine.low %v161_v34, %v165_v12  ;;  %v98_v34 = vld [vmem:[#allocation4 + $0xd0] sm:$0xff] }
  0xc8   :  { %v10659_v45 = vcombine.high %v169_v41, %v173_v57  ;;  %v102_v12 = vld [vmem:[#allocation4 + $0xf0] sm:$0xff] }
  0xca   :  { %1796 = vmatpush1.bf16.msra.mxu0 %v10592_v48  ;;  %1837 = vmatpush1.bf16.msra.mxu1 %v10594_v49  ;;  %v177_v48 = vld [vmem:[#allocation4 + $0x348] sm:$0xff] }
  0xcb   :  { %1797 = vmatprep.subr.bf16.mxu0 %v10601_v50  ;;  %1838 = vmatprep.subr.bf16.mxu1 %v10603_v51  ;;  %v181_v49 = vld [vmem:[#allocation4 + $0x368] sm:$0xff]  ;;  %v10656_v50 = vcombine.low %v168_v39, %v172_v40  ;;  %v10658_v51 = vcombine.low %v169_v41, %v173_v57  ;;  %v10589_v39 = vcombine.high %v98_v34, %v102_v12  ;;  %v106_v41 = vld [vmem:[#allocation4 + $0x110] sm:$0xff] }
  0xcc   :  { %v10667_v54 = vcombine.high %v177_v48, %v181_v49  ;;  %v110_v57 = vld [vmem:[#allocation4 + $0x130] sm:$0xff] }
  0xce   :  { %1798 = vmatpush1.bf16.msra.mxu0 %v10600_v58  ;;  %1839 = vmatpush1.bf16.msra.mxu1 %v10602_v59  ;;  %v185_v58 = vld [vmem:[#allocation4 + $0x388] sm:$0xff] }
  0xcf   :  { %1799 = vmatprep.subr.bf16.mxu0 %v10609_v60  ;;  %1840 = vmatprep.subr.bf16.mxu1 %v10611_v61  ;;  %v189_v59 = vld [vmem:[#allocation4 + $0x3a8] sm:$0xff]  ;;  %v10664_v60 = vcombine.low %v176_v46, %v180_v47  ;;  %v10666_v61 = vcombine.low %v177_v48, %v181_v49  ;;  %v10597_v46 = vcombine.high %v106_v41, %v110_v57  ;;  %v114_v47 = vld [vmem:[#allocation4 + $0x150] sm:$0xff]  ;;  %v115_v49 = vld [vmem:[#allocation4 + $0x158] sm:$0xff] }
  0xd0   :  { %v10675_v63 = vcombine.high %v185_v58, %v189_v59  ;;  %v118_v48 = vld [vmem:[#allocation4 + $0x170] sm:$0xff] }
  0xd2   :  { %1800 = vmatpush1.bf16.msra.mxu0 %v10608_v2  ;;  %1841 = vmatpush1.bf16.msra.mxu1 %v10610_v3  ;;  %v193_v2 = vld [vmem:[#allocation4 + $0x3c8] sm:$0xff] }
  0xd3   :  { %1801 = vmatprep.subr.bf16.mxu0 %v10617_v4  ;;  %1842 = vmatprep.subr.bf16.mxu1 %v10619_v5  ;;  %v197_v3 = vld [vmem:[#allocation4 + $0x3e8] sm:$0xff]  ;;  %v10672_v4 = vcombine.low %v184_v55, %v188_v56  ;;  %v10674_v5 = vcombine.low %v185_v58, %v189_v59  ;;  %v122_v56 = vld [vmem:[#allocation4 + $0x190] sm:$0xff]  ;;  %v123_v59 = vld [vmem:[#allocation4 + $0x198] sm:$0xff] }
  0xd4   :  { %v10683_v7 = vcombine.high %v193_v2, %v197_v3  ;;  %v126_v58 = vld [vmem:[#allocation4 + $0x1b0] sm:$0xff] }
  0xd6   :  { %1802 = vmatpush1.bf16.msra.mxu0 %v10616_v10  ;;  %1843 = vmatpush1.bf16.msra.mxu1 %v10618_v11  ;;  %v75_v10 = vld [vmem:[#allocation4 + $0x18] sm:$0xff] }
  0xd7   :  { %1803 = vmatprep.subr.bf16.mxu0 %v10625_v13  ;;  %1844 = vmatprep.subr.bf16.mxu1 %v10627_v14  ;;  %v79_v11 = vld [vmem:[#allocation4 + $0x38] sm:$0xff]  ;;  %v10680_v13 = vcombine.low %v192_v0, %v196_v1  ;;  %v10682_v14 = vcombine.low %v193_v2, %v197_v3  ;;  %v130_v1 = vld [vmem:[#allocation4 + $0x1d0] sm:$0xff] }
  0xd8   :  { %v10567_v16 = vcombine.high %v75_v10, %v79_v11  ;;  %v10566_v24 = vcombine.low %v75_v10, %v79_v11  ;;  %v134_v2 = vld [vmem:[#allocation4 + $0x1f0] sm:$0xff]  ;;  %v131_v3 = vld [vmem:[#allocation4 + $0x1d8] sm:$0xff] }
  0xd9   :  { %v142_v10 = vld [vmem:[#allocation4 + $0x230] sm:$0xff]  ;;  %v139_v11 = vld [vmem:[#allocation4 + $0x218] sm:$0xff] }
  0xda   :  { %1804 = vmatpush1.bf16.msra.mxu0 %v10624_v20  ;;  %1845 = vmatpush1.bf16.msra.mxu1 %v10626_v21  ;;  %v12020_v20 = vcombine.low %v12008_v17, %v12008_v17  ;;  %v83_v21 = vld [vmem:[#allocation4 + $0x58] sm:$0xff]  ;;  %v10572_v17 = vcombine.low %v82_v18, %v86_v19  ;;  %v146_v19 = vld [vmem:[#allocation4 + $0x250] sm:$0xff] }
  0xdb   :  { %1805 = vmatprep.subr.bf16.mxu0 %v10633_v22  ;;  %1846 = vmatprep.subr.bf16.mxu1 %v10635_v53  ;;  %v87_v22 = vld [vmem:[#allocation4 + $0x78] sm:$0xff]  ;;  %v10564_v53 = vcombine.low %v74_v8, %v78_v9  ;;  %v138_v9 = vld [vmem:[#allocation4 + $0x210] sm:$0xff] }
  0xdc   :  { %v10575_v26 = vcombine.high %v83_v21, %v87_v22 }
  0xde   :  { %1806 = vmatpush1.bf16.msra.mxu0 %v10632_v28  ;;  %1847 = vmatpush1.bf16.msra.mxu1 %v10634_v29  ;;  %v94_v28 = vld [vmem:[#allocation4 + $0xb0] sm:$0xff]  ;;  %v91_v29 = vld [vmem:[#allocation4 + $0x98] sm:$0xff] }
  0xdf   :  { %1807 = vmatprep.subr.bf16.mxu0 %v10641_v30  ;;  %1848 = vmatprep.subr.bf16.mxu1 %v10643_v31  ;;  %v95_v30 = vld [vmem:[#allocation4 + $0xb8] sm:$0xff]  ;;  %v10574_v31 = vcombine.low %v83_v21, %v87_v22  ;;  %v10581_v32 = vcombine.high %v90_v27, %v94_v28  ;;  %v150_v21 = vld [vmem:[#allocation4 + $0x270] sm:$0xff] }
  0xe0   :  { %v10583_v33 = vcombine.high %v91_v29, %v95_v30  ;;  %v147_v22 = vld [vmem:[#allocation4 + $0x258] sm:$0xff] }
  0xe2   :  { %1808 = vmatpush1.bf16.msra.mxu0 %v10640_v35  ;;  %1849 = vmatpush1.bf16.msra.mxu1 %v10642_v36  ;;  %v99_v35 = vld [vmem:[#allocation4 + $0xd8] sm:$0xff] }
  0xe3   :  { %1809 = vmatprep.subr.bf16.mxu0 %v10649_v37  ;;  %1850 = vmatprep.subr.bf16.mxu1 %v10651_v38  ;;  %v103_v36 = vld [vmem:[#allocation4 + $0xf8] sm:$0xff]  ;;  %v10580_v37 = vcombine.low %v90_v27, %v94_v28  ;;  %v10582_v38 = vcombine.low %v91_v29, %v95_v30  ;;  %v154_v28 = vld [vmem:[#allocation4 + $0x290] sm:$0xff] }
  0xe4   :  { %v10591_v40 = vcombine.high %v99_v35, %v103_v36  ;;  %v158_v29 = vld [vmem:[#allocation4 + $0x2b0] sm:$0xff]  ;;  %v155_v30 = vld [vmem:[#allocation4 + $0x298] sm:$0xff] }
  0xe6   :  { %1810 = vmatpush1.bf16.msra.mxu0 %v10648_v42  ;;  %1851 = vmatpush1.bf16.msra.mxu1 %v10650_v43  ;;  %v107_v42 = vld [vmem:[#allocation4 + $0x118] sm:$0xff] }
  0xe7   :  { %1811 = vmatprep.subr.bf16.mxu0 %v10657_v44  ;;  %1852 = vmatprep.subr.bf16.mxu1 %v10659_v45  ;;  %v111_v43 = vld [vmem:[#allocation4 + $0x138] sm:$0xff]  ;;  %v10588_v44 = vcombine.low %v98_v34, %v102_v12  ;;  %v10590_v45 = vcombine.low %v99_v35, %v103_v36  ;;  %v162_v12 = vld [vmem:[#allocation4 + $0x2d0] sm:$0xff] }
  0xe8   :  { %v166_v35 = vld [vmem:[#allocation4 + $0x2f0] sm:$0xff]  ;;  %v163_v36 = vld [vmem:[#allocation4 + $0x2d8] sm:$0xff] }
  0xea   :  { %1812 = vmatpush1.bf16.msra.mxu0 %v10656_v50  ;;  %1853 = vmatpush1.bf16.msra.mxu1 %v10658_v51  ;;  %v119_v50 = vld [vmem:[#allocation4 + $0x178] sm:$0xff]  ;;  %v10596_v51 = vcombine.low %v106_v41, %v110_v57  ;;  %v170_v57 = vld [vmem:[#allocation4 + $0x310] sm:$0xff] }
  0xeb   :  { %1813 = vmatprep.subr.bf16.mxu0 %v10665_v52  ;;  %1854 = vmatprep.subr.bf16.mxu1 %v10667_v54  ;;  %v10598_v52 = vcombine.low %v107_v42, %v111_v43  ;;  %v10605_v54 = vcombine.high %v114_v47, %v118_v48  ;;  %v10607_v55 = vcombine.high %v115_v49, %v119_v50 }
  0xee   :  { %1814 = vmatpush1.bf16.msra.mxu0 %v10664_v60  ;;  %1855 = vmatpush1.bf16.msra.mxu1 %v10666_v61  ;;  %v127_v60 = vld [vmem:[#allocation4 + $0x1b8] sm:$0xff]  ;;  %v10604_v61 = vcombine.low %v114_v47, %v118_v48  ;;  %v178_v48 = vld [vmem:[#allocation4 + $0x350] sm:$0xff] }
  0xef   :  { %1815 = vmatprep.subr.bf16.mxu0 %v10673_v62  ;;  %1856 = vmatprep.subr.bf16.mxu1 %v10675_v63  ;;  %v10606_v62 = vcombine.low %v115_v49, %v119_v50  ;;  %v10613_v63 = vcombine.high %v122_v56, %v126_v58  ;;  %v10615_v0 = vcombine.high %v123_v59, %v127_v60  ;;  %v182_v49 = vld [vmem:[#allocation4 + $0x370] sm:$0xff]  ;;  %v179_v50 = vld [vmem:[#allocation4 + $0x358] sm:$0xff] }
  0xf2   :  { %1816 = vmatpush1.bf16.msra.mxu0 %v10672_v4  ;;  %1857 = vmatpush1.bf16.msra.mxu1 %v10674_v5  ;;  %v135_v4 = vld [vmem:[#allocation4 + $0x1f8] sm:$0xff]  ;;  %v10612_v5 = vcombine.low %v122_v56, %v126_v58  ;;  %v186_v58 = vld [vmem:[#allocation4 + $0x390] sm:$0xff] }
  0xf3   :  { %1817 = vmatprep.subr.bf16.mxu0 %v10681_v6  ;;  %1858 = vmatprep.subr.bf16.mxu1 %v10683_v7  ;;  %v10614_v6 = vcombine.low %v123_v59, %v127_v60  ;;  %v10621_v7 = vcombine.high %v130_v1, %v134_v2  ;;  %v10623_v8 = vcombine.high %v131_v3, %v135_v4  ;;  %v190_v59 = vld [vmem:[#allocation4 + $0x3b0] sm:$0xff]  ;;  %v187_v60 = vld [vmem:[#allocation4 + $0x398] sm:$0xff] }
  0xf6   :  { %1818 = vmatpush1.bf16.msra.mxu0 %v10680_v13  ;;  %1859 = vmatpush1.bf16.msra.mxu1 %v10682_v14  ;;  %v143_v13 = vld [vmem:[#allocation4 + $0x238] sm:$0xff]  ;;  %v10620_v14 = vcombine.low %v130_v1, %v134_v2  ;;  %v194_v2 = vld [vmem:[#allocation4 + $0x3d0] sm:$0xff] }
  0xf7   :  { %1869 = vmatprep.subr.bf16.mxu0 %v10565_v15  ;;  %1910 = vmatprep.subr.bf16.mxu1 %v10567_v16  ;;  %v10622_v15 = vcombine.low %v131_v3, %v135_v4  ;;  %v10629_v16 = vcombine.high %v138_v9, %v142_v10  ;;  %v10631_v18 = vcombine.high %v139_v11, %v143_v13  ;;  %v198_v3 = vld [vmem:[#allocation4 + $0x3f0] sm:$0xff]  ;;  %v195_v4 = vld [vmem:[#allocation4 + $0x3d8] sm:$0xff] }
  0xf9   :  { %1820 = vmatmul.mubr.bf16.vlgmr.msra.gmra.mrb[8].mxu0 %v12020_v20  ;;  %1861 = vmatmul.mubr.bf16.vlgmr.msra.gmra.mrb[8].mxu1 %v12020_v20 }
  0xfa   :  { %1870 = vmatpush1.bf16.msra.mxu0 %v10564_v53  ;;  %1911 = vmatpush1.bf16.msra.mxu1 %v10566_v24  ;;  %v151_v53 = vld [vmem:[#allocation4 + $0x278] sm:$0xff]  ;;  %v10628_v24 = vcombine.low %v138_v9, %v142_v10  ;;  %v2012_v10 = vld [vmem:[#allocation8] sm:$0xff] }
  0xfb   :  { %1871 = vmatprep.subr.bf16.mxu0 %v10573_v25  ;;  %1912 = vmatprep.subr.bf16.mxu1 %v10575_v26  ;;  %v10630_v25 = vcombine.low %v139_v11, %v143_v13  ;;  %v10637_v26 = vcombine.high %v146_v19, %v150_v21  ;;  %v10639_v27 = vcombine.high %v147_v22, %v151_v53  ;;  %v2016_v11 = vld [vmem:[#allocation8 + $0x20] sm:$0xff]  ;;  %v2013_v13 = vld [vmem:[#allocation8 + $0x8] sm:$0xff] }
  0xfc   :  { %1901 = vmatprep.mubr.bf16.mxu0 %v12012_v23  ;;  %1942 = vmatprep.mubr.bf16.mxu1 %v12012_v23  ;;  %v10599_v23 = vcombine.high %v107_v42, %v111_v43  ;;  %v174_v42 = vld [vmem:[#allocation4 + $0x330] sm:$0xff]  ;;  %v171_v43 = vld [vmem:[#allocation4 + $0x318] sm:$0xff] }
  0xfe   :  { %1872 = vmatpush1.bf16.msra.mxu0 %v10572_v17  ;;  %1913 = vmatpush1.bf16.msra.mxu1 %v10574_v31  ;;  %v159_v17 = vld [vmem:[#allocation4 + $0x2b8] sm:$0xff]  ;;  %v10636_v31 = vcombine.low %v146_v19, %v150_v21  ;;  %v2020_v21 = vld [vmem:[#allocation8 + $0x40] sm:$0xff] }
  0xff   :  { %1873 = vmatprep.subr.bf16.mxu0 %v10581_v32  ;;  %1914 = vmatprep.subr.bf16.mxu1 %v10583_v33  ;;  %v10638_v32 = vcombine.low %v147_v22, %v151_v53  ;;  %v10645_v33 = vcombine.high %v154_v28, %v158_v29  ;;  %v10647_v34 = vcombine.high %v155_v30, %v159_v17  ;;  %v2024_v22 = vld [vmem:[#allocation8 + $0x60] sm:$0xff]  ;;  %v2021_v53 = vld [vmem:[#allocation8 + $0x48] sm:$0xff] }
 0x102   :  { %1874 = vmatpush1.bf16.msra.mxu0 %v10580_v37  ;;  %1915 = vmatpush1.bf16.msra.mxu1 %v10582_v38  ;;  %v167_v37 = vld [vmem:[#allocation4 + $0x2f8] sm:$0xff]  ;;  %v10644_v38 = vcombine.low %v154_v28, %v158_v29  ;;  %v2028_v29 = vld [vmem:[#allocation8 + $0x80] sm:$0xff] }
 0x103   :  { %1875 = vmatprep.subr.bf16.mxu0 %v10589_v39  ;;  %1916 = vmatprep.subr.bf16.mxu1 %v10591_v40  ;;  %v10646_v39 = vcombine.low %v155_v30, %v159_v17  ;;  %v10653_v40 = vcombine.high %v162_v12, %v166_v35  ;;  %v10655_v41 = vcombine.high %v163_v36, %v167_v37  ;;  %v2032_v30 = vld [vmem:[#allocation8 + $0xa0] sm:$0xff]  ;;  %v2029_v17 = vld [vmem:[#allocation8 + $0x88] sm:$0xff] }
 0x106   :  { %1876 = vmatpush1.bf16.msra.mxu0 %v10588_v44  ;;  %1917 = vmatpush1.bf16.msra.mxu1 %v10590_v45  ;;  %v175_v44 = vld [vmem:[#allocation4 + $0x338] sm:$0xff]  ;;  %v10652_v45 = vcombine.low %v162_v12, %v166_v35  ;;  %v2036_v35 = vld [vmem:[#allocation8 + $0xc0] sm:$0xff] }
 0x107   :  { %1877 = vmatprep.subr.bf16.mxu0 %v10597_v46  ;;  %1918 = vmatprep.subr.bf16.mxu1 %v10599_v23  ;;  %v10654_v46 = vcombine.low %v163_v36, %v167_v37  ;;  %v10661_v23 = vcombine.high %v170_v57, %v174_v42  ;;  %v10663_v47 = vcombine.high %v171_v43, %v175_v44  ;;  %v2040_v36 = vld [vmem:[#allocation8 + $0xe0] sm:$0xff]  ;;  %v14283_v37 = vmov 0  }
 0x10a   :  { %1878 = vmatpush1.bf16.msra.mxu0 %v10596_v51  ;;  %1919 = vmatpush1.bf16.msra.mxu1 %v10598_v52  ;;  %v183_v51 = vld [vmem:[#allocation4 + $0x378] sm:$0xff]  ;;  %v10660_v52 = vcombine.low %v170_v57, %v174_v42  ;;  %v2044_v42 = vld [vmem:[#allocation8 + $0x100] sm:$0xff] }
 0x10b   :  { %1879 = vmatprep.subr.bf16.mxu0 %v10605_v54  ;;  %1920 = vmatprep.subr.bf16.mxu1 %v10607_v55  ;;  %v10662_v54 = vcombine.low %v171_v43, %v175_v44  ;;  %v10669_v55 = vcombine.high %v178_v48, %v182_v49  ;;  %v10671_v56 = vcombine.high %v179_v50, %v183_v51  ;;  %v2048_v43 = vld [vmem:[#allocation8 + $0x120] sm:$0xff]  ;;  %v2045_v44 = vld [vmem:[#allocation8 + $0x108] sm:$0xff] }
 0x10e   :  { %1880 = vmatpush1.bf16.msra.mxu0 %v10604_v61  ;;  %1921 = vmatpush1.bf16.msra.mxu1 %v10606_v62  ;;  %v191_v61 = vld [vmem:[#allocation4 + $0x3b8] sm:$0xff]  ;;  %v10668_v62 = vcombine.low %v178_v48, %v182_v49  ;;  %v2052_v49 = vld [vmem:[#allocation8 + $0x140] sm:$0xff] }
 0x10f   :  { %1881 = vmatprep.subr.bf16.mxu0 %v10613_v63  ;;  %1922 = vmatprep.subr.bf16.mxu1 %v10615_v0  ;;  %v10670_v63 = vcombine.low %v179_v50, %v183_v51  ;;  %v10677_v0 = vcombine.high %v186_v58, %v190_v59  ;;  %v10679_v1 = vcombine.high %v187_v60, %v191_v61  ;;  %v2056_v50 = vld [vmem:[#allocation8 + $0x160] sm:$0xff]  ;;  %v2053_v51 = vld [vmem:[#allocation8 + $0x148] sm:$0xff] }
 0x112   :  { %1882 = vmatpush1.bf16.msra.mxu0 %v10612_v5  ;;  %1923 = vmatpush1.bf16.msra.mxu1 %v10614_v6  ;;  %v199_v5 = vld [vmem:[#allocation4 + $0x3f8] sm:$0xff]  ;;  %v10676_v6 = vcombine.low %v186_v58, %v190_v59  ;;  %v2060_v59 = vld [vmem:[#allocation8 + $0x180] sm:$0xff] }
 0x113   :  { %1883 = vmatprep.subr.bf16.mxu0 %v10621_v7  ;;  %1924 = vmatprep.subr.bf16.mxu1 %v10623_v8  ;;  %v10678_v7 = vcombine.low %v187_v60, %v191_v61  ;;  %v10685_v8 = vcombine.high %v194_v2, %v198_v3  ;;  %v10687_v9 = vcombine.high %v195_v4, %v199_v5  ;;  %v2064_v60 = vld [vmem:[#allocation8 + $0x1a0] sm:$0xff]  ;;  %v2061_v61 = vld [vmem:[#allocation8 + $0x188] sm:$0xff] }
 0x116   :  { %1884 = vmatpush1.bf16.msra.mxu0 %v10620_v14  ;;  %1925 = vmatpush1.bf16.msra.mxu1 %v10622_v15  ;;  %v2017_v14 = vld [vmem:[#allocation8 + $0x28] sm:$0xff]  ;;  %v10684_v15 = vcombine.low %v194_v2, %v198_v3 }
 0x117   :  { %1885 = vmatprep.subr.bf16.mxu0 %v10629_v16  ;;  %1926 = vmatprep.subr.bf16.mxu1 %v10631_v18  ;;  %v10686_v16 = vcombine.low %v195_v4, %v199_v5  ;;  %v12026_v18 = vcombine.high %v2012_v10, %v2016_v11  ;;  %v12028_v19 = vcombine.high %v2013_v13, %v2017_v14  ;;  %v2068_v4 = vld [vmem:[#allocation8 + $0x1c0] sm:$0xff] }
 0x118   :  { %v2072_v5 = vld [vmem:[#allocation8 + $0x1e0] sm:$0xff] }
 0x11a   :  { %1886 = vmatpush1.bf16.msra.mxu0 %v10628_v24  ;;  %1927 = vmatpush1.bf16.msra.mxu1 %v10630_v25  ;;  %v2025_v24 = vld [vmem:[#allocation8 + $0x68] sm:$0xff]  ;;  %v12030_v25 = vcombine.low %v2012_v10, %v2016_v11 }
 0x11b   :  { %1887 = vmatprep.subr.bf16.mxu0 %v10637_v26  ;;  %1928 = vmatprep.subr.bf16.mxu1 %v10639_v27  ;;  %v12033_v26 = vcombine.low %v2013_v13, %v2017_v14  ;;  %v12035_v27 = vcombine.high %v2020_v21, %v2024_v22  ;;  %v12038_v28 = vcombine.high %v2021_v53, %v2025_v24 }
 0x11c   :  { %v12113_v13 = vcombine.low %v2060_v59, %v2064_v60 }
 0x11e   :  { %1888 = vmatpush1.bf16.msra.mxu0 %v10636_v31  ;;  %1929 = vmatpush1.bf16.msra.mxu1 %v10638_v32  ;;  %v2033_v31 = vld [vmem:[#allocation8 + $0xa8] sm:$0xff]  ;;  %v12043_v32 = vcombine.low %v2020_v21, %v2024_v22  ;;  %v12119_v21 = vcombine.high %v2068_v4, %v2072_v5 }
 0x11f   :  { %1889 = vmatprep.subr.bf16.mxu0 %v10645_v33  ;;  %1930 = vmatprep.subr.bf16.mxu1 %v10647_v34  ;;  %v12047_v33 = vcombine.low %v2021_v53, %v2025_v24  ;;  %v12049_v34 = vcombine.high %v2028_v29, %v2032_v30  ;;  %v12052_v12 = vcombine.high %v2029_v17, %v2033_v31  ;;  %v2076_v24 = vld [vmem:[#allocation8 + $0x200] sm:$0xff] }
 0x122   :  { %1890 = vmatpush1.bf16.msra.mxu0 %v10644_v38  ;;  %1931 = vmatpush1.bf16.msra.mxu1 %v10646_v39  ;;  %v2041_v38 = vld [vmem:[#allocation8 + $0xe8] sm:$0xff]  ;;  %v12057_v39 = vcombine.low %v2028_v29, %v2032_v30  ;;  %v2080_v29 = vld [vmem:[#allocation8 + $0x220] sm:$0xff] }
 0x123   :  { %1891 = vmatprep.subr.bf16.mxu0 %v10653_v40  ;;  %1932 = vmatprep.subr.bf16.mxu1 %v10655_v41  ;;  %v12061_v40 = vcombine.low %v2029_v17, %v2033_v31  ;;  %v12063_v41 = vcombine.high %v2036_v35, %v2040_v36  ;;  %v2077_v30 = vld [vmem:[#allocation8 + $0x208] sm:$0xff]  ;;  %v12125_v31 = vcombine.low %v2068_v4, %v2072_v5 }
 0x124   :  { %v2081_v17 = vld [vmem:[#allocation8 + $0x228] sm:$0xff] }
 0x126   :  { %1892 = vmatpush1.bf16.msra.mxu0 %v10652_v45  ;;  %1933 = vmatpush1.bf16.msra.mxu1 %v10654_v46  ;;  %v2049_v45 = vld [vmem:[#allocation8 + $0x128] sm:$0xff]  ;;  %v12069_v46 = vcombine.low %v2036_v35, %v2040_v36  ;;  %v12131_v36 = vcombine.high %v2076_v24, %v2080_v29 }
 0x127   :  { %1893 = vmatprep.subr.bf16.mxu0 %v10661_v23  ;;  %1934 = vmatprep.subr.bf16.mxu1 %v10663_v47  ;;  %v12075_v47 = vcombine.high %v2044_v42, %v2048_v43  ;;  %v12078_v48 = vcombine.high %v2045_v44, %v2049_v45 }
 0x12a   :  { %1894 = vmatpush1.bf16.msra.mxu0 %v10660_v52  ;;  %1935 = vmatpush1.bf16.msra.mxu1 %v10662_v54  ;;  %v2057_v52 = vld [vmem:[#allocation8 + $0x168] sm:$0xff]  ;;  %v12081_v54 = vcombine.low %v2044_v42, %v2048_v43  ;;  %v2088_v42 = vld [vmem:[#allocation8 + $0x260] sm:$0xff] }
 0x12b   :  { %1895 = vmatprep.subr.bf16.mxu0 %v10669_v55  ;;  %1936 = vmatprep.subr.bf16.mxu1 %v10671_v56  ;;  %v12085_v55 = vcombine.low %v2045_v44, %v2049_v45  ;;  %v12087_v56 = vcombine.high %v2052_v49, %v2056_v50  ;;  %v12090_v58 = vcombine.high %v2053_v51, %v2057_v52  ;;  %v2085_v43 = vld [vmem:[#allocation8 + $0x248] sm:$0xff] }
 0x12c   :  { %v2089_v44 = vld [vmem:[#allocation8 + $0x268] sm:$0xff]  ;;  %v12137_v45 = vcombine.low %v2076_v24, %v2080_v29 }
 0x12d   :  { %v12153_v4 = vcombine.low %v2085_v43, %v2089_v44 }
 0x12e   :  { %1896 = vmatpush1.bf16.msra.mxu0 %v10668_v62  ;;  %1937 = vmatpush1.bf16.msra.mxu1 %v10670_v63  ;;  %v2065_v62 = vld [vmem:[#allocation8 + $0x1a8] sm:$0xff]  ;;  %v12093_v63 = vcombine.low %v2052_v49, %v2056_v50  ;;  %v12141_v49 = vcombine.low %v2077_v30, %v2081_v17 }
 0x12f   :  { %1897 = vmatprep.subr.bf16.mxu0 %v10677_v0  ;;  %1938 = vmatprep.subr.bf16.mxu1 %v10679_v1  ;;  %v12097_v0 = vcombine.low %v2053_v51, %v2057_v52  ;;  %v12099_v1 = vcombine.high %v2060_v59, %v2064_v60  ;;  %v12104_v3 = vcombine.high %v2061_v61, %v2065_v62  ;;  %v2092_v52 = vld [vmem:[#allocation8 + $0x280] sm:$0xff]  ;;  %v2093_v60 = vld [vmem:[#allocation8 + $0x288] sm:$0xff] }
 0x130   :  { %14512 = vst [vmem:[#allocation11_spill] sm:$0xff] %v12141_v49  ;;  %v12146_v51 = vcombine.high %v2085_v43, %v2089_v44  ;;  %v2096_v59 = vld [vmem:[#allocation8 + $0x2a0] sm:$0xff]  ;;  %14516 = vst [vmem:[#allocation15_spill] sm:$0xff] %v12153_v4  ;;  %v2113_v43 = vld [vmem:[#allocation8 + $0x328] sm:$0xff] }
 0x131   :  { %v12155_v5 = vcombine.high %v2092_v52, %v2096_v59 }
 0x132   :  { %1898 = vmatpush1.bf16.msra.mxu0 %v10676_v6  ;;  %1939 = vmatpush1.bf16.msra.mxu1 %v10678_v7  ;;  %14514 = vst [vmem:[#allocation13_spill] sm:$0xff] %v12146_v51 }
 0x133   :  { %1899 = vmatprep.subr.bf16.mxu0 %v10685_v8  ;;  %1940 = vmatprep.subr.bf16.mxu1 %v10687_v9  ;;  %v2069_v8 = vld [vmem:[#allocation8 + $0x1c8] sm:$0xff]  ;;  %14517 = vst [vmem:[#allocation16_spill] sm:$0xff] %v12155_v5 }
 0x134   :  { %v2073_v9 = vld [vmem:[#allocation8 + $0x1e8] sm:$0xff] }
 0x135   :  { %v12122_v53 = vcombine.high %v2069_v8, %v2073_v9  ;;  %v12129_v35 = vcombine.low %v2069_v8, %v2073_v9  ;;  %v2100_v9 = vld [vmem:[#allocation8 + $0x2c0] sm:$0xff] }
 0x136   :  { %1900 = vmatpush1.bf16.msra.mxu0 %v10684_v15  ;;  %1941 = vmatpush1.bf16.msra.mxu1 %v10686_v16  ;;  %v12117_v16 = vcombine.low %v2061_v61, %v2065_v62  ;;  %v2097_v61 = vld [vmem:[#allocation8 + $0x2a8] sm:$0xff] }
 0x137   :  { %2780 = vmatprep.subr.bf16.mxu0 %v12026_v18  ;;  %2821 = vmatprep.subr.bf16.mxu1 %v12028_v19  ;;  %v12158_v8 = vcombine.high %v2093_v60, %v2097_v61  ;;  %v12165_v24 = vcombine.low %v2093_v60, %v2097_v61  ;;  %v2116_v61 = vld [vmem:[#allocation8 + $0x340] sm:$0xff] }
 0x139   :  { %1902 = vmatmul.mubr.bf16.vlgmr.msra.gmra.mrb[12].mxu0 %v12020_v20  ;;  %1943 = vmatmul.mubr.bf16.vlgmr.msra.gmra.mrb[12].mxu1 %v12020_v20  ;;  %v2037_v20 = vld [vmem:[#allocation8 + $0xc8] sm:$0xff]  ;;  %14518 = vst [vmem:[#allocation17_spill] sm:$0xff] %v12158_v8  ;;  %14520 = vst [vmem:[#allocation19_spill] sm:$0xff] %v12165_v24 }
 0x13a   :  { %2781 = vmatpush1.bf16.msra.mxu0 %v12030_v25  ;;  %2822 = vmatpush1.bf16.msra.mxu1 %v12033_v26  ;;  %v12066_v57 = vcombine.high %v2037_v20, %v2041_v38  ;;  %v12073_v23 = vcombine.low %v2037_v20, %v2041_v38  ;;  %v12134_v20 = vcombine.high %v2077_v30, %v2081_v17  ;;  %v2084_v38 = vld [vmem:[#allocation8 + $0x240] sm:$0xff] }
 0x13b   :  { %2782 = vmatprep.subr.bf16.mxu0 %v12035_v27  ;;  %2823 = vmatprep.subr.bf16.mxu1 %v12038_v28  ;;  %v12143_v50 = vcombine.high %v2084_v38, %v2088_v42  ;;  %v12149_v62 = vcombine.low %v2084_v38, %v2088_v42  ;;  %v2108_v17 = vld [vmem:[#allocation8 + $0x300] sm:$0xff]  ;;  %v2109_v42 = vld [vmem:[#allocation8 + $0x308] sm:$0xff] }
 0x13c   :  { %2812 = vmatprep.mubr.bf16.mxu0 %v14283_v37  ;;  %2853 = vmatprep.mubr.bf16.mxu1 %v14283_v37  ;;  %v2112_v38 = vld [vmem:[#allocation8 + $0x320] sm:$0xff]  ;;  %v12182_v60 = vcombine.high %v2109_v42, %v2113_v43 }
 0x13d   :  { %14513 = vst [vmem:[#allocation12_spill] sm:$0xff] %v12143_v50  ;;  %14515 = vst [vmem:[#allocation14_spill] sm:$0xff] %v12149_v62  ;;  %v2120_v37 = vld [vmem:[#allocation8 + $0x360] sm:$0xff] }
 0x13e   :  { %2783 = vmatpush1.bf16.msra.mxu0 %v12043_v32  ;;  %2824 = vmatpush1.bf16.msra.mxu1 %v12047_v33  ;;  %14526 = vst [vmem:[#allocation25_spill] sm:$0xff] %v12182_v60 }
 0x13f   :  { %2784 = vmatprep.subr.bf16.mxu0 %v12049_v34  ;;  %2825 = vmatprep.subr.bf16.mxu1 %v12052_v12 }
 0x142   :  { %2785 = vmatpush1.bf16.msra.mxu0 %v12057_v39  ;;  %2826 = vmatpush1.bf16.msra.mxu1 %v12061_v40 }
 0x143   :  { %2786 = vmatprep.subr.bf16.mxu0 %v12063_v41  ;;  %2827 = vmatprep.subr.bf16.mxu1 %v12066_v57 }
 0x146   :  { %2787 = vmatpush1.bf16.msra.mxu0 %v12069_v46  ;;  %2828 = vmatpush1.bf16.msra.mxu1 %v12073_v23 }
 0x147   :  { %2788 = vmatprep.subr.bf16.mxu0 %v12075_v47  ;;  %2829 = vmatprep.subr.bf16.mxu1 %v12078_v48 }
 0x14a   :  { %2789 = vmatpush1.bf16.msra.mxu0 %v12081_v54  ;;  %2830 = vmatpush1.bf16.msra.mxu1 %v12085_v55 }
 0x14b   :  { %2790 = vmatprep.subr.bf16.mxu0 %v12087_v56  ;;  %2831 = vmatprep.subr.bf16.mxu1 %v12090_v58 }
 0x14c   :  { %v12101_v2 = vpop.f32.mrb[0].mxu0  ;;  %v12106_v6 = vpop.f32.mrb[0].mxu1 }
 0x14d   :  { %v12108_v7 = vpop.f32.mrb[1].mxu0  ;;  %v12110_v10 = vpop.f32.mrb[1].mxu1 }
 0x14e   :  { %v1014_v11 = vpop.f32.mrb[2].mxu0  ;;  %2791 = vmatpush1.bf16.msra.mxu0 %v12093_v63  ;;  %v1055_v14 = vpop.f32.mrb[2].mxu1  ;;  %2832 = vmatpush1.bf16.msra.mxu1 %v12097_v0 }
 0x14f   :  { %v1015_v15 = vpop.f32.mrb[3].mxu0  ;;  %2792 = vmatprep.subr.bf16.mxu0 %v12099_v1  ;;  %v1056_v22 = vpop.f32.mrb[3].mxu1  ;;  %2833 = vmatprep.subr.bf16.mxu1 %v12104_v3  ;;  %v2104_v11 = vld [vmem:[#allocation8 + $0x2e0] sm:$0xff]  ;;  %v2101_v14 = vld [vmem:[#allocation8 + $0x2c8] sm:$0xff] }
 0x150   :  { %v2105_v15 = vld [vmem:[#allocation8 + $0x2e8] sm:$0xff]  ;;  %v12161_v22 = vcombine.low %v2092_v52, %v2096_v59  ;;  %v12167_v29 = vcombine.high %v2100_v9, %v2104_v11  ;;  %v12173_v44 = vcombine.low %v2100_v9, %v2104_v11  ;;  %v12179_v59 = vcombine.high %v2108_v17, %v2112_v38 }
 0x151   :  { %v12170_v30 = vcombine.high %v2101_v14, %v2105_v15  ;;  %v12177_v52 = vcombine.low %v2101_v14, %v2105_v15  ;;  %v12185_v9 = vcombine.low %v2108_v17, %v2112_v38  ;;  %v12189_v11 = vcombine.low %v2109_v42, %v2113_v43 }
 0x152   :  { %2793 = vmatpush1.bf16.msra.mxu0 %v12113_v13  ;;  %2834 = vmatpush1.bf16.msra.mxu1 %v12117_v16  ;;  %14519 = vst [vmem:[#allocation18_spill] sm:$0xff] %v12161_v22  ;;  %14521 = vst [vmem:[#allocation20_spill] sm:$0xff] %v12167_v29  ;;  %v12191_v14 = vcombine.high %v2116_v61, %v2120_v37  ;;  %v12197_v17 = vcombine.low %v2116_v61, %v2120_v37 }
 0x153   :  { %2794 = vmatprep.subr.bf16.mxu0 %v12119_v21  ;;  %2835 = vmatprep.subr.bf16.mxu1 %v12122_v53  ;;  %14522 = vst [vmem:[#allocation21_spill] sm:$0xff] %v12170_v30  ;;  %14523 = vst [vmem:[#allocation22_spill] sm:$0xff] %v12173_v44 }
 0x154   :  { %14524 = vst [vmem:[#allocation23_spill] sm:$0xff] %v12177_v52  ;;  %14525 = vst [vmem:[#allocation24_spill] sm:$0xff] %v12179_v59 }
 0x155   :  { %14527 = vst [vmem:[#allocation26_spill] sm:$0xff] %v12185_v9  ;;  %14528 = vst [vmem:[#allocation27_spill] sm:$0xff] %v12189_v11 }
 0x156   :  { %2795 = vmatpush1.bf16.msra.mxu0 %v12125_v31  ;;  %2836 = vmatpush1.bf16.msra.mxu1 %v12129_v35  ;;  %14529 = vst [vmem:[#allocation28_spill] sm:$0xff] %v12191_v14  ;;  %14531 = vst [vmem:[#allocation30_spill] sm:$0xff] %v12197_v17 }
 0x157   :  { %2796 = vmatprep.subr.bf16.mxu0 %v12131_v36  ;;  %2837 = vmatprep.subr.bf16.mxu1 %v12134_v20 }
 0x15a   :  { %2797 = vmatpush1.bf16.msra.mxu0 %v12137_v45  ;;  %2838 = vmatpush1.bf16.msra.mxu1 %v12141_v49 }
 0x15b   :  { %2798 = vmatprep.subr.bf16.mxu0 %v12143_v50  ;;  %2839 = vmatprep.subr.bf16.mxu1 %v12146_v51 }
 0x15e   :  { %2799 = vmatpush1.bf16.msra.mxu0 %v12149_v62  ;;  %2840 = vmatpush1.bf16.msra.mxu1 %v12153_v4 }
 0x15f   :  { %2800 = vmatprep.subr.bf16.mxu0 %v12155_v5  ;;  %2841 = vmatprep.subr.bf16.mxu1 %v12158_v8  ;;  %v2117_v8 = vld [vmem:[#allocation8 + $0x348] sm:$0xff] }
 0x160   :  { %v2121_v5 = vld [vmem:[#allocation8 + $0x368] sm:$0xff] }
 0x161   :  { %v12194_v15 = vcombine.high %v2117_v8, %v2121_v5  ;;  %v12201_v38 = vcombine.low %v2117_v8, %v2121_v5 }
 0x162   :  { %2801 = vmatpush1.bf16.msra.mxu0 %v12161_v22  ;;  %2842 = vmatpush1.bf16.msra.mxu1 %v12165_v24  ;;  %v2125_v24 = vld [vmem:[#allocation8 + $0x388] sm:$0xff] }
 0x163   :  { %2802 = vmatprep.subr.bf16.mxu0 %v12167_v29  ;;  %2843 = vmatprep.subr.bf16.mxu1 %v12170_v30  ;;  %14530 = vst [vmem:[#allocation29_spill] sm:$0xff] %v12194_v15  ;;  %v2124_v30 = vld [vmem:[#allocation8 + $0x380] sm:$0xff]  ;;  %v2129_v22 = vld [vmem:[#allocation8 + $0x3a8] sm:$0xff]  ;;  %14532 = vst [vmem:[#allocation31_spill] sm:$0xff] %v12201_v38 }
 0x164   :  { %v2128_v29 = vld [vmem:[#allocation8 + $0x3a0] sm:$0xff]  ;;  %v12206_v43 = vcombine.high %v2125_v24, %v2129_v22  ;;  %v12213_v5 = vcombine.low %v2125_v24, %v2129_v22 }
 0x165   :  { %v12203_v42 = vcombine.high %v2124_v30, %v2128_v29  ;;  %v12209_v37 = vcombine.low %v2124_v30, %v2128_v29 }
 0x166   :  { %2803 = vmatpush1.bf16.msra.mxu0 %v12173_v44  ;;  %2844 = vmatpush1.bf16.msra.mxu1 %v12177_v52  ;;  %14534 = vst [vmem:[#allocation33_spill] sm:$0xff] %v12206_v43  ;;  %v2133_v52 = vld [vmem:[#allocation8 + $0x3c8] sm:$0xff]  ;;  %14536 = vst [vmem:[#allocation35_spill] sm:$0xff] %v12213_v5 }
 0x167   :  { %2804 = vmatprep.subr.bf16.mxu0 %v12179_v59  ;;  %2845 = vmatprep.subr.bf16.mxu1 %v12182_v60  ;;  %14533 = vst [vmem:[#allocation32_spill] sm:$0xff] %v12203_v42  ;;  %v2132_v60 = vld [vmem:[#allocation8 + $0x3c0] sm:$0xff]  ;;  %v2137_v44 = vld [vmem:[#allocation8 + $0x3e8] sm:$0xff]  ;;  %14535 = vst [vmem:[#allocation34_spill] sm:$0xff] %v12209_v37 }
 0x168   :  { %v2136_v59 = vld [vmem:[#allocation8 + $0x3e0] sm:$0xff]  ;;  %v12218_v61 = vcombine.high %v2133_v52, %v2137_v44  ;;  %v12225_v22 = vcombine.low %v2133_v52, %v2137_v44  ;;  %v2030_v44 = vld [vmem:[#allocation8 + $0x90] sm:$0xff] }
 0x169   :  { %v12215_v8 = vcombine.high %v2132_v60, %v2136_v59  ;;  %v12221_v29 = vcombine.low %v2132_v60, %v2136_v59  ;;  %v2034_v52 = vld [vmem:[#allocation8 + $0xb0] sm:$0xff] }
 0x16a   :  { %2805 = vmatpush1.bf16.msra.mxu0 %v12185_v9  ;;  %2846 = vmatpush1.bf16.msra.mxu1 %v12189_v11  ;;  %14538 = vst [vmem:[#allocation37_spill] sm:$0xff] %v12218_v61  ;;  %v2015_v11 = vld [vmem:[#allocation8 + $0x18] sm:$0xff]  ;;  %14540 = vst [vmem:[#allocation39_spill] sm:$0xff] %v12225_v22 }
 0x16b   :  { %2806 = vmatprep.subr.bf16.mxu0 %v12191_v14  ;;  %2847 = vmatprep.subr.bf16.mxu1 %v12194_v15  ;;  %14537 = vst [vmem:[#allocation36_spill] sm:$0xff] %v12215_v8  ;;  %v2014_v15 = vld [vmem:[#allocation8 + $0x10] sm:$0xff]  ;;  %v2019_v9 = vld [vmem:[#allocation8 + $0x38] sm:$0xff]  ;;  %14539 = vst [vmem:[#allocation38_spill] sm:$0xff] %v12221_v29 }
 0x16c   :  { %v2018_v14 = vld [vmem:[#allocation8 + $0x30] sm:$0xff]  ;;  %v10695_v30 = vcombine.high %v2015_v11, %v2019_v9  ;;  %v10694_v59 = vcombine.low %v2015_v11, %v2019_v9 }
 0x16d   :  { %v10693_v24 = vcombine.high %v2014_v15, %v2018_v14  ;;  %v10692_v4 = vcombine.low %v2014_v15, %v2018_v14  ;;  %v10709_v15 = vcombine.high %v2030_v44, %v2034_v52  ;;  %v2038_v9 = vld [vmem:[#allocation8 + $0xd0] sm:$0xff] }
 0x16e   :  { %2807 = vmatpush1.bf16.msra.mxu0 %v12197_v17  ;;  %2848 = vmatpush1.bf16.msra.mxu1 %v12201_v38  ;;  %v2023_v38 = vld [vmem:[#allocation8 + $0x58] sm:$0xff]  ;;  %v2042_v11 = vld [vmem:[#allocation8 + $0xf0] sm:$0xff] }
 0x16f   :  { %2808 = vmatprep.subr.bf16.mxu0 %v12203_v42  ;;  %2849 = vmatprep.subr.bf16.mxu1 %v12206_v43  ;;  %v2022_v43 = vld [vmem:[#allocation8 + $0x50] sm:$0xff]  ;;  %v2027_v17 = vld [vmem:[#allocation8 + $0x78] sm:$0xff] }
 0x170   :  { %v2026_v42 = vld [vmem:[#allocation8 + $0x70] sm:$0xff]  ;;  %v10702_v14 = vcombine.low %v2023_v38, %v2027_v17 }
 0x171   :  { %v10701_v60 = vcombine.high %v2022_v43, %v2026_v42  ;;  %v10700_v62 = vcombine.low %v2022_v43, %v2026_v42  ;;  %v10717_v42 = vcombine.high %v2038_v9, %v2042_v11 }
 0x172   :  { %2809 = vmatpush1.bf16.msra.mxu0 %v12209_v37  ;;  %2850 = vmatpush1.bf16.msra.mxu1 %v12213_v5  ;;  %v14541_v5 = vmov 0   ;;  %v2035_v37 = vld [vmem:[#allocation8 + $0xb8] sm:$0xff] }
 0x173   :  { %2810 = vmatprep.subr.bf16.mxu0 %v12215_v8  ;;  %2851 = vmatprep.subr.bf16.mxu1 %v12218_v61  ;;  %v10703_v8 = vcombine.high %v2023_v38, %v2027_v17  ;;  %v2031_v61 = vld [vmem:[#allocation8 + $0x98] sm:$0xff]  ;;  %v2046_v17 = vld [vmem:[#allocation8 + $0x110] sm:$0xff] }
 0x174   :  { %v2050_v38 = vld [vmem:[#allocation8 + $0x130] sm:$0xff] }
 0x175   :  { %v10725_v50 = vcombine.high %v2046_v17, %v2050_v38 }
 0x176   :  { %2811 = vmatpush1.bf16.msra.mxu0 %v12221_v29  ;;  %2852 = vmatpush1.bf16.msra.mxu1 %v12225_v22  ;;  %v2043_v22 = vld [vmem:[#allocation8 + $0xf8] sm:$0xff]  ;;  %v10708_v29 = vcombine.low %v2030_v44, %v2034_v52  ;;  %v2058_v44 = vld [vmem:[#allocation8 + $0x170] sm:$0xff] }
 0x177   :  { %2862 = vmatprep.subr.bf16.mxu0 %v10693_v24  ;;  %2903 = vmatprep.subr.bf16.mxu1 %v10695_v30  ;;  %v10711_v24 = vcombine.high %v2031_v61, %v2035_v37  ;;  %v2039_v30 = vld [vmem:[#allocation8 + $0xd8] sm:$0xff] }
 0x178   :  { %v10719_v43 = vcombine.high %v2039_v30, %v2043_v22  ;;  %v10718_v51 = vcombine.low %v2039_v30, %v2043_v22  ;;  %v2055_v52 = vld [vmem:[#allocation8 + $0x158] sm:$0xff] }
 0x179   :  { %2813 = vmatmul.mubr.bf16.vlgmr.msra.gmra.mrb[16].mxu0 %v14541_v5  ;;  %2854 = vmatmul.mubr.bf16.vlgmr.msra.gmra.mrb[16].mxu1 %v14541_v5 }
 0x17a   :  { %2863 = vmatpush1.bf16.msra.mxu0 %v10692_v4  ;;  %2904 = vmatpush1.bf16.msra.mxu1 %v10694_v59  ;;  %v10710_v4 = vcombine.low %v2031_v61, %v2035_v37  ;;  %v2051_v59 = vld [vmem:[#allocation8 + $0x138] sm:$0xff]  ;;  %v10724_v37 = vcombine.low %v2046_v17, %v2050_v38  ;;  %v2074_v17 = vld [vmem:[#allocation8 + $0x1f0] sm:$0xff] }
 0x17b   :  { %2864 = vmatprep.subr.bf16.mxu0 %v10701_v60  ;;  %2905 = vmatprep.subr.bf16.mxu1 %v10703_v8  ;;  %v2047_v8 = vld [vmem:[#allocation8 + $0x118] sm:$0xff]  ;;  %v10716_v60 = vcombine.low %v2038_v9, %v2042_v11  ;;  %v2066_v9 = vld [vmem:[#allocation8 + $0x1b0] sm:$0xff] }
 0x17c   :  { %2894 = vmatprep.mubr.bf16.mxu0 %v14541_v5  ;;  %2935 = vmatprep.mubr.bf16.mxu1 %v14541_v5  ;;  %v10727_v49 = vcombine.high %v2047_v8, %v2051_v59  ;;  %v10726_v61 = vcombine.low %v2047_v8, %v2051_v59  ;;  %v2063_v11 = vld [vmem:[#allocation8 + $0x198] sm:$0xff] }
 0x17d   :  { %v2071_v8 = vld [vmem:[#allocation8 + $0x1d8] sm:$0xff] }
 0x17e   :  { %2865 = vmatpush1.bf16.msra.mxu0 %v10700_v62  ;;  %2906 = vmatpush1.bf16.msra.mxu1 %v10702_v14  ;;  %v2054_v62 = vld [vmem:[#allocation8 + $0x150] sm:$0xff]  ;;  %v2059_v14 = vld [vmem:[#allocation8 + $0x178] sm:$0xff] }
 0x17f   :  { %2866 = vmatprep.subr.bf16.mxu0 %v10709_v15  ;;  %2907 = vmatprep.subr.bf16.mxu1 %v10711_v24  ;;  %v10733_v15 = vcombine.high %v2054_v62, %v2058_v44  ;;  %v10735_v24 = vcombine.high %v2055_v52, %v2059_v14  ;;  %v10732_v22 = vcombine.low %v2054_v62, %v2058_v44  ;;  %v2075_v59 = vld [vmem:[#allocation8 + $0x1f8] sm:$0xff] }
 0x180   :  { %v10734_v30 = vcombine.low %v2055_v52, %v2059_v14 }
 0x182   :  { %2867 = vmatpush1.bf16.msra.mxu0 %v10708_v29  ;;  %2908 = vmatpush1.bf16.msra.mxu1 %v10710_v4  ;;  %v2062_v29 = vld [vmem:[#allocation8 + $0x190] sm:$0xff]  ;;  %v2067_v4 = vld [vmem:[#allocation8 + $0x1b8] sm:$0xff] }
 0x183   :  { %2868 = vmatprep.subr.bf16.mxu0 %v10717_v42  ;;  %2909 = vmatprep.subr.bf16.mxu1 %v10719_v43  ;;  %v12234_v42 = vcombine.high %v2062_v29, %v2066_v9  ;;  %v12246_v44 = vcombine.low %v2062_v29, %v2066_v9  ;;  %v12261_v9 = vcombine.low %v2071_v8, %v2075_v59 }
 0x185   :  { %14544 = vst [vmem:[#allocation42_spill] sm:$0xff] %v12246_v44  ;;  %14549 = vst [vmem:[#allocation47_spill] sm:$0xff] %v12261_v9 }
 0x186   :  { %2869 = vmatpush1.bf16.msra.mxu0 %v10716_v60  ;;  %2910 = vmatpush1.bf16.msra.mxu1 %v10718_v51  ;;  %v12238_v51 = vcombine.high %v2063_v11, %v2067_v4 }
 0x187   :  { %2870 = vmatprep.subr.bf16.mxu0 %v10725_v50  ;;  %2911 = vmatprep.subr.bf16.mxu1 %v10727_v49  ;;  %v2070_v50 = vld [vmem:[#allocation8 + $0x1d0] sm:$0xff] }
 0x188   :  { %v12257_v29 = vcombine.low %v2070_v50, %v2074_v17 }
 0x18a   :  { %2871 = vmatpush1.bf16.msra.mxu0 %v10724_v37  ;;  %2912 = vmatpush1.bf16.msra.mxu1 %v10726_v61  ;;  %v12249_v37 = vcombine.low %v2063_v11, %v2067_v4  ;;  %v12251_v61 = vcombine.high %v2070_v50, %v2074_v17  ;;  %14548 = vst [vmem:[#allocation46_spill] sm:$0xff] %v12257_v29 }
 0x18b   :  { %2872 = vmatprep.subr.bf16.mxu0 %v10733_v15  ;;  %2913 = vmatprep.subr.bf16.mxu1 %v10735_v24  ;;  %v12254_v24 = vcombine.high %v2071_v8, %v2075_v59 }
 0x18c   :  { %v12236_v43 = vpop.f32.mrb[4].mxu0  ;;  %v12240_v49 = vpop.f32.mrb[4].mxu1  ;;  %14545 = vst [vmem:[#allocation43_spill] sm:$0xff] %v12249_v37  ;;  %14546 = vst [vmem:[#allocation44_spill] sm:$0xff] %v12251_v61 }
 0x18d   :  { %v12242_v38 = vpop.f32.mrb[5].mxu0  ;;  %v12244_v60 = vpop.f32.mrb[5].mxu1  ;;  %14547 = vst [vmem:[#allocation45_spill] sm:$0xff] %v12254_v24 }
 0x18e   :  { %14542 = vst [vmem:[#allocation40_spill] sm:$0xff] %v12242_v38  ;;  %14543 = vst [vmem:[#allocation41_spill] sm:$0xff] %v12244_v60  ;;  %v1096_v62 = vpop.f32.mrb[6].mxu0  ;;  %2873 = vmatpush1.bf16.msra.mxu0 %v10732_v22  ;;  %v1137_v52 = vpop.f32.mrb[6].mxu1  ;;  %2914 = vmatpush1.bf16.msra.mxu1 %v10734_v30  ;;  %v2078_v38 = vld [vmem:[#allocation8 + $0x210] sm:$0xff]  ;;  %v2083_v22 = vld [vmem:[#allocation8 + $0x238] sm:$0xff] }
 0x18f   :  { %v1097_v14 = vpop.f32.mrb[7].mxu0  ;;  %2874 = vmatprep.subr.bf16.mxu0 %v12234_v42  ;;  %v1138_v15 = vpop.f32.mrb[7].mxu1  ;;  %2915 = vmatprep.subr.bf16.mxu1 %v12238_v51  ;;  %v2082_v60 = vld [vmem:[#allocation8 + $0x230] sm:$0xff]  ;;  %v2079_v62 = vld [vmem:[#allocation8 + $0x218] sm:$0xff] }
 0x190   :  { %v12263_v11 = vcombine.high %v2078_v38, %v2082_v60  ;;  %v12266_v4 = vcombine.high %v2079_v62, %v2083_v22  ;;  %v2086_v30 = vld [vmem:[#allocation8 + $0x250] sm:$0xff]  ;;  %v2087_v14 = vld [vmem:[#allocation8 + $0x258] sm:$0xff]  ;;  %v12269_v50 = vcombine.low %v2078_v38, %v2082_v60  ;;  %v12273_v17 = vcombine.low %v2079_v62, %v2083_v22 }
 0x191   :  { %v2090_v52 = vld [vmem:[#allocation8 + $0x270] sm:$0xff]  ;;  %v2091_v15 = vld [vmem:[#allocation8 + $0x278] sm:$0xff] }
 0x192   :  { %2875 = vmatpush1.bf16.msra.mxu0 %v12246_v44  ;;  %2916 = vmatpush1.bf16.msra.mxu1 %v12249_v37  ;;  %14550 = vst [vmem:[#allocation48_spill] sm:$0xff] %v12263_v11  ;;  %14551 = vst [vmem:[#allocation49_spill] sm:$0xff] %v12266_v4  ;;  %v12275_v8 = vcombine.high %v2086_v30, %v2090_v52  ;;  %v12278_v59 = vcombine.high %v2087_v14, %v2091_v15  ;;  %v2095_v37 = vld [vmem:[#allocation8 + $0x298] sm:$0xff] }
 0x193   :  { %2876 = vmatprep.subr.bf16.mxu0 %v12251_v61  ;;  %2917 = vmatprep.subr.bf16.mxu1 %v12254_v24  ;;  %14552 = vst [vmem:[#allocation50_spill] sm:$0xff] %v12269_v50  ;;  %14553 = vst [vmem:[#allocation51_spill] sm:$0xff] %v12273_v17  ;;  %v2094_v24 = vld [vmem:[#allocation8 + $0x290] sm:$0xff]  ;;  %v2099_v44 = vld [vmem:[#allocation8 + $0x2b8] sm:$0xff]  ;;  %v12281_v38 = vcombine.low %v2086_v30, %v2090_v52  ;;  %v12285_v60 = vcombine.low %v2087_v14, %v2091_v15 }
 0x194   :  { %14554 = vst [vmem:[#allocation52_spill] sm:$0xff] %v12275_v8  ;;  %14555 = vst [vmem:[#allocation53_spill] sm:$0xff] %v12278_v59  ;;  %v2098_v61 = vld [vmem:[#allocation8 + $0x2b0] sm:$0xff]  ;;  %v12290_v22 = vcombine.high %v2095_v37, %v2099_v44  ;;  %v12297_v52 = vcombine.low %v2095_v37, %v2099_v44 }
 0x195   :  { %14556 = vst [vmem:[#allocation54_spill] sm:$0xff] %v12281_v38  ;;  %14557 = vst [vmem:[#allocation55_spill] sm:$0xff] %v12285_v60  ;;  %v12287_v62 = vcombine.high %v2094_v24, %v2098_v61  ;;  %v12293_v30 = vcombine.low %v2094_v24, %v2098_v61 }
 0x196   :  { %2877 = vmatpush1.bf16.msra.mxu0 %v12257_v29  ;;  %2918 = vmatpush1.bf16.msra.mxu1 %v12261_v9  ;;  %14559 = vst [vmem:[#allocation57_spill] sm:$0xff] %v12290_v22  ;;  %v2103_v9 = vld [vmem:[#allocation8 + $0x2d8] sm:$0xff]  ;;  %14561 = vst [vmem:[#allocation59_spill] sm:$0xff] %v12297_v52 }
 0x197   :  { %2878 = vmatprep.subr.bf16.mxu0 %v12263_v11  ;;  %2919 = vmatprep.subr.bf16.mxu1 %v12266_v4  ;;  %14558 = vst [vmem:[#allocation56_spill] sm:$0xff] %v12287_v62  ;;  %v2102_v4 = vld [vmem:[#allocation8 + $0x2d0] sm:$0xff]  ;;  %v2107_v29 = vld [vmem:[#allocation8 + $0x2f8] sm:$0xff]  ;;  %14560 = vst [vmem:[#allocation58_spill] sm:$0xff] %v12293_v30 }
 0x198   :  { %v2106_v11 = vld [vmem:[#allocation8 + $0x2f0] sm:$0xff]  ;;  %v12302_v15 = vcombine.high %v2103_v9, %v2107_v29  ;;  %v12309_v44 = vcombine.low %v2103_v9, %v2107_v29 }
 0x199   :  { %v12299_v14 = vcombine.high %v2102_v4, %v2106_v11  ;;  %v12305_v61 = vcombine.low %v2102_v4, %v2106_v11 }
 0x19a   :  { %2879 = vmatpush1.bf16.msra.mxu0 %v12269_v50  ;;  %2920 = vmatpush1.bf16.msra.mxu1 %v12273_v17  ;;  %14563 = vst [vmem:[#allocation61_spill] sm:$0xff] %v12302_v15  ;;  %v2111_v17 = vld [vmem:[#allocation8 + $0x318] sm:$0xff]  ;;  %14565 = vst [vmem:[#allocation63_spill] sm:$0xff] %v12309_v44 }
 0x19b   :  { %2880 = vmatprep.subr.bf16.mxu0 %v12275_v8  ;;  %2921 = vmatprep.subr.bf16.mxu1 %v12278_v59  ;;  %14562 = vst [vmem:[#allocation60_spill] sm:$0xff] %v12299_v14  ;;  %v2110_v59 = vld [vmem:[#allocation8 + $0x310] sm:$0xff]  ;;  %v2115_v50 = vld [vmem:[#allocation8 + $0x338] sm:$0xff]  ;;  %14564 = vst [vmem:[#allocation62_spill] sm:$0xff] %v12305_v61 }
 0x19c   :  { %v2114_v8 = vld [vmem:[#allocation8 + $0x330] sm:$0xff]  ;;  %v12314_v24 = vcombine.high %v2111_v17, %v2115_v50  ;;  %v12321_v29 = vcombine.low %v2111_v17, %v2115_v50 }
 0x19d   :  { %v12311_v37 = vcombine.high %v2110_v59, %v2114_v8  ;;  %v12317_v11 = vcombine.low %v2110_v59, %v2114_v8 }
 0x19e   :  { %2881 = vmatpush1.bf16.msra.mxu0 %v12281_v38  ;;  %2922 = vmatpush1.bf16.msra.mxu1 %v12285_v60  ;;  %14567 = vst [vmem:[#allocation65_spill] sm:$0xff] %v12314_v24  ;;  %v2119_v60 = vld [vmem:[#allocation8 + $0x358] sm:$0xff] }
 0x19f   :  { %2882 = vmatprep.subr.bf16.mxu0 %v12287_v62  ;;  %2923 = vmatprep.subr.bf16.mxu1 %v12290_v22  ;;  %14566 = vst [vmem:[#allocation64_spill] sm:$0xff] %v12311_v37  ;;  %v2118_v22 = vld [vmem:[#allocation8 + $0x350] sm:$0xff]  ;;  %v2123_v38 = vld [vmem:[#allocation8 + $0x378] sm:$0xff] }
 0x1a0   :  { %v2122_v62 = vld [vmem:[#allocation8 + $0x370] sm:$0xff]  ;;  %v12326_v4 = vcombine.high %v2119_v60, %v2123_v38  ;;  %v12333_v50 = vcombine.low %v2119_v60, %v2123_v38 }
 0x1a1   :  { %v12323_v9 = vcombine.high %v2118_v22, %v2122_v62  ;;  %v12329_v8 = vcombine.low %v2118_v22, %v2122_v62 }
 0x1a2   :  { %2883 = vmatpush1.bf16.msra.mxu0 %v12293_v30  ;;  %2924 = vmatpush1.bf16.msra.mxu1 %v12297_v52  ;;  %14568 = vst [vmem:[#allocation66_spill] sm:$0xff] %v12326_v4  ;;  %v2127_v52 = vld [vmem:[#allocation8 + $0x398] sm:$0xff] }
 0x1a3   :  { %2884 = vmatprep.subr.bf16.mxu0 %v12299_v14  ;;  %2925 = vmatprep.subr.bf16.mxu1 %v12302_v15  ;;  %v2126_v15 = vld [vmem:[#allocation8 + $0x390] sm:$0xff]  ;;  %v2131_v30 = vld [vmem:[#allocation8 + $0x3b8] sm:$0xff] }
 0x1a4   :  { %v2130_v14 = vld [vmem:[#allocation8 + $0x3b0] sm:$0xff]  ;;  %v12338_v59 = vcombine.high %v2127_v52, %v2131_v30  ;;  %v12345_v38 = vcombine.low %v2127_v52, %v2131_v30  ;;  %v1953_v30 = vlaneseq }
 0x1a5   :  { %v12335_v17 = vcombine.high %v2126_v15, %v2130_v14  ;;  %v12341_v62 = vcombine.low %v2126_v15, %v2130_v14  ;;  %v14584_v15 = vld [vmem:[#allocation26_spill] sm:$0xff] }
 0x1a6   :  { %2885 = vmatpush1.bf16.msra.mxu0 %v12305_v61  ;;  %2926 = vmatpush1.bf16.msra.mxu1 %v12309_v44  ;;  %v2135_v44 = vld [vmem:[#allocation8 + $0x3d8] sm:$0xff]  ;;  %vm12489_vm0 = vcmp.lt.s32.totalorder %v1953_v30, 256 }
 0x1a7   :  { %2886 = vmatprep.subr.bf16.mxu0 %v12311_v37  ;;  %2927 = vmatprep.subr.bf16.mxu1 %v12314_v24  ;;  %v2134_v24 = vld [vmem:[#allocation8 + $0x3d0] sm:$0xff]  ;;  %v2139_v61 = vld [vmem:[#allocation8 + $0x3f8] sm:$0xff] }
 0x1a8   :  { %v2138_v37 = vld [vmem:[#allocation8 + $0x3f0] sm:$0xff]  ;;  %v12350_v22 = vcombine.high %v2135_v44, %v2139_v61  ;;  %v12357_v14 = vcombine.low %v2135_v44, %v2139_v61  ;;  %v14585_v61 = vld [vmem:[#allocation27_spill] sm:$0xff]  ;;  %v14586_v44 = vld [vmem:[#allocation28_spill] sm:$0xff] }
 0x1a9   :  { %v12347_v60 = vcombine.high %v2134_v24, %v2138_v37 }
 0x1aa   :  { %2887 = vmatpush1.bf16.msra.mxu0 %v12317_v11  ;;  %2928 = vmatpush1.bf16.msra.mxu1 %v12321_v29 }
 0x1ab   :  { %2888 = vmatprep.subr.bf16.mxu0 %v12323_v9  ;;  %2929 = vmatprep.subr.bf16.mxu1 %v12326_v4  ;;  %v12353_v4 = vcombine.low %v2134_v24, %v2138_v37  ;;  %v14587_v37 = vld [vmem:[#allocation29_spill] sm:$0xff]  ;;  %v14588_v24 = vld [vmem:[#allocation30_spill] sm:$0xff] }
 0x1ae   :  { %2889 = vmatpush1.bf16.msra.mxu0 %v12329_v8  ;;  %2930 = vmatpush1.bf16.msra.mxu1 %v12333_v50 }
 0x1af   :  { %2890 = vmatprep.subr.bf16.mxu0 %v12335_v17  ;;  %2931 = vmatprep.subr.bf16.mxu1 %v12338_v59 }
 0x1b2   :  { %2891 = vmatpush1.bf16.msra.mxu0 %v12341_v62  ;;  %2932 = vmatpush1.bf16.msra.mxu1 %v12345_v38 }
 0x1b3   :  { %2892 = vmatprep.subr.bf16.mxu0 %v12347_v60  ;;  %2933 = vmatprep.subr.bf16.mxu1 %v12350_v22 }
 0x1b6   :  { %2893 = vmatpush1.bf16.msra.mxu0 %v12353_v4  ;;  %2934 = vmatpush1.bf16.msra.mxu1 %v12357_v14 }
 0x1b7   :  { %3813 = vmatprep.subr.bf16.mxu0 %v12026_v18  ;;  %3854 = vmatprep.subr.bf16.mxu1 %v12028_v19  ;;  %v12376_v18 = vshrl.u32 %v1953_v30, 7 }
 0x1b9   :  { %2895 = vmatmul.mubr.bf16.vlgmr.msra.gmra.mrb[20].mxu0 %v14541_v5  ;;  %2936 = vmatmul.mubr.bf16.vlgmr.msra.gmra.mrb[20].mxu1 %v14541_v5  ;;  %v12383_v19 = vsub.s32 0, %v12376_v18 }
 0x1ba   :  { %3814 = vmatpush1.bf16.msra.mxu0 %v12030_v25  ;;  %3855 = vmatpush1.bf16.msra.mxu1 %v12033_v26  ;;  %v12390_v25 = vld [vmem:[%s14279_s5] sm:$0xff]  ;;  %v1963_v26 = vsub.s32 2, %v12376_v18 }
 0x1bb   :  { %3815 = vmatprep.subr.bf16.mxu0 %v12035_v27  ;;  %3856 = vmatprep.subr.bf16.mxu1 %v12038_v28  ;;  %v12394_v27 = vsub.s32 1, %v12376_v18  ;;  %v1967_v28 = vsub.s32 3, %v12376_v18 }
 0x1be   :  { %3816 = vmatpush1.bf16.msra.mxu0 %v12043_v32  ;;  %3857 = vmatpush1.bf16.msra.mxu1 %v12047_v33  ;;  %v1956_v32 = vrot.slane %v12390_v25, %v12383_v19 }
 0x1bf   :  { %3817 = vmatprep.subr.bf16.mxu0 %v12049_v34  ;;  %3858 = vmatprep.subr.bf16.mxu1 %v12052_v12  ;;  %v1964_v34 = vrot.slane %v12390_v25, %v1963_v26  ;;  %v1960_v12 = vrot.slane %v12390_v25, %v12394_v27  ;;  %v14589_v26 = vld [vmem:[#allocation31_spill] sm:$0xff] }
 0x1c2   :  { %3818 = vmatpush1.bf16.msra.mxu0 %v12057_v39  ;;  %3859 = vmatpush1.bf16.msra.mxu1 %v12061_v40 }
 0x1c3   :  { %3819 = vmatprep.subr.bf16.mxu0 %v12063_v41  ;;  %3860 = vmatprep.subr.bf16.mxu1 %v12066_v57  ;;  %v1968_v57 = vrot.slane %v12390_v25, %v1967_v28  ;;  %v14590_v28 = vld [vmem:[#allocation32_spill] sm:$0xff] }
 0x1c6   :  { %3820 = vmatpush1.bf16.msra.mxu0 %v12069_v46  ;;  %3861 = vmatpush1.bf16.msra.mxu1 %v12073_v23 }
 0x1c7   :  { %3821 = vmatprep.subr.bf16.mxu0 %v12075_v47  ;;  %3862 = vmatprep.subr.bf16.mxu1 %v12078_v48 }
 0x1ca   :  { %3822 = vmatpush1.bf16.msra.mxu0 %v12081_v54  ;;  %3863 = vmatpush1.bf16.msra.mxu1 %v12085_v55 }
 0x1cb   :  { %3823 = vmatprep.subr.bf16.mxu0 %v12087_v56  ;;  %3864 = vmatprep.subr.bf16.mxu1 %v12090_v58 }
 0x1cc   :  { %v1821_v33 = vpop.f32.mrb[8].mxu0  ;;  %v1862_v40 = vpop.f32.mrb[8].mxu1 }
 0x1cd   :  { %v1822_v39 = vadd.f32 %v1821_v33, %v12101_v2  ;;  %v1823_v41 = vpop.f32.mrb[9].mxu0  ;;  %v1863_v46 = vadd.f32 %v1862_v40, %v12106_v6  ;;  %v1864_v47 = vpop.f32.mrb[9].mxu1  ;;  %v14592_v33 = vld [vmem:[#allocation34_spill] sm:$0xff] }
 0x1ce   :  { %v1824_v23 = vadd.f32 %v1823_v41, %v12108_v7  ;;  %v1825_v48 = vpop.f32.mrb[10].mxu0  ;;  %3824 = vmatpush1.bf16.msra.mxu0 %v12093_v63  ;;  %v1865_v55 = vadd.f32 %v1864_v47, %v12110_v10  ;;  %v1866_v56 = vpop.f32.mrb[10].mxu1  ;;  %3865 = vmatpush1.bf16.msra.mxu1 %v12097_v0  ;;  %v14569_v63 = vld [vmem:[#allocation11_spill] sm:$0xff]  ;;  %v14570_v0 = vld [vmem:[#allocation12_spill] sm:$0xff]  ;;  %v14596_v40 = vld [vmem:[#allocation38_spill] sm:$0xff]  ;;  %v1983_v47 = vsub.s32 7, %v12376_v18 }
 0x1cf   :  { %v1993_v54 = vadd.f32 %v1956_v32, %v1822_v39  ;;  %v1826_v5 = vpop.f32.mrb[11].mxu0  ;;  %3825 = vmatprep.subr.bf16.mxu0 %v12099_v1  ;;  %v1995_v58 = vadd.f32 %v1964_v34, %v1863_v46  ;;  %v1867_v52 = vpop.f32.mrb[11].mxu1  ;;  %3866 = vmatprep.subr.bf16.mxu1 %v12104_v3  ;;  %v14571_v1 = vld [vmem:[#allocation13_spill] sm:$0xff]  ;;  %v14572_v3 = vld [vmem:[#allocation14_spill] sm:$0xff]  ;;  %v14573_v7 = vld [vmem:[#allocation15_spill] sm:$0xff]  ;;  %v1979_v46 = vsub.s32 6, %v12376_v18 }
 0x1d0   :  { %v1994_v2 = vadd.f32 %v1960_v12, %v1824_v23  ;;  %v1996_v6 = vadd.f32 %v1968_v57, %v1865_v55  ;;  %v14574_v10 = vld [vmem:[#allocation16_spill] sm:$0xff]  ;;  %v14591_v32 = vld [vmem:[#allocation33_spill] sm:$0xff]  ;;  %v14593_v34 = vld [vmem:[#allocation35_spill] sm:$0xff]  ;;  %v1971_v57 = vsub.s32 4, %v12376_v18  ;;  %v1975_v23 = vsub.s32 5, %v12376_v18 }
 0x1d1   :  { %2001 = vst [vmem:[#allocation2] sm:$0xff] %v1993_v54  ;;  %2003 = vst [vmem:[#allocation2 + $0x10] sm:$0xff] %v1995_v58  ;;  %v14594_v12 = vld [vmem:[#allocation36_spill] sm:$0xff]  ;;  %v14595_v39 = vld [vmem:[#allocation37_spill] sm:$0xff]  ;;  %v1980_v55 = vrot.slane %v12390_v25, %v1979_v46  ;;  %v1984_v52 = vrot.slane %v12390_v25, %v1983_v47 }
 0x1d2   :  { %2002 = vst [vmem:[#allocation2 + $0x8] sm:$0xff] %v1994_v2  ;;  %3826 = vmatpush1.bf16.msra.mxu0 %v12113_v13  ;;  %2004 = vst [vmem:[#allocation2 + $0x18] sm:$0xff] %v1996_v6  ;;  %3867 = vmatpush1.bf16.msra.mxu1 %v12117_v16  ;;  %v14575_v13 = vld [vmem:[#allocation17_spill] sm:$0xff]  ;;  %v14576_v16 = vld [vmem:[#allocation18_spill] sm:$0xff]  ;;  %v1972_v48 = vrot.slane %v12390_v25, %v1971_v57  ;;  %v1976_v56 = vrot.slane %v12390_v25, %v1975_v23 }
 0x1d3   :  { %3827 = vmatprep.subr.bf16.mxu0 %v12119_v21  ;;  %3868 = vmatprep.subr.bf16.mxu1 %v12122_v53  ;;  %v14577_v21 = vld [vmem:[#allocation19_spill] sm:$0xff]  ;;  %v14578_v53 = vld [vmem:[#allocation20_spill] sm:$0xff]  ;;  %v3047_v25 = vld [vmem:[#allocation8 + $0x10] sm:$0xff] }
 0x1d4   :  { %v14597_v41 = vld [vmem:[#allocation39_spill] sm:$0xff] }
 0x1d6   :  { %3828 = vmatpush1.bf16.msra.mxu0 %v12125_v31  ;;  %3869 = vmatpush1.bf16.msra.mxu1 %v12129_v35  ;;  %v14579_v31 = vld [vmem:[#allocation21_spill] sm:$0xff]  ;;  %v14580_v35 = vld [vmem:[#allocation22_spill] sm:$0xff] }
 0x1d7   :  { %3829 = vmatprep.subr.bf16.mxu0 %v12131_v36  ;;  %3870 = vmatprep.subr.bf16.mxu1 %v12134_v20  ;;  %v14581_v36 = vld [vmem:[#allocation23_spill] sm:$0xff]  ;;  %v14582_v20 = vld [vmem:[#allocation24_spill] sm:$0xff] }
 0x1da   :  { %3830 = vmatpush1.bf16.msra.mxu0 %v12137_v45  ;;  %3871 = vmatpush1.bf16.msra.mxu1 %v14569_v63  ;;  %v14583_v45 = vld [vmem:[#allocation25_spill] sm:$0xff]  ;;  %v14598_v63 = vld [vmem:[#allocation40_spill] sm:$0xff] }
 0x1db   :  { %3831 = vmatprep.subr.bf16.mxu0 %v14570_v0  ;;  %3872 = vmatprep.subr.bf16.mxu1 %v14571_v1 }
 0x1de   :  { %3832 = vmatpush1.bf16.msra.mxu0 %v14572_v3  ;;  %3873 = vmatpush1.bf16.msra.mxu1 %v14573_v7 }
 0x1df   :  { %3833 = vmatprep.subr.bf16.mxu0 %v14574_v10  ;;  %3874 = vmatprep.subr.bf16.mxu1 %v14575_v13  ;;  %v14599_v10 = vld [vmem:[#allocation41_spill] sm:$0xff] }
 0x1e2   :  { %3834 = vmatpush1.bf16.msra.mxu0 %v14576_v16  ;;  %3875 = vmatpush1.bf16.msra.mxu1 %v14577_v21 }
 0x1e3   :  { %3835 = vmatprep.subr.bf16.mxu0 %v14578_v53  ;;  %3876 = vmatprep.subr.bf16.mxu1 %v14579_v31 }
 0x1e6   :  { %3836 = vmatpush1.bf16.msra.mxu0 %v14580_v35  ;;  %3877 = vmatpush1.bf16.msra.mxu1 %v14581_v36  ;;  %v3051_v36 = vld [vmem:[#allocation8 + $0x30] sm:$0xff] }
 0x1e7   :  { %3837 = vmatprep.subr.bf16.mxu0 %v14582_v20  ;;  %3878 = vmatprep.subr.bf16.mxu1 %v14583_v45  ;;  %v12466_v20 = vcombine.high %v3047_v25, %v3051_v36  ;;  %v3052_v45 = vld [vmem:[#allocation8 + $0x38] sm:$0xff] }
 0x1ea   :  { %3838 = vmatpush1.bf16.msra.mxu0 %v14584_v15  ;;  %3879 = vmatpush1.bf16.msra.mxu1 %v14585_v61  ;;  %v12468_v15 = vcombine.low %v3047_v25, %v3051_v36 }
 0x1eb   :  { %3839 = vmatprep.subr.bf16.mxu0 %v14586_v44  ;;  %3880 = vmatprep.subr.bf16.mxu1 %v14587_v37  ;;  %v11888_v37 = vmov 1966171168  }
 0x1ee   :  { %3840 = vmatpush1.bf16.msra.mxu0 %v14588_v24  ;;  %3881 = vmatpush1.bf16.msra.mxu1 %v14589_v26  ;;  %v2957_v24 = vunpack.c.l.s4 %v11888_v37 }
 0x1ef   :  { %3841 = vmatprep.subr.bf16.mxu0 %v14590_v28  ;;  %3882 = vmatprep.subr.bf16.mxu1 %v14591_v32 }
 0x1f0   :  { %v2958_v26 = vunpack.c.0.s8 %v2957_v24 }
 0x1f2   :  { %3842 = vmatpush1.bf16.msra.mxu0 %v14592_v33  ;;  %3883 = vmatpush1.bf16.msra.mxu1 %v14593_v34  ;;  %v12477_v28 = vsub.s32 %v2958_v26, %v12376_v18 }
 0x1f3   :  { %3843 = vmatprep.subr.bf16.mxu0 %v14594_v12  ;;  %3884 = vmatprep.subr.bf16.mxu1 %v14595_v39 }
 0x1f6   :  { %3844 = vmatpush1.bf16.msra.mxu0 %v14596_v40  ;;  %3885 = vmatpush1.bf16.msra.mxu1 %v14597_v41 }
 0x1f7   :  { %3895 = vmatprep.subr.bf16.mxu0 %v12466_v20 }
 0x20c   :  { %v1903_v54 = vpop.f32.mrb[12].mxu0  ;;  %v1944_v58 = vpop.f32.mrb[12].mxu1 }
 0x20d   :  { %v1904_v5 = vadd.f32 %v1903_v54, %v12236_v43  ;;  %v1905_v2 = vpop.f32.mrb[13].mxu0  ;;  %v1945_v6 = vadd.f32 %v1944_v58, %v12240_v49  ;;  %v1946_v1 = vpop.f32.mrb[13].mxu1  ;;  %v3048_v49 = vld [vmem:[#allocation8 + $0x18] sm:$0xff] }
 0x20e   :  { %v1906_v0 = vadd.f32 %v1905_v2, %v14598_v63  ;;  %v1907_v3 = vpop.f32.mrb[14].mxu0  ;;  %v1947_v13 = vadd.f32 %v1946_v1, %v14599_v10  ;;  %v1948_v16 = vpop.f32.mrb[14].mxu1  ;;  %v12470_v61 = vcombine.low %v3048_v49, %v3052_v45  ;;  %v12472_v44 = vcombine.high %v3048_v49, %v3052_v45 }
 0x20f   :  { %v1997_v7 = vadd.f32 %v1972_v48, %v1904_v5  ;;  %v1908_v21 = vpop.f32.mrb[15].mxu0  ;;  %v1999_v53 = vadd.f32 %v1980_v55, %v1945_v6  ;;  %v1949_v35 = vpop.f32.mrb[15].mxu1 }
 0x210   :  { %v1998_v31 = vadd.f32 %v1976_v56, %v1906_v0  ;;  %v2000_v43 = vadd.f32 %v1984_v52, %v1947_v13  ;;  %3936 = vmatprep.subr.bf16.mxu1 %v12472_v44  ;;  %v2009_v21 = vld [vmem:[#allocation2] ss:$8 sm:$0xf] }
 0x211   :  { %2005 = vst [vmem:[#allocation2 + $0x20] sm:$0xff] %v1997_v7  ;;  %2007 = vst [vmem:[#allocation2 + $0x30] sm:$0xff] %v1999_v53 }
 0x212   :  { %2006 = vst [vmem:[#allocation2 + $0x28] sm:$0xff] %v1998_v31  ;;  %2008 = vst [vmem:[#allocation2 + $0x38] sm:$0xff] %v2000_v43 }
 0x219   :  { %v2010_v10 = vld [vmem:[#allocation2] ss:$8 sm:$0xf0] }
 0x21a   :  { %v2011_v53 = vor.u32 %v2010_v10, %v2009_v21  ;;  %v3075_v10 = vld [vmem:[#allocation8 + $0xf0] sm:$0xff] }
 0x24c   :  { %v2814_v32 = vpop.f32.mrb[16].mxu0  ;;  %v2855_v33 = vpop.f32.mrb[16].mxu1 }
 0x24d   :  { %v2816_v34 = vpop.f32.mrb[17].mxu0  ;;  %v2857_v39 = vpop.f32.mrb[17].mxu1 }
 0x24e   :  { %v2952_v12 = vcombine.low %v2814_v32, %v2816_v34  ;;  %v2818_v40 = vpop.f32.mrb[18].mxu0  ;;  %v2953_v41 = vcombine.low %v2855_v33, %v2857_v39  ;;  %v2859_v57 = vpop.f32.mrb[18].mxu1 }
 0x24f   :  { %v2819_v46 = vpop.f32.mrb[19].mxu0  ;;  %v2860_v47 = vpop.f32.mrb[19].mxu1 }
 0x250   :  { %v2962_v23 = vrot.slane %v2952_v12, %v12477_v28  ;;  %v2969_v48 = vrot.slane %v2953_v41, %v12477_v28  ;;  %v3055_v47 = vld [vmem:[#allocation8 + $0x50] sm:$0xff] }
 0x252   :  { %v2984_v54 = vcombine.low %v2962_v23, %v2969_v48  ;;  %v3059_v48 = vld [vmem:[#allocation8 + $0x70] sm:$0xff] }
 0x253   :  { %v12499_v30 = vcombine.high %v3055_v47, %v3059_v48 }
 0x254   :  { %v2992_v13 = vrot.slane %v2984_v54, %v12477_v28  ;;  %v3056_v54 = vld [vmem:[#allocation8 + $0x58] sm:$0xff] }
 0x28c   :  { %v2896_v55 = vpop.f32.mrb[20].mxu0  ;;  %v2937_v56 = vpop.f32.mrb[20].mxu1 }
 0x28d   :  { %v2898_v5 = vpop.f32.mrb[21].mxu0  ;;  %v2939_v58 = vpop.f32.mrb[21].mxu1 }
 0x28e   :  { %v2954_v18 = vcombine.low %v2896_v55, %v2898_v5  ;;  %v2900_v2 = vpop.f32.mrb[22].mxu0  ;;  %v2955_v52 = vcombine.low %v2937_v56, %v2939_v58  ;;  %v2941_v6 = vpop.f32.mrb[22].mxu1  ;;  %v3060_v55 = vld [vmem:[#allocation8 + $0x78] sm:$0xff] }
 0x28f   :  { %v2901_v63 = vpop.f32.mrb[23].mxu0  ;;  %v2942_v1 = vpop.f32.mrb[23].mxu1  ;;  %v12501_v58 = vcombine.high %v3056_v54, %v3060_v55  ;;  %v3067_v2 = vld [vmem:[#allocation8 + $0xb0] sm:$0xff]  ;;  %v3068_v6 = vld [vmem:[#allocation8 + $0xb8] sm:$0xff] }
 0x290   :  { %v2976_v0 = vrot.slane %v2954_v18, %v12477_v28  ;;  %v2983_v3 = vrot.slane %v2955_v52, %v12477_v28  ;;  %v3063_v18 = vld [vmem:[#allocation8 + $0x90] sm:$0xff]  ;;  %v3064_v52 = vld [vmem:[#allocation8 + $0x98] sm:$0xff]  ;;  %v12507_v63 = vcombine.low %v3055_v47, %v3059_v48 }
 0x291   :  { %v12511_v1 = vcombine.high %v3063_v18, %v3067_v2  ;;  %v12519_v21 = vcombine.low %v3063_v18, %v3067_v2  ;;  %v14605_v18 = vld [vmem:[#allocation45_spill] sm:$0xff]  ;;  %v14606_v2 = vld [vmem:[#allocation46_spill] sm:$0xff] }
 0x292   :  { %v2985_v7 = vcombine.low %v2976_v0, %v2983_v3  ;;  %v12509_v0 = vcombine.low %v3056_v54, %v3060_v55  ;;  %v12513_v3 = vcombine.high %v3064_v52, %v3068_v6  ;;  %v14602_v54 = vld [vmem:[#allocation42_spill] sm:$0xff]  ;;  %v14603_v55 = vld [vmem:[#allocation43_spill] sm:$0xff] }
 0x294   :  { %v2999_v16 = vrot.slane %v2985_v7, %v12477_v28  ;;  %v3071_v7 = vld [vmem:[#allocation8 + $0xd0] sm:$0xff] }
 0x296   :  { %v3000_v31 = vcombine.low %v2992_v13, %v2999_v16  ;;  %v3072_v13 = vld [vmem:[#allocation8 + $0xd8] sm:$0xff] }
 0x297   :  { %v3076_v16 = vld [vmem:[#allocation8 + $0xf8] sm:$0xff] }
 0x298   :  { %v3002_v35 = vadd.f32 %v3000_v31, %v2011_v53  ;;  %v12521_v53 = vcombine.low %v3064_v52, %v3068_v6  ;;  %v12525_v31 = vcombine.high %v3071_v7, %v3075_v10  ;;  %v14607_v52 = vld [vmem:[#allocation47_spill] sm:$0xff]  ;;  %v14608_v6 = vld [vmem:[#allocation48_spill] sm:$0xff] }
 0x29a   :  { %11778 = vtanh.f32 %v3002_v35  ;;  %v12527_v35 = vcombine.high %v3072_v13, %v3076_v16 }
 0x2a4   :  { %v11779_v43 = vpop.eup %11778 }
 0x2a5   :  { %v3004_v25 = vmul.f32 0.5, %v11779_v43  ;;  %v3007_v36 = vrot.slane %v11779_v43, 2  ;;  %v3016_v24 = vrot.slane %v11779_v43, 4  ;;  %v3011_v34 = vrot.slane %v11779_v43, 6  ;;  %v3079_v43 = vld [vmem:[#allocation8 + $0x110] sm:$0xff] }
 0x2a7   :  { %v3005_v49 = vadd.f32 0.5, %v3004_v25  ;;  %v3009_v45 = vmul.f32 0.5, %v3007_v36  ;;  %v3013_v12 = vmul.f32 0.5, %v3011_v34  ;;  %v3083_v25 = vld [vmem:[#allocation8 + $0x130] sm:$0xff]  ;;  %v3080_v36 = vld [vmem:[#allocation8 + $0x118] sm:$0xff] }
 0x2a8   :  { %v3091_v34 = vld [vmem:[#allocation8 + $0x170] sm:$0xff] }
 0x2a9   :  { %v3010_v37 = vadd.f32 0.5, %v3009_v45  ;;  %v3018_v32 = vmul.f32 %v3016_v24, %v3005_v49  ;;  %v3014_v39 = vadd.f32 0.5, %v3013_v12  ;;  %v3084_v49 = vld [vmem:[#allocation8 + $0x138] sm:$0xff]  ;;  %v12531_v45 = vcombine.low %v3071_v7, %v3075_v10  ;;  %v14609_v7 = vld [vmem:[#allocation49_spill] sm:$0xff] }
 0x2aa   :  { %v12537_v24 = vcombine.high %v3079_v43, %v3083_v25  ;;  %v3088_v12 = vld [vmem:[#allocation8 + $0x158] sm:$0xff] }
 0x2ab   :  { %v3015_v26 = vmul.f32 0.0, %v3010_v37  ;;  %v12533_v37 = vcombine.low %v3072_v13, %v3076_v16  ;;  %v14610_v10 = vld [vmem:[#allocation50_spill] sm:$0xff]  ;;  %v14613_v13 = vld [vmem:[#allocation53_spill] sm:$0xff] }
 0x2ac   :  { %v14614_v16 = vld [vmem:[#allocation54_spill] sm:$0xff] }
 0x2ad   :  { %v12485_v33 = vadd.f32 %v3018_v32, %v3015_v26  ;;  %v12539_v26 = vcombine.high %v3080_v36, %v3084_v49  ;;  %v3087_v32 = vld [vmem:[#allocation8 + $0x150] sm:$0xff] }
 0x2ae   :  { %v12555_v47 = vcombine.low %v3087_v32, %v3091_v34 }
 0x2af   :  { %11780 = vtanh.f32 %v12485_v33 }
 0x2b9   :  { %v11781_v40 = vpop.eup %11780 }
 0x2ba   :  { %v3021_v57 = vmul.f32 %v11781_v40, %v3014_v39  ;;  %v3092_v39 = vld [vmem:[#allocation8 + $0x178] sm:$0xff]  ;;  %v12543_v40 = vcombine.low %v3079_v43, %v3083_v25  ;;  %v14615_v43 = vld [vmem:[#allocation55_spill] sm:$0xff]  ;;  %v14616_v25 = vld [vmem:[#allocation56_spill] sm:$0xff] }
 0x2bb   :  { %v12557_v48 = vcombine.low %v3088_v12, %v3092_v39 }
 0x2bc   :  { %v3030_v46 = vrot.slane %v3021_v57, %v12394_v27  ;;  %3039 = vst.msk [vmem:[#allocation3] ss:$8 sm:$0x3] %vm12489_vm0, %v3021_v57  ;;  %v3026_v23 = vrot.slane %v3021_v57, %v12383_v19  ;;  %v12545_v57 = vcombine.low %v3080_v36, %v3084_v49  ;;  %v14617_v36 = vld [vmem:[#allocation57_spill] sm:$0xff]  ;;  %v14618_v49 = vld [vmem:[#allocation58_spill] sm:$0xff] }
 0x2be   :  { %v3034_v56 = vpack.c.bf16 %v3030_v46, %v3030_v46  ;;  %v12497_v5 = vpack.c.bf16 %v3026_v23, %v3026_v23  ;;  %v12549_v46 = vcombine.high %v3087_v32, %v3091_v34  ;;  %v12551_v23 = vcombine.high %v3088_v12, %v3092_v39  ;;  %v14619_v32 = vld [vmem:[#allocation59_spill] sm:$0xff]  ;;  %v14620_v34 = vld [vmem:[#allocation60_spill] sm:$0xff]  ;;  %v14621_v12 = vld [vmem:[#allocation61_spill] sm:$0xff] }
 0x2bf   :  { %v14622_v39 = vld [vmem:[#allocation62_spill] sm:$0xff] }
 0x2c0   :  { %3845 = vmatprep.mubr.bf16.mxu0 %v3034_v56  ;;  %3886 = vmatprep.mubr.bf16.mxu1 %v3034_v56 }
 0x2c1   :  { %3846 = vmatmul.mubr.bf16.vlgmr.msra.gmra.mrb[24].mxu0 %v12497_v5  ;;  %3887 = vmatmul.mubr.bf16.vlgmr.msra.gmra.mrb[24].mxu1 %v12497_v5 }
 0x2c2   :  { %3896 = vmatpush1.bf16.msra.mxu0 %v12468_v15  ;;  %3937 = vmatpush1.bf16.msra.mxu1 %v12470_v61 }
 0x2c3   :  { %3927 = vmatprep.mubr.bf16.mxu0 %v3034_v56  ;;  %3968 = vmatprep.mubr.bf16.mxu1 %v3034_v56  ;;  %v14604_v56 = vld [vmem:[#allocation44_spill] sm:$0xff] }
 0x2c4   :  { %3897 = vmatprep.subr.bf16.mxu0 %v12499_v30  ;;  %3938 = vmatprep.subr.bf16.mxu1 %v12501_v58 }
 0x2c6   :  { %3898 = vmatpush1.bf16.msra.mxu0 %v12507_v63  ;;  %3939 = vmatpush1.bf16.msra.mxu1 %v12509_v0 }
 0x2c7   :  { %3899 = vmatprep.subr.bf16.mxu0 %v12511_v1  ;;  %3940 = vmatprep.subr.bf16.mxu1 %v12513_v3 }
 0x2ca   :  { %3900 = vmatpush1.bf16.msra.mxu0 %v12519_v21  ;;  %3941 = vmatpush1.bf16.msra.mxu1 %v12521_v53 }
 0x2cb   :  { %3901 = vmatprep.subr.bf16.mxu0 %v12525_v31  ;;  %3942 = vmatprep.subr.bf16.mxu1 %v12527_v35 }
 0x2ce   :  { %3902 = vmatpush1.bf16.msra.mxu0 %v12531_v45  ;;  %3943 = vmatpush1.bf16.msra.mxu1 %v12533_v37 }
 0x2cf   :  { %3903 = vmatprep.subr.bf16.mxu0 %v12537_v24  ;;  %3944 = vmatprep.subr.bf16.mxu1 %v12539_v26 }
 0x2d2   :  { %3904 = vmatpush1.bf16.msra.mxu0 %v12543_v40  ;;  %3945 = vmatpush1.bf16.msra.mxu1 %v12545_v57 }
 0x2d3   :  { %3905 = vmatprep.subr.bf16.mxu0 %v12549_v46  ;;  %3946 = vmatprep.subr.bf16.mxu1 %v12551_v23 }
 0x2d6   :  { %3906 = vmatpush1.bf16.msra.mxu0 %v12555_v47  ;;  %3947 = vmatpush1.bf16.msra.mxu1 %v12557_v48 }
 0x2d7   :  { %3907 = vmatprep.subr.bf16.mxu0 %v12234_v42  ;;  %3948 = vmatprep.subr.bf16.mxu1 %v12238_v51  ;;  %v14611_v42 = vld [vmem:[#allocation51_spill] sm:$0xff]  ;;  %v14612_v51 = vld [vmem:[#allocation52_spill] sm:$0xff] }
 0x2da   :  { %3908 = vmatpush1.bf16.msra.mxu0 %v14602_v54  ;;  %3949 = vmatpush1.bf16.msra.mxu1 %v14603_v55  ;;  %v14623_v54 = vld [vmem:[#allocation63_spill] sm:$0xff]  ;;  %v14624_v55 = vld [vmem:[#allocation64_spill] sm:$0xff] }
 0x2db   :  { %3909 = vmatprep.subr.bf16.mxu0 %v14604_v56  ;;  %3950 = vmatprep.subr.bf16.mxu1 %v14605_v18  ;;  %v14625_v56 = vld [vmem:[#allocation65_spill] sm:$0xff]  ;;  %v14626_v18 = vld [vmem:[#allocation66_spill] sm:$0xff] }
 0x2de   :  { %3910 = vmatpush1.bf16.msra.mxu0 %v14606_v2  ;;  %3951 = vmatpush1.bf16.msra.mxu1 %v14607_v52  ;;  %v4091_v2 = vld [vmem:[#allocation8 + $0x80] sm:$0xff] }
 0x2df   :  { %3911 = vmatprep.subr.bf16.mxu0 %v14608_v6  ;;  %3952 = vmatprep.subr.bf16.mxu1 %v14609_v7  ;;  %v4095_v52 = vld [vmem:[#allocation8 + $0xa0] sm:$0xff]  ;;  %v4092_v6 = vld [vmem:[#allocation8 + $0x88] sm:$0xff] }
 0x2e0   :  { %v4096_v7 = vld [vmem:[#allocation8 + $0xa8] sm:$0xff] }
 0x2e2   :  { %3912 = vmatpush1.bf16.msra.mxu0 %v14610_v10  ;;  %3953 = vmatpush1.bf16.msra.mxu1 %v14611_v42 }
 0x2e3   :  { %3913 = vmatprep.subr.bf16.mxu0 %v14612_v51  ;;  %3954 = vmatprep.subr.bf16.mxu1 %v14613_v13  ;;  %v12626_v51 = vcombine.high %v4091_v2, %v4095_v52  ;;  %v12629_v13 = vcombine.high %v4092_v6, %v4096_v7 }
 0x2e6   :  { %3914 = vmatpush1.bf16.msra.mxu0 %v14614_v16  ;;  %3955 = vmatpush1.bf16.msra.mxu1 %v14615_v43  ;;  %v12632_v16 = vcombine.low %v4091_v2, %v4095_v52  ;;  %v12636_v43 = vcombine.low %v4092_v6, %v4096_v7  ;;  %v4120_v52 = vld [vmem:[#allocation8 + $0x168] sm:$0xff] }
 0x2e7   :  { %3915 = vmatprep.subr.bf16.mxu0 %v14616_v25  ;;  %3956 = vmatprep.subr.bf16.mxu1 %v14617_v36  ;;  %v4099_v25 = vld [vmem:[#allocation8 + $0xc0] sm:$0xff] }
 0x2e8   :  { %v4103_v36 = vld [vmem:[#allocation8 + $0xe0] sm:$0xff] }
 0x2ea   :  { %3916 = vmatpush1.bf16.msra.mxu0 %v14618_v49  ;;  %3957 = vmatpush1.bf16.msra.mxu1 %v14619_v32  ;;  %v4100_v49 = vld [vmem:[#allocation8 + $0xc8] sm:$0xff]  ;;  %v12641_v32 = vcombine.high %v4099_v25, %v4103_v36 }
 0x2eb   :  { %3917 = vmatprep.subr.bf16.mxu0 %v14620_v34  ;;  %3958 = vmatprep.subr.bf16.mxu1 %v14621_v12  ;;  %v4104_v34 = vld [vmem:[#allocation8 + $0xe8] sm:$0xff]  ;;  %v12643_v12 = vcombine.low %v4099_v25, %v4103_v36  ;;  %v4123_v36 = vld [vmem:[#allocation8 + $0x180] sm:$0xff] }
 0x2ee   :  { %3918 = vmatpush1.bf16.msra.mxu0 %v14622_v39  ;;  %3959 = vmatpush1.bf16.msra.mxu1 %v14623_v54  ;;  %v12645_v39 = vcombine.low %v4100_v49, %v4104_v34  ;;  %v12647_v54 = vcombine.high %v4100_v49, %v4104_v34  ;;  %v4127_v49 = vld [vmem:[#allocation8 + $0x1a0] sm:$0xff]  ;;  %v4124_v34 = vld [vmem:[#allocation8 + $0x188] sm:$0xff] }
 0x2ef   :  { %3919 = vmatprep.subr.bf16.mxu0 %v14624_v55  ;;  %3960 = vmatprep.subr.bf16.mxu1 %v14625_v56  ;;  %v4107_v55 = vld [vmem:[#allocation8 + $0x100] sm:$0xff] }
 0x2f0   :  { %14627 = vst [vmem:[#allocation11_spill] sm:$0xff] %v12645_v39  ;;  %v4111_v56 = vld [vmem:[#allocation8 + $0x120] sm:$0xff] }
 0x2f2   :  { %3920 = vmatpush1.bf16.msra.mxu0 %v12317_v11  ;;  %3961 = vmatpush1.bf16.msra.mxu1 %v12321_v29  ;;  %v4075_v11 = vld [vmem:[#allocation8] sm:$0xff] }
 0x2f3   :  { %3921 = vmatprep.subr.bf16.mxu0 %v12323_v9  ;;  %3962 = vmatprep.subr.bf16.mxu1 %v14626_v18  ;;  %v4079_v29 = vld [vmem:[#allocation8 + $0x20] sm:$0xff]  ;;  %v4076_v9 = vld [vmem:[#allocation8 + $0x8] sm:$0xff] }
 0x2f4   :  { %v4108_v18 = vld [vmem:[#allocation8 + $0x108] sm:$0xff] }
 0x2f6   :  { %3922 = vmatpush1.bf16.msra.mxu0 %v12329_v8  ;;  %3963 = vmatpush1.bf16.msra.mxu1 %v12333_v50  ;;  %v12605_v8 = vcombine.low %v4075_v11, %v4079_v29  ;;  %v12607_v50 = vcombine.high %v4075_v11, %v4079_v29  ;;  %v12653_v11 = vcombine.high %v4107_v55, %v4111_v56  ;;  %v4112_v29 = vld [vmem:[#allocation8 + $0x128] sm:$0xff] }
 0x2f7   :  { %3923 = vmatprep.subr.bf16.mxu0 %v12335_v17  ;;  %3964 = vmatprep.subr.bf16.mxu1 %v12338_v59  ;;  %v4080_v17 = vld [vmem:[#allocation8 + $0x28] sm:$0xff]  ;;  %v4083_v59 = vld [vmem:[#allocation8 + $0x40] sm:$0xff] }
 0x2f8   :  { %14628 = vst [vmem:[#allocation12_spill] sm:$0xff] %v12653_v11 }
 0x2fa   :  { %3924 = vmatpush1.bf16.msra.mxu0 %v12341_v62  ;;  %3965 = vmatpush1.bf16.msra.mxu1 %v12345_v38  ;;  %v4087_v62 = vld [vmem:[#allocation8 + $0x60] sm:$0xff]  ;;  %v12609_v38 = vcombine.low %v4076_v9, %v4080_v17 }
 0x2fb   :  { %3925 = vmatprep.subr.bf16.mxu0 %v12347_v60  ;;  %3966 = vmatprep.subr.bf16.mxu1 %v12350_v22  ;;  %v12611_v60 = vcombine.high %v4076_v9, %v4080_v17  ;;  %v4084_v22 = vld [vmem:[#allocation8 + $0x48] sm:$0xff]  ;;  %v12620_v10 = vcombine.low %v4083_v59, %v4087_v62  ;;  %v12655_v9 = vcombine.low %v4107_v55, %v4111_v56 }
 0x2fc   :  { %v12657_v17 = vcombine.low %v4108_v18, %v4112_v29  ;;  %v12677_v55 = vcombine.high %v4123_v36, %v4127_v49  ;;  %v4128_v56 = vld [vmem:[#allocation8 + $0x1a8] sm:$0xff] }
 0x2fd   :  { %14629 = vst [vmem:[#allocation13_spill] sm:$0xff] %v12655_v9 }
 0x2fe   :  { %3926 = vmatpush1.bf16.msra.mxu0 %v12353_v4  ;;  %3967 = vmatpush1.bf16.msra.mxu1 %v12357_v14  ;;  %v12613_v4 = vcombine.high %v4083_v59, %v4087_v62  ;;  %v4088_v14 = vld [vmem:[#allocation8 + $0x68] sm:$0xff]  ;;  %14630 = vst [vmem:[#allocation14_spill] sm:$0xff] %v12657_v17  ;;  %v12659_v59 = vcombine.high %v4108_v18, %v4112_v29  ;;  %v4115_v62 = vld [vmem:[#allocation8 + $0x140] sm:$0xff]  ;;  %14636 = vst [vmem:[#allocation20_spill] sm:$0xff] %v12677_v55 }
 0x2ff   :  { %4843 = vmatprep.subr.bf16.mxu0 %v12607_v50  ;;  %4884 = vmatprep.subr.bf16.mxu1 %v12611_v60  ;;  %v12624_v42 = vcombine.low %v4084_v22, %v4088_v14  ;;  %v12679_v18 = vcombine.low %v4123_v36, %v4127_v49  ;;  %v12681_v29 = vcombine.low %v4124_v34, %v4128_v56  ;;  %v4136_v36 = vld [vmem:[#allocation8 + $0x1e8] sm:$0xff]  ;;  %v4139_v49 = vld [vmem:[#allocation8 + $0x200] sm:$0xff] }
 0x300   :  { %14631 = vst [vmem:[#allocation15_spill] sm:$0xff] %v12659_v59 }
 0x301   :  { %3928 = vmatmul.mubr.bf16.vlgmr.msra.gmra.mrb[28].mxu0 %v12497_v5  ;;  %3969 = vmatmul.mubr.bf16.vlgmr.msra.gmra.mrb[28].mxu1 %v12497_v5  ;;  %v12616_v5 = vcombine.high %v4084_v22, %v4088_v14  ;;  %v4119_v22 = vld [vmem:[#allocation8 + $0x160] sm:$0xff]  ;;  %v4116_v14 = vld [vmem:[#allocation8 + $0x148] sm:$0xff]  ;;  %14637 = vst [vmem:[#allocation21_spill] sm:$0xff] %v12679_v18  ;;  %14638 = vst [vmem:[#allocation22_spill] sm:$0xff] %v12681_v29 }
 0x302   :  { %4844 = vmatpush1.bf16.msra.mxu0 %v12605_v8  ;;  %4885 = vmatpush1.bf16.msra.mxu1 %v12609_v38  ;;  %v12665_v2 = vcombine.high %v4115_v62, %v4119_v22  ;;  %v12667_v6 = vcombine.low %v4115_v62, %v4119_v22  ;;  %v12669_v7 = vcombine.low %v4116_v14, %v4120_v52  ;;  %v4131_v22 = vld [vmem:[#allocation8 + $0x1c0] sm:$0xff] }
 0x303   :  { %4845 = vmatprep.subr.bf16.mxu0 %v12613_v4  ;;  %4886 = vmatprep.subr.bf16.mxu1 %v12616_v5  ;;  %v12671_v25 = vcombine.high %v4116_v14, %v4120_v52  ;;  %v12683_v62 = vcombine.high %v4124_v34, %v4128_v56  ;;  %v4135_v14 = vld [vmem:[#allocation8 + $0x1e0] sm:$0xff]  ;;  %v4132_v52 = vld [vmem:[#allocation8 + $0x1c8] sm:$0xff] }
 0x304   :  { %14632 = vst [vmem:[#allocation16_spill] sm:$0xff] %v12665_v2  ;;  %14633 = vst [vmem:[#allocation17_spill] sm:$0xff] %v12667_v6  ;;  %v12693_v34 = vcombine.low %v4132_v52, %v4136_v36  ;;  %v12695_v56 = vcombine.high %v4132_v52, %v4136_v36 }
 0x305   :  { %14634 = vst [vmem:[#allocation18_spill] sm:$0xff] %v12669_v7  ;;  %14635 = vst [vmem:[#allocation19_spill] sm:$0xff] %v12671_v25 }
 0x306   :  { %4846 = vmatpush1.bf16.msra.mxu0 %v12620_v10  ;;  %4887 = vmatpush1.bf16.msra.mxu1 %v12624_v42  ;;  %14639 = vst [vmem:[#allocation23_spill] sm:$0xff] %v12683_v62  ;;  %14642 = vst [vmem:[#allocation26_spill] sm:$0xff] %v12693_v34 }
 0x307   :  { %4847 = vmatprep.subr.bf16.mxu0 %v12626_v51  ;;  %4888 = vmatprep.subr.bf16.mxu1 %v12629_v13  ;;  %14643 = vst [vmem:[#allocation27_spill] sm:$0xff] %v12695_v56 }
 0x30a   :  { %4848 = vmatpush1.bf16.msra.mxu0 %v12632_v16  ;;  %4889 = vmatpush1.bf16.msra.mxu1 %v12636_v43 }
 0x30b   :  { %4849 = vmatprep.subr.bf16.mxu0 %v12641_v32  ;;  %4890 = vmatprep.subr.bf16.mxu1 %v12647_v54 }
 0x30e   :  { %4850 = vmatpush1.bf16.msra.mxu0 %v12643_v12  ;;  %4891 = vmatpush1.bf16.msra.mxu1 %v12645_v39  ;;  %v4156_v39 = vld [vmem:[#allocation8 + $0x288] sm:$0xff] }
 0x30f   :  { %4851 = vmatprep.subr.bf16.mxu0 %v12653_v11  ;;  %4892 = vmatprep.subr.bf16.mxu1 %v12659_v59  ;;  %v4155_v59 = vld [vmem:[#allocation8 + $0x280] sm:$0xff] }
 0x310   :  { %v4159_v11 = vld [vmem:[#allocation8 + $0x2a0] sm:$0xff] }
 0x312   :  { %4852 = vmatpush1.bf16.msra.mxu0 %v12655_v9  ;;  %4893 = vmatpush1.bf16.msra.mxu1 %v12657_v17  ;;  %v4148_v9 = vld [vmem:[#allocation8 + $0x248] sm:$0xff] }
 0x313   :  { %4853 = vmatprep.subr.bf16.mxu0 %v12665_v2  ;;  %4894 = vmatprep.subr.bf16.mxu1 %v12671_v25  ;;  %v4143_v25 = vld [vmem:[#allocation8 + $0x220] sm:$0xff] }
 0x314   :  { %v4147_v2 = vld [vmem:[#allocation8 + $0x240] sm:$0xff] }
 0x316   :  { %4854 = vmatpush1.bf16.msra.mxu0 %v12667_v6  ;;  %4895 = vmatpush1.bf16.msra.mxu1 %v12669_v7  ;;  %v12689_v7 = vcombine.low %v4131_v22, %v4135_v14  ;;  %v12691_v6 = vcombine.high %v4131_v22, %v4135_v14  ;;  %v4152_v22 = vld [vmem:[#allocation8 + $0x268] sm:$0xff]  ;;  %v12704_v14 = vcombine.low %v4139_v49, %v4143_v25 }
 0x317   :  { %4855 = vmatprep.subr.bf16.mxu0 %v12677_v55  ;;  %4896 = vmatprep.subr.bf16.mxu1 %v12683_v62  ;;  %v12697_v55 = vcombine.high %v4139_v49, %v4143_v25  ;;  %v4140_v62 = vld [vmem:[#allocation8 + $0x208] sm:$0xff] }
 0x318   :  { %14640 = vst [vmem:[#allocation24_spill] sm:$0xff] %v12689_v7  ;;  %14641 = vst [vmem:[#allocation25_spill] sm:$0xff] %v12691_v6 }
 0x319   :  { %14644 = vst [vmem:[#allocation28_spill] sm:$0xff] %v12697_v55  ;;  %14646 = vst [vmem:[#allocation30_spill] sm:$0xff] %v12704_v14 }
 0x31a   :  { %4856 = vmatpush1.bf16.msra.mxu0 %v12679_v18  ;;  %4897 = vmatpush1.bf16.msra.mxu1 %v12681_v29  ;;  %v4144_v18 = vld [vmem:[#allocation8 + $0x228] sm:$0xff]  ;;  %v4151_v29 = vld [vmem:[#allocation8 + $0x260] sm:$0xff] }
 0x31b   :  { %4857 = vmatprep.subr.bf16.mxu0 %v12691_v6  ;;  %v12700_v17 = vcombine.high %v4140_v62, %v4144_v18  ;;  %4898 = vmatprep.subr.bf16.mxu1 %v12695_v56  ;;  %v12708_v52 = vcombine.low %v4140_v62, %v4144_v18  ;;  %v12710_v36 = vcombine.high %v4147_v2, %v4151_v29  ;;  %v4160_v56 = vld [vmem:[#allocation8 + $0x2a8] sm:$0xff] }
 0x31c   :  { %v12713_v6 = vcombine.high %v4148_v9, %v4152_v22  ;;  %v12716_v25 = vcombine.low %v4147_v2, %v4151_v29  ;;  %v12720_v18 = vcombine.low %v4148_v9, %v4152_v22  ;;  %v12722_v62 = vcombine.high %v4155_v59, %v4159_v11 }
 0x31d   :  { %14645 = vst [vmem:[#allocation29_spill] sm:$0xff] %v12700_v17  ;;  %14647 = vst [vmem:[#allocation31_spill] sm:$0xff] %v12708_v52  ;;  %v12725_v49 = vcombine.high %v4156_v39, %v4160_v56  ;;  %v12728_v2 = vcombine.low %v4155_v59, %v4159_v11  ;;  %v12732_v9 = vcombine.low %v4156_v39, %v4160_v56 }
 0x31e   :  { %4858 = vmatpush1.bf16.msra.mxu0 %v12689_v7  ;;  %4899 = vmatpush1.bf16.msra.mxu1 %v12693_v34  ;;  %14648 = vst [vmem:[#allocation32_spill] sm:$0xff] %v12710_v36  ;;  %14649 = vst [vmem:[#allocation33_spill] sm:$0xff] %v12713_v6  ;;  %v4164_v34 = vld [vmem:[#allocation8 + $0x2c8] sm:$0xff] }
 0x31f   :  { %4859 = vmatprep.subr.bf16.mxu0 %v12697_v55  ;;  %4900 = vmatprep.subr.bf16.mxu1 %v12700_v17  ;;  %14650 = vst [vmem:[#allocation34_spill] sm:$0xff] %v12716_v25  ;;  %14651 = vst [vmem:[#allocation35_spill] sm:$0xff] %v12720_v18  ;;  %v4163_v17 = vld [vmem:[#allocation8 + $0x2c0] sm:$0xff]  ;;  %v4168_v7 = vld [vmem:[#allocation8 + $0x2e8] sm:$0xff] }
 0x320   :  { %14652 = vst [vmem:[#allocation36_spill] sm:$0xff] %v12722_v62  ;;  %14653 = vst [vmem:[#allocation37_spill] sm:$0xff] %v12725_v49  ;;  %v4167_v55 = vld [vmem:[#allocation8 + $0x2e0] sm:$0xff]  ;;  %v12737_v22 = vcombine.high %v4164_v34, %v4168_v7  ;;  %v12744_v39 = vcombine.low %v4164_v34, %v4168_v7 }
 0x321   :  { %14654 = vst [vmem:[#allocation38_spill] sm:$0xff] %v12728_v2  ;;  %14655 = vst [vmem:[#allocation39_spill] sm:$0xff] %v12732_v9  ;;  %v12734_v29 = vcombine.high %v4163_v17, %v4167_v55  ;;  %v12740_v11 = vcombine.low %v4163_v17, %v4167_v55 }
 0x322   :  { %4860 = vmatpush1.bf16.msra.mxu0 %v12704_v14  ;;  %4901 = vmatpush1.bf16.msra.mxu1 %v12708_v52  ;;  %14657 = vst [vmem:[#allocation41_spill] sm:$0xff] %v12737_v22  ;;  %v4172_v52 = vld [vmem:[#allocation8 + $0x308] sm:$0xff]  ;;  %14659 = vst [vmem:[#allocation43_spill] sm:$0xff] %v12744_v39 }
 0x323   :  { %4861 = vmatprep.subr.bf16.mxu0 %v12710_v36  ;;  %4902 = vmatprep.subr.bf16.mxu1 %v12713_v6  ;;  %14656 = vst [vmem:[#allocation40_spill] sm:$0xff] %v12734_v29  ;;  %v4171_v6 = vld [vmem:[#allocation8 + $0x300] sm:$0xff]  ;;  %v4176_v14 = vld [vmem:[#allocation8 + $0x328] sm:$0xff]  ;;  %14658 = vst [vmem:[#allocation42_spill] sm:$0xff] %v12740_v11 }
 0x324   :  { %v4175_v36 = vld [vmem:[#allocation8 + $0x320] sm:$0xff]  ;;  %v12749_v56 = vcombine.high %v4172_v52, %v4176_v14  ;;  %v12756_v7 = vcombine.low %v4172_v52, %v4176_v14 }
 0x325   :  { %v12746_v59 = vcombine.high %v4171_v6, %v4175_v36  ;;  %v12752_v17 = vcombine.low %v4171_v6, %v4175_v36 }
 0x326   :  { %4862 = vmatpush1.bf16.msra.mxu0 %v12716_v25  ;;  %4903 = vmatpush1.bf16.msra.mxu1 %v12720_v18  ;;  %14661 = vst [vmem:[#allocation45_spill] sm:$0xff] %v12749_v56  ;;  %v4180_v18 = vld [vmem:[#allocation8 + $0x348] sm:$0xff]  ;;  %14663 = vst [vmem:[#allocation47_spill] sm:$0xff] %v12756_v7 }
 0x327   :  { %4863 = vmatprep.subr.bf16.mxu0 %v12722_v62  ;;  %4904 = vmatprep.subr.bf16.mxu1 %v12725_v49  ;;  %14660 = vst [vmem:[#allocation44_spill] sm:$0xff] %v12746_v59  ;;  %v4179_v49 = vld [vmem:[#allocation8 + $0x340] sm:$0xff]  ;;  %v4184_v25 = vld [vmem:[#allocation8 + $0x368] sm:$0xff]  ;;  %14662 = vst [vmem:[#allocation46_spill] sm:$0xff] %v12752_v17 }
 0x328   :  { %v4183_v62 = vld [vmem:[#allocation8 + $0x360] sm:$0xff]  ;;  %v12761_v34 = vcombine.high %v4180_v18, %v4184_v25  ;;  %v12768_v14 = vcombine.low %v4180_v18, %v4184_v25 }
 0x329   :  { %v12758_v55 = vcombine.high %v4179_v49, %v4183_v62  ;;  %v12764_v6 = vcombine.low %v4179_v49, %v4183_v62 }
 0x32a   :  { %4864 = vmatpush1.bf16.msra.mxu0 %v12728_v2  ;;  %4905 = vmatpush1.bf16.msra.mxu1 %v12732_v9  ;;  %14665 = vst [vmem:[#allocation49_spill] sm:$0xff] %v12761_v34  ;;  %v4188_v9 = vld [vmem:[#allocation8 + $0x388] sm:$0xff]  ;;  %14667 = vst [vmem:[#allocation51_spill] sm:$0xff] %v12768_v14 }
 0x32b   :  { %4865 = vmatprep.subr.bf16.mxu0 %v12734_v29  ;;  %4906 = vmatprep.subr.bf16.mxu1 %v12737_v22  ;;  %14664 = vst [vmem:[#allocation48_spill] sm:$0xff] %v12758_v55  ;;  %v4187_v22 = vld [vmem:[#allocation8 + $0x380] sm:$0xff]  ;;  %v4192_v2 = vld [vmem:[#allocation8 + $0x3a8] sm:$0xff]  ;;  %14666 = vst [vmem:[#allocation50_spill] sm:$0xff] %v12764_v6 }
 0x32c   :  { %v4191_v29 = vld [vmem:[#allocation8 + $0x3a0] sm:$0xff]  ;;  %v12773_v36 = vcombine.high %v4188_v9, %v4192_v2  ;;  %v12780_v25 = vcombine.low %v4188_v9, %v4192_v2 }
 0x32d   :  { %v12770_v52 = vcombine.high %v4187_v22, %v4191_v29  ;;  %v12776_v62 = vcombine.low %v4187_v22, %v4191_v29 }
 0x32e   :  { %4866 = vmatpush1.bf16.msra.mxu0 %v12740_v11  ;;  %4907 = vmatpush1.bf16.msra.mxu1 %v12744_v39  ;;  %14669 = vst [vmem:[#allocation53_spill] sm:$0xff] %v12773_v36  ;;  %v4196_v39 = vld [vmem:[#allocation8 + $0x3c8] sm:$0xff]  ;;  %14671 = vst [vmem:[#allocation55_spill] sm:$0xff] %v12780_v25 }
 0x32f   :  { %4867 = vmatprep.subr.bf16.mxu0 %v12746_v59  ;;  %4908 = vmatprep.subr.bf16.mxu1 %v12749_v56  ;;  %14668 = vst [vmem:[#allocation52_spill] sm:$0xff] %v12770_v52  ;;  %v4195_v56 = vld [vmem:[#allocation8 + $0x3c0] sm:$0xff]  ;;  %v4200_v11 = vld [vmem:[#allocation8 + $0x3e8] sm:$0xff]  ;;  %14670 = vst [vmem:[#allocation54_spill] sm:$0xff] %v12776_v62 }
 0x330   :  { %v4199_v59 = vld [vmem:[#allocation8 + $0x3e0] sm:$0xff]  ;;  %v12785_v49 = vcombine.high %v4196_v39, %v4200_v11  ;;  %v12792_v29 = vcombine.low %v4196_v39, %v4200_v11 }
 0x331   :  { %v12782_v18 = vcombine.high %v4195_v56, %v4199_v59 }
 0x332   :  { %4868 = vmatpush1.bf16.msra.mxu0 %v12752_v17  ;;  %4909 = vmatpush1.bf16.msra.mxu1 %v12756_v7  ;;  %14673 = vst [vmem:[#allocation57_spill] sm:$0xff] %v12785_v49  ;;  %14675 = vst [vmem:[#allocation59_spill] sm:$0xff] %v12792_v29 }
 0x333   :  { %4869 = vmatprep.subr.bf16.mxu0 %v12758_v55  ;;  %4910 = vmatprep.subr.bf16.mxu1 %v12761_v34  ;;  %14672 = vst [vmem:[#allocation56_spill] sm:$0xff] %v12782_v18  ;;  %v12788_v34 = vcombine.low %v4195_v56, %v4199_v59 }
 0x335   :  { %14674 = vst [vmem:[#allocation58_spill] sm:$0xff] %v12788_v34 }
 0x336   :  { %4870 = vmatpush1.bf16.msra.mxu0 %v12764_v6  ;;  %4911 = vmatpush1.bf16.msra.mxu1 %v12768_v14 }
 0x337   :  { %4871 = vmatprep.subr.bf16.mxu0 %v12770_v52  ;;  %4912 = vmatprep.subr.bf16.mxu1 %v12773_v36 }
 0x33a   :  { %4872 = vmatpush1.bf16.msra.mxu0 %v12776_v62  ;;  %4913 = vmatpush1.bf16.msra.mxu1 %v12780_v25 }
 0x33b   :  { %4873 = vmatprep.subr.bf16.mxu0 %v12782_v18  ;;  %4914 = vmatprep.subr.bf16.mxu1 %v12785_v49 }
 0x33e   :  { %4874 = vmatpush1.bf16.msra.mxu0 %v12788_v34  ;;  %4915 = vmatpush1.bf16.msra.mxu1 %v12792_v29 }
 0x33f   :  { %4925 = vmatprep.subr.bf16.mxu0 %v12466_v20  ;;  %4966 = vmatprep.subr.bf16.mxu1 %v12472_v44 }
 0x394   :  { %v3847_v2 = vpop.f32.mrb[24].mxu0  ;;  %v3888_v9 = vpop.f32.mrb[24].mxu1 }
 0x395   :  { %v3849_v22 = vpop.f32.mrb[25].mxu0  ;;  %v3890_v59 = vpop.f32.mrb[25].mxu1 }
 0x396   :  { %v3985_v56 = vcombine.low %v3847_v2, %v3849_v22  ;;  %v3986_v25 = vcombine.low %v3888_v9, %v3890_v59  ;;  %v3851_v62 = vpop.f32.mrb[26].mxu0  ;;  %v3892_v18 = vpop.f32.mrb[26].mxu1  ;;  %v3043_v22 = vld [vmem:[#allocation2 + $0x1] ss:$8 sm:$0xf0] }
 0x397   :  { %v3852_v11 = vpop.f32.mrb[27].mxu0  ;;  %v3893_v39 = vpop.f32.mrb[27].mxu1 }
 0x398   :  { %v3995_v49 = vrot.slane %v3985_v56, %v12477_v28  ;;  %v4002_v34 = vrot.slane %v3986_v25, %v12477_v28  ;;  %v3042_v25 = vld [vmem:[#allocation2 + $0x1] ss:$8 sm:$0xf] }
 0x39a   :  { %v4017_v36 = vcombine.low %v3995_v49, %v4002_v34  ;;  %v3044_v49 = vor.u32 %v3043_v22, %v3042_v25 }
 0x39c   :  { %v4025_v59 = vrot.slane %v4017_v36, %v12477_v28 }
 0x3d4   :  { %v3929_v29 = vpop.f32.mrb[28].mxu0  ;;  %v3970_v52 = vpop.f32.mrb[28].mxu1 }
 0x3d5   :  { %v3931_v20 = vpop.f32.mrb[29].mxu0  ;;  %v3972_v14 = vpop.f32.mrb[29].mxu1 }
 0x3d6   :  { %v3987_v44 = vcombine.low %v3929_v29, %v3931_v20  ;;  %v3988_v6 = vcombine.low %v3970_v52, %v3972_v14  ;;  %v3933_v55 = vpop.f32.mrb[30].mxu0  ;;  %v3974_v7 = vpop.f32.mrb[30].mxu1 }
 0x3d7   :  { %v3934_v17 = vpop.f32.mrb[31].mxu0  ;;  %v3975_v2 = vpop.f32.mrb[31].mxu1 }
 0x3d8   :  { %v4009_v62 = vrot.slane %v3987_v44, %v12477_v28  ;;  %v4016_v18 = vrot.slane %v3988_v6, %v12477_v28 }
 0x3da   :  { %v4018_v9 = vcombine.low %v4009_v62, %v4016_v18 }
 0x3dc   :  { %v4032_v34 = vrot.slane %v4018_v9, %v12477_v28 }
 0x3de   :  { %v4033_v56 = vcombine.low %v4025_v59, %v4032_v34 }
 0x3e0   :  { %v4035_v11 = vadd.f32 %v4033_v56, %v3044_v49  ;;  %v4153_v49 = vld [vmem:[#allocation8 + $0x270] sm:$0xff]  ;;  %v4150_v56 = vld [vmem:[#allocation8 + $0x258] sm:$0xff] }
 0x3e2   :  { %11782 = vtanh.f32 %v4035_v11  ;;  %v4154_v11 = vld [vmem:[#allocation8 + $0x278] sm:$0xff] }
 0x3ec   :  { %v11783_v14 = vpop.eup %11782 }
 0x3ed   :  { %v4037_v55 = vmul.f32 0.5, %v11783_v14  ;;  %v4040_v7 = vrot.slane %v11783_v14, 2  ;;  %v4049_v39 = vrot.slane %v11783_v14, 4  ;;  %v4044_v36 = vrot.slane %v11783_v14, 6 }
 0x3ef   :  { %v4038_v17 = vadd.f32 0.5, %v4037_v55  ;;  %v4042_v52 = vmul.f32 0.5, %v4040_v7  ;;  %v4046_v2 = vmul.f32 0.5, %v4044_v36  ;;  %v12881_v36 = vcombine.low %v4150_v56, %v4154_v11 }
 0x3f1   :  { %v4043_v29 = vadd.f32 0.5, %v4042_v52  ;;  %v4051_v20 = vmul.f32 %v4049_v39, %v4038_v17  ;;  %v4047_v62 = vadd.f32 0.5, %v4046_v2  ;;  %v12875_v17 = vcombine.high %v4150_v56, %v4154_v11  ;;  %v4157_v52 = vld [vmem:[#allocation8 + $0x290] sm:$0xff]  ;;  %v4158_v39 = vld [vmem:[#allocation8 + $0x298] sm:$0xff] }
 0x3f2   :  { %v4186_v56 = vld [vmem:[#allocation8 + $0x378] sm:$0xff] }
 0x3f3   :  { %v4048_v6 = vmul.f32 %v4043_v29, %v12485_v33  ;;  %v4126_v33 = vld [vmem:[#allocation8 + $0x198] sm:$0xff]  ;;  %v4161_v29 = vld [vmem:[#allocation8 + $0x2b0] sm:$0xff] }
 0x3f4   :  { %v12885_v2 = vcombine.high %v4157_v52, %v4161_v29 }
 0x3f5   :  { %v12806_v44 = vadd.f32 %v4051_v20, %v4048_v6  ;;  %v4162_v6 = vld [vmem:[#allocation8 + $0x2b8] sm:$0xff] }
 0x3f7   :  { %11784 = vtanh.f32 %v12806_v44 }
 0x401   :  { %v11785_v18 = vpop.eup %11784 }
 0x402   :  { %v4054_v9 = vmul.f32 %v11785_v18, %v4047_v62  ;;  %v12887_v62 = vcombine.high %v4158_v39, %v4162_v6  ;;  %v4165_v18 = vld [vmem:[#allocation8 + $0x2d0] sm:$0xff] }
 0x404   :  { %v4063_v22 = vrot.slane %v4054_v9, %v12394_v27  ;;  %4069 = vst.msk [vmem:[#allocation3 + $0x1] ss:$8 sm:$0x3] %vm12489_vm0, %v4054_v9  ;;  %v4059_v59 = vrot.slane %v4054_v9, %v12383_v19  ;;  %v4169_v9 = vld [vmem:[#allocation8 + $0x2f0] sm:$0xff] }
 0x406   :  { %v4067_v34 = vpack.c.bf16 %v4063_v22, %v4063_v22  ;;  %v12813_v25 = vpack.c.bf16 %v4059_v59, %v4059_v59  ;;  %v4166_v22 = vld [vmem:[#allocation8 + $0x2d8] sm:$0xff] }
 0x407   :  { %v4170_v59 = vld [vmem:[#allocation8 + $0x2f8] sm:$0xff] }
 0x408   :  { %4875 = vmatprep.mubr.bf16.mxu0 %v4067_v34  ;;  %4916 = vmatprep.mubr.bf16.mxu1 %v4067_v34 }
 0x409   :  { %4876 = vmatmul.mubr.bf16.vlgmr.msra.gmra.mrb[32].mxu0 %v12813_v25  ;;  %4917 = vmatmul.mubr.bf16.vlgmr.msra.gmra.mrb[32].mxu1 %v12813_v25 }
 0x40a   :  { %4926 = vmatpush1.bf16.msra.mxu0 %v12468_v15  ;;  %4967 = vmatpush1.bf16.msra.mxu1 %v12470_v61  ;;  %v4125_v15 = vld [vmem:[#allocation8 + $0x190] sm:$0xff] }
 0x40b   :  { %4957 = vmatprep.mubr.bf16.mxu0 %v4067_v34  ;;  %4998 = vmatprep.mubr.bf16.mxu1 %v4067_v34  ;;  %v4129_v61 = vld [vmem:[#allocation8 + $0x1b0] sm:$0xff]  ;;  %v12891_v34 = vcombine.low %v4157_v52, %v4161_v29 }
 0x40c   :  { %4927 = vmatprep.subr.bf16.mxu0 %v12499_v30  ;;  %4968 = vmatprep.subr.bf16.mxu1 %v12501_v58  ;;  %v4130_v30 = vld [vmem:[#allocation8 + $0x1b8] sm:$0xff]  ;;  %v12837_v58 = vcombine.high %v4125_v15, %v4129_v61 }
 0x40e   :  { %4928 = vmatpush1.bf16.msra.mxu0 %v12507_v63  ;;  %4969 = vmatpush1.bf16.msra.mxu1 %v12509_v0  ;;  %v12839_v63 = vcombine.high %v4126_v33, %v4130_v30  ;;  %v4133_v0 = vld [vmem:[#allocation8 + $0x1d0] sm:$0xff] }
 0x40f   :  { %4929 = vmatprep.subr.bf16.mxu0 %v12511_v1  ;;  %4970 = vmatprep.subr.bf16.mxu1 %v12513_v3  ;;  %v4137_v1 = vld [vmem:[#allocation8 + $0x1f0] sm:$0xff]  ;;  %v4134_v3 = vld [vmem:[#allocation8 + $0x1d8] sm:$0xff] }
 0x412   :  { %4930 = vmatpush1.bf16.msra.mxu0 %v12519_v21  ;;  %4971 = vmatpush1.bf16.msra.mxu1 %v12521_v53  ;;  %v4138_v21 = vld [vmem:[#allocation8 + $0x1f8] sm:$0xff]  ;;  %v12843_v53 = vcombine.low %v4125_v15, %v4129_v61  ;;  %v12893_v15 = vcombine.low %v4158_v39, %v4162_v6  ;;  %v12897_v61 = vcombine.high %v4165_v18, %v4169_v9  ;;  %v4189_v6 = vld [vmem:[#allocation8 + $0x390] sm:$0xff] }
 0x413   :  { %4931 = vmatprep.subr.bf16.mxu0 %v12525_v31  ;;  %4972 = vmatprep.subr.bf16.mxu1 %v12527_v35  ;;  %v12845_v31 = vcombine.low %v4126_v33, %v4130_v30  ;;  %v12849_v35 = vcombine.high %v4133_v0, %v4137_v1  ;;  %v12899_v33 = vcombine.high %v4166_v22, %v4170_v59  ;;  %v4173_v30 = vld [vmem:[#allocation8 + $0x310] sm:$0xff] }
 0x416   :  { %4932 = vmatpush1.bf16.msra.mxu0 %v12531_v45  ;;  %4973 = vmatpush1.bf16.msra.mxu1 %v12533_v37  ;;  %v12851_v45 = vcombine.high %v4134_v3, %v4138_v21  ;;  %v4141_v37 = vld [vmem:[#allocation8 + $0x210] sm:$0xff] }
 0x417   :  { %4933 = vmatprep.subr.bf16.mxu0 %v12537_v24  ;;  %4974 = vmatprep.subr.bf16.mxu1 %v12539_v26  ;;  %v4145_v24 = vld [vmem:[#allocation8 + $0x230] sm:$0xff]  ;;  %v4142_v26 = vld [vmem:[#allocation8 + $0x218] sm:$0xff] }
 0x418   :  { %v12867_v14 = vcombine.low %v4141_v37, %v4145_v24 }
 0x41a   :  { %4934 = vmatpush1.bf16.msra.mxu0 %v12543_v40  ;;  %4975 = vmatpush1.bf16.msra.mxu1 %v12545_v57  ;;  %v4146_v40 = vld [vmem:[#allocation8 + $0x238] sm:$0xff]  ;;  %v12855_v57 = vcombine.low %v4133_v0, %v4137_v1  ;;  %v4177_v0 = vld [vmem:[#allocation8 + $0x330] sm:$0xff] }
 0x41b   :  { %4935 = vmatprep.subr.bf16.mxu0 %v12549_v46  ;;  %4976 = vmatprep.subr.bf16.mxu1 %v12551_v23  ;;  %v12857_v46 = vcombine.low %v4134_v3, %v4138_v21  ;;  %v12861_v23 = vcombine.high %v4141_v37, %v4145_v24  ;;  %v12869_v55 = vcombine.low %v4142_v26, %v4146_v40  ;;  %v4174_v1 = vld [vmem:[#allocation8 + $0x318] sm:$0xff] }
 0x41c   :  { %v4178_v3 = vld [vmem:[#allocation8 + $0x338] sm:$0xff]  ;;  %v12903_v21 = vcombine.low %v4165_v18, %v4169_v9  ;;  %v12905_v37 = vcombine.low %v4166_v22, %v4170_v59  ;;  %v12909_v24 = vcombine.high %v4173_v30, %v4177_v0  ;;  %v12915_v11 = vcombine.low %v4173_v30, %v4177_v0  ;;  %v4193_v18 = vld [vmem:[#allocation8 + $0x3b0] sm:$0xff] }
 0x41d   :  { %v12917_v52 = vcombine.low %v4174_v1, %v4178_v3  ;;  %v4190_v9 = vld [vmem:[#allocation8 + $0x398] sm:$0xff]  ;;  %v12933_v0 = vcombine.high %v4189_v6, %v4193_v18 }
 0x41e   :  { %4936 = vmatpush1.bf16.msra.mxu0 %v12555_v47  ;;  %4977 = vmatpush1.bf16.msra.mxu1 %v12557_v48  ;;  %v12863_v47 = vcombine.high %v4142_v26, %v4146_v40  ;;  %v4149_v48 = vld [vmem:[#allocation8 + $0x250] sm:$0xff]  ;;  %14676 = vst [vmem:[#allocation60_spill] sm:$0xff] %v12905_v37  ;;  %14677 = vst [vmem:[#allocation61_spill] sm:$0xff] %v12909_v24  ;;  %v12911_v26 = vcombine.high %v4174_v1, %v4178_v3  ;;  %v4194_v22 = vld [vmem:[#allocation8 + $0x3b8] sm:$0xff] }
 0x41f   :  { %4937 = vmatprep.subr.bf16.mxu0 %v12837_v58  ;;  %4978 = vmatprep.subr.bf16.mxu1 %v12839_v63  ;;  %v12873_v7 = vcombine.high %v4149_v48, %v4153_v49  ;;  %v12879_v20 = vcombine.low %v4149_v48, %v4153_v49  ;;  %v4181_v40 = vld [vmem:[#allocation8 + $0x350] sm:$0xff]  ;;  %v4182_v49 = vld [vmem:[#allocation8 + $0x358] sm:$0xff]  ;;  %v12935_v1 = vcombine.high %v4190_v9, %v4194_v22 }
 0x420   :  { %14678 = vst [vmem:[#allocation62_spill] sm:$0xff] %v12911_v26  ;;  %v4185_v48 = vld [vmem:[#allocation8 + $0x370] sm:$0xff]  ;;  %v12923_v39 = vcombine.high %v4182_v49, %v4186_v56  ;;  %v12929_v30 = vcombine.low %v4182_v49, %v4186_v56 }
 0x421   :  { %v12921_v29 = vcombine.high %v4181_v40, %v4185_v48  ;;  %v12927_v59 = vcombine.low %v4181_v40, %v4185_v48  ;;  %v4197_v3 = vld [vmem:[#allocation8 + $0x3d0] sm:$0xff]  ;;  %v12939_v40 = vcombine.low %v4189_v6, %v4193_v18  ;;  %v12941_v48 = vcombine.low %v4190_v9, %v4194_v22  ;;  %v14700_v6 = vld [vmem:[#allocation30_spill] sm:$0xff]  ;;  %v14701_v18 = vld [vmem:[#allocation31_spill] sm:$0xff] }
 0x422   :  { %4938 = vmatpush1.bf16.msra.mxu0 %v12843_v53  ;;  %4979 = vmatpush1.bf16.msra.mxu1 %v12845_v31  ;;  %14679 = vst [vmem:[#allocation63_spill] sm:$0xff] %v12923_v39  ;;  %v14702_v9 = vld [vmem:[#allocation32_spill] sm:$0xff]  ;;  %v14703_v22 = vld [vmem:[#allocation33_spill] sm:$0xff] }
 0x423   :  { %4939 = vmatprep.subr.bf16.mxu0 %v12849_v35  ;;  %4980 = vmatprep.subr.bf16.mxu1 %v12851_v45  ;;  %14680 = vst [vmem:[#allocation64_spill] sm:$0xff] %v12927_v59 }
 0x426   :  { %4940 = vmatpush1.bf16.msra.mxu0 %v12855_v57  ;;  %4981 = vmatpush1.bf16.msra.mxu1 %v12857_v46 }
 0x427   :  { %4941 = vmatprep.subr.bf16.mxu0 %v12861_v23  ;;  %4982 = vmatprep.subr.bf16.mxu1 %v12863_v47 }
 0x42a   :  { %4942 = vmatpush1.bf16.msra.mxu0 %v12867_v14  ;;  %4983 = vmatpush1.bf16.msra.mxu1 %v12869_v55 }
 0x42b   :  { %4943 = vmatprep.subr.bf16.mxu0 %v12873_v7  ;;  %4984 = vmatprep.subr.bf16.mxu1 %v12875_v17 }
 0x42e   :  { %4944 = vmatpush1.bf16.msra.mxu0 %v12879_v20  ;;  %4985 = vmatpush1.bf16.msra.mxu1 %v12881_v36 }
 0x42f   :  { %4945 = vmatprep.subr.bf16.mxu0 %v12885_v2  ;;  %4986 = vmatprep.subr.bf16.mxu1 %v12887_v62 }
 0x432   :  { %4946 = vmatpush1.bf16.msra.mxu0 %v12891_v34  ;;  %4987 = vmatpush1.bf16.msra.mxu1 %v12893_v15 }
 0x433   :  { %4947 = vmatprep.subr.bf16.mxu0 %v12897_v61  ;;  %4988 = vmatprep.subr.bf16.mxu1 %v12899_v33 }
 0x436   :  { %4948 = vmatpush1.bf16.msra.mxu0 %v12903_v21  ;;  %4989 = vmatpush1.bf16.msra.mxu1 %v12905_v37  ;;  %v4202_v37 = vld [vmem:[#allocation8 + $0x3f8] sm:$0xff] }
 0x437   :  { %4949 = vmatprep.subr.bf16.mxu0 %v12909_v24  ;;  %4990 = vmatprep.subr.bf16.mxu1 %v12911_v26  ;;  %v4201_v26 = vld [vmem:[#allocation8 + $0x3f0] sm:$0xff]  ;;  %v4198_v24 = vld [vmem:[#allocation8 + $0x3d8] sm:$0xff] }
 0x438   :  { %v12945_v49 = vcombine.high %v4197_v3, %v4201_v26  ;;  %v12947_v56 = vcombine.high %v4198_v24, %v4202_v37 }
 0x43a   :  { %4950 = vmatpush1.bf16.msra.mxu0 %v12915_v11  ;;  %4991 = vmatpush1.bf16.msra.mxu1 %v12917_v52 }
 0x43b   :  { %4951 = vmatprep.subr.bf16.mxu0 %v12921_v29  ;;  %4992 = vmatprep.subr.bf16.mxu1 %v12923_v39  ;;  %v12951_v39 = vcombine.low %v4197_v3, %v4201_v26  ;;  %v14699_v26 = vld [vmem:[#allocation29_spill] sm:$0xff]  ;;  %v14704_v3 = vld [vmem:[#allocation34_spill] sm:$0xff] }
 0x43e   :  { %4952 = vmatpush1.bf16.msra.mxu0 %v12927_v59  ;;  %4993 = vmatpush1.bf16.msra.mxu1 %v12929_v30  ;;  %v12953_v59 = vcombine.low %v4198_v24, %v4202_v37  ;;  %v14697_v37 = vld [vmem:[#allocation26_spill] sm:$0xff]  ;;  %v14698_v24 = vld [vmem:[#allocation28_spill] sm:$0xff] }
 0x43f   :  { %4953 = vmatprep.subr.bf16.mxu0 %v12933_v0  ;;  %4994 = vmatprep.subr.bf16.mxu1 %v12935_v1 }
 0x442   :  { %4954 = vmatpush1.bf16.msra.mxu0 %v12939_v40  ;;  %4995 = vmatpush1.bf16.msra.mxu1 %v12941_v48 }
 0x443   :  { %4955 = vmatprep.subr.bf16.mxu0 %v12945_v49  ;;  %4996 = vmatprep.subr.bf16.mxu1 %v12947_v56 }
 0x446   :  { %4956 = vmatpush1.bf16.msra.mxu0 %v12951_v39  ;;  %4997 = vmatpush1.bf16.msra.mxu1 %v12953_v59 }
 0x447   :  { %5873 = vmatprep.subr.bf16.mxu0 %v12607_v50  ;;  %5914 = vmatprep.subr.bf16.mxu1 %v12611_v60  ;;  %v14682_v50 = vld [vmem:[#allocation12_spill] sm:$0xff]  ;;  %v14684_v60 = vld [vmem:[#allocation13_spill] sm:$0xff] }
 0x449   :  { %4958 = vmatmul.mubr.bf16.vlgmr.msra.gmra.mrb[36].mxu0 %v12813_v25  ;;  %4999 = vmatmul.mubr.bf16.vlgmr.msra.gmra.mrb[36].mxu1 %v12813_v25  ;;  %v14696_v25 = vld [vmem:[#allocation24_spill] sm:$0xff] }
 0x44a   :  { %5874 = vmatpush1.bf16.msra.mxu0 %v12605_v8  ;;  %5915 = vmatpush1.bf16.msra.mxu1 %v12609_v38  ;;  %v14681_v8 = vld [vmem:[#allocation11_spill] sm:$0xff] }
 0x44b   :  { %5875 = vmatprep.subr.bf16.mxu0 %v12613_v4  ;;  %5916 = vmatprep.subr.bf16.mxu1 %v12616_v5  ;;  %v14683_v38 = vld [vmem:[#allocation15_spill] sm:$0xff]  ;;  %v14685_v4 = vld [vmem:[#allocation14_spill] sm:$0xff]  ;;  %v14686_v5 = vld [vmem:[#allocation16_spill] sm:$0xff] }
 0x44e   :  { %5876 = vmatpush1.bf16.msra.mxu0 %v12620_v10  ;;  %5917 = vmatpush1.bf16.msra.mxu1 %v12624_v42  ;;  %v14687_v10 = vld [vmem:[#allocation19_spill] sm:$0xff]  ;;  %v14688_v42 = vld [vmem:[#allocation17_spill] sm:$0xff] }
 0x44f   :  { %5877 = vmatprep.subr.bf16.mxu0 %v12626_v51  ;;  %5918 = vmatprep.subr.bf16.mxu1 %v12629_v13  ;;  %v14689_v51 = vld [vmem:[#allocation18_spill] sm:$0xff]  ;;  %v14690_v13 = vld [vmem:[#allocation20_spill] sm:$0xff] }
 0x452   :  { %5878 = vmatpush1.bf16.msra.mxu0 %v12632_v16  ;;  %5919 = vmatpush1.bf16.msra.mxu1 %v12636_v43  ;;  %v14691_v16 = vld [vmem:[#allocation23_spill] sm:$0xff]  ;;  %v14692_v43 = vld [vmem:[#allocation21_spill] sm:$0xff] }
 0x453   :  { %5879 = vmatprep.subr.bf16.mxu0 %v12641_v32  ;;  %5920 = vmatprep.subr.bf16.mxu1 %v12647_v54  ;;  %v14693_v32 = vld [vmem:[#allocation22_spill] sm:$0xff]  ;;  %v14695_v54 = vld [vmem:[#allocation27_spill] sm:$0xff] }
 0x456   :  { %5880 = vmatpush1.bf16.msra.mxu0 %v12643_v12  ;;  %5921 = vmatpush1.bf16.msra.mxu1 %v14681_v8  ;;  %v14694_v12 = vld [vmem:[#allocation25_spill] sm:$0xff]  ;;  %v14705_v8 = vld [vmem:[#allocation35_spill] sm:$0xff] }
 0x457   :  { %5881 = vmatprep.subr.bf16.mxu0 %v14682_v50  ;;  %5922 = vmatprep.subr.bf16.mxu1 %v14683_v38  ;;  %v14706_v50 = vld [vmem:[#allocation36_spill] sm:$0xff]  ;;  %v14707_v38 = vld [vmem:[#allocation37_spill] sm:$0xff] }
 0x45a   :  { %5882 = vmatpush1.bf16.msra.mxu0 %v14684_v60  ;;  %5923 = vmatpush1.bf16.msra.mxu1 %v14685_v4  ;;  %v14708_v60 = vld [vmem:[#allocation38_spill] sm:$0xff]  ;;  %v14709_v4 = vld [vmem:[#allocation39_spill] sm:$0xff] }
 0x45b   :  { %5883 = vmatprep.subr.bf16.mxu0 %v14686_v5  ;;  %5924 = vmatprep.subr.bf16.mxu1 %v14687_v10  ;;  %v14710_v5 = vld [vmem:[#allocation40_spill] sm:$0xff]  ;;  %v14711_v10 = vld [vmem:[#allocation41_spill] sm:$0xff] }
 0x45e   :  { %5884 = vmatpush1.bf16.msra.mxu0 %v14688_v42  ;;  %5925 = vmatpush1.bf16.msra.mxu1 %v14689_v51  ;;  %v14712_v42 = vld [vmem:[#allocation42_spill] sm:$0xff]  ;;  %v14713_v51 = vld [vmem:[#allocation43_spill] sm:$0xff] }
 0x45f   :  { %5885 = vmatprep.subr.bf16.mxu0 %v14690_v13  ;;  %5926 = vmatprep.subr.bf16.mxu1 %v14691_v16  ;;  %v14714_v13 = vld [vmem:[#allocation44_spill] sm:$0xff]  ;;  %v14715_v16 = vld [vmem:[#allocation45_spill] sm:$0xff] }
 0x462   :  { %5886 = vmatpush1.bf16.msra.mxu0 %v14692_v43  ;;  %5927 = vmatpush1.bf16.msra.mxu1 %v14693_v32  ;;  %v14716_v43 = vld [vmem:[#allocation46_spill] sm:$0xff]  ;;  %v14717_v32 = vld [vmem:[#allocation47_spill] sm:$0xff] }
 0x463   :  { %5887 = vmatprep.subr.bf16.mxu0 %v14694_v12  ;;  %5928 = vmatprep.subr.bf16.mxu1 %v14695_v54  ;;  %v14718_v12 = vld [vmem:[#allocation48_spill] sm:$0xff]  ;;  %v14719_v54 = vld [vmem:[#allocation49_spill] sm:$0xff] }
 0x466   :  { %5888 = vmatpush1.bf16.msra.mxu0 %v14696_v25  ;;  %5929 = vmatpush1.bf16.msra.mxu1 %v14697_v37  ;;  %v14720_v25 = vld [vmem:[#allocation50_spill] sm:$0xff]  ;;  %v14721_v37 = vld [vmem:[#allocation51_spill] sm:$0xff] }
 0x467   :  { %5889 = vmatprep.subr.bf16.mxu0 %v14698_v24  ;;  %5930 = vmatprep.subr.bf16.mxu1 %v14699_v26  ;;  %v14722_v24 = vld [vmem:[#allocation52_spill] sm:$0xff]  ;;  %v14723_v26 = vld [vmem:[#allocation53_spill] sm:$0xff] }
 0x46a   :  { %5890 = vmatpush1.bf16.msra.mxu0 %v14700_v6  ;;  %5931 = vmatpush1.bf16.msra.mxu1 %v14701_v18  ;;  %v14724_v6 = vld [vmem:[#allocation54_spill] sm:$0xff]  ;;  %v14725_v18 = vld [vmem:[#allocation55_spill] sm:$0xff] }
 0x46b   :  { %5891 = vmatprep.subr.bf16.mxu0 %v14702_v9  ;;  %5932 = vmatprep.subr.bf16.mxu1 %v14703_v22  ;;  %v14726_v9 = vld [vmem:[#allocation56_spill] sm:$0xff]  ;;  %v14727_v22 = vld [vmem:[#allocation57_spill] sm:$0xff] }
 0x46e   :  { %5892 = vmatpush1.bf16.msra.mxu0 %v14704_v3  ;;  %5933 = vmatpush1.bf16.msra.mxu1 %v14705_v8  ;;  %v14728_v3 = vld [vmem:[#allocation58_spill] sm:$0xff]  ;;  %v14729_v8 = vld [vmem:[#allocation59_spill] sm:$0xff] }
 0x46f   :  { %5893 = vmatprep.subr.bf16.mxu0 %v14706_v50  ;;  %5934 = vmatprep.subr.bf16.mxu1 %v14707_v38  ;;  %v5107_v50 = vld [vmem:[#allocation8 + $0x10] sm:$0xff] }
 0x470   :  { %v5111_v38 = vld [vmem:[#allocation8 + $0x30] sm:$0xff] }
 0x472   :  { %5894 = vmatpush1.bf16.msra.mxu0 %v14708_v60  ;;  %5935 = vmatpush1.bf16.msra.mxu1 %v14709_v4  ;;  %v5108_v60 = vld [vmem:[#allocation8 + $0x18] sm:$0xff]  ;;  %v13025_v4 = vcombine.high %v5107_v50, %v5111_v38 }
 0x473   :  { %5895 = vmatprep.subr.bf16.mxu0 %v14710_v5  ;;  %5936 = vmatprep.subr.bf16.mxu1 %v14711_v10  ;;  %v5112_v5 = vld [vmem:[#allocation8 + $0x38] sm:$0xff]  ;;  %v13027_v10 = vcombine.low %v5107_v50, %v5111_v38 }
 0x474   :  { %14730 = vst [vmem:[#allocation65_spill] sm:$0xff] %v13025_v4 }
 0x476   :  { %5896 = vmatpush1.bf16.msra.mxu0 %v14712_v42  ;;  %5937 = vmatpush1.bf16.msra.mxu1 %v14713_v51  ;;  %v13029_v42 = vcombine.low %v5108_v60, %v5112_v5  ;;  %v13031_v51 = vcombine.high %v5108_v60, %v5112_v5 }
 0x477   :  { %5897 = vmatprep.subr.bf16.mxu0 %v14714_v13  ;;  %5938 = vmatprep.subr.bf16.mxu1 %v14715_v16 }
 0x478   :  { %14731 = vst [vmem:[#allocation66_spill] sm:$0xff] %v13031_v51 }
 0x47a   :  { %5898 = vmatpush1.bf16.msra.mxu0 %v14716_v43  ;;  %5939 = vmatpush1.bf16.msra.mxu1 %v14717_v32 }
 0x47b   :  { %5899 = vmatprep.subr.bf16.mxu0 %v14718_v12  ;;  %5940 = vmatprep.subr.bf16.mxu1 %v14719_v54 }
 0x47e   :  { %5900 = vmatpush1.bf16.msra.mxu0 %v14720_v25  ;;  %5941 = vmatpush1.bf16.msra.mxu1 %v14721_v37 }
 0x47f   :  { %5901 = vmatprep.subr.bf16.mxu0 %v14722_v24  ;;  %5942 = vmatprep.subr.bf16.mxu1 %v14723_v26 }
 0x482   :  { %5902 = vmatpush1.bf16.msra.mxu0 %v14724_v6  ;;  %5943 = vmatpush1.bf16.msra.mxu1 %v14725_v18 }
 0x483   :  { %5903 = vmatprep.subr.bf16.mxu0 %v14726_v9  ;;  %5944 = vmatprep.subr.bf16.mxu1 %v14727_v22 }
 0x486   :  { %5904 = vmatpush1.bf16.msra.mxu0 %v14728_v3  ;;  %5945 = vmatpush1.bf16.msra.mxu1 %v14729_v8 }
 0x487   :  { %5955 = vmatprep.subr.bf16.mxu0 %v13025_v4  ;;  %5996 = vmatprep.subr.bf16.mxu1 %v13031_v51 }
 0x4dc   :  { %v4877_v13 = vpop.f32.mrb[32].mxu0  ;;  %v4918_v16 = vpop.f32.mrb[32].mxu1 }
 0x4dd   :  { %v4879_v43 = vpop.f32.mrb[33].mxu0  ;;  %v4920_v32 = vpop.f32.mrb[33].mxu1 }
 0x4de   :  { %v5015_v12 = vcombine.low %v4877_v13, %v4879_v43  ;;  %v5016_v54 = vcombine.low %v4918_v16, %v4920_v32  ;;  %v4881_v25 = vpop.f32.mrb[34].mxu0  ;;  %v4922_v37 = vpop.f32.mrb[34].mxu1 }
 0x4df   :  { %v4882_v24 = vpop.f32.mrb[35].mxu0  ;;  %v4923_v26 = vpop.f32.mrb[35].mxu1  ;;  %v4073_v25 = vld [vmem:[#allocation2 + $0x2] ss:$8 sm:$0xf0] }
 0x4e0   :  { %v5025_v6 = vrot.slane %v5015_v12, %v12477_v28  ;;  %v5032_v18 = vrot.slane %v5016_v54, %v12477_v28  ;;  %v4072_v37 = vld [vmem:[#allocation2 + $0x2] ss:$8 sm:$0xf] }
 0x4e1   :  { %v4074_v24 = vor.u32 %v4073_v25, %v4072_v37  ;;  %v5119_v37 = vld [vmem:[#allocation8 + $0x70] sm:$0xff] }
 0x4e2   :  { %v5047_v9 = vcombine.low %v5025_v6, %v5032_v18 }
 0x4e4   :  { %v5055_v12 = vrot.slane %v5047_v9, %v12477_v28 }
 0x51c   :  { %v4959_v22 = vpop.f32.mrb[36].mxu0  ;;  %v5000_v3 = vpop.f32.mrb[36].mxu1 }
 0x51d   :  { %v4961_v8 = vpop.f32.mrb[37].mxu0  ;;  %v5002_v50 = vpop.f32.mrb[37].mxu1 }
 0x51e   :  { %v5017_v38 = vcombine.low %v4959_v22, %v4961_v8  ;;  %v5018_v60 = vcombine.low %v5000_v3, %v5002_v50  ;;  %v4963_v5 = vpop.f32.mrb[38].mxu0  ;;  %v5004_v51 = vpop.f32.mrb[38].mxu1 }
 0x51f   :  { %v4964_v4 = vpop.f32.mrb[39].mxu0  ;;  %v5005_v13 = vpop.f32.mrb[39].mxu1 }
 0x520   :  { %v5039_v16 = vrot.slane %v5017_v38, %v12477_v28  ;;  %v5046_v43 = vrot.slane %v5018_v60, %v12477_v28 }
 0x522   :  { %v5048_v32 = vcombine.low %v5039_v16, %v5046_v43 }
 0x524   :  { %v5062_v54 = vrot.slane %v5048_v32, %v12477_v28 }
 0x526   :  { %v5063_v26 = vcombine.low %v5055_v12, %v5062_v54  ;;  %v5115_v54 = vld [vmem:[#allocation8 + $0x50] sm:$0xff] }
 0x528   :  { %v5065_v6 = vadd.f32 %v5063_v26, %v4074_v24  ;;  %v5120_v24 = vld [vmem:[#allocation8 + $0x78] sm:$0xff] }
 0x52a   :  { %11786 = vtanh.f32 %v5065_v6 }
 0x534   :  { %v11787_v18 = vpop.eup %11786 }
 0x535   :  { %v5067_v22 = vmul.f32 0.5, %v11787_v18  ;;  %v5070_v51 = vrot.slane %v11787_v18, 2  ;;  %v5079_v50 = vrot.slane %v11787_v18, 4  ;;  %v5074_v9 = vrot.slane %v11787_v18, 6 }
 0x536   :  { %v13051_v18 = vcombine.high %v5115_v54, %v5119_v37 }
 0x537   :  { %v5068_v4 = vadd.f32 0.5, %v5067_v22  ;;  %v5072_v3 = vmul.f32 0.5, %v5070_v51  ;;  %v5076_v13 = vmul.f32 0.5, %v5074_v9  ;;  %v5123_v22 = vld [vmem:[#allocation8 + $0x90] sm:$0xff] }
 0x539   :  { %v5073_v8 = vadd.f32 0.5, %v5072_v3  ;;  %v5081_v60 = vmul.f32 %v5079_v50, %v5068_v4  ;;  %v5077_v16 = vadd.f32 0.5, %v5076_v13  ;;  %v5127_v4 = vld [vmem:[#allocation8 + $0xb0] sm:$0xff]  ;;  %v5124_v3 = vld [vmem:[#allocation8 + $0x98] sm:$0xff]  ;;  %v13059_v50 = vcombine.low %v5115_v54, %v5119_v37 }
 0x53a   :  { %v5131_v13 = vld [vmem:[#allocation8 + $0xd0] sm:$0xff] }
 0x53b   :  { %v5078_v38 = vmul.f32 %v5073_v8, %v12806_v44  ;;  %v5116_v44 = vld [vmem:[#allocation8 + $0x58] sm:$0xff]  ;;  %14733 = vst [vmem:[#allocation12_spill] sm:$0xff] %v13059_v50 }
 0x53c   :  { %v13053_v51 = vcombine.high %v5116_v44, %v5120_v24  ;;  %v5128_v8 = vld [vmem:[#allocation8 + $0xb8] sm:$0xff] }
 0x53d   :  { %v13042_v5 = vadd.f32 %v5081_v60, %v5078_v38  ;;  %v13061_v38 = vcombine.low %v5116_v44, %v5120_v24  ;;  %v13063_v60 = vcombine.high %v5123_v22, %v5127_v4  ;;  %v13065_v9 = vcombine.high %v5124_v3, %v5128_v8  ;;  %v5139_v44 = vld [vmem:[#allocation8 + $0x110] sm:$0xff] }
 0x53e   :  { %14732 = vst [vmem:[#allocation11_spill] sm:$0xff] %v13053_v51  ;;  %v5143_v24 = vld [vmem:[#allocation8 + $0x130] sm:$0xff] }
 0x53f   :  { %11788 = vtanh.f32 %v13042_v5  ;;  %14734 = vst [vmem:[#allocation15_spill] sm:$0xff] %v13061_v38  ;;  %14735 = vst [vmem:[#allocation13_spill] sm:$0xff] %v13063_v60 }
 0x540   :  { %14736 = vst [vmem:[#allocation14_spill] sm:$0xff] %v13065_v9 }
 0x549   :  { %v11789_v43 = vpop.eup %11788 }
 0x54a   :  { %v5084_v32 = vmul.f32 %v11789_v43, %v5077_v16  ;;  %v5135_v16 = vld [vmem:[#allocation8 + $0xf0] sm:$0xff]  ;;  %v5132_v43 = vld [vmem:[#allocation8 + $0xd8] sm:$0xff] }
 0x54b   :  { %v13077_v54 = vcombine.high %v5131_v13, %v5135_v16 }
 0x54c   :  { %v5093_v25 = vrot.slane %v5084_v32, %v12394_v27  ;;  %5099 = vst.msk [vmem:[#allocation3 + $0x2] ss:$8 sm:$0x3] %vm12489_vm0, %v5084_v32  ;;  %v5089_v12 = vrot.slane %v5084_v32, %v12383_v19  ;;  %v5136_v32 = vld [vmem:[#allocation8 + $0xf8] sm:$0xff] }
 0x54d   :  { %v13079_v37 = vcombine.high %v5132_v43, %v5136_v32 }
 0x54e   :  { %v5097_v26 = vpack.c.bf16 %v5093_v25, %v5093_v25  ;;  %v13049_v6 = vpack.c.bf16 %v5089_v12, %v5089_v12  ;;  %v13071_v25 = vcombine.low %v5123_v22, %v5127_v4  ;;  %v13073_v12 = vcombine.low %v5124_v3, %v5128_v8 }
 0x54f   :  { %14737 = vst [vmem:[#allocation16_spill] sm:$0xff] %v13079_v37  ;;  %v13083_v22 = vcombine.low %v5131_v13, %v5135_v16  ;;  %v13085_v4 = vcombine.low %v5132_v43, %v5136_v32  ;;  %v13089_v3 = vcombine.high %v5139_v44, %v5143_v24  ;;  %v13095_v13 = vcombine.low %v5139_v44, %v5143_v24  ;;  %v6172_v44 = vld [vmem:[#allocation8 + $0x128] sm:$0xff] }
 0x550   :  { %5905 = vmatprep.mubr.bf16.mxu0 %v5097_v26  ;;  %5946 = vmatprep.mubr.bf16.mxu1 %v5097_v26 }
 0x551   :  { %5906 = vmatmul.mubr.bf16.vlgmr.msra.gmra.mrb[40].mxu0 %v13049_v6  ;;  %5947 = vmatmul.mubr.bf16.vlgmr.msra.gmra.mrb[40].mxu1 %v13049_v6  ;;  %14738 = vst [vmem:[#allocation19_spill] sm:$0xff] %v13083_v22 }
 0x552   :  { %5956 = vmatpush1.bf16.msra.mxu0 %v13027_v10  ;;  %5997 = vmatpush1.bf16.msra.mxu1 %v13029_v42 }
 0x553   :  { %5987 = vmatprep.mubr.bf16.mxu0 %v5097_v26  ;;  %6028 = vmatprep.mubr.bf16.mxu1 %v5097_v26  ;;  %v5140_v26 = vld [vmem:[#allocation8 + $0x118] sm:$0xff] }
 0x554   :  { %5957 = vmatprep.subr.bf16.mxu0 %v13051_v18  ;;  %5998 = vmatprep.subr.bf16.mxu1 %v13053_v51  ;;  %v5144_v51 = vld [vmem:[#allocation8 + $0x138] sm:$0xff] }
 0x555   :  { %v13091_v8 = vcombine.high %v5140_v26, %v5144_v51  ;;  %v13097_v16 = vcombine.low %v5140_v26, %v5144_v51 }
 0x556   :  { %5958 = vmatpush1.bf16.msra.mxu0 %v13059_v50  ;;  %5999 = vmatpush1.bf16.msra.mxu1 %v13061_v38  ;;  %v5148_v38 = vld [vmem:[#allocation8 + $0x158] sm:$0xff] }
 0x557   :  { %5959 = vmatprep.subr.bf16.mxu0 %v13063_v60  ;;  %6000 = vmatprep.subr.bf16.mxu1 %v13065_v9  ;;  %v5147_v9 = vld [vmem:[#allocation8 + $0x150] sm:$0xff]  ;;  %v5152_v50 = vld [vmem:[#allocation8 + $0x178] sm:$0xff] }
 0x558   :  { %v5151_v60 = vld [vmem:[#allocation8 + $0x170] sm:$0xff]  ;;  %v13103_v32 = vcombine.high %v5148_v38, %v5152_v50 }
 0x559   :  { %v13101_v43 = vcombine.high %v5147_v9, %v5151_v60 }
 0x55a   :  { %5960 = vmatpush1.bf16.msra.mxu0 %v13071_v25  ;;  %6001 = vmatpush1.bf16.msra.mxu1 %v13073_v12 }
 0x55b   :  { %5961 = vmatprep.subr.bf16.mxu0 %v13077_v54  ;;  %6002 = vmatprep.subr.bf16.mxu1 %v13079_v37  ;;  %v13107_v37 = vcombine.low %v5147_v9, %v5151_v60  ;;  %v6168_v60 = vld [vmem:[#allocation8 + $0x108] sm:$0xff] }
 0x55c   :  { %v13209_v26 = vcombine.low %v6168_v60, %v6172_v44 }
 0x55e   :  { %5962 = vmatpush1.bf16.msra.mxu0 %v13083_v22  ;;  %6003 = vmatpush1.bf16.msra.mxu1 %v13085_v4  ;;  %v13109_v22 = vcombine.low %v5148_v38, %v5152_v50  ;;  %v6167_v50 = vld [vmem:[#allocation8 + $0x100] sm:$0xff] }
 0x55f   :  { %5963 = vmatprep.subr.bf16.mxu0 %v13089_v3  ;;  %6004 = vmatprep.subr.bf16.mxu1 %v13091_v8  ;;  %v6171_v38 = vld [vmem:[#allocation8 + $0x120] sm:$0xff] }
 0x560   :  { %v13205_v9 = vcombine.high %v6167_v50, %v6171_v38  ;;  %v13207_v24 = vcombine.low %v6167_v50, %v6171_v38  ;;  %v6196_v38 = vld [vmem:[#allocation8 + $0x1e8] sm:$0xff] }
 0x562   :  { %5964 = vmatpush1.bf16.msra.mxu0 %v13095_v13  ;;  %6005 = vmatpush1.bf16.msra.mxu1 %v13097_v16 }
 0x563   :  { %5965 = vmatprep.subr.bf16.mxu0 %v13101_v43  ;;  %6006 = vmatprep.subr.bf16.mxu1 %v13103_v32 }
 0x566   :  { %5966 = vmatpush1.bf16.msra.mxu0 %v13107_v37  ;;  %6007 = vmatpush1.bf16.msra.mxu1 %v13109_v22 }
 0x567   :  { %5967 = vmatprep.subr.bf16.mxu0 %v12837_v58  ;;  %6008 = vmatprep.subr.bf16.mxu1 %v12839_v63  ;;  %v14739_v58 = vld [vmem:[#allocation60_spill] sm:$0xff]  ;;  %v14740_v63 = vld [vmem:[#allocation61_spill] sm:$0xff] }
 0x56a   :  { %5968 = vmatpush1.bf16.msra.mxu0 %v12843_v53  ;;  %6009 = vmatpush1.bf16.msra.mxu1 %v12845_v31  ;;  %v14741_v53 = vld [vmem:[#allocation62_spill] sm:$0xff]  ;;  %v14742_v31 = vld [vmem:[#allocation63_spill] sm:$0xff] }
 0x56b   :  { %5969 = vmatprep.subr.bf16.mxu0 %v12849_v35  ;;  %6010 = vmatprep.subr.bf16.mxu1 %v12851_v45  ;;  %v14743_v35 = vld [vmem:[#allocation64_spill] sm:$0xff]  ;;  %v6135_v45 = vld [vmem:[#allocation8] sm:$0xff] }
 0x56e   :  { %5970 = vmatpush1.bf16.msra.mxu0 %v12855_v57  ;;  %6011 = vmatpush1.bf16.msra.mxu1 %v12857_v46  ;;  %v6139_v57 = vld [vmem:[#allocation8 + $0x20] sm:$0xff]  ;;  %v6136_v46 = vld [vmem:[#allocation8 + $0x8] sm:$0xff] }
 0x56f   :  { %5971 = vmatprep.subr.bf16.mxu0 %v12861_v23  ;;  %6012 = vmatprep.subr.bf16.mxu1 %v12863_v47  ;;  %v13157_v23 = vcombine.low %v6135_v45, %v6139_v57  ;;  %v13159_v47 = vcombine.high %v6135_v45, %v6139_v57  ;;  %v6180_v45 = vld [vmem:[#allocation8 + $0x168] sm:$0xff] }
 0x572   :  { %5972 = vmatpush1.bf16.msra.mxu0 %v12867_v14  ;;  %6013 = vmatpush1.bf16.msra.mxu1 %v12869_v55  ;;  %v6140_v14 = vld [vmem:[#allocation8 + $0x28] sm:$0xff]  ;;  %v6143_v55 = vld [vmem:[#allocation8 + $0x40] sm:$0xff] }
 0x573   :  { %5973 = vmatprep.subr.bf16.mxu0 %v12873_v7  ;;  %6014 = vmatprep.subr.bf16.mxu1 %v12875_v17  ;;  %v6147_v7 = vld [vmem:[#allocation8 + $0x60] sm:$0xff]  ;;  %v13161_v17 = vcombine.low %v6136_v46, %v6140_v14 }
 0x576   :  { %5974 = vmatpush1.bf16.msra.mxu0 %v12879_v20  ;;  %6015 = vmatpush1.bf16.msra.mxu1 %v12881_v36  ;;  %v13163_v20 = vcombine.high %v6136_v46, %v6140_v14  ;;  %v13165_v36 = vcombine.high %v6143_v55, %v6147_v7 }
 0x577   :  { %5975 = vmatprep.subr.bf16.mxu0 %v12885_v2  ;;  %6016 = vmatprep.subr.bf16.mxu1 %v12887_v62  ;;  %v6144_v2 = vld [vmem:[#allocation8 + $0x48] sm:$0xff] }
 0x578   :  { %v6148_v62 = vld [vmem:[#allocation8 + $0x68] sm:$0xff] }
 0x57a   :  { %5976 = vmatpush1.bf16.msra.mxu0 %v12891_v34  ;;  %6017 = vmatpush1.bf16.msra.mxu1 %v12893_v15  ;;  %v6151_v34 = vld [vmem:[#allocation8 + $0x80] sm:$0xff]  ;;  %v13168_v15 = vcombine.high %v6144_v2, %v6148_v62 }
 0x57b   :  { %5977 = vmatprep.subr.bf16.mxu0 %v12897_v61  ;;  %6018 = vmatprep.subr.bf16.mxu1 %v12899_v33  ;;  %v6155_v61 = vld [vmem:[#allocation8 + $0xa0] sm:$0xff]  ;;  %v6152_v33 = vld [vmem:[#allocation8 + $0x88] sm:$0xff] }
 0x57e   :  { %5978 = vmatpush1.bf16.msra.mxu0 %v12903_v21  ;;  %6019 = vmatpush1.bf16.msra.mxu1 %v14739_v58  ;;  %v6156_v21 = vld [vmem:[#allocation8 + $0xa8] sm:$0xff]  ;;  %v13211_v58 = vcombine.high %v6168_v60, %v6172_v44  ;;  %v6199_v60 = vld [vmem:[#allocation8 + $0x200] sm:$0xff] }
 0x57f   :  { %5979 = vmatprep.subr.bf16.mxu0 %v14740_v63  ;;  %6020 = vmatprep.subr.bf16.mxu1 %v14741_v53  ;;  %v6175_v63 = vld [vmem:[#allocation8 + $0x140] sm:$0xff] }
 0x580   :  { %v6179_v53 = vld [vmem:[#allocation8 + $0x160] sm:$0xff] }
 0x581   :  { %v13219_v57 = vcombine.low %v6175_v63, %v6179_v53  ;;  %v6203_v44 = vld [vmem:[#allocation8 + $0x220] sm:$0xff] }
 0x582   :  { %5980 = vmatpush1.bf16.msra.mxu0 %v12915_v11  ;;  %6021 = vmatpush1.bf16.msra.mxu1 %v12917_v52  ;;  %v13172_v11 = vcombine.low %v6143_v55, %v6147_v7  ;;  %v13176_v52 = vcombine.low %v6144_v2, %v6148_v62  ;;  %v6183_v55 = vld [vmem:[#allocation8 + $0x180] sm:$0xff]  ;;  %v6184_v2 = vld [vmem:[#allocation8 + $0x188] sm:$0xff] }
 0x583   :  { %5981 = vmatprep.subr.bf16.mxu0 %v12921_v29  ;;  %6022 = vmatprep.subr.bf16.mxu1 %v14742_v31  ;;  %v13178_v29 = vcombine.high %v6151_v34, %v6155_v61  ;;  %v6176_v31 = vld [vmem:[#allocation8 + $0x148] sm:$0xff]  ;;  %14744 = vst [vmem:[#allocation17_spill] sm:$0xff] %v13219_v57  ;;  %v6187_v7 = vld [vmem:[#allocation8 + $0x1a0] sm:$0xff] }
 0x584   :  { %v13221_v46 = vcombine.low %v6176_v31, %v6180_v45  ;;  %v13223_v14 = vcombine.high %v6176_v31, %v6180_v45  ;;  %v13229_v62 = vcombine.high %v6183_v55, %v6187_v7  ;;  %v13249_v31 = vcombine.high %v6199_v60, %v6203_v44  ;;  %v6200_v45 = vld [vmem:[#allocation8 + $0x208] sm:$0xff] }
 0x586   :  { %5982 = vmatpush1.bf16.msra.mxu0 %v14743_v35  ;;  %6023 = vmatpush1.bf16.msra.mxu1 %v12929_v30  ;;  %v13188_v30 = vcombine.low %v6152_v33, %v6156_v21  ;;  %v13217_v35 = vcombine.high %v6175_v63, %v6179_v53  ;;  %14745 = vst [vmem:[#allocation18_spill] sm:$0xff] %v13221_v46  ;;  %14746 = vst [vmem:[#allocation20_spill] sm:$0xff] %v13229_v62 }
 0x587   :  { %5983 = vmatprep.subr.bf16.mxu0 %v12933_v0  ;;  %6024 = vmatprep.subr.bf16.mxu1 %v12935_v1  ;;  %v6159_v0 = vld [vmem:[#allocation8 + $0xc0] sm:$0xff]  ;;  %14754 = vst [vmem:[#allocation28_spill] sm:$0xff] %v13249_v31 }
 0x588   :  { %v6163_v1 = vld [vmem:[#allocation8 + $0xe0] sm:$0xff] }
 0x58a   :  { %5984 = vmatpush1.bf16.msra.mxu0 %v12939_v40  ;;  %6025 = vmatpush1.bf16.msra.mxu1 %v12941_v48  ;;  %v6160_v40 = vld [vmem:[#allocation8 + $0xc8] sm:$0xff]  ;;  %v13193_v48 = vcombine.high %v6159_v0, %v6163_v1 }
 0x58b   :  { %5985 = vmatprep.subr.bf16.mxu0 %v12945_v49  ;;  %6026 = vmatprep.subr.bf16.mxu1 %v12947_v56  ;;  %v6164_v49 = vld [vmem:[#allocation8 + $0xe8] sm:$0xff]  ;;  %v13195_v56 = vcombine.low %v6159_v0, %v6163_v1  ;;  %v6191_v0 = vld [vmem:[#allocation8 + $0x1c0] sm:$0xff] }
 0x58c   :  { %v13199_v51 = vcombine.high %v6160_v40, %v6164_v49  ;;  %v6195_v1 = vld [vmem:[#allocation8 + $0x1e0] sm:$0xff] }
 0x58d   :  { %v13243_v50 = vcombine.high %v6191_v0, %v6195_v1 }
 0x58e   :  { %5986 = vmatpush1.bf16.msra.mxu0 %v12951_v39  ;;  %6027 = vmatpush1.bf16.msra.mxu1 %v12953_v59  ;;  %v13181_v39 = vcombine.high %v6152_v33, %v6156_v21  ;;  %v13184_v59 = vcombine.low %v6151_v34, %v6155_v61  ;;  %v6188_v34 = vld [vmem:[#allocation8 + $0x1a8] sm:$0xff]  ;;  %v13231_v61 = vcombine.low %v6183_v55, %v6187_v7  ;;  %v6207_v7 = vld [vmem:[#allocation8 + $0x240] sm:$0xff] }
 0x58f   :  { %6903 = vmatprep.subr.bf16.mxu0 %v13159_v47  ;;  %6944 = vmatprep.subr.bf16.mxu1 %v13163_v20  ;;  %v13233_v33 = vcombine.low %v6184_v2, %v6188_v34  ;;  %v13235_v21 = vcombine.high %v6184_v2, %v6188_v34  ;;  %14751 = vst [vmem:[#allocation27_spill] sm:$0xff] %v13243_v50  ;;  %v6204_v55 = vld [vmem:[#allocation8 + $0x228] sm:$0xff]  ;;  %v6211_v34 = vld [vmem:[#allocation8 + $0x260] sm:$0xff] }
 0x590   :  { %14747 = vst [vmem:[#allocation23_spill] sm:$0xff] %v13231_v61  ;;  %v13252_v2 = vcombine.high %v6200_v45, %v6204_v55 }
 0x591   :  { %5988 = vmatmul.mubr.bf16.vlgmr.msra.gmra.mrb[44].mxu0 %v13049_v6  ;;  %6029 = vmatmul.mubr.bf16.vlgmr.msra.gmra.mrb[44].mxu1 %v13049_v6  ;;  %v13197_v6 = vcombine.low %v6160_v40, %v6164_v49  ;;  %14748 = vst [vmem:[#allocation21_spill] sm:$0xff] %v13233_v33  ;;  %14749 = vst [vmem:[#allocation22_spill] sm:$0xff] %v13235_v21  ;;  %v6192_v40 = vld [vmem:[#allocation8 + $0x1c8] sm:$0xff]  ;;  %v13241_v49 = vcombine.low %v6191_v0, %v6195_v1 }
 0x592   :  { %6904 = vmatpush1.bf16.msra.mxu0 %v13157_v23  ;;  %6945 = vmatpush1.bf16.msra.mxu1 %v13161_v17  ;;  %v13245_v63 = vcombine.low %v6192_v40, %v6196_v38  ;;  %v13247_v53 = vcombine.high %v6192_v40, %v6196_v38  ;;  %14755 = vst [vmem:[#allocation29_spill] sm:$0xff] %v13252_v2  ;;  %v6212_v0 = vld [vmem:[#allocation8 + $0x268] sm:$0xff] }
 0x593   :  { %6905 = vmatprep.subr.bf16.mxu0 %v13165_v36  ;;  %6946 = vmatprep.subr.bf16.mxu1 %v13168_v15  ;;  %14750 = vst [vmem:[#allocation25_spill] sm:$0xff] %v13241_v49  ;;  %v13256_v1 = vcombine.low %v6199_v60, %v6203_v44  ;;  %v13260_v40 = vcombine.low %v6200_v45, %v6204_v55 }
 0x594   :  { %14752 = vst [vmem:[#allocation24_spill] sm:$0xff] %v13245_v63  ;;  %14753 = vst [vmem:[#allocation26_spill] sm:$0xff] %v13247_v53  ;;  %v13262_v38 = vcombine.high %v6207_v7, %v6211_v34  ;;  %v13268_v60 = vcombine.low %v6207_v7, %v6211_v34 }
 0x595   :  { %14756 = vst [vmem:[#allocation30_spill] sm:$0xff] %v13256_v1  ;;  %14757 = vst [vmem:[#allocation31_spill] sm:$0xff] %v13260_v40 }
 0x596   :  { %6906 = vmatpush1.bf16.msra.mxu0 %v13172_v11  ;;  %6947 = vmatpush1.bf16.msra.mxu1 %v13176_v52  ;;  %14758 = vst [vmem:[#allocation32_spill] sm:$0xff] %v13262_v38  ;;  %14760 = vst [vmem:[#allocation34_spill] sm:$0xff] %v13268_v60 }
 0x597   :  { %6907 = vmatprep.subr.bf16.mxu0 %v13178_v29  ;;  %6948 = vmatprep.subr.bf16.mxu1 %v13181_v39 }
 0x59a   :  { %6908 = vmatpush1.bf16.msra.mxu0 %v13184_v59  ;;  %6949 = vmatpush1.bf16.msra.mxu1 %v13188_v30 }
 0x59b   :  { %6909 = vmatprep.subr.bf16.mxu0 %v13193_v48  ;;  %6950 = vmatprep.subr.bf16.mxu1 %v13199_v51 }
 0x59e   :  { %6910 = vmatpush1.bf16.msra.mxu0 %v13195_v56  ;;  %6951 = vmatpush1.bf16.msra.mxu1 %v13197_v6 }
 0x59f   :  { %6911 = vmatprep.subr.bf16.mxu0 %v13205_v9  ;;  %6952 = vmatprep.subr.bf16.mxu1 %v13211_v58 }
 0x5a2   :  { %6912 = vmatpush1.bf16.msra.mxu0 %v13207_v24  ;;  %6953 = vmatpush1.bf16.msra.mxu1 %v13209_v26 }
 0x5a3   :  { %6913 = vmatprep.subr.bf16.mxu0 %v13217_v35  ;;  %6954 = vmatprep.subr.bf16.mxu1 %v13223_v14 }
 0x5a6   :  { %6914 = vmatpush1.bf16.msra.mxu0 %v13219_v57  ;;  %6955 = vmatpush1.bf16.msra.mxu1 %v13221_v46 }
 0x5a7   :  { %6915 = vmatprep.subr.bf16.mxu0 %v13229_v62  ;;  %6956 = vmatprep.subr.bf16.mxu1 %v13235_v21  ;;  %v6219_v21 = vld [vmem:[#allocation8 + $0x2a0] sm:$0xff]  ;;  %v6216_v62 = vld [vmem:[#allocation8 + $0x288] sm:$0xff] }
 0x5aa   :  { %6916 = vmatpush1.bf16.msra.mxu0 %v13231_v61  ;;  %6957 = vmatpush1.bf16.msra.mxu1 %v13233_v33  ;;  %v6208_v33 = vld [vmem:[#allocation8 + $0x248] sm:$0xff]  ;;  %v6215_v61 = vld [vmem:[#allocation8 + $0x280] sm:$0xff] }
 0x5ab   :  { %6917 = vmatprep.subr.bf16.mxu0 %v13243_v50  ;;  %6958 = vmatprep.subr.bf16.mxu1 %v13247_v53  ;;  %v13265_v50 = vcombine.high %v6208_v33, %v6212_v0  ;;  %v6220_v53 = vld [vmem:[#allocation8 + $0x2a8] sm:$0xff]  ;;  %v13272_v44 = vcombine.low %v6208_v33, %v6212_v0  ;;  %v13274_v45 = vcombine.high %v6215_v61, %v6219_v21 }
 0x5ac   :  { %v13277_v55 = vcombine.high %v6216_v62, %v6220_v53  ;;  %v13280_v7 = vcombine.low %v6215_v61, %v6219_v21  ;;  %v13284_v33 = vcombine.low %v6216_v62, %v6220_v53 }
 0x5ad   :  { %14759 = vst [vmem:[#allocation33_spill] sm:$0xff] %v13265_v50  ;;  %14761 = vst [vmem:[#allocation35_spill] sm:$0xff] %v13272_v44 }
 0x5ae   :  { %6918 = vmatpush1.bf16.msra.mxu0 %v13241_v49  ;;  %6959 = vmatpush1.bf16.msra.mxu1 %v13245_v63  ;;  %14762 = vst [vmem:[#allocation36_spill] sm:$0xff] %v13274_v45  ;;  %14763 = vst [vmem:[#allocation37_spill] sm:$0xff] %v13277_v55  ;;  %v6224_v63 = vld [vmem:[#allocation8 + $0x2c8] sm:$0xff] }
 0x5af   :  { %6919 = vmatprep.subr.bf16.mxu0 %v13249_v31  ;;  %6960 = vmatprep.subr.bf16.mxu1 %v13252_v2  ;;  %v6223_v2 = vld [vmem:[#allocation8 + $0x2c0] sm:$0xff]  ;;  %v6228_v49 = vld [vmem:[#allocation8 + $0x2e8] sm:$0xff]  ;;  %14764 = vst [vmem:[#allocation38_spill] sm:$0xff] %v13280_v7  ;;  %14765 = vst [vmem:[#allocation39_spill] sm:$0xff] %v13284_v33 }
 0x5b0   :  { %v6227_v31 = vld [vmem:[#allocation8 + $0x2e0] sm:$0xff]  ;;  %v13289_v0 = vcombine.high %v6224_v63, %v6228_v49  ;;  %v13296_v62 = vcombine.low %v6224_v63, %v6228_v49 }
 0x5b1   :  { %v13286_v34 = vcombine.high %v6223_v2, %v6227_v31  ;;  %v13292_v61 = vcombine.low %v6223_v2, %v6227_v31 }
 0x5b2   :  { %6920 = vmatpush1.bf16.msra.mxu0 %v13256_v1  ;;  %6961 = vmatpush1.bf16.msra.mxu1 %v13260_v40  ;;  %14767 = vst [vmem:[#allocation41_spill] sm:$0xff] %v13289_v0  ;;  %v6232_v40 = vld [vmem:[#allocation8 + $0x308] sm:$0xff]  ;;  %14769 = vst [vmem:[#allocation43_spill] sm:$0xff] %v13296_v62 }
 0x5b3   :  { %6921 = vmatprep.subr.bf16.mxu0 %v13262_v38  ;;  %6962 = vmatprep.subr.bf16.mxu1 %v13265_v50  ;;  %14766 = vst [vmem:[#allocation40_spill] sm:$0xff] %v13286_v34  ;;  %v6231_v50 = vld [vmem:[#allocation8 + $0x300] sm:$0xff]  ;;  %v6236_v1 = vld [vmem:[#allocation8 + $0x328] sm:$0xff]  ;;  %14768 = vst [vmem:[#allocation42_spill] sm:$0xff] %v13292_v61 }
 0x5b4   :  { %v6235_v38 = vld [vmem:[#allocation8 + $0x320] sm:$0xff]  ;;  %v13301_v53 = vcombine.high %v6232_v40, %v6236_v1  ;;  %v13308_v49 = vcombine.low %v6232_v40, %v6236_v1 }
 0x5b5   :  { %v13298_v21 = vcombine.high %v6231_v50, %v6235_v38  ;;  %v13304_v31 = vcombine.low %v6231_v50, %v6235_v38 }
 0x5b6   :  { %6922 = vmatpush1.bf16.msra.mxu0 %v13268_v60  ;;  %6963 = vmatpush1.bf16.msra.mxu1 %v13272_v44  ;;  %14771 = vst [vmem:[#allocation45_spill] sm:$0xff] %v13301_v53  ;;  %v6240_v44 = vld [vmem:[#allocation8 + $0x348] sm:$0xff]  ;;  %14773 = vst [vmem:[#allocation47_spill] sm:$0xff] %v13308_v49 }
 0x5b7   :  { %6923 = vmatprep.subr.bf16.mxu0 %v13274_v45  ;;  %6964 = vmatprep.subr.bf16.mxu1 %v13277_v55  ;;  %14770 = vst [vmem:[#allocation44_spill] sm:$0xff] %v13298_v21  ;;  %v6239_v55 = vld [vmem:[#allocation8 + $0x340] sm:$0xff]  ;;  %v6244_v60 = vld [vmem:[#allocation8 + $0x368] sm:$0xff]  ;;  %14772 = vst [vmem:[#allocation46_spill] sm:$0xff] %v13304_v31 }
 0x5b8   :  { %v6243_v45 = vld [vmem:[#allocation8 + $0x360] sm:$0xff]  ;;  %v13313_v2 = vcombine.high %v6240_v44, %v6244_v60  ;;  %v13320_v1 = vcombine.low %v6240_v44, %v6244_v60 }
 0x5b9   :  { %v13310_v63 = vcombine.high %v6239_v55, %v6243_v45  ;;  %v13316_v50 = vcombine.low %v6239_v55, %v6243_v45 }
 0x5ba   :  { %6924 = vmatpush1.bf16.msra.mxu0 %v13280_v7  ;;  %6965 = vmatpush1.bf16.msra.mxu1 %v13284_v33  ;;  %14775 = vst [vmem:[#allocation49_spill] sm:$0xff] %v13313_v2  ;;  %v6248_v33 = vld [vmem:[#allocation8 + $0x388] sm:$0xff]  ;;  %14777 = vst [vmem:[#allocation51_spill] sm:$0xff] %v13320_v1 }
 0x5bb   :  { %6925 = vmatprep.subr.bf16.mxu0 %v13286_v34  ;;  %6966 = vmatprep.subr.bf16.mxu1 %v13289_v0  ;;  %14774 = vst [vmem:[#allocation48_spill] sm:$0xff] %v13310_v63  ;;  %v6247_v0 = vld [vmem:[#allocation8 + $0x380] sm:$0xff]  ;;  %v6252_v7 = vld [vmem:[#allocation8 + $0x3a8] sm:$0xff]  ;;  %14776 = vst [vmem:[#allocation50_spill] sm:$0xff] %v13316_v50 }
 0x5bc   :  { %v6251_v34 = vld [vmem:[#allocation8 + $0x3a0] sm:$0xff]  ;;  %v13325_v38 = vcombine.high %v6248_v33, %v6252_v7  ;;  %v13332_v60 = vcombine.low %v6248_v33, %v6252_v7  ;;  %v14786_v7 = vld [vmem:[#allocation65_spill] sm:$0xff]  ;;  %v14787_v33 = vld [vmem:[#allocation66_spill] sm:$0xff] }
 0x5bd   :  { %v13322_v40 = vcombine.high %v6247_v0, %v6251_v34  ;;  %v13328_v45 = vcombine.low %v6247_v0, %v6251_v34 }
 0x5be   :  { %6926 = vmatpush1.bf16.msra.mxu0 %v13292_v61  ;;  %6967 = vmatpush1.bf16.msra.mxu1 %v13296_v62  ;;  %14779 = vst [vmem:[#allocation53_spill] sm:$0xff] %v13325_v38  ;;  %v6256_v62 = vld [vmem:[#allocation8 + $0x3c8] sm:$0xff]  ;;  %14781 = vst [vmem:[#allocation55_spill] sm:$0xff] %v13332_v60 }
 0x5bf   :  { %6927 = vmatprep.subr.bf16.mxu0 %v13298_v21  ;;  %6968 = vmatprep.subr.bf16.mxu1 %v13301_v53  ;;  %14778 = vst [vmem:[#allocation52_spill] sm:$0xff] %v13322_v40  ;;  %v6255_v53 = vld [vmem:[#allocation8 + $0x3c0] sm:$0xff]  ;;  %v6260_v61 = vld [vmem:[#allocation8 + $0x3e8] sm:$0xff]  ;;  %14780 = vst [vmem:[#allocation54_spill] sm:$0xff] %v13328_v45 }
 0x5c0   :  { %v6259_v21 = vld [vmem:[#allocation8 + $0x3e0] sm:$0xff]  ;;  %v13337_v55 = vcombine.high %v6256_v62, %v6260_v61  ;;  %v13344_v34 = vcombine.low %v6256_v62, %v6260_v61 }
 0x5c1   :  { %v13334_v44 = vcombine.high %v6255_v53, %v6259_v21 }
 0x5c2   :  { %6928 = vmatpush1.bf16.msra.mxu0 %v13304_v31  ;;  %6969 = vmatpush1.bf16.msra.mxu1 %v13308_v49  ;;  %14783 = vst [vmem:[#allocation57_spill] sm:$0xff] %v13337_v55  ;;  %14785 = vst [vmem:[#allocation59_spill] sm:$0xff] %v13344_v34 }
 0x5c3   :  { %6929 = vmatprep.subr.bf16.mxu0 %v13310_v63  ;;  %6970 = vmatprep.subr.bf16.mxu1 %v13313_v2  ;;  %14782 = vst [vmem:[#allocation56_spill] sm:$0xff] %v13334_v44  ;;  %v13340_v2 = vcombine.low %v6255_v53, %v6259_v21 }
 0x5c5   :  { %14784 = vst [vmem:[#allocation58_spill] sm:$0xff] %v13340_v2 }
 0x5c6   :  { %6930 = vmatpush1.bf16.msra.mxu0 %v13316_v50  ;;  %6971 = vmatpush1.bf16.msra.mxu1 %v13320_v1 }
 0x5c7   :  { %6931 = vmatprep.subr.bf16.mxu0 %v13322_v40  ;;  %6972 = vmatprep.subr.bf16.mxu1 %v13325_v38 }
 0x5ca   :  { %6932 = vmatpush1.bf16.msra.mxu0 %v13328_v45  ;;  %6973 = vmatpush1.bf16.msra.mxu1 %v13332_v60 }
 0x5cb   :  { %6933 = vmatprep.subr.bf16.mxu0 %v13334_v44  ;;  %6974 = vmatprep.subr.bf16.mxu1 %v13337_v55 }
 0x5ce   :  { %6934 = vmatpush1.bf16.msra.mxu0 %v13340_v2  ;;  %6975 = vmatpush1.bf16.msra.mxu1 %v13344_v34 }
 0x5cf   :  { %6985 = vmatprep.subr.bf16.mxu0 %v14786_v7  ;;  %7026 = vmatprep.subr.bf16.mxu1 %v14787_v33 }
 0x624   :  { %v5907_v0 = vpop.f32.mrb[40].mxu0  ;;  %v5948_v45 = vpop.f32.mrb[40].mxu1 }
 0x625   :  { %v5909_v21 = vpop.f32.mrb[41].mxu0  ;;  %v5950_v53 = vpop.f32.mrb[41].mxu1 }
 0x626   :  { %v6045_v38 = vcombine.low %v5907_v0, %v5909_v21  ;;  %v6046_v60 = vcombine.low %v5948_v45, %v5950_v53  ;;  %v5911_v40 = vpop.f32.mrb[42].mxu0  ;;  %v5952_v44 = vpop.f32.mrb[42].mxu1  ;;  %v5103_v21 = vld [vmem:[#allocation2 + $0x3] ss:$8 sm:$0xf0] }
 0x627   :  { %v5912_v61 = vpop.f32.mrb[43].mxu0  ;;  %v5953_v62 = vpop.f32.mrb[43].mxu1 }
 0x628   :  { %v6055_v55 = vrot.slane %v6045_v38, %v12477_v28  ;;  %v6062_v2 = vrot.slane %v6046_v60, %v12477_v28  ;;  %v5102_v60 = vld [vmem:[#allocation2 + $0x3] ss:$8 sm:$0xf] }
 0x62a   :  { %v6077_v1 = vcombine.low %v6055_v55, %v6062_v2  ;;  %v5104_v55 = vor.u32 %v5103_v21, %v5102_v60 }
 0x62c   :  { %v6085_v38 = vrot.slane %v6077_v1, %v12477_v28 }
 0x664   :  { %v5989_v34 = vpop.f32.mrb[44].mxu0  ;;  %v6030_v50 = vpop.f32.mrb[44].mxu1 }
 0x665   :  { %v5991_v7 = vpop.f32.mrb[45].mxu0  ;;  %v6032_v63 = vpop.f32.mrb[45].mxu1 }
 0x666   :  { %v6047_v33 = vcombine.low %v5989_v34, %v5991_v7  ;;  %v6048_v49 = vcombine.low %v6030_v50, %v6032_v63  ;;  %v5993_v31 = vpop.f32.mrb[46].mxu0  ;;  %v6034_v46 = vpop.f32.mrb[46].mxu1 }
 0x667   :  { %v5994_v57 = vpop.f32.mrb[47].mxu0  ;;  %v6035_v0 = vpop.f32.mrb[47].mxu1 }
 0x668   :  { %v6069_v40 = vrot.slane %v6047_v33, %v12477_v28  ;;  %v6076_v45 = vrot.slane %v6048_v49, %v12477_v28 }
 0x66a   :  { %v6078_v44 = vcombine.low %v6069_v40, %v6076_v45 }
 0x66c   :  { %v6092_v2 = vrot.slane %v6078_v44, %v12477_v28 }
 0x66e   :  { %v6093_v53 = vcombine.low %v6085_v38, %v6092_v2 }
 0x670   :  { %v6095_v61 = vadd.f32 %v6093_v53, %v5104_v55  ;;  %v14789_v55 = vld [vmem:[#allocation12_spill] sm:$0xff]  ;;  %v14790_v53 = vld [vmem:[#allocation15_spill] sm:$0xff] }
 0x672   :  { %11790 = vtanh.f32 %v6095_v61  ;;  %v14791_v61 = vld [vmem:[#allocation13_spill] sm:$0xff] }
 0x67c   :  { %v11791_v63 = vpop.eup %11790 }
 0x67d   :  { %v6097_v31 = vmul.f32 0.5, %v11791_v63  ;;  %v6100_v46 = vrot.slane %v11791_v63, 2  ;;  %v6109_v62 = vrot.slane %v11791_v63, 4  ;;  %v6104_v1 = vrot.slane %v11791_v63, 6  ;;  %v14792_v63 = vld [vmem:[#allocation14_spill] sm:$0xff] }
 0x67f   :  { %v6098_v57 = vadd.f32 0.5, %v6097_v31  ;;  %v6102_v50 = vmul.f32 0.5, %v6100_v46  ;;  %v6106_v0 = vmul.f32 0.5, %v6104_v1  ;;  %v6189_v31 = vld [vmem:[#allocation8 + $0x1b0] sm:$0xff]  ;;  %v6186_v46 = vld [vmem:[#allocation8 + $0x198] sm:$0xff] }
 0x681   :  { %v6103_v34 = vadd.f32 0.5, %v6102_v50  ;;  %v6111_v7 = vmul.f32 %v6109_v62, %v6098_v57  ;;  %v6107_v40 = vadd.f32 0.5, %v6106_v0  ;;  %v6190_v57 = vld [vmem:[#allocation8 + $0x1b8] sm:$0xff]  ;;  %v6209_v0 = vld [vmem:[#allocation8 + $0x250] sm:$0xff] }
 0x682   :  { %v6202_v62 = vld [vmem:[#allocation8 + $0x218] sm:$0xff] }
 0x683   :  { %v6108_v49 = vmul.f32 %v6103_v34, %v13042_v5  ;;  %v14788_v5 = vld [vmem:[#allocation11_spill] sm:$0xff]  ;;  %v6205_v34 = vld [vmem:[#allocation8 + $0x230] sm:$0xff] }
 0x685   :  { %v13358_v33 = vadd.f32 %v6111_v7, %v6108_v49  ;;  %v6206_v49 = vld [vmem:[#allocation8 + $0x238] sm:$0xff] }
 0x686   :  { %v13415_v1 = vcombine.high %v6202_v62, %v6206_v49 }
 0x687   :  { %11792 = vtanh.f32 %v13358_v33 }
 0x691   :  { %v11793_v45 = vpop.eup %11792 }
 0x692   :  { %v6114_v44 = vmul.f32 %v11793_v45, %v6107_v40  ;;  %v6213_v40 = vld [vmem:[#allocation8 + $0x270] sm:$0xff]  ;;  %v6210_v45 = vld [vmem:[#allocation8 + $0x258] sm:$0xff] }
 0x694   :  { %v6123_v21 = vrot.slane %v6114_v44, %v12394_v27  ;;  %6129 = vst.msk [vmem:[#allocation3 + $0x3] ss:$8 sm:$0x3] %vm12489_vm0, %v6114_v44  ;;  %v6119_v38 = vrot.slane %v6114_v44, %v12383_v19  ;;  %v6214_v44 = vld [vmem:[#allocation8 + $0x278] sm:$0xff] }
 0x696   :  { %v6127_v2 = vpack.c.bf16 %v6123_v21, %v6123_v21  ;;  %v13365_v60 = vpack.c.bf16 %v6119_v38, %v6119_v38  ;;  %v13421_v38 = vcombine.low %v6202_v62, %v6206_v49  ;;  %v6233_v62 = vld [vmem:[#allocation8 + $0x310] sm:$0xff] }
 0x697   :  { %v6237_v49 = vld [vmem:[#allocation8 + $0x330] sm:$0xff] }
 0x698   :  { %6935 = vmatprep.mubr.bf16.mxu0 %v6127_v2  ;;  %6976 = vmatprep.mubr.bf16.mxu1 %v6127_v2 }
 0x699   :  { %6936 = vmatmul.mubr.bf16.vlgmr.msra.gmra.mrb[48].mxu0 %v13365_v60  ;;  %6977 = vmatmul.mubr.bf16.vlgmr.msra.gmra.mrb[48].mxu1 %v13365_v60 }
 0x69a   :  { %6986 = vmatpush1.bf16.msra.mxu0 %v13027_v10  ;;  %7027 = vmatpush1.bf16.msra.mxu1 %v13029_v42  ;;  %v14793_v10 = vld [vmem:[#allocation16_spill] sm:$0xff]  ;;  %v14794_v42 = vld [vmem:[#allocation19_spill] sm:$0xff] }
 0x69b   :  { %7017 = vmatprep.mubr.bf16.mxu0 %v6127_v2  ;;  %7058 = vmatprep.mubr.bf16.mxu1 %v6127_v2  ;;  %v13425_v2 = vcombine.high %v6209_v0, %v6213_v40 }
 0x69c   :  { %6987 = vmatprep.subr.bf16.mxu0 %v13051_v18  ;;  %7028 = vmatprep.subr.bf16.mxu1 %v14788_v5  ;;  %v6185_v18 = vld [vmem:[#allocation8 + $0x190] sm:$0xff]  ;;  %v13427_v5 = vcombine.high %v6210_v45, %v6214_v44 }
 0x69d   :  { %v13395_v50 = vcombine.low %v6185_v18, %v6189_v31 }
 0x69e   :  { %6988 = vmatpush1.bf16.msra.mxu0 %v14789_v55  ;;  %7029 = vmatpush1.bf16.msra.mxu1 %v14790_v53  ;;  %v6217_v55 = vld [vmem:[#allocation8 + $0x290] sm:$0xff] }
 0x69f   :  { %6989 = vmatprep.subr.bf16.mxu0 %v14791_v61  ;;  %7030 = vmatprep.subr.bf16.mxu1 %v14792_v63  ;;  %v6221_v53 = vld [vmem:[#allocation8 + $0x2b0] sm:$0xff]  ;;  %v6218_v61 = vld [vmem:[#allocation8 + $0x298] sm:$0xff] }
 0x6a0   :  { %v6222_v63 = vld [vmem:[#allocation8 + $0x2b8] sm:$0xff] }
 0x6a2   :  { %6990 = vmatpush1.bf16.msra.mxu0 %v13071_v25  ;;  %7031 = vmatpush1.bf16.msra.mxu1 %v13073_v12  ;;  %v13389_v25 = vcombine.high %v6185_v18, %v6189_v31  ;;  %v13391_v12 = vcombine.high %v6186_v46, %v6190_v57  ;;  %v13437_v18 = vcombine.high %v6217_v55, %v6221_v53 }
 0x6a3   :  { %6991 = vmatprep.subr.bf16.mxu0 %v13077_v54  ;;  %7032 = vmatprep.subr.bf16.mxu1 %v14793_v10  ;;  %v6193_v54 = vld [vmem:[#allocation8 + $0x1d0] sm:$0xff]  ;;  %v13431_v10 = vcombine.low %v6209_v0, %v6213_v40  ;;  %v13439_v31 = vcombine.high %v6218_v61, %v6222_v63  ;;  %v6234_v0 = vld [vmem:[#allocation8 + $0x318] sm:$0xff] }
 0x6a4   :  { %14795 = vst [vmem:[#allocation60_spill] sm:$0xff] %v13437_v18  ;;  %v6238_v40 = vld [vmem:[#allocation8 + $0x338] sm:$0xff] }
 0x6a5   :  { %14796 = vst [vmem:[#allocation61_spill] sm:$0xff] %v13439_v31 }
 0x6a6   :  { %6992 = vmatpush1.bf16.msra.mxu0 %v14794_v42  ;;  %7033 = vmatpush1.bf16.msra.mxu1 %v13085_v4  ;;  %v6197_v4 = vld [vmem:[#allocation8 + $0x1f0] sm:$0xff]  ;;  %v13433_v42 = vcombine.low %v6210_v45, %v6214_v44 }
 0x6a7   :  { %6993 = vmatprep.subr.bf16.mxu0 %v13089_v3  ;;  %7034 = vmatprep.subr.bf16.mxu1 %v13091_v8  ;;  %v6194_v3 = vld [vmem:[#allocation8 + $0x1d8] sm:$0xff] }
 0x6a8   :  { %v6198_v8 = vld [vmem:[#allocation8 + $0x1f8] sm:$0xff] }
 0x6aa   :  { %6994 = vmatpush1.bf16.msra.mxu0 %v13095_v13  ;;  %7035 = vmatpush1.bf16.msra.mxu1 %v13097_v16  ;;  %v13397_v13 = vcombine.low %v6186_v46, %v6190_v57  ;;  %v13401_v16 = vcombine.high %v6193_v54, %v6197_v4  ;;  %v6225_v46 = vld [vmem:[#allocation8 + $0x2d0] sm:$0xff] }
 0x6ab   :  { %6995 = vmatprep.subr.bf16.mxu0 %v13101_v43  ;;  %7036 = vmatprep.subr.bf16.mxu1 %v13103_v32  ;;  %v13403_v43 = vcombine.high %v6194_v3, %v6198_v8  ;;  %v6201_v32 = vld [vmem:[#allocation8 + $0x210] sm:$0xff] }
 0x6ac   :  { %v13413_v7 = vcombine.high %v6201_v32, %v6205_v34  ;;  %v13419_v21 = vcombine.low %v6201_v32, %v6205_v34  ;;  %v6229_v57 = vld [vmem:[#allocation8 + $0x2f0] sm:$0xff] }
 0x6ad   :  { %v13449_v32 = vcombine.high %v6225_v46, %v6229_v57  ;;  %v13455_v45 = vcombine.low %v6225_v46, %v6229_v57  ;;  %v13467_v46 = vcombine.low %v6233_v62, %v6237_v49  ;;  %v13469_v57 = vcombine.low %v6234_v0, %v6238_v40 }
 0x6ae   :  { %6996 = vmatpush1.bf16.msra.mxu0 %v13107_v37  ;;  %7037 = vmatpush1.bf16.msra.mxu1 %v13109_v22  ;;  %v13407_v37 = vcombine.low %v6193_v54, %v6197_v4  ;;  %v13409_v22 = vcombine.low %v6194_v3, %v6198_v8  ;;  %v6226_v54 = vld [vmem:[#allocation8 + $0x2d8] sm:$0xff]  ;;  %v13443_v3 = vcombine.low %v6217_v55, %v6221_v53 }
 0x6af   :  { %6997 = vmatprep.subr.bf16.mxu0 %v13389_v25  ;;  %7038 = vmatprep.subr.bf16.mxu1 %v13391_v12  ;;  %v6230_v4 = vld [vmem:[#allocation8 + $0x2f8] sm:$0xff]  ;;  %v13445_v8 = vcombine.low %v6218_v61, %v6222_v63  ;;  %14799 = vst [vmem:[#allocation64_spill] sm:$0xff] %v13449_v32  ;;  %14801 = vst [vmem:[#allocation66_spill] sm:$0xff] %v13455_v45  ;;  %v13461_v55 = vcombine.high %v6233_v62, %v6237_v49  ;;  %v6241_v61 = vld [vmem:[#allocation8 + $0x350] sm:$0xff] }
 0x6b0   :  { %14797 = vst [vmem:[#allocation62_spill] sm:$0xff] %v13443_v3  ;;  %v13451_v34 = vcombine.high %v6226_v54, %v6230_v4  ;;  %v13457_v44 = vcombine.low %v6226_v54, %v6230_v4  ;;  %v13463_v53 = vcombine.high %v6234_v0, %v6238_v40  ;;  %v6245_v63 = vld [vmem:[#allocation8 + $0x370] sm:$0xff] }
 0x6b1   :  { %14798 = vst [vmem:[#allocation63_spill] sm:$0xff] %v13445_v8  ;;  %14803 = vst [vmem:[#allocation12_spill] sm:$0xff] %v13461_v55  ;;  %v13473_v54 = vcombine.high %v6241_v61, %v6245_v63  ;;  %v13479_v62 = vcombine.low %v6241_v61, %v6245_v63 }
 0x6b2   :  { %6998 = vmatpush1.bf16.msra.mxu0 %v13395_v50  ;;  %7039 = vmatpush1.bf16.msra.mxu1 %v13397_v13  ;;  %14800 = vst [vmem:[#allocation65_spill] sm:$0xff] %v13451_v34  ;;  %14802 = vst [vmem:[#allocation11_spill] sm:$0xff] %v13457_v44 }
 0x6b3   :  { %6999 = vmatprep.subr.bf16.mxu0 %v13401_v16  ;;  %7040 = vmatprep.subr.bf16.mxu1 %v13403_v43  ;;  %14804 = vst [vmem:[#allocation15_spill] sm:$0xff] %v13463_v53  ;;  %14806 = vst [vmem:[#allocation14_spill] sm:$0xff] %v13479_v62 }
 0x6b6   :  { %7000 = vmatpush1.bf16.msra.mxu0 %v13407_v37  ;;  %7041 = vmatpush1.bf16.msra.mxu1 %v13409_v22 }
 0x6b7   :  { %7001 = vmatprep.subr.bf16.mxu0 %v13413_v7  ;;  %7042 = vmatprep.subr.bf16.mxu1 %v13415_v1 }
 0x6ba   :  { %7002 = vmatpush1.bf16.msra.mxu0 %v13419_v21  ;;  %7043 = vmatpush1.bf16.msra.mxu1 %v13421_v38 }
 0x6bb   :  { %7003 = vmatprep.subr.bf16.mxu0 %v13425_v2  ;;  %7044 = vmatprep.subr.bf16.mxu1 %v13427_v5 }
 0x6be   :  { %7004 = vmatpush1.bf16.msra.mxu0 %v13431_v10  ;;  %7045 = vmatpush1.bf16.msra.mxu1 %v13433_v42 }
 0x6bf   :  { %7005 = vmatprep.subr.bf16.mxu0 %v13437_v18  ;;  %7046 = vmatprep.subr.bf16.mxu1 %v13439_v31  ;;  %v6242_v31 = vld [vmem:[#allocation8 + $0x358] sm:$0xff] }
 0x6c0   :  { %v6246_v18 = vld [vmem:[#allocation8 + $0x378] sm:$0xff] }
 0x6c1   :  { %v13475_v4 = vcombine.high %v6242_v31, %v6246_v18  ;;  %v13481_v49 = vcombine.low %v6242_v31, %v6246_v18 }
 0x6c2   :  { %7006 = vmatpush1.bf16.msra.mxu0 %v13443_v3  ;;  %7047 = vmatpush1.bf16.msra.mxu1 %v13445_v8  ;;  %v6250_v8 = vld [vmem:[#allocation8 + $0x398] sm:$0xff] }
 0x6c3   :  { %7007 = vmatprep.subr.bf16.mxu0 %v13449_v32  ;;  %7048 = vmatprep.subr.bf16.mxu1 %v13451_v34  ;;  %14805 = vst [vmem:[#allocation13_spill] sm:$0xff] %v13475_v4  ;;  %v6249_v34 = vld [vmem:[#allocation8 + $0x390] sm:$0xff]  ;;  %v6254_v3 = vld [vmem:[#allocation8 + $0x3b8] sm:$0xff] }
 0x6c4   :  { %v6253_v32 = vld [vmem:[#allocation8 + $0x3b0] sm:$0xff]  ;;  %v13487_v40 = vcombine.high %v6250_v8, %v6254_v3  ;;  %v13493_v18 = vcombine.low %v6250_v8, %v6254_v3  ;;  %v14831_v8 = vld [vmem:[#allocation42_spill] sm:$0xff] }
 0x6c5   :  { %v13485_v0 = vcombine.high %v6249_v34, %v6253_v32  ;;  %v13491_v61 = vcombine.low %v6249_v34, %v6253_v32  ;;  %v14830_v3 = vld [vmem:[#allocation41_spill] sm:$0xff]  ;;  %v14832_v32 = vld [vmem:[#allocation43_spill] sm:$0xff]  ;;  %v14833_v34 = vld [vmem:[#allocation44_spill] sm:$0xff] }
 0x6c6   :  { %7008 = vmatpush1.bf16.msra.mxu0 %v13455_v45  ;;  %7049 = vmatpush1.bf16.msra.mxu1 %v13457_v44  ;;  %v6258_v44 = vld [vmem:[#allocation8 + $0x3d8] sm:$0xff] }
 0x6c7   :  { %7009 = vmatprep.subr.bf16.mxu0 %v13461_v55  ;;  %7050 = vmatprep.subr.bf16.mxu1 %v13463_v53  ;;  %v6257_v53 = vld [vmem:[#allocation8 + $0x3d0] sm:$0xff]  ;;  %v6262_v45 = vld [vmem:[#allocation8 + $0x3f8] sm:$0xff] }
 0x6c8   :  { %v6261_v55 = vld [vmem:[#allocation8 + $0x3f0] sm:$0xff]  ;;  %v13499_v63 = vcombine.high %v6258_v44, %v6262_v45 }
 0x6c9   :  { %v13497_v31 = vcombine.high %v6257_v53, %v6261_v55 }
 0x6ca   :  { %7010 = vmatpush1.bf16.msra.mxu0 %v13467_v46  ;;  %7051 = vmatpush1.bf16.msra.mxu1 %v13469_v57 }
 0x6cb   :  { %7011 = vmatprep.subr.bf16.mxu0 %v13473_v54  ;;  %7052 = vmatprep.subr.bf16.mxu1 %v13475_v4  ;;  %v13503_v4 = vcombine.low %v6257_v53, %v6261_v55  ;;  %v14836_v55 = vld [vmem:[#allocation47_spill] sm:$0xff]  ;;  %v14837_v53 = vld [vmem:[#allocation48_spill] sm:$0xff] }
 0x6ce   :  { %7012 = vmatpush1.bf16.msra.mxu0 %v13479_v62  ;;  %7053 = vmatpush1.bf16.msra.mxu1 %v13481_v49  ;;  %v13505_v62 = vcombine.low %v6258_v44, %v6262_v45  ;;  %v14834_v45 = vld [vmem:[#allocation45_spill] sm:$0xff]  ;;  %v14835_v44 = vld [vmem:[#allocation46_spill] sm:$0xff] }
 0x6cf   :  { %7013 = vmatprep.subr.bf16.mxu0 %v13485_v0  ;;  %7054 = vmatprep.subr.bf16.mxu1 %v13487_v40 }
 0x6d2   :  { %7014 = vmatpush1.bf16.msra.mxu0 %v13491_v61  ;;  %7055 = vmatpush1.bf16.msra.mxu1 %v13493_v18 }
 0x6d3   :  { %7015 = vmatprep.subr.bf16.mxu0 %v13497_v31  ;;  %7056 = vmatprep.subr.bf16.mxu1 %v13499_v63 }
 0x6d6   :  { %7016 = vmatpush1.bf16.msra.mxu0 %v13503_v4  ;;  %7057 = vmatpush1.bf16.msra.mxu1 %v13505_v62 }
 0x6d7   :  { %7933 = vmatprep.subr.bf16.mxu0 %v13159_v47  ;;  %7974 = vmatprep.subr.bf16.mxu1 %v13163_v20  ;;  %v14808_v47 = vld [vmem:[#allocation18_spill] sm:$0xff] }
 0x6d8   :  { %v14810_v20 = vld [vmem:[#allocation22_spill] sm:$0xff] }
 0x6d9   :  { %7018 = vmatmul.mubr.bf16.vlgmr.msra.gmra.mrb[52].mxu0 %v13365_v60  ;;  %7059 = vmatmul.mubr.bf16.vlgmr.msra.gmra.mrb[52].mxu1 %v13365_v60  ;;  %v14829_v60 = vld [vmem:[#allocation40_spill] sm:$0xff] }
 0x6da   :  { %7934 = vmatpush1.bf16.msra.mxu0 %v13157_v23  ;;  %7975 = vmatpush1.bf16.msra.mxu1 %v13161_v17  ;;  %v14807_v23 = vld [vmem:[#allocation17_spill] sm:$0xff]  ;;  %v14809_v17 = vld [vmem:[#allocation20_spill] sm:$0xff] }
 0x6db   :  { %7935 = vmatprep.subr.bf16.mxu0 %v13165_v36  ;;  %7976 = vmatprep.subr.bf16.mxu1 %v13168_v15  ;;  %v14811_v36 = vld [vmem:[#allocation23_spill] sm:$0xff]  ;;  %v14812_v15 = vld [vmem:[#allocation21_spill] sm:$0xff] }
 0x6de   :  { %7936 = vmatpush1.bf16.msra.mxu0 %v13172_v11  ;;  %7977 = vmatpush1.bf16.msra.mxu1 %v13176_v52  ;;  %v14813_v11 = vld [vmem:[#allocation27_spill] sm:$0xff]  ;;  %v14814_v52 = vld [vmem:[#allocation26_spill] sm:$0xff] }
 0x6df   :  { %7937 = vmatprep.subr.bf16.mxu0 %v13178_v29  ;;  %7978 = vmatprep.subr.bf16.mxu1 %v13181_v39  ;;  %v14815_v29 = vld [vmem:[#allocation25_spill] sm:$0xff]  ;;  %v14816_v39 = vld [vmem:[#allocation24_spill] sm:$0xff] }
 0x6e2   :  { %7938 = vmatpush1.bf16.msra.mxu0 %v13184_v59  ;;  %7979 = vmatpush1.bf16.msra.mxu1 %v13188_v30  ;;  %v14817_v59 = vld [vmem:[#allocation28_spill] sm:$0xff]  ;;  %v14818_v30 = vld [vmem:[#allocation29_spill] sm:$0xff] }
 0x6e3   :  { %7939 = vmatprep.subr.bf16.mxu0 %v13193_v48  ;;  %7980 = vmatprep.subr.bf16.mxu1 %v13199_v51  ;;  %v14819_v48 = vld [vmem:[#allocation30_spill] sm:$0xff]  ;;  %v14822_v51 = vld [vmem:[#allocation33_spill] sm:$0xff] }
 0x6e6   :  { %7940 = vmatpush1.bf16.msra.mxu0 %v13195_v56  ;;  %7981 = vmatpush1.bf16.msra.mxu1 %v13197_v6  ;;  %v14820_v56 = vld [vmem:[#allocation31_spill] sm:$0xff]  ;;  %v14821_v6 = vld [vmem:[#allocation32_spill] sm:$0xff] }
 0x6e7   :  { %7941 = vmatprep.subr.bf16.mxu0 %v13205_v9  ;;  %7982 = vmatprep.subr.bf16.mxu1 %v13211_v58  ;;  %v14823_v9 = vld [vmem:[#allocation34_spill] sm:$0xff]  ;;  %v14826_v58 = vld [vmem:[#allocation37_spill] sm:$0xff] }
 0x6ea   :  { %7942 = vmatpush1.bf16.msra.mxu0 %v13207_v24  ;;  %7983 = vmatpush1.bf16.msra.mxu1 %v13209_v26  ;;  %v14824_v24 = vld [vmem:[#allocation35_spill] sm:$0xff]  ;;  %v14825_v26 = vld [vmem:[#allocation36_spill] sm:$0xff] }
 0x6eb   :  { %7943 = vmatprep.subr.bf16.mxu0 %v13217_v35  ;;  %7984 = vmatprep.subr.bf16.mxu1 %v13223_v14  ;;  %v14827_v35 = vld [vmem:[#allocation38_spill] sm:$0xff]  ;;  %v14828_v14 = vld [vmem:[#allocation39_spill] sm:$0xff] }
 0x6ee   :  { %7944 = vmatpush1.bf16.msra.mxu0 %v14807_v23  ;;  %7985 = vmatpush1.bf16.msra.mxu1 %v14808_v47  ;;  %v14838_v23 = vld [vmem:[#allocation49_spill] sm:$0xff]  ;;  %v14839_v47 = vld [vmem:[#allocation50_spill] sm:$0xff] }
 0x6ef   :  { %7945 = vmatprep.subr.bf16.mxu0 %v14809_v17  ;;  %7986 = vmatprep.subr.bf16.mxu1 %v14810_v20  ;;  %v14840_v17 = vld [vmem:[#allocation51_spill] sm:$0xff]  ;;  %v14841_v20 = vld [vmem:[#allocation52_spill] sm:$0xff] }
 0x6f2   :  { %7946 = vmatpush1.bf16.msra.mxu0 %v14811_v36  ;;  %7987 = vmatpush1.bf16.msra.mxu1 %v14812_v15  ;;  %v14842_v36 = vld [vmem:[#allocation53_spill] sm:$0xff]  ;;  %v14843_v15 = vld [vmem:[#allocation54_spill] sm:$0xff] }
 0x6f3   :  { %7947 = vmatprep.subr.bf16.mxu0 %v14813_v11  ;;  %7988 = vmatprep.subr.bf16.mxu1 %v14814_v52  ;;  %v14844_v11 = vld [vmem:[#allocation55_spill] sm:$0xff]  ;;  %v14845_v52 = vld [vmem:[#allocation56_spill] sm:$0xff] }
 0x6f6   :  { %7948 = vmatpush1.bf16.msra.mxu0 %v14815_v29  ;;  %7989 = vmatpush1.bf16.msra.mxu1 %v14816_v39  ;;  %v14846_v29 = vld [vmem:[#allocation57_spill] sm:$0xff]  ;;  %v14847_v39 = vld [vmem:[#allocation58_spill] sm:$0xff] }
 0x6f7   :  { %7949 = vmatprep.subr.bf16.mxu0 %v14817_v59  ;;  %7990 = vmatprep.subr.bf16.mxu1 %v14818_v30  ;;  %v14848_v59 = vld [vmem:[#allocation59_spill] sm:$0xff]  ;;  %v7167_v30 = vld [vmem:[#allocation8 + $0x10] sm:$0xff] }
 0x6fa   :  { %7950 = vmatpush1.bf16.msra.mxu0 %v14819_v48  ;;  %7991 = vmatpush1.bf16.msra.mxu1 %v14820_v56  ;;  %v7171_v48 = vld [vmem:[#allocation8 + $0x30] sm:$0xff]  ;;  %v7168_v56 = vld [vmem:[#allocation8 + $0x18] sm:$0xff] }
 0x6fb   :  { %7951 = vmatprep.subr.bf16.mxu0 %v14821_v6  ;;  %7992 = vmatprep.subr.bf16.mxu1 %v14822_v51  ;;  %v13577_v6 = vcombine.high %v7167_v30, %v7171_v48  ;;  %v7172_v51 = vld [vmem:[#allocation8 + $0x38] sm:$0xff] }
 0x6fe   :  { %7952 = vmatpush1.bf16.msra.mxu0 %v14823_v9  ;;  %7993 = vmatpush1.bf16.msra.mxu1 %v14824_v24  ;;  %v13579_v9 = vcombine.low %v7167_v30, %v7171_v48  ;;  %v13581_v24 = vcombine.low %v7168_v56, %v7172_v51 }
 0x6ff   :  { %7953 = vmatprep.subr.bf16.mxu0 %v14825_v26  ;;  %7994 = vmatprep.subr.bf16.mxu1 %v14826_v58  ;;  %v13583_v26 = vcombine.high %v7168_v56, %v7172_v51  ;;  %v6133_v51 = vld [vmem:[#allocation2 + $0x4] ss:$8 sm:$0xf0] }
 0x702   :  { %7954 = vmatpush1.bf16.msra.mxu0 %v14827_v35  ;;  %7995 = vmatpush1.bf16.msra.mxu1 %v14828_v14 }
 0x703   :  { %7955 = vmatprep.subr.bf16.mxu0 %v14829_v60  ;;  %7996 = vmatprep.subr.bf16.mxu1 %v14830_v3 }
 0x706   :  { %7956 = vmatpush1.bf16.msra.mxu0 %v14831_v8  ;;  %7997 = vmatpush1.bf16.msra.mxu1 %v14832_v32 }
 0x707   :  { %7957 = vmatprep.subr.bf16.mxu0 %v14833_v34  ;;  %7998 = vmatprep.subr.bf16.mxu1 %v14834_v45 }
 0x70a   :  { %7958 = vmatpush1.bf16.msra.mxu0 %v14835_v44  ;;  %7999 = vmatpush1.bf16.msra.mxu1 %v14836_v55 }
 0x70b   :  { %7959 = vmatprep.subr.bf16.mxu0 %v14837_v53  ;;  %8000 = vmatprep.subr.bf16.mxu1 %v14838_v23 }
 0x70e   :  { %7960 = vmatpush1.bf16.msra.mxu0 %v14839_v47  ;;  %8001 = vmatpush1.bf16.msra.mxu1 %v14840_v17 }
 0x70f   :  { %7961 = vmatprep.subr.bf16.mxu0 %v14841_v20  ;;  %8002 = vmatprep.subr.bf16.mxu1 %v14842_v36 }
 0x712   :  { %7962 = vmatpush1.bf16.msra.mxu0 %v14843_v15  ;;  %8003 = vmatpush1.bf16.msra.mxu1 %v14844_v11 }
 0x713   :  { %7963 = vmatprep.subr.bf16.mxu0 %v14845_v52  ;;  %8004 = vmatprep.subr.bf16.mxu1 %v14846_v29 }
 0x716   :  { %7964 = vmatpush1.bf16.msra.mxu0 %v14847_v39  ;;  %8005 = vmatpush1.bf16.msra.mxu1 %v14848_v59 }
 0x717   :  { %8015 = vmatprep.subr.bf16.mxu0 %v13577_v6  ;;  %8056 = vmatprep.subr.bf16.mxu1 %v13583_v26 }
 0x76c   :  { %v6937_v58 = vpop.f32.mrb[48].mxu0  ;;  %v6978_v35 = vpop.f32.mrb[48].mxu1 }
 0x76d   :  { %v6939_v14 = vpop.f32.mrb[49].mxu0  ;;  %v6980_v60 = vpop.f32.mrb[49].mxu1 }
 0x76e   :  { %v7075_v3 = vcombine.low %v6937_v58, %v6939_v14  ;;  %v7076_v8 = vcombine.low %v6978_v35, %v6980_v60  ;;  %v6941_v32 = vpop.f32.mrb[50].mxu0  ;;  %v6982_v34 = vpop.f32.mrb[50].mxu1  ;;  %v6132_v14 = vld [vmem:[#allocation2 + $0x4] ss:$8 sm:$0xf] }
 0x76f   :  { %v6942_v45 = vpop.f32.mrb[51].mxu0  ;;  %v6983_v44 = vpop.f32.mrb[51].mxu1  ;;  %v6134_v60 = vor.u32 %v6133_v51, %v6132_v14 }
 0x770   :  { %v7085_v55 = vrot.slane %v7075_v3, %v12477_v28  ;;  %v7092_v53 = vrot.slane %v7076_v8, %v12477_v28 }
 0x772   :  { %v7107_v23 = vcombine.low %v7085_v55, %v7092_v53 }
 0x774   :  { %v7115_v58 = vrot.slane %v7107_v23, %v12477_v28 }
 0x7ac   :  { %v7019_v47 = vpop.f32.mrb[52].mxu0  ;;  %v7060_v17 = vpop.f32.mrb[52].mxu1 }
 0x7ad   :  { %v7021_v20 = vpop.f32.mrb[53].mxu0  ;;  %v7062_v36 = vpop.f32.mrb[53].mxu1 }
 0x7ae   :  { %v7077_v15 = vcombine.low %v7019_v47, %v7021_v20  ;;  %v7078_v11 = vcombine.low %v7060_v17, %v7062_v36  ;;  %v7023_v52 = vpop.f32.mrb[54].mxu0  ;;  %v7064_v29 = vpop.f32.mrb[54].mxu1 }
 0x7af   :  { %v7024_v39 = vpop.f32.mrb[55].mxu0  ;;  %v7065_v59 = vpop.f32.mrb[55].mxu1 }
 0x7b0   :  { %v7099_v30 = vrot.slane %v7077_v15, %v12477_v28  ;;  %v7106_v48 = vrot.slane %v7078_v11, %v12477_v28 }
 0x7b2   :  { %v7108_v56 = vcombine.low %v7099_v30, %v7106_v48  ;;  %v7175_v30 = vld [vmem:[#allocation8 + $0x50] sm:$0xff] }
 0x7b3   :  { %v7179_v48 = vld [vmem:[#allocation8 + $0x70] sm:$0xff] }
 0x7b4   :  { %v7122_v35 = vrot.slane %v7108_v56, %v12477_v28  ;;  %v7180_v56 = vld [vmem:[#allocation8 + $0x78] sm:$0xff]  ;;  %v13603_v14 = vcombine.high %v7175_v30, %v7179_v48 }
 0x7b6   :  { %v7123_v3 = vcombine.low %v7115_v58, %v7122_v35  ;;  %v7183_v35 = vld [vmem:[#allocation8 + $0x90] sm:$0xff] }
 0x7b8   :  { %v7125_v8 = vadd.f32 %v7123_v3, %v6134_v60  ;;  %v7187_v3 = vld [vmem:[#allocation8 + $0xb0] sm:$0xff] }
 0x7ba   :  { %11794 = vtanh.f32 %v7125_v8  ;;  %v7184_v8 = vld [vmem:[#allocation8 + $0x98] sm:$0xff] }
 0x7c4   :  { %v11795_v32 = vpop.eup %11794 }
 0x7c5   :  { %v7127_v34 = vmul.f32 0.5, %v11795_v32  ;;  %v7130_v45 = vrot.slane %v11795_v32, 2  ;;  %v7139_v47 = vrot.slane %v11795_v32, 4  ;;  %v7134_v23 = vrot.slane %v11795_v32, 6  ;;  %v7188_v32 = vld [vmem:[#allocation8 + $0xb8] sm:$0xff] }
 0x7c7   :  { %v7128_v44 = vadd.f32 0.5, %v7127_v34  ;;  %v7132_v55 = vmul.f32 0.5, %v7130_v45  ;;  %v7136_v15 = vmul.f32 0.5, %v7134_v23  ;;  %v13611_v34 = vcombine.low %v7175_v30, %v7179_v48  ;;  %v7204_v30 = vld [vmem:[#allocation8 + $0x138] sm:$0xff] }
 0x7c8   :  { %v13623_v23 = vcombine.low %v7183_v35, %v7187_v3 }
 0x7c9   :  { %v7133_v53 = vadd.f32 0.5, %v7132_v55  ;;  %v7141_v20 = vmul.f32 %v7139_v47, %v7128_v44  ;;  %v7137_v11 = vadd.f32 0.5, %v7136_v15  ;;  %v13615_v44 = vcombine.high %v7183_v35, %v7187_v3  ;;  %v7195_v47 = vld [vmem:[#allocation8 + $0xf0] sm:$0xff] }
 0x7ca   :  { %v13617_v55 = vcombine.high %v7184_v8, %v7188_v32  ;;  %v13625_v15 = vcombine.low %v7184_v8, %v7188_v32  ;;  %v7207_v35 = vld [vmem:[#allocation8 + $0x150] sm:$0xff]  ;;  %v7208_v8 = vld [vmem:[#allocation8 + $0x158] sm:$0xff] }
 0x7cb   :  { %v7138_v17 = vmul.f32 %v7133_v53, %v13358_v33  ;;  %v7176_v33 = vld [vmem:[#allocation8 + $0x58] sm:$0xff]  ;;  %v7191_v53 = vld [vmem:[#allocation8 + $0xd0] sm:$0xff] }
 0x7cc   :  { %v13605_v60 = vcombine.high %v7176_v33, %v7180_v56  ;;  %v13613_v45 = vcombine.low %v7176_v33, %v7180_v56  ;;  %v13635_v48 = vcombine.low %v7191_v53, %v7195_v47  ;;  %v7211_v3 = vld [vmem:[#allocation8 + $0x170] sm:$0xff]  ;;  %v7212_v32 = vld [vmem:[#allocation8 + $0x178] sm:$0xff] }
 0x7cd   :  { %v13594_v36 = vadd.f32 %v7141_v20, %v7138_v17  ;;  %v7192_v17 = vld [vmem:[#allocation8 + $0xd8] sm:$0xff] }
 0x7ce   :  { %v7196_v20 = vld [vmem:[#allocation8 + $0xf8] sm:$0xff]  ;;  %14850 = vst [vmem:[#allocation19_spill] sm:$0xff] %v13635_v48 }
 0x7cf   :  { %11796 = vtanh.f32 %v13594_v36  ;;  %v13637_v33 = vcombine.low %v7192_v17, %v7196_v20 }
 0x7d9   :  { %v11797_v52 = vpop.eup %11796 }
 0x7da   :  { %v7144_v29 = vmul.f32 %v11797_v52, %v7137_v11  ;;  %v13629_v11 = vcombine.high %v7191_v53, %v7195_v47  ;;  %v13631_v52 = vcombine.high %v7192_v17, %v7196_v20  ;;  %v13653_v17 = vcombine.high %v7207_v35, %v7211_v3 }
 0x7db   :  { %v13655_v20 = vcombine.high %v7208_v8, %v7212_v32 }
 0x7dc   :  { %v7153_v39 = vrot.slane %v7144_v29, %v12394_v27  ;;  %7159 = vst.msk [vmem:[#allocation3 + $0x4] ss:$8 sm:$0x3] %vm12489_vm0, %v7144_v29  ;;  %v7149_v59 = vrot.slane %v7144_v29, %v12383_v19  ;;  %14849 = vst [vmem:[#allocation16_spill] sm:$0xff] %v13631_v52  ;;  %v7199_v29 = vld [vmem:[#allocation8 + $0x110] sm:$0xff] }
 0x7de   :  { %v7157_v51 = vpack.c.bf16 %v7153_v39, %v7153_v39  ;;  %v13601_v58 = vpack.c.bf16 %v7149_v59, %v7149_v59  ;;  %v7203_v39 = vld [vmem:[#allocation8 + $0x130] sm:$0xff]  ;;  %v7200_v59 = vld [vmem:[#allocation8 + $0x118] sm:$0xff] }
 0x7df   :  { %v13641_v56 = vcombine.high %v7199_v29, %v7203_v39  ;;  %v13647_v53 = vcombine.low %v7199_v29, %v7203_v39  ;;  %v13649_v47 = vcombine.low %v7200_v59, %v7204_v30  ;;  %v8216_v29 = vld [vmem:[#allocation8 + $0xa8] sm:$0xff] }
 0x7e0   :  { %7965 = vmatprep.mubr.bf16.mxu0 %v7157_v51  ;;  %8006 = vmatprep.mubr.bf16.mxu1 %v7157_v51 }
 0x7e1   :  { %7966 = vmatmul.mubr.bf16.vlgmr.msra.gmra.mrb[56].mxu0 %v13601_v58  ;;  %8007 = vmatmul.mubr.bf16.vlgmr.msra.gmra.mrb[56].mxu1 %v13601_v58 }
 0x7e2   :  { %8016 = vmatpush1.bf16.msra.mxu0 %v13579_v9  ;;  %8057 = vmatpush1.bf16.msra.mxu1 %v13581_v24 }
 0x7e3   :  { %8047 = vmatprep.mubr.bf16.mxu0 %v7157_v51  ;;  %8088 = vmatprep.mubr.bf16.mxu1 %v7157_v51  ;;  %v13643_v51 = vcombine.high %v7200_v59, %v7204_v30 }
 0x7e4   :  { %8017 = vmatprep.subr.bf16.mxu0 %v13603_v14  ;;  %8058 = vmatprep.subr.bf16.mxu1 %v13605_v60 }
 0x7e6   :  { %8018 = vmatpush1.bf16.msra.mxu0 %v13611_v34  ;;  %8059 = vmatpush1.bf16.msra.mxu1 %v13613_v45 }
 0x7e7   :  { %8019 = vmatprep.subr.bf16.mxu0 %v13615_v44  ;;  %8060 = vmatprep.subr.bf16.mxu1 %v13617_v55 }
 0x7ea   :  { %8020 = vmatpush1.bf16.msra.mxu0 %v13623_v23  ;;  %8061 = vmatpush1.bf16.msra.mxu1 %v13625_v15 }
 0x7eb   :  { %8021 = vmatprep.subr.bf16.mxu0 %v13629_v11  ;;  %8062 = vmatprep.subr.bf16.mxu1 %v13631_v52  ;;  %v13659_v52 = vcombine.low %v7207_v35, %v7211_v3 }
 0x7ee   :  { %8022 = vmatpush1.bf16.msra.mxu0 %v13635_v48  ;;  %8063 = vmatpush1.bf16.msra.mxu1 %v13637_v33  ;;  %v13661_v48 = vcombine.low %v7208_v8, %v7212_v32  ;;  %v8219_v32 = vld [vmem:[#allocation8 + $0xc0] sm:$0xff] }
 0x7ef   :  { %8023 = vmatprep.subr.bf16.mxu0 %v13641_v56  ;;  %8064 = vmatprep.subr.bf16.mxu1 %v13643_v51 }
 0x7f2   :  { %8024 = vmatpush1.bf16.msra.mxu0 %v13647_v53  ;;  %8065 = vmatpush1.bf16.msra.mxu1 %v13649_v47 }
 0x7f3   :  { %8025 = vmatprep.subr.bf16.mxu0 %v13653_v17  ;;  %8066 = vmatprep.subr.bf16.mxu1 %v13655_v20 }
 0x7f6   :  { %8026 = vmatpush1.bf16.msra.mxu0 %v13659_v52  ;;  %8067 = vmatpush1.bf16.msra.mxu1 %v13661_v48 }
 0x7f7   :  { %8027 = vmatprep.subr.bf16.mxu0 %v13389_v25  ;;  %8068 = vmatprep.subr.bf16.mxu1 %v13391_v12  ;;  %v14851_v25 = vld [vmem:[#allocation60_spill] sm:$0xff]  ;;  %v14852_v12 = vld [vmem:[#allocation61_spill] sm:$0xff] }
 0x7fa   :  { %8028 = vmatpush1.bf16.msra.mxu0 %v13395_v50  ;;  %8069 = vmatpush1.bf16.msra.mxu1 %v13397_v13  ;;  %v14853_v50 = vld [vmem:[#allocation62_spill] sm:$0xff]  ;;  %v14854_v13 = vld [vmem:[#allocation63_spill] sm:$0xff] }
 0x7fb   :  { %8029 = vmatprep.subr.bf16.mxu0 %v13401_v16  ;;  %8070 = vmatprep.subr.bf16.mxu1 %v13403_v43  ;;  %v14855_v16 = vld [vmem:[#allocation64_spill] sm:$0xff]  ;;  %v14856_v43 = vld [vmem:[#allocation65_spill] sm:$0xff] }
 0x7fe   :  { %8030 = vmatpush1.bf16.msra.mxu0 %v13407_v37  ;;  %8071 = vmatpush1.bf16.msra.mxu1 %v13409_v22  ;;  %v14857_v37 = vld [vmem:[#allocation66_spill] sm:$0xff]  ;;  %v14858_v22 = vld [vmem:[#allocation11_spill] sm:$0xff] }
 0x7ff   :  { %8031 = vmatprep.subr.bf16.mxu0 %v13413_v7  ;;  %8072 = vmatprep.subr.bf16.mxu1 %v13415_v1  ;;  %v14859_v7 = vld [vmem:[#allocation12_spill] sm:$0xff]  ;;  %v14860_v1 = vld [vmem:[#allocation15_spill] sm:$0xff] }
 0x802   :  { %8032 = vmatpush1.bf16.msra.mxu0 %v13419_v21  ;;  %8073 = vmatpush1.bf16.msra.mxu1 %v13421_v38  ;;  %v14861_v21 = vld [vmem:[#allocation13_spill] sm:$0xff]  ;;  %v14862_v38 = vld [vmem:[#allocation14_spill] sm:$0xff] }
 0x803   :  { %8033 = vmatprep.subr.bf16.mxu0 %v13425_v2  ;;  %8074 = vmatprep.subr.bf16.mxu1 %v13427_v5  ;;  %v8195_v2 = vld [vmem:[#allocation8] sm:$0xff] }
 0x804   :  { %v8199_v5 = vld [vmem:[#allocation8 + $0x20] sm:$0xff] }
 0x806   :  { %8034 = vmatpush1.bf16.msra.mxu0 %v13431_v10  ;;  %8075 = vmatpush1.bf16.msra.mxu1 %v13433_v42  ;;  %v8196_v10 = vld [vmem:[#allocation8 + $0x8] sm:$0xff]  ;;  %v13709_v42 = vcombine.low %v8195_v2, %v8199_v5 }
 0x807   :  { %8035 = vmatprep.subr.bf16.mxu0 %v14851_v25  ;;  %8076 = vmatprep.subr.bf16.mxu1 %v14852_v12  ;;  %v8223_v25 = vld [vmem:[#allocation8 + $0xe0] sm:$0xff]  ;;  %v8220_v12 = vld [vmem:[#allocation8 + $0xc8] sm:$0xff] }
 0x80a   :  { %8036 = vmatpush1.bf16.msra.mxu0 %v14853_v50  ;;  %8077 = vmatpush1.bf16.msra.mxu1 %v14854_v13  ;;  %v13745_v50 = vcombine.high %v8219_v32, %v8223_v25  ;;  %v8224_v13 = vld [vmem:[#allocation8 + $0xe8] sm:$0xff] }
 0x80b   :  { %8037 = vmatprep.subr.bf16.mxu0 %v14855_v16  ;;  %8078 = vmatprep.subr.bf16.mxu1 %v14856_v43  ;;  %v13747_v16 = vcombine.low %v8219_v32, %v8223_v25  ;;  %v13749_v43 = vcombine.low %v8220_v12, %v8224_v13  ;;  %v8247_v32 = vld [vmem:[#allocation8 + $0x1a0] sm:$0xff]  ;;  %v8244_v25 = vld [vmem:[#allocation8 + $0x188] sm:$0xff] }
 0x80e   :  { %8038 = vmatpush1.bf16.msra.mxu0 %v14857_v37  ;;  %8079 = vmatpush1.bf16.msra.mxu1 %v14858_v22  ;;  %v13751_v37 = vcombine.high %v8220_v12, %v8224_v13  ;;  %v8227_v22 = vld [vmem:[#allocation8 + $0x100] sm:$0xff]  ;;  %v8248_v13 = vld [vmem:[#allocation8 + $0x1a8] sm:$0xff] }
 0x80f   :  { %8039 = vmatprep.subr.bf16.mxu0 %v14859_v7  ;;  %8080 = vmatprep.subr.bf16.mxu1 %v14860_v1  ;;  %v8231_v7 = vld [vmem:[#allocation8 + $0x120] sm:$0xff]  ;;  %v8228_v1 = vld [vmem:[#allocation8 + $0x108] sm:$0xff] }
 0x812   :  { %8040 = vmatpush1.bf16.msra.mxu0 %v13467_v46  ;;  %8081 = vmatpush1.bf16.msra.mxu1 %v13469_v57  ;;  %v13711_v46 = vcombine.high %v8195_v2, %v8199_v5  ;;  %v8200_v57 = vld [vmem:[#allocation8 + $0x28] sm:$0xff]  ;;  %v13759_v2 = vcombine.low %v8227_v22, %v8231_v7 }
 0x813   :  { %8041 = vmatprep.subr.bf16.mxu0 %v13473_v54  ;;  %8082 = vmatprep.subr.bf16.mxu1 %v14861_v21  ;;  %v8203_v54 = vld [vmem:[#allocation8 + $0x40] sm:$0xff]  ;;  %v13757_v21 = vcombine.high %v8227_v22, %v8231_v7  ;;  %v13785_v7 = vcombine.low %v8244_v25, %v8248_v13 }
 0x814   :  { %14863 = vst [vmem:[#allocation17_spill] sm:$0xff] %v13759_v2 }
 0x815   :  { %14872 = vst [vmem:[#allocation24_spill] sm:$0xff] %v13785_v7 }
 0x816   :  { %8042 = vmatpush1.bf16.msra.mxu0 %v14862_v38  ;;  %8083 = vmatpush1.bf16.msra.mxu1 %v13481_v49  ;;  %v8207_v49 = vld [vmem:[#allocation8 + $0x60] sm:$0xff]  ;;  %v8232_v38 = vld [vmem:[#allocation8 + $0x128] sm:$0xff] }
 0x817   :  { %8043 = vmatprep.subr.bf16.mxu0 %v13485_v0  ;;  %8084 = vmatprep.subr.bf16.mxu1 %v13487_v40  ;;  %v13713_v0 = vcombine.low %v8196_v10, %v8200_v57  ;;  %v13715_v40 = vcombine.high %v8196_v10, %v8200_v57  ;;  %v13724_v39 = vcombine.low %v8203_v54, %v8207_v49  ;;  %v8235_v57 = vld [vmem:[#allocation8 + $0x140] sm:$0xff] }
 0x818   :  { %v13761_v5 = vcombine.low %v8228_v1, %v8232_v38  ;;  %v13763_v10 = vcombine.high %v8228_v1, %v8232_v38  ;;  %v13787_v1 = vcombine.high %v8244_v25, %v8248_v13  ;;  %v8251_v38 = vld [vmem:[#allocation8 + $0x1c0] sm:$0xff] }
 0x81a   :  { %8044 = vmatpush1.bf16.msra.mxu0 %v13491_v61  ;;  %8085 = vmatpush1.bf16.msra.mxu1 %v13493_v18  ;;  %v8208_v61 = vld [vmem:[#allocation8 + $0x68] sm:$0xff]  ;;  %v8211_v18 = vld [vmem:[#allocation8 + $0x80] sm:$0xff]  ;;  %14864 = vst [vmem:[#allocation18_spill] sm:$0xff] %v13761_v5  ;;  %14865 = vst [vmem:[#allocation20_spill] sm:$0xff] %v13763_v10 }
 0x81b   :  { %8045 = vmatprep.subr.bf16.mxu0 %v13497_v31  ;;  %8086 = vmatprep.subr.bf16.mxu1 %v13499_v63  ;;  %v8215_v63 = vld [vmem:[#allocation8 + $0xa0] sm:$0xff]  ;;  %14873 = vst [vmem:[#allocation28_spill] sm:$0xff] %v13787_v1 }
 0x81c   :  { %v13730_v30 = vcombine.high %v8211_v18, %v8215_v63  ;;  %v13736_v3 = vcombine.low %v8211_v18, %v8215_v63 }
 0x81e   :  { %8046 = vmatpush1.bf16.msra.mxu0 %v13503_v4  ;;  %8087 = vmatpush1.bf16.msra.mxu1 %v13505_v62  ;;  %v13717_v4 = vcombine.high %v8203_v54, %v8207_v49  ;;  %v8204_v62 = vld [vmem:[#allocation8 + $0x48] sm:$0xff]  ;;  %v8239_v54 = vld [vmem:[#allocation8 + $0x160] sm:$0xff] }
 0x81f   :  { %8963 = vmatprep.subr.bf16.mxu0 %v13711_v46  ;;  %v13720_v31 = vcombine.high %v8204_v62, %v8208_v61  ;;  %9004 = vmatprep.subr.bf16.mxu1 %v13715_v40  ;;  %v13728_v59 = vcombine.low %v8204_v62, %v8208_v61  ;;  %v8236_v49 = vld [vmem:[#allocation8 + $0x148] sm:$0xff]  ;;  %v13769_v62 = vcombine.high %v8235_v57, %v8239_v54 }
 0x820   :  { %v8240_v61 = vld [vmem:[#allocation8 + $0x168] sm:$0xff]  ;;  %v13771_v18 = vcombine.low %v8235_v57, %v8239_v54  ;;  %v8255_v57 = vld [vmem:[#allocation8 + $0x1e0] sm:$0xff] }
 0x821   :  { %8048 = vmatmul.mubr.bf16.vlgmr.msra.gmra.mrb[60].mxu0 %v13601_v58  ;;  %8089 = vmatmul.mubr.bf16.vlgmr.msra.gmra.mrb[60].mxu1 %v13601_v58  ;;  %v8212_v58 = vld [vmem:[#allocation8 + $0x88] sm:$0xff]  ;;  %14866 = vst [vmem:[#allocation22_spill] sm:$0xff] %v13769_v62  ;;  %v13773_v63 = vcombine.low %v8236_v49, %v8240_v61 }
 0x822   :  { %8964 = vmatpush1.bf16.msra.mxu0 %v13709_v42  ;;  %9005 = vmatpush1.bf16.msra.mxu1 %v13713_v0  ;;  %v13733_v35 = vcombine.high %v8212_v58, %v8216_v29  ;;  %v13740_v8 = vcombine.low %v8212_v58, %v8216_v29  ;;  %14867 = vst [vmem:[#allocation23_spill] sm:$0xff] %v13771_v18  ;;  %v8243_v29 = vld [vmem:[#allocation8 + $0x180] sm:$0xff]  ;;  %v8252_v54 = vld [vmem:[#allocation8 + $0x1c8] sm:$0xff] }
 0x823   :  { %8965 = vmatprep.subr.bf16.mxu0 %v13717_v4  ;;  %9006 = vmatprep.subr.bf16.mxu1 %v13720_v31  ;;  %14868 = vst [vmem:[#allocation21_spill] sm:$0xff] %v13773_v63  ;;  %v13775_v58 = vcombine.high %v8236_v49, %v8240_v61  ;;  %v13781_v12 = vcombine.high %v8243_v29, %v8247_v32 }
 0x824   :  { %v13783_v22 = vcombine.low %v8243_v29, %v8247_v32  ;;  %v13793_v49 = vcombine.low %v8251_v38, %v8255_v57  ;;  %v13795_v61 = vcombine.high %v8251_v38, %v8255_v57  ;;  %v8256_v29 = vld [vmem:[#allocation8 + $0x1e8] sm:$0xff]  ;;  %v8259_v32 = vld [vmem:[#allocation8 + $0x200] sm:$0xff] }
 0x825   :  { %14869 = vst [vmem:[#allocation27_spill] sm:$0xff] %v13775_v58  ;;  %14870 = vst [vmem:[#allocation26_spill] sm:$0xff] %v13781_v12  ;;  %v13797_v25 = vcombine.low %v8252_v54, %v8256_v29  ;;  %v13799_v13 = vcombine.high %v8252_v54, %v8256_v29  ;;  %v8272_v38 = vld [vmem:[#allocation8 + $0x268] sm:$0xff] }
 0x826   :  { %8966 = vmatpush1.bf16.msra.mxu0 %v13724_v39  ;;  %9007 = vmatpush1.bf16.msra.mxu1 %v13728_v59  ;;  %14871 = vst [vmem:[#allocation25_spill] sm:$0xff] %v13783_v22  ;;  %14874 = vst [vmem:[#allocation29_spill] sm:$0xff] %v13793_v49 }
 0x827   :  { %8967 = vmatprep.subr.bf16.mxu0 %v13730_v30  ;;  %9008 = vmatprep.subr.bf16.mxu1 %v13733_v35  ;;  %14875 = vst [vmem:[#allocation30_spill] sm:$0xff] %v13795_v61  ;;  %14876 = vst [vmem:[#allocation31_spill] sm:$0xff] %v13797_v25 }
 0x828   :  { %14877 = vst [vmem:[#allocation32_spill] sm:$0xff] %v13799_v13 }
 0x82a   :  { %8968 = vmatpush1.bf16.msra.mxu0 %v13736_v3  ;;  %9009 = vmatpush1.bf16.msra.mxu1 %v13740_v8 }
 0x82b   :  { %8969 = vmatprep.subr.bf16.mxu0 %v13745_v50  ;;  %9010 = vmatprep.subr.bf16.mxu1 %v13751_v37 }
 0x82e   :  { %8970 = vmatpush1.bf16.msra.mxu0 %v13747_v16  ;;  %9011 = vmatpush1.bf16.msra.mxu1 %v13749_v43 }
 0x82f   :  { %8971 = vmatprep.subr.bf16.mxu0 %v13757_v21  ;;  %9012 = vmatprep.subr.bf16.mxu1 %v13763_v10  ;;  %v8276_v10 = vld [vmem:[#allocation8 + $0x288] sm:$0xff] }
 0x832   :  { %8972 = vmatpush1.bf16.msra.mxu0 %v13759_v2  ;;  %9013 = vmatpush1.bf16.msra.mxu1 %v13761_v5  ;;  %v8275_v5 = vld [vmem:[#allocation8 + $0x280] sm:$0xff] }
 0x833   :  { %8973 = vmatprep.subr.bf16.mxu0 %v13769_v62  ;;  %9014 = vmatprep.subr.bf16.mxu1 %v13775_v58  ;;  %v8268_v62 = vld [vmem:[#allocation8 + $0x248] sm:$0xff]  ;;  %v8279_v2 = vld [vmem:[#allocation8 + $0x2a0] sm:$0xff] }
 0x836   :  { %8974 = vmatpush1.bf16.msra.mxu0 %v13771_v18  ;;  %9015 = vmatpush1.bf16.msra.mxu1 %v13773_v63  ;;  %v8263_v63 = vld [vmem:[#allocation8 + $0x220] sm:$0xff] }
 0x837   :  { %8975 = vmatprep.subr.bf16.mxu0 %v13781_v12  ;;  %9016 = vmatprep.subr.bf16.mxu1 %v13787_v1  ;;  %v13801_v12 = vcombine.high %v8259_v32, %v8263_v63  ;;  %v8260_v1 = vld [vmem:[#allocation8 + $0x208] sm:$0xff]  ;;  %v8267_v18 = vld [vmem:[#allocation8 + $0x240] sm:$0xff]  ;;  %v13808_v57 = vcombine.low %v8259_v32, %v8263_v63 }
 0x839   :  { %14878 = vst [vmem:[#allocation33_spill] sm:$0xff] %v13801_v12  ;;  %14880 = vst [vmem:[#allocation35_spill] sm:$0xff] %v13808_v57 }
 0x83a   :  { %8976 = vmatpush1.bf16.msra.mxu0 %v13783_v22  ;;  %9017 = vmatpush1.bf16.msra.mxu1 %v13785_v7  ;;  %v8264_v22 = vld [vmem:[#allocation8 + $0x228] sm:$0xff]  ;;  %v8271_v7 = vld [vmem:[#allocation8 + $0x260] sm:$0xff] }
 0x83b   :  { %8977 = vmatprep.subr.bf16.mxu0 %v13795_v61  ;;  %v13804_v58 = vcombine.high %v8260_v1, %v8264_v22  ;;  %9018 = vmatprep.subr.bf16.mxu1 %v13799_v13  ;;  %v13812_v54 = vcombine.low %v8260_v1, %v8264_v22  ;;  %v13814_v29 = vcombine.high %v8267_v18, %v8271_v7  ;;  %v8280_v13 = vld [vmem:[#allocation8 + $0x2a8] sm:$0xff] }
 0x83c   :  { %v13817_v61 = vcombine.high %v8268_v62, %v8272_v38  ;;  %v13820_v63 = vcombine.low %v8267_v18, %v8271_v7  ;;  %v13824_v22 = vcombine.low %v8268_v62, %v8272_v38  ;;  %v13826_v1 = vcombine.high %v8275_v5, %v8279_v2 }
 0x83d   :  { %14879 = vst [vmem:[#allocation34_spill] sm:$0xff] %v13804_v58  ;;  %14881 = vst [vmem:[#allocation36_spill] sm:$0xff] %v13812_v54  ;;  %v13829_v32 = vcombine.high %v8276_v10, %v8280_v13  ;;  %v13832_v18 = vcombine.low %v8275_v5, %v8279_v2  ;;  %v13836_v62 = vcombine.low %v8276_v10, %v8280_v13 }
 0x83e   :  { %8978 = vmatpush1.bf16.msra.mxu0 %v13793_v49  ;;  %9019 = vmatpush1.bf16.msra.mxu1 %v13797_v25  ;;  %14882 = vst [vmem:[#allocation37_spill] sm:$0xff] %v13814_v29  ;;  %14883 = vst [vmem:[#allocation38_spill] sm:$0xff] %v13817_v61  ;;  %v8284_v25 = vld [vmem:[#allocation8 + $0x2c8] sm:$0xff] }
 0x83f   :  { %8979 = vmatprep.subr.bf16.mxu0 %v13801_v12  ;;  %9020 = vmatprep.subr.bf16.mxu1 %v13804_v58  ;;  %14884 = vst [vmem:[#allocation39_spill] sm:$0xff] %v13820_v63  ;;  %14885 = vst [vmem:[#allocation40_spill] sm:$0xff] %v13824_v22  ;;  %v8283_v58 = vld [vmem:[#allocation8 + $0x2c0] sm:$0xff]  ;;  %v8288_v49 = vld [vmem:[#allocation8 + $0x2e8] sm:$0xff] }
 0x840   :  { %14886 = vst [vmem:[#allocation41_spill] sm:$0xff] %v13826_v1  ;;  %14887 = vst [vmem:[#allocation42_spill] sm:$0xff] %v13829_v32  ;;  %v8287_v12 = vld [vmem:[#allocation8 + $0x2e0] sm:$0xff]  ;;  %v13841_v38 = vcombine.high %v8284_v25, %v8288_v49  ;;  %v13848_v5 = vcombine.low %v8284_v25, %v8288_v49 }
 0x841   :  { %14888 = vst [vmem:[#allocation43_spill] sm:$0xff] %v13832_v18  ;;  %14889 = vst [vmem:[#allocation44_spill] sm:$0xff] %v13836_v62  ;;  %v13838_v7 = vcombine.high %v8283_v58, %v8287_v12  ;;  %v13844_v2 = vcombine.low %v8283_v58, %v8287_v12 }
 0x842   :  { %8980 = vmatpush1.bf16.msra.mxu0 %v13808_v57  ;;  %9021 = vmatpush1.bf16.msra.mxu1 %v13812_v54  ;;  %14891 = vst [vmem:[#allocation46_spill] sm:$0xff] %v13841_v38  ;;  %v8292_v54 = vld [vmem:[#allocation8 + $0x308] sm:$0xff]  ;;  %14893 = vst [vmem:[#allocation48_spill] sm:$0xff] %v13848_v5 }
 0x843   :  { %8981 = vmatprep.subr.bf16.mxu0 %v13814_v29  ;;  %9022 = vmatprep.subr.bf16.mxu1 %v13817_v61  ;;  %14890 = vst [vmem:[#allocation45_spill] sm:$0xff] %v13838_v7  ;;  %v8291_v61 = vld [vmem:[#allocation8 + $0x300] sm:$0xff]  ;;  %v8296_v57 = vld [vmem:[#allocation8 + $0x328] sm:$0xff]  ;;  %14892 = vst [vmem:[#allocation47_spill] sm:$0xff] %v13844_v2 }
 0x844   :  { %v8295_v29 = vld [vmem:[#allocation8 + $0x320] sm:$0xff]  ;;  %v13853_v13 = vcombine.high %v8292_v54, %v8296_v57  ;;  %v13860_v12 = vcombine.low %v8292_v54, %v8296_v57 }
 0x845   :  { %v13850_v10 = vcombine.high %v8291_v61, %v8295_v29  ;;  %v13856_v58 = vcombine.low %v8291_v61, %v8295_v29 }
 0x846   :  { %8982 = vmatpush1.bf16.msra.mxu0 %v13820_v63  ;;  %9023 = vmatpush1.bf16.msra.mxu1 %v13824_v22  ;;  %14895 = vst [vmem:[#allocation50_spill] sm:$0xff] %v13853_v13  ;;  %v8300_v22 = vld [vmem:[#allocation8 + $0x348] sm:$0xff]  ;;  %14897 = vst [vmem:[#allocation52_spill] sm:$0xff] %v13860_v12 }
 0x847   :  { %8983 = vmatprep.subr.bf16.mxu0 %v13826_v1  ;;  %9024 = vmatprep.subr.bf16.mxu1 %v13829_v32  ;;  %14894 = vst [vmem:[#allocation49_spill] sm:$0xff] %v13850_v10  ;;  %v8299_v32 = vld [vmem:[#allocation8 + $0x340] sm:$0xff]  ;;  %v8304_v63 = vld [vmem:[#allocation8 + $0x368] sm:$0xff]  ;;  %14896 = vst [vmem:[#allocation51_spill] sm:$0xff] %v13856_v58 }
 0x848   :  { %v8303_v1 = vld [vmem:[#allocation8 + $0x360] sm:$0xff]  ;;  %v13865_v25 = vcombine.high %v8300_v22, %v8304_v63  ;;  %v13872_v57 = vcombine.low %v8300_v22, %v8304_v63 }
 0x849   :  { %v13862_v49 = vcombine.high %v8299_v32, %v8303_v1  ;;  %v13868_v61 = vcombine.low %v8299_v32, %v8303_v1 }
 0x84a   :  { %8984 = vmatpush1.bf16.msra.mxu0 %v13832_v18  ;;  %9025 = vmatpush1.bf16.msra.mxu1 %v13836_v62  ;;  %14899 = vst [vmem:[#allocation54_spill] sm:$0xff] %v13865_v25  ;;  %v8308_v62 = vld [vmem:[#allocation8 + $0x388] sm:$0xff]  ;;  %14901 = vst [vmem:[#allocation56_spill] sm:$0xff] %v13872_v57 }
 0x84b   :  { %8985 = vmatprep.subr.bf16.mxu0 %v13838_v7  ;;  %9026 = vmatprep.subr.bf16.mxu1 %v13841_v38  ;;  %14898 = vst [vmem:[#allocation53_spill] sm:$0xff] %v13862_v49  ;;  %v8307_v38 = vld [vmem:[#allocation8 + $0x380] sm:$0xff]  ;;  %v8312_v18 = vld [vmem:[#allocation8 + $0x3a8] sm:$0xff]  ;;  %14900 = vst [vmem:[#allocation55_spill] sm:$0xff] %v13868_v61 }
 0x84c   :  { %v8311_v7 = vld [vmem:[#allocation8 + $0x3a0] sm:$0xff]  ;;  %v13877_v29 = vcombine.high %v8308_v62, %v8312_v18  ;;  %v13884_v63 = vcombine.low %v8308_v62, %v8312_v18 }
 0x84d   :  { %v13874_v54 = vcombine.high %v8307_v38, %v8311_v7  ;;  %v13880_v1 = vcombine.low %v8307_v38, %v8311_v7 }
 0x84e   :  { %8986 = vmatpush1.bf16.msra.mxu0 %v13844_v2  ;;  %9027 = vmatpush1.bf16.msra.mxu1 %v13848_v5  ;;  %14903 = vst [vmem:[#allocation58_spill] sm:$0xff] %v13877_v29  ;;  %v8316_v5 = vld [vmem:[#allocation8 + $0x3c8] sm:$0xff]  ;;  %14905 = vst [vmem:[#allocation60_spill] sm:$0xff] %v13884_v63 }
 0x84f   :  { %8987 = vmatprep.subr.bf16.mxu0 %v13850_v10  ;;  %9028 = vmatprep.subr.bf16.mxu1 %v13853_v13  ;;  %14902 = vst [vmem:[#allocation57_spill] sm:$0xff] %v13874_v54  ;;  %v8315_v13 = vld [vmem:[#allocation8 + $0x3c0] sm:$0xff]  ;;  %v8320_v2 = vld [vmem:[#allocation8 + $0x3e8] sm:$0xff]  ;;  %14904 = vst [vmem:[#allocation59_spill] sm:$0xff] %v13880_v1 }
 0x850   :  { %v8319_v10 = vld [vmem:[#allocation8 + $0x3e0] sm:$0xff]  ;;  %v13889_v32 = vcombine.high %v8316_v5, %v8320_v2  ;;  %v13896_v7 = vcombine.low %v8316_v5, %v8320_v2 }
 0x851   :  { %v13886_v22 = vcombine.high %v8315_v13, %v8319_v10 }
 0x852   :  { %8988 = vmatpush1.bf16.msra.mxu0 %v13856_v58  ;;  %9029 = vmatpush1.bf16.msra.mxu1 %v13860_v12  ;;  %14907 = vst [vmem:[#allocation62_spill] sm:$0xff] %v13889_v32  ;;  %14909 = vst [vmem:[#allocation64_spill] sm:$0xff] %v13896_v7 }
 0x853   :  { %8989 = vmatprep.subr.bf16.mxu0 %v13862_v49  ;;  %9030 = vmatprep.subr.bf16.mxu1 %v13865_v25  ;;  %14906 = vst [vmem:[#allocation61_spill] sm:$0xff] %v13886_v22  ;;  %v13892_v25 = vcombine.low %v8315_v13, %v8319_v10 }
 0x855   :  { %14908 = vst [vmem:[#allocation63_spill] sm:$0xff] %v13892_v25 }
 0x856   :  { %8990 = vmatpush1.bf16.msra.mxu0 %v13868_v61  ;;  %9031 = vmatpush1.bf16.msra.mxu1 %v13872_v57 }
 0x857   :  { %8991 = vmatprep.subr.bf16.mxu0 %v13874_v54  ;;  %9032 = vmatprep.subr.bf16.mxu1 %v13877_v29 }
 0x85a   :  { %8992 = vmatpush1.bf16.msra.mxu0 %v13880_v1  ;;  %9033 = vmatpush1.bf16.msra.mxu1 %v13884_v63 }
 0x85b   :  { %8993 = vmatprep.subr.bf16.mxu0 %v13886_v22  ;;  %9034 = vmatprep.subr.bf16.mxu1 %v13889_v32 }
 0x85e   :  { %8994 = vmatpush1.bf16.msra.mxu0 %v13892_v25  ;;  %9035 = vmatpush1.bf16.msra.mxu1 %v13896_v7 }
 0x85f   :  { %9045 = vmatprep.subr.bf16.mxu0 %v13577_v6  ;;  %9086 = vmatprep.subr.bf16.mxu1 %v13583_v26 }
 0x8b4   :  { %v7967_v18 = vpop.f32.mrb[56].mxu0  ;;  %v8008_v62 = vpop.f32.mrb[56].mxu1 }
 0x8b5   :  { %v7969_v38 = vpop.f32.mrb[57].mxu0  ;;  %v8010_v10 = vpop.f32.mrb[57].mxu1 }
 0x8b6   :  { %v8105_v13 = vcombine.low %v7967_v18, %v7969_v38  ;;  %v8106_v63 = vcombine.low %v8008_v62, %v8010_v10  ;;  %v7971_v1 = vpop.f32.mrb[58].mxu0  ;;  %v8012_v22 = vpop.f32.mrb[58].mxu1  ;;  %v7163_v38 = vld [vmem:[#allocation2 + $0x5] ss:$8 sm:$0xf0] }
 0x8b7   :  { %v7972_v2 = vpop.f32.mrb[59].mxu0  ;;  %v8013_v5 = vpop.f32.mrb[59].mxu1 }
 0x8b8   :  { %v8115_v32 = vrot.slane %v8105_v13, %v12477_v28  ;;  %v8122_v25 = vrot.slane %v8106_v63, %v12477_v28  ;;  %v7162_v63 = vld [vmem:[#allocation2 + $0x5] ss:$8 sm:$0xf] }
 0x8ba   :  { %v8137_v29 = vcombine.low %v8115_v32, %v8122_v25  ;;  %v7164_v32 = vor.u32 %v7163_v38, %v7162_v63 }
 0x8bc   :  { %v8145_v10 = vrot.slane %v8137_v29, %v12477_v28 }
 0x8f4   :  { %v8049_v7 = vpop.f32.mrb[60].mxu0  ;;  %v8090_v54 = vpop.f32.mrb[60].mxu1 }
 0x8f5   :  { %v8051_v6 = vpop.f32.mrb[61].mxu0  ;;  %v8092_v57 = vpop.f32.mrb[61].mxu1 }
 0x8f6   :  { %v8107_v26 = vcombine.low %v8049_v7, %v8051_v6  ;;  %v8108_v61 = vcombine.low %v8090_v54, %v8092_v57  ;;  %v8053_v49 = vpop.f32.mrb[62].mxu0  ;;  %v8094_v12 = vpop.f32.mrb[62].mxu1 }
 0x8f7   :  { %v8054_v58 = vpop.f32.mrb[63].mxu0  ;;  %v8095_v18 = vpop.f32.mrb[63].mxu1 }
 0x8f8   :  { %v8129_v1 = vrot.slane %v8107_v26, %v12477_v28  ;;  %v8136_v22 = vrot.slane %v8108_v61, %v12477_v28 }
 0x8fa   :  { %v8138_v62 = vcombine.low %v8129_v1, %v8136_v22 }
 0x8fc   :  { %v8152_v25 = vrot.slane %v8138_v62, %v12477_v28 }
 0x8fe   :  { %v8153_v13 = vcombine.low %v8145_v10, %v8152_v25 }
 0x900   :  { %v8155_v2 = vadd.f32 %v8153_v13, %v7164_v32  ;;  %v8266_v32 = vld [vmem:[#allocation8 + $0x238] sm:$0xff] }
 0x902   :  { %11798 = vtanh.f32 %v8155_v2 }
 0x90c   :  { %v11799_v57 = vpop.eup %11798 }
 0x90d   :  { %v8157_v49 = vmul.f32 0.5, %v11799_v57  ;;  %v8160_v12 = vrot.slane %v11799_v57, 2  ;;  %v8169_v5 = vrot.slane %v11799_v57, 4  ;;  %v8164_v29 = vrot.slane %v11799_v57, 6  ;;  %v8269_v57 = vld [vmem:[#allocation8 + $0x250] sm:$0xff] }
 0x90f   :  { %v8158_v58 = vadd.f32 0.5, %v8157_v49  ;;  %v8162_v54 = vmul.f32 0.5, %v8160_v12  ;;  %v8166_v18 = vmul.f32 0.5, %v8164_v29  ;;  %v8273_v49 = vld [vmem:[#allocation8 + $0x270] sm:$0xff]  ;;  %v8270_v12 = vld [vmem:[#allocation8 + $0x258] sm:$0xff] }
 0x910   :  { %v8281_v29 = vld [vmem:[#allocation8 + $0x2b0] sm:$0xff] }
 0x911   :  { %v8163_v7 = vadd.f32 0.5, %v8162_v54  ;;  %v8171_v6 = vmul.f32 %v8169_v5, %v8158_v58  ;;  %v8167_v1 = vadd.f32 0.5, %v8166_v18  ;;  %v8274_v58 = vld [vmem:[#allocation8 + $0x278] sm:$0xff]  ;;  %v13977_v5 = vcombine.high %v8269_v57, %v8273_v49 }
 0x912   :  { %v8278_v18 = vld [vmem:[#allocation8 + $0x298] sm:$0xff] }
 0x913   :  { %v8168_v61 = vmul.f32 %v8163_v7, %v13594_v36  ;;  %v8245_v36 = vld [vmem:[#allocation8 + $0x190] sm:$0xff] }
 0x915   :  { %v13910_v26 = vadd.f32 %v8171_v6, %v8168_v61  ;;  %v13979_v61 = vcombine.high %v8270_v12, %v8274_v58  ;;  %v8277_v6 = vld [vmem:[#allocation8 + $0x290] sm:$0xff] }
 0x917   :  { %11800 = vtanh.f32 %v13910_v26 }
 0x921   :  { %v11801_v22 = vpop.eup %11800 }
 0x922   :  { %v8174_v62 = vmul.f32 %v11801_v22, %v8167_v1  ;;  %v8282_v1 = vld [vmem:[#allocation8 + $0x2b8] sm:$0xff]  ;;  %v13983_v22 = vcombine.low %v8269_v57, %v8273_v49  ;;  %v8301_v49 = vld [vmem:[#allocation8 + $0x350] sm:$0xff] }
 0x924   :  { %v8183_v38 = vrot.slane %v8174_v62, %v12394_v27  ;;  %8189 = vst.msk [vmem:[#allocation3 + $0x5] ss:$8 sm:$0x3] %vm12489_vm0, %v8174_v62  ;;  %v8179_v10 = vrot.slane %v8174_v62, %v12383_v19  ;;  %v13985_v62 = vcombine.low %v8270_v12, %v8274_v58  ;;  %v8305_v12 = vld [vmem:[#allocation8 + $0x370] sm:$0xff]  ;;  %v8302_v58 = vld [vmem:[#allocation8 + $0x358] sm:$0xff] }
 0x926   :  { %v8187_v25 = vpack.c.bf16 %v8183_v38, %v8183_v38  ;;  %v13917_v63 = vpack.c.bf16 %v8179_v10, %v8179_v10  ;;  %v13989_v38 = vcombine.high %v8277_v6, %v8281_v29  ;;  %v13991_v10 = vcombine.high %v8278_v18, %v8282_v1 }
 0x928   :  { %8995 = vmatprep.mubr.bf16.mxu0 %v8187_v25  ;;  %9036 = vmatprep.mubr.bf16.mxu1 %v8187_v25 }
 0x929   :  { %8996 = vmatmul.mubr.bf16.vlgmr.msra.gmra.mrb[64].mxu0 %v13917_v63  ;;  %9037 = vmatmul.mubr.bf16.vlgmr.msra.gmra.mrb[64].mxu1 %v13917_v63 }
 0x92a   :  { %9046 = vmatpush1.bf16.msra.mxu0 %v13579_v9  ;;  %9087 = vmatpush1.bf16.msra.mxu1 %v13581_v24  ;;  %v14910_v9 = vld [vmem:[#allocation16_spill] sm:$0xff]  ;;  %v14911_v24 = vld [vmem:[#allocation19_spill] sm:$0xff] }
 0x92b   :  { %9077 = vmatprep.mubr.bf16.mxu0 %v8187_v25  ;;  %9118 = vmatprep.mubr.bf16.mxu1 %v8187_v25  ;;  %v8285_v25 = vld [vmem:[#allocation8 + $0x2d0] sm:$0xff] }
 0x92c   :  { %9047 = vmatprep.subr.bf16.mxu0 %v13603_v14  ;;  %9088 = vmatprep.subr.bf16.mxu1 %v13605_v60  ;;  %v8249_v14 = vld [vmem:[#allocation8 + $0x1b0] sm:$0xff]  ;;  %v8246_v60 = vld [vmem:[#allocation8 + $0x198] sm:$0xff] }
 0x92e   :  { %9048 = vmatpush1.bf16.msra.mxu0 %v13611_v34  ;;  %9089 = vmatpush1.bf16.msra.mxu1 %v13613_v45  ;;  %v8250_v34 = vld [vmem:[#allocation8 + $0x1b8] sm:$0xff]  ;;  %v13941_v45 = vcombine.high %v8245_v36, %v8249_v14 }
 0x92f   :  { %9049 = vmatprep.subr.bf16.mxu0 %v13615_v44  ;;  %9090 = vmatprep.subr.bf16.mxu1 %v13617_v55  ;;  %v13943_v44 = vcombine.high %v8246_v60, %v8250_v34  ;;  %v8253_v55 = vld [vmem:[#allocation8 + $0x1d0] sm:$0xff] }
 0x932   :  { %9050 = vmatpush1.bf16.msra.mxu0 %v13623_v23  ;;  %9091 = vmatpush1.bf16.msra.mxu1 %v13625_v15  ;;  %v8257_v23 = vld [vmem:[#allocation8 + $0x1f0] sm:$0xff]  ;;  %v8254_v15 = vld [vmem:[#allocation8 + $0x1d8] sm:$0xff] }
 0x933   :  { %9051 = vmatprep.subr.bf16.mxu0 %v13629_v11  ;;  %9092 = vmatprep.subr.bf16.mxu1 %v14910_v9  ;;  %v8258_v11 = vld [vmem:[#allocation8 + $0x1f8] sm:$0xff]  ;;  %v8289_v9 = vld [vmem:[#allocation8 + $0x2f0] sm:$0xff] }
 0x936   :  { %9052 = vmatpush1.bf16.msra.mxu0 %v14911_v24  ;;  %9093 = vmatpush1.bf16.msra.mxu1 %v13637_v33  ;;  %v13947_v33 = vcombine.low %v8245_v36, %v8249_v14  ;;  %v8286_v24 = vld [vmem:[#allocation8 + $0x2d8] sm:$0xff]  ;;  %v13995_v14 = vcombine.low %v8277_v6, %v8281_v29 }
 0x937   :  { %9053 = vmatprep.subr.bf16.mxu0 %v13641_v56  ;;  %9094 = vmatprep.subr.bf16.mxu1 %v13643_v51  ;;  %v13949_v56 = vcombine.low %v8246_v60, %v8250_v34  ;;  %v13953_v51 = vcombine.high %v8253_v55, %v8257_v23  ;;  %v8290_v36 = vld [vmem:[#allocation8 + $0x2f8] sm:$0xff]  ;;  %v13997_v60 = vcombine.low %v8278_v18, %v8282_v1 }
 0x938   :  { %v14001_v34 = vcombine.high %v8285_v25, %v8289_v9  ;;  %v8306_v6 = vld [vmem:[#allocation8 + $0x378] sm:$0xff]  ;;  %v14025_v1 = vcombine.high %v8301_v49, %v8305_v12 }
 0x93a   :  { %9054 = vmatpush1.bf16.msra.mxu0 %v13647_v53  ;;  %9095 = vmatpush1.bf16.msra.mxu1 %v13649_v47  ;;  %v13955_v53 = vcombine.high %v8254_v15, %v8258_v11  ;;  %v8261_v47 = vld [vmem:[#allocation8 + $0x210] sm:$0xff] }
 0x93b   :  { %9055 = vmatprep.subr.bf16.mxu0 %v13653_v17  ;;  %9096 = vmatprep.subr.bf16.mxu1 %v13655_v20  ;;  %v8265_v17 = vld [vmem:[#allocation8 + $0x230] sm:$0xff]  ;;  %v8262_v20 = vld [vmem:[#allocation8 + $0x218] sm:$0xff] }
 0x93c   :  { %v13965_v13 = vcombine.high %v8261_v47, %v8265_v17  ;;  %v13967_v2 = vcombine.high %v8262_v20, %v8266_v32  ;;  %v13971_v54 = vcombine.low %v8261_v47, %v8265_v17  ;;  %v13973_v7 = vcombine.low %v8262_v20, %v8266_v32  ;;  %v8298_v47 = vld [vmem:[#allocation8 + $0x338] sm:$0xff] }
 0x93d   :  { %v14007_v17 = vcombine.low %v8285_v25, %v8289_v9  ;;  %v14009_v20 = vcombine.low %v8286_v24, %v8290_v36  ;;  %v14027_v25 = vcombine.high %v8302_v58, %v8306_v6  ;;  %v8309_v9 = vld [vmem:[#allocation8 + $0x390] sm:$0xff] }
 0x93e   :  { %9056 = vmatpush1.bf16.msra.mxu0 %v13659_v52  ;;  %9097 = vmatpush1.bf16.msra.mxu1 %v13661_v48  ;;  %v13959_v52 = vcombine.low %v8253_v55, %v8257_v23  ;;  %v13961_v48 = vcombine.low %v8254_v15, %v8258_v11  ;;  %v14003_v55 = vcombine.high %v8286_v24, %v8290_v36  ;;  %v8293_v23 = vld [vmem:[#allocation8 + $0x310] sm:$0xff]  ;;  %v8294_v11 = vld [vmem:[#allocation8 + $0x318] sm:$0xff] }
 0x93f   :  { %9057 = vmatprep.subr.bf16.mxu0 %v13941_v45  ;;  %9098 = vmatprep.subr.bf16.mxu1 %v13943_v44  ;;  %v8297_v15 = vld [vmem:[#allocation8 + $0x330] sm:$0xff]  ;;  %14913 = vst [vmem:[#allocation66_spill] sm:$0xff] %v14007_v17  ;;  %14914 = vst [vmem:[#allocation11_spill] sm:$0xff] %v14009_v20  ;;  %v14015_v57 = vcombine.high %v8294_v11, %v8298_v47  ;;  %v14021_v18 = vcombine.low %v8294_v11, %v8298_v47  ;;  %v8310_v36 = vld [vmem:[#allocation8 + $0x398] sm:$0xff] }
 0x940   :  { %14912 = vst [vmem:[#allocation65_spill] sm:$0xff] %v14003_v55  ;;  %v14013_v32 = vcombine.high %v8293_v23, %v8297_v15  ;;  %v14019_v29 = vcombine.low %v8293_v23, %v8297_v15  ;;  %14917 = vst [vmem:[#allocation13_spill] sm:$0xff] %v14027_v25  ;;  %v8313_v24 = vld [vmem:[#allocation8 + $0x3b0] sm:$0xff]  ;;  %v14031_v23 = vcombine.low %v8301_v49, %v8305_v12 }
 0x941   :  { %14916 = vst [vmem:[#allocation15_spill] sm:$0xff] %v14015_v57  ;;  %v14033_v15 = vcombine.low %v8302_v58, %v8306_v6  ;;  %v14037_v11 = vcombine.high %v8309_v9, %v8313_v24  ;;  %v14043_v49 = vcombine.low %v8309_v9, %v8313_v24  ;;  %v14942_v9 = vld [vmem:[#allocation41_spill] sm:$0xff]  ;;  %v14943_v24 = vld [vmem:[#allocation42_spill] sm:$0xff] }
 0x942   :  { %9058 = vmatpush1.bf16.msra.mxu0 %v13947_v33  ;;  %9099 = vmatpush1.bf16.msra.mxu1 %v13949_v56  ;;  %14915 = vst [vmem:[#allocation12_spill] sm:$0xff] %v14013_v32  ;;  %14918 = vst [vmem:[#allocation14_spill] sm:$0xff] %v14031_v23 }
 0x943   :  { %9059 = vmatprep.subr.bf16.mxu0 %v13953_v51  ;;  %9100 = vmatprep.subr.bf16.mxu1 %v13955_v53 }
 0x946   :  { %9060 = vmatpush1.bf16.msra.mxu0 %v13959_v52  ;;  %9101 = vmatpush1.bf16.msra.mxu1 %v13961_v48 }
 0x947   :  { %9061 = vmatprep.subr.bf16.mxu0 %v13965_v13  ;;  %9102 = vmatprep.subr.bf16.mxu1 %v13967_v2 }
 0x94a   :  { %9062 = vmatpush1.bf16.msra.mxu0 %v13971_v54  ;;  %9103 = vmatpush1.bf16.msra.mxu1 %v13973_v7 }
 0x94b   :  { %9063 = vmatprep.subr.bf16.mxu0 %v13977_v5  ;;  %9104 = vmatprep.subr.bf16.mxu1 %v13979_v61 }
 0x94e   :  { %9064 = vmatpush1.bf16.msra.mxu0 %v13983_v22  ;;  %9105 = vmatpush1.bf16.msra.mxu1 %v13985_v62 }
 0x94f   :  { %9065 = vmatprep.subr.bf16.mxu0 %v13989_v38  ;;  %9106 = vmatprep.subr.bf16.mxu1 %v13991_v10 }
 0x952   :  { %9066 = vmatpush1.bf16.msra.mxu0 %v13995_v14  ;;  %9107 = vmatpush1.bf16.msra.mxu1 %v13997_v60 }
 0x953   :  { %9067 = vmatprep.subr.bf16.mxu0 %v14001_v34  ;;  %9108 = vmatprep.subr.bf16.mxu1 %v14003_v55  ;;  %v8314_v55 = vld [vmem:[#allocation8 + $0x3b8] sm:$0xff] }
 0x954   :  { %v14039_v47 = vcombine.high %v8310_v36, %v8314_v55  ;;  %v14045_v12 = vcombine.low %v8310_v36, %v8314_v55  ;;  %v14937_v55 = vld [vmem:[#allocation36_spill] sm:$0xff]  ;;  %v14944_v36 = vld [vmem:[#allocation43_spill] sm:$0xff] }
 0x956   :  { %9068 = vmatpush1.bf16.msra.mxu0 %v14007_v17  ;;  %9109 = vmatpush1.bf16.msra.mxu1 %v14009_v20  ;;  %v8318_v20 = vld [vmem:[#allocation8 + $0x3d8] sm:$0xff] }
 0x957   :  { %9069 = vmatprep.subr.bf16.mxu0 %v14013_v32  ;;  %9110 = vmatprep.subr.bf16.mxu1 %v14015_v57  ;;  %v8317_v57 = vld [vmem:[#allocation8 + $0x3d0] sm:$0xff]  ;;  %v8322_v17 = vld [vmem:[#allocation8 + $0x3f8] sm:$0xff] }
 0x958   :  { %v8321_v32 = vld [vmem:[#allocation8 + $0x3f0] sm:$0xff]  ;;  %v14051_v6 = vcombine.high %v8318_v20, %v8322_v17 }
 0x959   :  { %v14049_v58 = vcombine.high %v8317_v57, %v8321_v32 }
 0x95a   :  { %9070 = vmatpush1.bf16.msra.mxu0 %v14019_v29  ;;  %9111 = vmatpush1.bf16.msra.mxu1 %v14021_v18 }
 0x95b   :  { %9071 = vmatprep.subr.bf16.mxu0 %v14025_v1  ;;  %9112 = vmatprep.subr.bf16.mxu1 %v14027_v25  ;;  %v14055_v25 = vcombine.low %v8317_v57, %v8321_v32  ;;  %v14940_v32 = vld [vmem:[#allocation39_spill] sm:$0xff]  ;;  %v14941_v57 = vld [vmem:[#allocation40_spill] sm:$0xff] }
 0x95e   :  { %9072 = vmatpush1.bf16.msra.mxu0 %v14031_v23  ;;  %9113 = vmatpush1.bf16.msra.mxu1 %v14033_v15  ;;  %v14057_v23 = vcombine.low %v8318_v20, %v8322_v17  ;;  %v14938_v17 = vld [vmem:[#allocation37_spill] sm:$0xff]  ;;  %v14939_v20 = vld [vmem:[#allocation38_spill] sm:$0xff] }
 0x95f   :  { %9073 = vmatprep.subr.bf16.mxu0 %v14037_v11  ;;  %9114 = vmatprep.subr.bf16.mxu1 %v14039_v47 }
 0x962   :  { %9074 = vmatpush1.bf16.msra.mxu0 %v14043_v49  ;;  %9115 = vmatpush1.bf16.msra.mxu1 %v14045_v12 }
 0x963   :  { %9075 = vmatprep.subr.bf16.mxu0 %v14049_v58  ;;  %9116 = vmatprep.subr.bf16.mxu1 %v14051_v6 }
 0x966   :  { %9076 = vmatpush1.bf16.msra.mxu0 %v14055_v25  ;;  %9117 = vmatpush1.bf16.msra.mxu1 %v14057_v23 }
 0x967   :  { %9993 = vmatprep.subr.bf16.mxu0 %v13711_v46  ;;  %10034 = vmatprep.subr.bf16.mxu1 %v13715_v40  ;;  %v14920_v46 = vld [vmem:[#allocation17_spill] sm:$0xff]  ;;  %v14922_v40 = vld [vmem:[#allocation22_spill] sm:$0xff] }
 0x969   :  { %9078 = vmatmul.mubr.bf16.vlgmr.msra.gmra.mrb[68].mxu0 %v13917_v63  ;;  %9119 = vmatmul.mubr.bf16.vlgmr.msra.gmra.mrb[68].mxu1 %v13917_v63  ;;  %v14936_v63 = vld [vmem:[#allocation35_spill] sm:$0xff] }
 0x96a   :  { %9994 = vmatpush1.bf16.msra.mxu0 %v13709_v42  ;;  %10035 = vmatpush1.bf16.msra.mxu1 %v13713_v0  ;;  %v14919_v42 = vld [vmem:[#allocation20_spill] sm:$0xff]  ;;  %v14921_v0 = vld [vmem:[#allocation18_spill] sm:$0xff] }
 0x96b   :  { %9995 = vmatprep.subr.bf16.mxu0 %v13717_v4  ;;  %10036 = vmatprep.subr.bf16.mxu1 %v13720_v31  ;;  %v14923_v4 = vld [vmem:[#allocation27_spill] sm:$0xff] }
 0x96c   :  { %v14924_v31 = vld [vmem:[#allocation23_spill] sm:$0xff] }
 0x96e   :  { %9996 = vmatpush1.bf16.msra.mxu0 %v13724_v39  ;;  %10037 = vmatpush1.bf16.msra.mxu1 %v13728_v59  ;;  %v14925_v39 = vld [vmem:[#allocation21_spill] sm:$0xff]  ;;  %v14926_v59 = vld [vmem:[#allocation26_spill] sm:$0xff] }
 0x96f   :  { %9997 = vmatprep.subr.bf16.mxu0 %v13730_v30  ;;  %10038 = vmatprep.subr.bf16.mxu1 %v13733_v35  ;;  %v14927_v30 = vld [vmem:[#allocation28_spill] sm:$0xff]  ;;  %v14928_v35 = vld [vmem:[#allocation25_spill] sm:$0xff] }
 0x972   :  { %9998 = vmatpush1.bf16.msra.mxu0 %v13736_v3  ;;  %10039 = vmatpush1.bf16.msra.mxu1 %v13740_v8  ;;  %v14929_v3 = vld [vmem:[#allocation24_spill] sm:$0xff]  ;;  %v14930_v8 = vld [vmem:[#allocation30_spill] sm:$0xff] }
 0x973   :  { %9999 = vmatprep.subr.bf16.mxu0 %v13745_v50  ;;  %10040 = vmatprep.subr.bf16.mxu1 %v13751_v37  ;;  %v14931_v50 = vld [vmem:[#allocation32_spill] sm:$0xff]  ;;  %v14934_v37 = vld [vmem:[#allocation33_spill] sm:$0xff] }
 0x976   :  { %10000 = vmatpush1.bf16.msra.mxu0 %v13747_v16  ;;  %10041 = vmatpush1.bf16.msra.mxu1 %v13749_v43  ;;  %v14932_v16 = vld [vmem:[#allocation29_spill] sm:$0xff]  ;;  %v14933_v43 = vld [vmem:[#allocation31_spill] sm:$0xff] }
 0x977   :  { %10001 = vmatprep.subr.bf16.mxu0 %v13757_v21  ;;  %10042 = vmatprep.subr.bf16.mxu1 %v14919_v42  ;;  %v14935_v21 = vld [vmem:[#allocation34_spill] sm:$0xff]  ;;  %v14945_v42 = vld [vmem:[#allocation44_spill] sm:$0xff] }
 0x97a   :  { %10002 = vmatpush1.bf16.msra.mxu0 %v14920_v46  ;;  %10043 = vmatpush1.bf16.msra.mxu1 %v14921_v0  ;;  %v14946_v46 = vld [vmem:[#allocation45_spill] sm:$0xff]  ;;  %v14947_v0 = vld [vmem:[#allocation46_spill] sm:$0xff] }
 0x97b   :  { %10003 = vmatprep.subr.bf16.mxu0 %v14922_v40  ;;  %10044 = vmatprep.subr.bf16.mxu1 %v14923_v4  ;;  %v14948_v40 = vld [vmem:[#allocation47_spill] sm:$0xff]  ;;  %v14949_v4 = vld [vmem:[#allocation48_spill] sm:$0xff] }
 0x97e   :  { %10004 = vmatpush1.bf16.msra.mxu0 %v14924_v31  ;;  %10045 = vmatpush1.bf16.msra.mxu1 %v14925_v39  ;;  %v14950_v31 = vld [vmem:[#allocation49_spill] sm:$0xff]  ;;  %v14951_v39 = vld [vmem:[#allocation50_spill] sm:$0xff] }
 0x97f   :  { %10005 = vmatprep.subr.bf16.mxu0 %v14926_v59  ;;  %10046 = vmatprep.subr.bf16.mxu1 %v14927_v30  ;;  %v14952_v59 = vld [vmem:[#allocation51_spill] sm:$0xff]  ;;  %v14953_v30 = vld [vmem:[#allocation52_spill] sm:$0xff] }
 0x982   :  { %10006 = vmatpush1.bf16.msra.mxu0 %v14928_v35  ;;  %10047 = vmatpush1.bf16.msra.mxu1 %v14929_v3  ;;  %v14954_v35 = vld [vmem:[#allocation53_spill] sm:$0xff]  ;;  %v14955_v3 = vld [vmem:[#allocation54_spill] sm:$0xff] }
 0x983   :  { %10007 = vmatprep.subr.bf16.mxu0 %v14930_v8  ;;  %10048 = vmatprep.subr.bf16.mxu1 %v14931_v50  ;;  %v14956_v8 = vld [vmem:[#allocation55_spill] sm:$0xff]  ;;  %v14957_v50 = vld [vmem:[#allocation56_spill] sm:$0xff] }
 0x986   :  { %10008 = vmatpush1.bf16.msra.mxu0 %v14932_v16  ;;  %10049 = vmatpush1.bf16.msra.mxu1 %v14933_v43  ;;  %v14958_v16 = vld [vmem:[#allocation57_spill] sm:$0xff]  ;;  %v14959_v43 = vld [vmem:[#allocation58_spill] sm:$0xff] }
 0x987   :  { %10009 = vmatprep.subr.bf16.mxu0 %v14934_v37  ;;  %10050 = vmatprep.subr.bf16.mxu1 %v14935_v21  ;;  %v14960_v37 = vld [vmem:[#allocation59_spill] sm:$0xff]  ;;  %v14961_v21 = vld [vmem:[#allocation60_spill] sm:$0xff] }
 0x98a   :  { %10010 = vmatpush1.bf16.msra.mxu0 %v14936_v63  ;;  %10051 = vmatpush1.bf16.msra.mxu1 %v14937_v55  ;;  %v14962_v63 = vld [vmem:[#allocation61_spill] sm:$0xff]  ;;  %v14963_v55 = vld [vmem:[#allocation62_spill] sm:$0xff] }
 0x98b   :  { %10011 = vmatprep.subr.bf16.mxu0 %v14938_v17  ;;  %10052 = vmatprep.subr.bf16.mxu1 %v14939_v20  ;;  %v14964_v17 = vld [vmem:[#allocation63_spill] sm:$0xff]  ;;  %v14965_v20 = vld [vmem:[#allocation64_spill] sm:$0xff] }
 0x98e   :  { %10012 = vmatpush1.bf16.msra.mxu0 %v14940_v32  ;;  %10053 = vmatpush1.bf16.msra.mxu1 %v14941_v57  ;;  %v14129_v32 = vld [vmem:[#allocation8 + $0x10] sm:$0xff] }
 0x98f   :  { %10013 = vmatprep.subr.bf16.mxu0 %v14942_v9  ;;  %10054 = vmatprep.subr.bf16.mxu1 %v14943_v24  ;;  %v14131_v57 = vld [vmem:[#allocation8 + $0x30] sm:$0xff]  ;;  %v14133_v9 = vld [vmem:[#allocation8 + $0x18] sm:$0xff] }
 0x990   :  { %v11589_v24 = vcombine.high %v14129_v32, %v14131_v57 }
 0x992   :  { %10014 = vmatpush1.bf16.msra.mxu0 %v14944_v36  ;;  %10055 = vmatpush1.bf16.msra.mxu1 %v14945_v42  ;;  %v14137_v36 = vld [vmem:[#allocation8 + $0x38] sm:$0xff] }
 0x993   :  { %10015 = vmatprep.subr.bf16.mxu0 %v14946_v46  ;;  %10056 = vmatprep.subr.bf16.mxu1 %v14947_v0  ;;  %v11591_v0 = vcombine.high %v14133_v9, %v14137_v36 }
 0x996   :  { %10016 = vmatpush1.bf16.msra.mxu0 %v14948_v40  ;;  %10057 = vmatpush1.bf16.msra.mxu1 %v14949_v4 }
 0x997   :  { %10017 = vmatprep.subr.bf16.mxu0 %v14950_v31  ;;  %10058 = vmatprep.subr.bf16.mxu1 %v14951_v39 }
 0x99a   :  { %10018 = vmatpush1.bf16.msra.mxu0 %v14952_v59  ;;  %10059 = vmatpush1.bf16.msra.mxu1 %v14953_v30 }
 0x99b   :  { %10019 = vmatprep.subr.bf16.mxu0 %v14954_v35  ;;  %10060 = vmatprep.subr.bf16.mxu1 %v14955_v3 }
 0x99e   :  { %10020 = vmatpush1.bf16.msra.mxu0 %v14956_v8  ;;  %10061 = vmatpush1.bf16.msra.mxu1 %v14957_v50 }
 0x99f   :  { %10021 = vmatprep.subr.bf16.mxu0 %v14958_v16  ;;  %10062 = vmatprep.subr.bf16.mxu1 %v14959_v43 }
 0x9a2   :  { %10022 = vmatpush1.bf16.msra.mxu0 %v14960_v37  ;;  %10063 = vmatpush1.bf16.msra.mxu1 %v14961_v21 }
 0x9a3   :  { %10023 = vmatprep.subr.bf16.mxu0 %v14962_v63  ;;  %10064 = vmatprep.subr.bf16.mxu1 %v14963_v55 }
 0x9a6   :  { %10024 = vmatpush1.bf16.msra.mxu0 %v14964_v17  ;;  %10065 = vmatpush1.bf16.msra.mxu1 %v14965_v20 }
 0x9a7   :  { %10075 = vmatprep.subr.bf16.mxu0 %v11589_v24  ;;  %10116 = vmatprep.subr.bf16.mxu1 %v11591_v0 }
 0x9fc   :  { %v8997_v40 = vpop.f32.mrb[64].mxu0  ;;  %v9038_v4 = vpop.f32.mrb[64].mxu1 }
 0x9fd   :  { %v8999_v31 = vpop.f32.mrb[65].mxu0  ;;  %v9040_v39 = vpop.f32.mrb[65].mxu1 }
 0x9fe   :  { %v9135_v59 = vcombine.low %v8997_v40, %v8999_v31  ;;  %v9136_v30 = vcombine.low %v9038_v4, %v9040_v39  ;;  %v9001_v35 = vpop.f32.mrb[66].mxu0  ;;  %v9042_v3 = vpop.f32.mrb[66].mxu1 }
 0x9ff   :  { %v9002_v8 = vpop.f32.mrb[67].mxu0  ;;  %v9043_v50 = vpop.f32.mrb[67].mxu1  ;;  %v8193_v35 = vld [vmem:[#allocation2 + $0x6] ss:$8 sm:$0xf0] }
 0xa00   :  { %v9145_v16 = vrot.slane %v9135_v59, %v12477_v28  ;;  %v9152_v43 = vrot.slane %v9136_v30, %v12477_v28  ;;  %v8192_v3 = vld [vmem:[#allocation2 + $0x6] ss:$8 sm:$0xf] }
 0xa01   :  { %v8194_v8 = vor.u32 %v8193_v35, %v8192_v3  ;;  %v9239_v3 = vld [vmem:[#allocation8 + $0x70] sm:$0xff] }
 0xa02   :  { %v9167_v37 = vcombine.low %v9145_v16, %v9152_v43 }
 0xa04   :  { %v9175_v59 = vrot.slane %v9167_v37, %v12477_v28 }
 0xa3c   :  { %v9079_v21 = vpop.f32.mrb[68].mxu0  ;;  %v9120_v63 = vpop.f32.mrb[68].mxu1 }
 0xa3d   :  { %v9081_v55 = vpop.f32.mrb[69].mxu0  ;;  %v9122_v17 = vpop.f32.mrb[69].mxu1 }
 0xa3e   :  { %v9137_v20 = vcombine.low %v9079_v21, %v9081_v55  ;;  %v9138_v24 = vcombine.low %v9120_v63, %v9122_v17  ;;  %v9083_v0 = vpop.f32.mrb[70].mxu0  ;;  %v9124_v46 = vpop.f32.mrb[70].mxu1 }
 0xa3f   :  { %v9084_v42 = vpop.f32.mrb[71].mxu0  ;;  %v9125_v40 = vpop.f32.mrb[71].mxu1 }
 0xa40   :  { %v9159_v4 = vrot.slane %v9137_v20, %v12477_v28  ;;  %v9166_v31 = vrot.slane %v9138_v24, %v12477_v28 }
 0xa42   :  { %v9168_v39 = vcombine.low %v9159_v4, %v9166_v31 }
 0xa44   :  { %v9182_v30 = vrot.slane %v9168_v39, %v12477_v28 }
 0xa46   :  { %v9183_v50 = vcombine.low %v9175_v59, %v9182_v30  ;;  %v9235_v30 = vld [vmem:[#allocation8 + $0x50] sm:$0xff] }
 0xa48   :  { %v9185_v16 = vadd.f32 %v9183_v50, %v8194_v8  ;;  %v9240_v8 = vld [vmem:[#allocation8 + $0x78] sm:$0xff] }
 0xa4a   :  { %11802 = vtanh.f32 %v9185_v16 }
 0xa54   :  { %v11803_v43 = vpop.eup %11802 }
 0xa55   :  { %v9187_v21 = vmul.f32 0.5, %v11803_v43  ;;  %v9190_v46 = vrot.slane %v11803_v43, 2  ;;  %v9199_v17 = vrot.slane %v11803_v43, 4  ;;  %v9194_v37 = vrot.slane %v11803_v43, 6 }
 0xa56   :  { %v11597_v43 = vcombine.high %v9235_v30, %v9239_v3 }
 0xa57   :  { %v9188_v42 = vadd.f32 0.5, %v9187_v21  ;;  %v9192_v63 = vmul.f32 0.5, %v9190_v46  ;;  %v9196_v40 = vmul.f32 0.5, %v9194_v37  ;;  %v9243_v21 = vld [vmem:[#allocation8 + $0x90] sm:$0xff] }
 0xa59   :  { %v9193_v55 = vadd.f32 0.5, %v9192_v63  ;;  %v9201_v24 = vmul.f32 %v9199_v17, %v9188_v42  ;;  %v9197_v4 = vadd.f32 0.5, %v9196_v40  ;;  %v9247_v42 = vld [vmem:[#allocation8 + $0xb0] sm:$0xff]  ;;  %v9244_v63 = vld [vmem:[#allocation8 + $0x98] sm:$0xff]  ;;  %v11596_v17 = vcombine.low %v9235_v30, %v9239_v3 }
 0xa5a   :  { %v9251_v40 = vld [vmem:[#allocation8 + $0xd0] sm:$0xff]  ;;  %v9260_v30 = vld [vmem:[#allocation8 + $0x118] sm:$0xff] }
 0xa5b   :  { %v9198_v20 = vmul.f32 %v9193_v55, %v13910_v26  ;;  %v9236_v26 = vld [vmem:[#allocation8 + $0x58] sm:$0xff]  ;;  %v14967_v55 = vcombine.low %v14133_v9, %v14137_v36 }
 0xa5c   :  { %v11599_v46 = vcombine.high %v9236_v26, %v9240_v8  ;;  %v9264_v3 = vld [vmem:[#allocation8 + $0x138] sm:$0xff] }
 0xa5d   :  { %v14152_v0 = vadd.f32 %v9201_v24, %v9198_v20  ;;  %v11598_v20 = vcombine.low %v9236_v26, %v9240_v8  ;;  %v11605_v24 = vcombine.high %v9243_v21, %v9247_v42 }
 0xa5f   :  { %11804 = vtanh.f32 %v14152_v0 }
 0xa69   :  { %v11805_v31 = vpop.eup %11804 }
 0xa6a   :  { %v9204_v39 = vmul.f32 %v11805_v31, %v9197_v4  ;;  %v9255_v4 = vld [vmem:[#allocation8 + $0xf0] sm:$0xff]  ;;  %v9252_v31 = vld [vmem:[#allocation8 + $0xd8] sm:$0xff] }
 0xa6b   :  { %v11613_v9 = vcombine.high %v9251_v40, %v9255_v4  ;;  %v11612_v26 = vcombine.low %v9251_v40, %v9255_v4 }
 0xa6c   :  { %v9213_v35 = vrot.slane %v9204_v39, %v12394_v27  ;;  %9219 = vst.msk [vmem:[#allocation3 + $0x6] ss:$8 sm:$0x3] %vm12489_vm0, %v9204_v39  ;;  %v9209_v59 = vrot.slane %v9204_v39, %v12383_v19  ;;  %v9248_v27 = vld [vmem:[#allocation8 + $0xb8] sm:$0xff]  ;;  %v14966_v19 = vcombine.low %v14129_v32, %v14131_v57  ;;  %v11604_v32 = vcombine.low %v9243_v21, %v9247_v42 }
 0xa6d   :  { %v11607_v37 = vcombine.high %v9244_v63, %v9248_v27  ;;  %v9256_v39 = vld [vmem:[#allocation8 + $0xf8] sm:$0xff]  ;;  %v11606_v57 = vcombine.low %v9244_v63, %v9248_v27  ;;  %v11622_v27 = vcombine.low %v9260_v30, %v9264_v3 }
 0xa6e   :  { %v9217_v50 = vpack.c.bf16 %v9213_v35, %v9213_v35  ;;  %v14159_v16 = vpack.c.bf16 %v9209_v59, %v9209_v59  ;;  %v11615_v36 = vcombine.high %v9252_v31, %v9256_v39  ;;  %v9259_v35 = vld [vmem:[#allocation8 + $0x110] sm:$0xff]  ;;  %v11614_v8 = vcombine.low %v9252_v31, %v9256_v39  ;;  %v9268_v21 = vld [vmem:[#allocation8 + $0x158] sm:$0xff] }
 0xa6f   :  { %v9263_v59 = vld [vmem:[#allocation8 + $0x130] sm:$0xff]  ;;  %v9272_v42 = vld [vmem:[#allocation8 + $0x178] sm:$0xff] }
 0xa70   :  { %10025 = vmatprep.mubr.bf16.mxu0 %v9217_v50  ;;  %10066 = vmatprep.mubr.bf16.mxu1 %v9217_v50  ;;  %v11620_v63 = vcombine.low %v9259_v35, %v9263_v59 }
 0xa71   :  { %10026 = vmatmul.mubr.bf16.vlgmr.msra.gmra.mrb[72].mxu0 %v14159_v16  ;;  %10067 = vmatmul.mubr.bf16.vlgmr.msra.gmra.mrb[72].mxu1 %v14159_v16 }
 0xa72   :  { %10076 = vmatpush1.bf16.msra.mxu0 %v14966_v19  ;;  %10117 = vmatpush1.bf16.msra.mxu1 %v14967_v55  ;;  %v9271_v19 = vld [vmem:[#allocation8 + $0x170] sm:$0xff] }
 0xa73   :  { %10107 = vmatprep.mubr.bf16.mxu0 %v9217_v50  ;;  %10148 = vmatprep.mubr.bf16.mxu1 %v9217_v50  ;;  %v11621_v50 = vcombine.high %v9259_v35, %v9263_v59 }
 0xa74   :  { %10077 = vmatprep.subr.bf16.mxu0 %v11597_v43  ;;  %10118 = vmatprep.subr.bf16.mxu1 %v11599_v46  ;;  %v11623_v43 = vcombine.high %v9260_v30, %v9264_v3  ;;  %v9267_v46 = vld [vmem:[#allocation8 + $0x150] sm:$0xff] }
 0xa75   :  { %v11629_v55 = vcombine.high %v9267_v46, %v9271_v19 }
 0xa76   :  { %10078 = vmatpush1.bf16.msra.mxu0 %v11596_v17  ;;  %10119 = vmatpush1.bf16.msra.mxu1 %v11598_v20  ;;  %v11631_v17 = vcombine.high %v9268_v21, %v9272_v42  ;;  %v11628_v20 = vcombine.low %v9267_v46, %v9271_v19  ;;  %v9222_v19 = vld [vmem:[#allocation2 + $0x7] ss:$8 sm:$0xf] }
 0xa77   :  { %10079 = vmatprep.subr.bf16.mxu0 %v11605_v24  ;;  %10120 = vmatprep.subr.bf16.mxu1 %v11607_v37  ;;  %v11630_v24 = vcombine.low %v9268_v21, %v9272_v42 }
 0xa7a   :  { %10080 = vmatpush1.bf16.msra.mxu0 %v11604_v32  ;;  %10121 = vmatpush1.bf16.msra.mxu1 %v11606_v57 }
 0xa7b   :  { %10081 = vmatprep.subr.bf16.mxu0 %v11613_v9  ;;  %10122 = vmatprep.subr.bf16.mxu1 %v11615_v36 }
 0xa7e   :  { %10082 = vmatpush1.bf16.msra.mxu0 %v11612_v26  ;;  %10123 = vmatpush1.bf16.msra.mxu1 %v11614_v8 }
 0xa7f   :  { %10083 = vmatprep.subr.bf16.mxu0 %v11621_v50  ;;  %10124 = vmatprep.subr.bf16.mxu1 %v11623_v43  ;;  %v9223_v50 = vld [vmem:[#allocation2 + $0x7] ss:$8 sm:$0xf0] }
 0xa80   :  { %v9224_v21 = vor.u32 %v9223_v50, %v9222_v19 }
 0xa82   :  { %10084 = vmatpush1.bf16.msra.mxu0 %v11620_v63  ;;  %10125 = vmatpush1.bf16.msra.mxu1 %v11622_v27 }
 0xa83   :  { %10085 = vmatprep.subr.bf16.mxu0 %v11629_v55  ;;  %10126 = vmatprep.subr.bf16.mxu1 %v11631_v17 }
 0xa86   :  { %10086 = vmatpush1.bf16.msra.mxu0 %v11628_v20  ;;  %10127 = vmatpush1.bf16.msra.mxu1 %v11630_v24 }
 0xa87   :  { %10087 = vmatprep.subr.bf16.mxu0 %v13941_v45  ;;  %10128 = vmatprep.subr.bf16.mxu1 %v13943_v44  ;;  %v14968_v45 = vld [vmem:[#allocation65_spill] sm:$0xff]  ;;  %v14969_v44 = vld [vmem:[#allocation66_spill] sm:$0xff] }
 0xa8a   :  { %10088 = vmatpush1.bf16.msra.mxu0 %v13947_v33  ;;  %10129 = vmatpush1.bf16.msra.mxu1 %v13949_v56  ;;  %v14970_v33 = vld [vmem:[#allocation11_spill] sm:$0xff]  ;;  %v14971_v56 = vld [vmem:[#allocation12_spill] sm:$0xff] }
 0xa8b   :  { %10089 = vmatprep.subr.bf16.mxu0 %v13953_v51  ;;  %10130 = vmatprep.subr.bf16.mxu1 %v13955_v53  ;;  %v14972_v51 = vld [vmem:[#allocation15_spill] sm:$0xff]  ;;  %v14973_v53 = vld [vmem:[#allocation13_spill] sm:$0xff] }
 0xa8e   :  { %10090 = vmatpush1.bf16.msra.mxu0 %v13959_v52  ;;  %10131 = vmatpush1.bf16.msra.mxu1 %v13961_v48  ;;  %v14974_v52 = vld [vmem:[#allocation14_spill] sm:$0xff]  ;;  %v11762_v48 = vld [vmem:[%s14280_s6 + $0x40] sm:$0xff]  }
 0xa8f   :  { %10091 = vmatprep.subr.bf16.mxu0 %v13965_v13  ;;  %10132 = vmatprep.subr.bf16.mxu1 %v13967_v2  ;;  %v11763_v13 = vld [vmem:[%s14280_s6] sm:$0xff]   ;;  %v11764_v2 = vld [vmem:[%s14280_s6 + $0x48] sm:$0xff]  }
 0xa92   :  { %10092 = vmatpush1.bf16.msra.mxu0 %v13971_v54  ;;  %10133 = vmatpush1.bf16.msra.mxu1 %v13973_v7  ;;  %v11765_v54 = vld [vmem:[%s14280_s6 + $0x8] sm:$0xff]   ;;  %v11766_v7 = vld [vmem:[%s14280_s6 + $0x50] sm:$0xff]  }
 0xa93   :  { %10093 = vmatprep.subr.bf16.mxu0 %v13977_v5  ;;  %10134 = vmatprep.subr.bf16.mxu1 %v13979_v61  ;;  %v11767_v5 = vld [vmem:[%s14280_s6 + $0x10] sm:$0xff]   ;;  %v11768_v61 = vld [vmem:[%s14280_s6 + $0x58] sm:$0xff]  }
 0xa96   :  { %10094 = vmatpush1.bf16.msra.mxu0 %v13983_v22  ;;  %10135 = vmatpush1.bf16.msra.mxu1 %v13985_v62  ;;  %v11769_v22 = vld [vmem:[%s14280_s6 + $0x18] sm:$0xff]   ;;  %v11770_v62 = vld [vmem:[%s14280_s6 + $0x60] sm:$0xff]  }
 0xa97   :  { %10095 = vmatprep.subr.bf16.mxu0 %v13989_v38  ;;  %10136 = vmatprep.subr.bf16.mxu1 %v13991_v10  ;;  %v11771_v38 = vld [vmem:[%s14280_s6 + $0x20] sm:$0xff]   ;;  %v11772_v10 = vld [vmem:[%s14280_s6 + $0x68] sm:$0xff]  }
 0xa9a   :  { %10096 = vmatpush1.bf16.msra.mxu0 %v13995_v14  ;;  %10137 = vmatpush1.bf16.msra.mxu1 %v13997_v60  ;;  %v11773_v14 = vld [vmem:[%s14280_s6 + $0x28] sm:$0xff]   ;;  %v11774_v60 = vld [vmem:[%s14280_s6 + $0x70] sm:$0xff]  }
 0xa9b   :  { %10097 = vmatprep.subr.bf16.mxu0 %v14001_v34  ;;  %10138 = vmatprep.subr.bf16.mxu1 %v14968_v45  ;;  %v11775_v34 = vld [vmem:[%s14280_s6 + $0x30] sm:$0xff]  }
 0xa9e   :  { %10098 = vmatpush1.bf16.msra.mxu0 %v14969_v44  ;;  %10139 = vmatpush1.bf16.msra.mxu1 %v14970_v33 }
 0xa9f   :  { %10099 = vmatprep.subr.bf16.mxu0 %v14971_v56  ;;  %10140 = vmatprep.subr.bf16.mxu1 %v14972_v51 }
 0xaa2   :  { %10100 = vmatpush1.bf16.msra.mxu0 %v14019_v29  ;;  %10141 = vmatpush1.bf16.msra.mxu1 %v14021_v18  ;;  %v11776_v29 = vld [vmem:[%s14280_s6 + $0x78] sm:$0xff]  }
 0xaa3   :  { %10101 = vmatprep.subr.bf16.mxu0 %v14025_v1  ;;  %10142 = vmatprep.subr.bf16.mxu1 %v14973_v53  ;;  %v11777_v18 = vld [vmem:[%s14280_s6 + $0x38] sm:$0xff]  }
 0xaa6   :  { %10102 = vmatpush1.bf16.msra.mxu0 %v14974_v52  ;;  %10143 = vmatpush1.bf16.msra.mxu1 %v14033_v15 }
 0xaa7   :  { %10103 = vmatprep.subr.bf16.mxu0 %v14037_v11  ;;  %10144 = vmatprep.subr.bf16.mxu1 %v14039_v47 }
 0xaaa   :  { %10104 = vmatpush1.bf16.msra.mxu0 %v14043_v49  ;;  %10145 = vmatpush1.bf16.msra.mxu1 %v14045_v12 }
 0xaab   :  { %10105 = vmatprep.subr.bf16.mxu0 %v14049_v58  ;;  %10146 = vmatprep.subr.bf16.mxu1 %v14051_v6 }
 0xaae   :  { %10106 = vmatpush1.bf16.msra.mxu0 %v14055_v25  ;;  %10147 = vmatpush1.bf16.msra.mxu1 %v14057_v23 }
 0xaaf   :  { %11729 = vmatprep.subr.bf16.mxu0 %v11762_v48 }
 0xab1   :  { %10108 = vmatmul.mubr.bf16.vlgmr.msra.gmra.mrb[76].mxu0 %v14159_v16  ;;  %10149 = vmatmul.mubr.bf16.vlgmr.msra.gmra.mrb[76].mxu1 %v14159_v16 }
 0xab2   :  { %11730 = vmatpush3.bf16.msra.mxu0 %v11763_v13 }
 0xab3   :  { %11731 = vmatprep.subr.bf16.mxu0 %v11764_v2 }
 0xab6   :  { %11732 = vmatpush3.bf16.msra.mxu0 %v11765_v54 }
 0xab7   :  { %11733 = vmatprep.subr.bf16.mxu0 %v11766_v7 }
 0xaba   :  { %11734 = vmatpush3.bf16.msra.mxu0 %v11767_v5 }
 0xabb   :  { %11735 = vmatprep.subr.bf16.mxu0 %v11768_v61 }
 0xabe   :  { %11736 = vmatpush3.bf16.msra.mxu0 %v11769_v22 }
 0xabf   :  { %11737 = vmatprep.subr.bf16.mxu0 %v11770_v62 }
 0xac2   :  { %11738 = vmatpush3.bf16.msra.mxu0 %v11771_v38 }
 0xac3   :  { %11739 = vmatprep.subr.bf16.mxu0 %v11772_v10 }
 0xac6   :  { %11740 = vmatpush3.bf16.msra.mxu0 %v11773_v14 }
 0xac7   :  { %11741 = vmatprep.subr.bf16.mxu0 %v11774_v60 }
 0xaca   :  { %11742 = vmatpush3.bf16.msra.mxu0 %v11775_v34 }
 0xacb   :  { %11743 = vmatprep.subr.bf16.mxu0 %v11776_v29 }
 0xace   :  { %11744 = vmatpush3.bf16.msra.mxu0 %v11777_v18 }
 0xb44   :  { %v10027_v1 = vpop.f32.mrb[72].mxu0  ;;  %v10068_v25 = vpop.f32.mrb[72].mxu1 }
 0xb45   :  { %v10029_v23 = vpop.f32.mrb[73].mxu0  ;;  %v10070_v15 = vpop.f32.mrb[73].mxu1 }
 0xb46   :  { %v10165_v11 = vcombine.low %v10027_v1, %v10029_v23  ;;  %v10166_v47 = vcombine.low %v10068_v25, %v10070_v15  ;;  %v10031_v49 = vpop.f32.mrb[74].mxu0  ;;  %v10072_v12 = vpop.f32.mrb[74].mxu1 }
 0xb47   :  { %v10032_v58 = vpop.f32.mrb[75].mxu0  ;;  %v10073_v6 = vpop.f32.mrb[75].mxu1 }
 0xb48   :  { %v10175_v16 = vrot.slane %v10165_v11, %v12477_v28  ;;  %v10182_v37 = vrot.slane %v10166_v47, %v12477_v28 }
 0xb4a   :  { %v10197_v40 = vcombine.low %v10175_v16, %v10182_v37 }
 0xb4c   :  { %v10205_v43 = vrot.slane %v10197_v40, %v12477_v28 }
 0xb84   :  { %v10109_v4 = vpop.f32.mrb[76].mxu0  ;;  %v10150_v31 = vpop.f32.mrb[76].mxu1 }
 0xb85   :  { %v10111_v39 = vpop.f32.mrb[77].mxu0  ;;  %v10152_v32 = vpop.f32.mrb[77].mxu1 }
 0xb86   :  { %v10167_v57 = vcombine.low %v10109_v4, %v10111_v39  ;;  %v10168_v9 = vcombine.low %v10150_v31, %v10152_v32  ;;  %v10113_v36 = vpop.f32.mrb[78].mxu0  ;;  %v10154_v35 = vpop.f32.mrb[78].mxu1 }
 0xb87   :  { %v10114_v59 = vpop.f32.mrb[79].mxu0  ;;  %v10155_v30 = vpop.f32.mrb[79].mxu1 }
 0xb88   :  { %v10189_v3 = vrot.slane %v10167_v57, %v12477_v28  ;;  %v10196_v26 = vrot.slane %v10168_v9, %v12477_v28 }
 0xb8a   :  { %v10198_v8 = vcombine.low %v10189_v3, %v10196_v26 }
 0xb8c   :  { %v10212_v46 = vrot.slane %v10198_v8, %v12477_v28 }
 0xb8e   :  { %v10213_v42 = vcombine.low %v10205_v43, %v10212_v46 }
 0xb90   :  { %v10215_v63 = vadd.f32 %v10213_v42, %v9224_v21 }
 0xb92   :  { %11806 = vtanh.f32 %v10215_v63 }
 0xb9c   :  { %v11807_v27 = vpop.eup %11806 }
 0xb9d   :  { %v10217_v55 = vmul.f32 0.5, %v11807_v27  ;;  %v10220_v17 = vrot.slane %v11807_v27, 2  ;;  %v10229_v44 = vrot.slane %v11807_v27, 4  ;;  %v10224_v53 = vrot.slane %v11807_v27, 6 }
 0xb9f   :  { %v10218_v20 = vadd.f32 0.5, %v10217_v55  ;;  %v10222_v24 = vmul.f32 0.5, %v10220_v17  ;;  %v10226_v52 = vmul.f32 0.5, %v10224_v53 }
 0xba1   :  { %v10223_v45 = vadd.f32 0.5, %v10222_v24  ;;  %v10231_v56 = vmul.f32 %v10229_v44, %v10218_v20  ;;  %v10227_v28 = vadd.f32 0.5, %v10226_v52 }
 0xba3   :  { %v10228_v33 = vmul.f32 %v10223_v45, %v14152_v0  ;;  %v11712_v0 = vld [vmem:[%s14281_s7] ss:$0 sm:$0xff] }
 0xba5   :  { %v10232_v51 = vadd.f32 %v10231_v56, %v10228_v33 }
 0xba7   :  { %11808 = vtanh.f32 %v10232_v51 }
 0xbb1   :  { %v11809_v48 = vpop.eup %11808 }
 0xbb2   :  { %v10234_v13 = vmul.f32 %v11809_v48, %v10227_v28 }
 0xbb4   :  { %10236 = vst.msk [vmem:[#allocation3 + $0x7] ss:$8 sm:$0x3] %vm12489_vm0, %v10234_v13 }
 0xbbb   :  { %v10239_v2 = vld [vmem:[#allocation3 + $0x8] sm:$0xff]  ;;  %v10238_v54 = vld [vmem:[#allocation3] sm:$0xff] }
 0xbbc   :  { %v10241_v7 = vpack.c.bf16 %v10239_v2, %v10239_v2  ;;  %v10240_v5 = vpack.c.bf16 %v10238_v54, %v10238_v54 }
 0xbbe   :  { %10409 = vmatprep.mubr.bf16.mxu0 %v10241_v7 }
 0xbbf   :  { %10410 = vmatmul.mubr.bf16.vlgmr.msra.gmra.mrb[80].mxu0 %v10240_v5 }
 0xc92   :  { %v11745_v61 = vpop.f32.mrb[80].mxu0 }
 0xc93   :  { %v11746_v22 = vpop.f32.mrb[81].mxu0 }
 0xc94   :  { %v11747_v62 = vadd.f32 %v11746_v22, %v11745_v61  ;;  %v11748_v38 = vpop.f32.mrb[82].mxu0 }
 0xc95   :  { %v11749_v10 = vpop.f32.mrb[83].mxu0 }
 0xc96   :  { %v10412_v14 = vadd.f32 %v11747_v62, %v11712_v0 }
 0xc98   :  { %v10417_v60 = vmul.f32 0.5, %v10412_v14 }
 0xc9a   :  { %11810 = vtanh.f32 %v10417_v60 }
 0xca4   :  { %v11811_v41 = vpop.eup %11810 }
 0xca5   :  { %v10419_v34 = vadd.f32 1.0, %v11811_v41 }
 0xca7   :  { %v10420_v29 = vmul.f32 0.5, %v10419_v34 }
 0xca9   :  { %10421 = vst [vmem:[%s14282_s8] sm:$0xff] %v10420_v29 }
 0xcaa   :  { %10426 = vsyncpa [#allocation5], 1 }
 0xcab   :  { %10427 = vsyncpa [#allocation7], 1 }

</bundles_post_ra>
